<compile_context>
chip_gen: v6e
topology: v6e:2x2x1
jax: 0.10.0
libtpu: 0.0.40
codegen_flags: <defaults>
</compile_context>

<pallas_src>
import functools

import jax
import jax.numpy as jnp
from jax import lax
from jax.experimental import pallas as pl
from jax.experimental.pallas import tpu as pltpu

# ----------------------------- config / dictionaries -----------------------------
OCR_DICT = {'<PAD>': 0, '<END>': 1}
for _i in range(2, 24):
    OCR_DICT[f'c{_i}'] = _i
ENTITY_DICT = {'<PAD>': 0, 'O': 1, 'B-K': 2, 'I-K': 3, 'B-V': 4, 'I-V': 5, 'B-X': 6, 'I-X': 7}

D_MODEL = 32                 # d_model -> bilstm input_size = 2 * d_model
HIDDEN = 32                  # bilstm hidden_size, bidirectional=True
NUM_ENT = len(ENTITY_DICT)   # MLP out_dim
BATCH_PAD = 8                # sublane-aligned padded batch
E_PAD = 128                  # lane-dense logits width


# ----------------- fused kernel: BiLSTM + MLP head + CE loss -----------------
def _kie_fused_kernel(x_ref, wih_ref, bih_ref, whh_ref, wmlp_ref, bmlp_ref, tgt_ref,
                      logits_ref, loss_ref,
                      gx_s, h_s,
                      *, batch_pad, seq_len, hidden, num_ent, ignore_index):
    BP, T, H = batch_pad, seq_len, hidden
    H2, H4, H6, H8 = 2 * H, 4 * H, 6 * H, 8 * H

    # ---- input projection, both directions, all timesteps: one bf16 MXU matmul ----
    # x row-block s already holds [x(s) | x(T-1-s)] and wih is block-diagonal over
    # directions, so gx row-block s directly holds the per-step gate pre-activations for
    # BOTH chains: the time loop does a single contiguous aligned load, no select.
    gx_s[...] = (jnp.dot(x_ref[...], wih_ref[...], preferred_element_type=jnp.float32)
                 + bih_ref[...])

    whh = whh_ref[...]                       # (2H, 8H) bf16, block-diagonal over directions
    # NOTE: whh is loop-invariant; explicit matmul_push_rhs residency is skipped on purpose
    # (MRF/MRB per-chip differences) -- Mosaic may hoist the repeated RHS load.

    def step(s, carry):
        h, c = carry                         # (BP, 2H) f32, packed [fwd | bwd]
        gx_t = gx_s[pl.ds(s * BP, BP), :]    # (BP, 8H): 8-sublane aligned, own tile row
        gates = gx_t + jnp.dot(h.astype(jnp.bfloat16), whh,
                               preferred_element_type=jnp.float32)
        # gate blocks packed [f | i | o | g]; activate only the lanes that need it
        sg = jax.nn.sigmoid(gates[:, 0:H6])          # f, i, o  (contiguous 6H lanes)
        f_g = sg[:, 0:H2]
        i_g = sg[:, H2:H4]
        o_g = sg[:, H4:H6]
        g_g = jnp.tanh(gates[:, H6:H8])              # g gate only (2H lanes)
        c_new = f_g * c + i_g * g_g
        h_new = o_g * jnp.tanh(c_new)
        # fwd half belongs to output time s, bwd half to output time T-1-s
        h_s[pl.ds(s * BP, BP), 0:H] = h_new[:, 0:H]
        h_s[pl.ds((T - 1 - s) * BP, BP), H:H2] = h_new[:, H:H2]
        return h_new, c_new

    zeros = jnp.zeros((BP, H2), jnp.float32)
    lax.fori_loop(0, T, step, (zeros, zeros), unroll=True)

    # ---- MLP head: single stacked (2H, E_pad) weight, lane-dense (128-wide) output ----
    logits = (jnp.dot(h_s[...], wmlp_ref[...], preferred_element_type=jnp.float32)
              + bmlp_ref[...])
    logits_ref[...] = logits                              # unmasked full-lane store

    # ---- CrossEntropyLoss(ignore_index=<PAD>, reduction='mean') over the E valid lanes ----
    tgt = tgt_ref[...]                                    # (T*BP, 1) int32
    col = lax.broadcasted_iota(jnp.int32, logits.shape, 1)
    valid_col = col < num_ent
    z = jnp.where(valid_col, logits, -1e30)
    m = jnp.max(z, axis=-1, keepdims=True)
    e = jnp.where(valid_col, jnp.exp(z - m), 0.0)
    lse = jnp.log(jnp.sum(e, axis=-1, keepdims=True))
    picked = jnp.sum(jnp.where(col == tgt, z - m, 0.0), axis=-1, keepdims=True)
    nll = lse - picked                                    # (T*BP, 1)
    valid_row = (tgt != ignore_index).astype(jnp.float32)
    loss_sum = jnp.sum(nll * valid_row)
    cnt = jnp.sum(valid_row)
    # TODO(synk): PyTorch CE returns NaN when every target is ignored; we return 0 instead.
    loss_ref[0, 0] = loss_sum / jnp.maximum(cnt, 1.0)


# ----------------------------------- wrapper --------------------------------------
def init_params(key):
    ks = jax.random.split(key, 6)
    s = 0.02

    def rnd(k, shape):
        return jax.random.normal(k, shape, jnp.float32) * s

    return {
        'wih_f': rnd(ks[0], (2 * D_MODEL, 4 * HIDDEN)),
        'whh_f': rnd(ks[1], (HIDDEN, 4 * HIDDEN)),
        'b_f': jnp.zeros((1, 4 * HIDDEN), jnp.float32),
        'wih_b': rnd(ks[2], (2 * D_MODEL, 4 * HIDDEN)),
        'whh_b': rnd(ks[3], (HIDDEN, 4 * HIDDEN)),
        'b_b': jnp.zeros((1, 4 * HIDDEN), jnp.float32),
        'wmlp_f': rnd(ks[4], (HIDDEN, NUM_ENT)),
        'wmlp_b': rnd(ks[5], (HIDDEN, NUM_ENT)),
        'b_mlp': jnp.zeros((1, NUM_ENT), jnp.float32),
    }


@jax.jit
def kie_decoder_trie_forward(params, ocr_logits, multi_modal_context, texts, tags):
    """Training-mode forward: returns (scalar CE loss, doc-level KIE logits (B, T, E))."""
    B, N, L = texts.shape
    C = ocr_logits.shape[-1]
    T = N * L
    H = HIDDEN
    E = NUM_ENT
    BP = BATCH_PAD
    EP = E_PAD

    end_id = OCR_DICT['<END>']
    ocr_pad = OCR_DICT['<PAD>']
    ent_pad = ENTITY_DICT['<PAD>']

    # ---- UnionLayer glue: validity mask + padded tags (tiny integer ops, plain JAX) ----
    before_end = jnp.cumsum((texts == end_id).astype(jnp.int32), axis=-1) == 0
    mask = before_end & (texts != ocr_pad)                           # (B, N, L) bool
    new_tags = jnp.where(mask, tags, ent_pad)                        # (B, N, L)

    # ---- feature fusion: concat ocr features with broadcast context, apply mask ----
    ocr = ocr_logits.astype(jnp.float32).reshape(B, N, L, C)
    ctx = jnp.broadcast_to(
        multi_modal_context.astype(jnp.float32)[:, :, None, :], (B, N, L, C))
    fused = jnp.concatenate([ocr, ctx], axis=-1) * mask[..., None].astype(jnp.float32)

    # time-major, batch padded to 8 sublanes so each time step owns its own (8,128) tile
    x_btc = fused.reshape(B, T, 2 * C)
    x_pad = jnp.zeros((BP, T, 2 * C), jnp.float32).at[:B].set(x_btc)
    x_tm = x_pad.transpose(1, 0, 2)                                  # (T, BP, 2C)
    # per-step paired input: row-block s = [x(s) for fwd chain | x(T-1-s) for bwd chain]
    x_pair = jnp.concatenate([x_tm, x_tm[::-1]], axis=-1)            # (T, BP, 4C)
    x_pair = x_pair.reshape(T * BP, 4 * C).astype(jnp.bfloat16)

    tgt_pad = jnp.full((BP, T), ent_pad, jnp.int32).at[:B].set(
        new_tags.reshape(B, T).astype(jnp.int32))
    tgt_tm = tgt_pad.transpose(1, 0).reshape(T * BP, 1)

    # ---- weight packing ----
    # params store gate columns in order [i|f|g|o]; kernel uses [f|i|o|g], each gate block
    # direction-interleaved [fwd(H)|bwd(H)]: sigmoid gates are the contiguous low 6H lanes,
    # the tanh gate is the top 2H lanes, and f/o are lane-offset-0 aligned with c/h carries.
    def pack_gate_cols(wf, wb):
        parts = []
        for g in (1, 0, 3, 2):                                       # f, i, o, g
            parts.append(wf[:, g * H:(g + 1) * H])
            parts.append(wb[:, g * H:(g + 1) * H])
        return jnp.concatenate(parts, axis=1)

    zi_f = jnp.zeros_like(params['wih_f'])
    zi_b = jnp.zeros_like(params['wih_b'])
    wih_big = jnp.concatenate([pack_gate_cols(params['wih_f'], zi_b),    # rows 0:2C  (x fwd)
                               pack_gate_cols(zi_f, params['wih_b'])],   # rows 2C:4C (x bwd)
                              axis=0).astype(jnp.bfloat16)               # (4C, 8H)
    bih = pack_gate_cols(params['b_f'], params['b_b'])                   # (1, 8H) f32
    zh_f = jnp.zeros_like(params['whh_f'])
    zh_b = jnp.zeros_like(params['whh_b'])
    whh_big = jnp.concatenate([pack_gate_cols(params['whh_f'], zh_b),    # rows 0:H  (h fwd)
                               pack_gate_cols(zh_f, params['whh_b'])],   # rows H:2H (h bwd)
                              axis=0).astype(jnp.bfloat16)               # (2H, 8H)

    wmlp = jnp.concatenate([params['wmlp_f'], params['wmlp_b']], axis=0)  # (2H, E)
    wmlp_pad = jnp.zeros((2 * H, EP), jnp.float32).at[:, :E].set(wmlp)
    bmlp_pad = jnp.zeros((1, EP), jnp.float32).at[:, :E].set(params['b_mlp'])

    inputs = [x_pair, wih_big, bih, whh_big, wmlp_pad, bmlp_pad, tgt_tm]

    flops = (2 * (T * BP) * (4 * C) * (8 * H)          # input projection
             + T * 2 * BP * (2 * H) * (8 * H)          # recurrent matmuls
             + 2 * (T * BP) * (2 * H) * EP)            # MLP head
    transcendentals = T * BP * (6 * H + 2 * H + 2 * H) + T * BP * EP
    bytes_accessed = int(sum(a.size * a.dtype.itemsize for a in inputs)
                         + (T * BP * EP + 1) * 4)

    # Single launch, single grid step: whole batch processed inside the kernel.
    # (Latency-bound on the 32-step serial recurrence at this size; on v7x, a leading
    # "parallel" grid axis over 8-row batch chunks would split larger batches across the
    # two TensorCores.)
    logits_pad, loss = pl.pallas_call(
        functools.partial(_kie_fused_kernel, batch_pad=BP, seq_len=T, hidden=H,
                          num_ent=E, ignore_index=ent_pad),
        out_shape=(jax.ShapeDtypeStruct((T * BP, EP), jnp.float32),
                   jax.ShapeDtypeStruct((1, 1), jnp.float32)),
        grid=(1,),
        in_specs=[pl.BlockSpec(a.shape, lambda i: (0, 0)) for a in inputs],
        out_specs=(pl.BlockSpec((T * BP, EP), lambda i: (0, 0)),
                   pl.BlockSpec(memory_space=pltpu.MemorySpace.SMEM)),
        scratch_shapes=[pltpu.VMEM((T * BP, 8 * H), jnp.float32),   # gate pre-activations
                        pltpu.VMEM((T * BP, 2 * H), jnp.float32)],  # merged [h_fwd|h_bwd]
        compiler_params=pltpu.CompilerParams(dimension_semantics=("arbitrary",)),
        cost_estimate=pl.CostEstimate(flops=int(flops),
                                      transcendentals=int(transcendentals),
                                      bytes_accessed=bytes_accessed),
    )(*inputs)

    # back to (B, T, E) for the caller (tiny; XLA fuses)
    logits = logits_pad.reshape(T, BP, EP).transpose(1, 0, 2)[:B, :, :E]
    # TODO(synk): returned logits are not re-masked at PAD positions (loss ignores them).
    return loss[0, 0], logits


# ------------------------------------ main -----------------------------------------
if __name__ == "__main__":
    key = jax.random.PRNGKey(0)
    B, N, L, C = 2, 4, 8, D_MODEL
    k1, k2, k3, k4, k5 = jax.random.split(key, 5)

    ocr_logits = jax.random.normal(k1, (B * N, L, C), jnp.float32)
    multi_modal_context = jax.random.normal(k2, (B, N, C), jnp.float32)

    texts = jax.random.randint(k3, (B, N, L), 2, len(OCR_DICT)).astype(jnp.int32)
    texts = texts.at[:, :, L - 2].set(OCR_DICT['<END>'])
    texts = texts.at[:, :, L - 1].set(OCR_DICT['<PAD>'])
    tags = jax.random.randint(k4, (B, N, L), 1, NUM_ENT).astype(jnp.int32)

    params = init_params(k5)

    loss, kie_logits = kie_decoder_trie_forward(
        params, ocr_logits, multi_modal_context, texts, tags)
    jax.block_until_ready((loss, kie_logits))
    print("KERNEL_OK")
</pallas_src>

<mosaic_0001>
module attributes {stable_mosaic.version = 11 : i64} {
  func.func @_kie_fused_kernel(%arg0: i32, %arg1: memref<256x128xbf16, #tpu.memory_space<vmem>>, %arg2: memref<128x256xbf16, #tpu.memory_space<vmem>>, %arg3: memref<1x256xf32, #tpu.memory_space<vmem>>, %arg4: memref<64x256xbf16, #tpu.memory_space<vmem>>, %arg5: memref<64x128xf32, #tpu.memory_space<vmem>>, %arg6: memref<1x128xf32, #tpu.memory_space<vmem>>, %arg7: memref<256x1xi32, #tpu.memory_space<vmem>>, %arg8: memref<256x128xf32, #tpu.memory_space<vmem>>, %arg9: memref<1x1xf32, #tpu.memory_space<smem>>, %arg10: memref<256x256xf32, #tpu.memory_space<vmem>>, %arg11: memref<256x64xf32, #tpu.memory_space<vmem>>) attributes {dimension_semantics = [#tpu.dimension_semantics<arbitrary>], iteration_bounds = array<i64: 1>, scalar_prefetch = 0 : i64, scratch_operands = 2 : i64, tpu.core_type = #tpu.core_type<tc>, window_params = [{pipeline_mode = #tpu.pipeline_mode<synchronous>, transform_indices = @transform_0, window_bounds = array<i64: 256, 128>}, {pipeline_mode = #tpu.pipeline_mode<synchronous>, transform_indices = @transform_1, window_bounds = array<i64: 128, 256>}, {pipeline_mode = #tpu.pipeline_mode<synchronous>, transform_indices = @transform_2, window_bounds = array<i64: 1, 256>}, {pipeline_mode = #tpu.pipeline_mode<synchronous>, transform_indices = @transform_3, window_bounds = array<i64: 64, 256>}, {pipeline_mode = #tpu.pipeline_mode<synchronous>, transform_indices = @transform_4, window_bounds = array<i64: 64, 128>}, {pipeline_mode = #tpu.pipeline_mode<synchronous>, transform_indices = @transform_5, window_bounds = array<i64: 1, 128>}, {pipeline_mode = #tpu.pipeline_mode<synchronous>, transform_indices = @transform_6, window_bounds = array<i64: 256, 1>}, {pipeline_mode = #tpu.pipeline_mode<synchronous>, transform_indices = @transform_7, window_bounds = array<i64: 256, 128>}, {transform_indices = @transform_8, window_bounds = array<i64: 1, 1>}]} {
    %c0 = arith.constant 0 : index
    %c0_0 = arith.constant 0 : index
    %0 = vector.load %arg1[%c0, %c0_0] : memref<256x128xbf16, #tpu.memory_space<vmem>>, vector<256x128xbf16>
    %c0_1 = arith.constant 0 : index
    %c0_2 = arith.constant 0 : index
    %1 = vector.load %arg2[%c0_1, %c0_2] : memref<128x256xbf16, #tpu.memory_space<vmem>>, vector<128x256xbf16>
    %cst = arith.constant dense<0.000000e+00> : vector<256x256xf32>
    %2 = tpu.matmul %0, %1, %cst {dimension_numbers = #tpu.dot_dimension_numbers<[1], [0], [0], [1], [0, 0, 1, 1], [], []>} : vector<256x128xbf16>, vector<128x256xbf16>, vector<256x256xf32> -> vector<256x256xf32>
    %c0_3 = arith.constant 0 : index
    %c0_4 = arith.constant 0 : index
    %3 = vector.load %arg3[%c0_3, %c0_4] : memref<1x256xf32, #tpu.memory_space<vmem>>, vector<1x256xf32>
    %4 = vector.broadcast %3 : vector<1x256xf32> to vector<256x256xf32>
    %5 = arith.addf %2, %4 : vector<256x256xf32>
    %c0_5 = arith.constant 0 : index
    %c0_6 = arith.constant 0 : index
    %6 = vector.load %arg10[%c0_5, %c0_6] : memref<256x256xf32, #tpu.memory_space<vmem>>, vector<256x256xf32>
    tpu.vector_store %arg10[%c0_5, %c0_6], %5 {strides = array<i32>} : memref<256x256xf32, #tpu.memory_space<vmem>>, vector<256x256xf32>,
    %c0_7 = arith.constant 0 : index
    %c0_8 = arith.constant 0 : index
    %7 = vector.load %arg4[%c0_7, %c0_8] : memref<64x256xbf16, #tpu.memory_space<vmem>>, vector<64x256xbf16>
    %cst_9 = arith.constant 0.000000e+00 : f32
    %8 = vector.broadcast %cst_9 : f32 to vector<8x64xf32>
    %c0_i32 = arith.constant 0 : i32
    %c8_i32 = arith.constant 8 : i32
    %9 = arith.muli %c0_i32, %c8_i32 : i32
    %10 = arith.index_cast %9 : i32 to index
    %c0_10 = arith.constant 0 : index
    %11 = vector.load %arg10[%10, %c0_10] : memref<256x256xf32, #tpu.memory_space<vmem>>, vector<8x256xf32>
    %12 = arith.truncf %8 : vector<8x64xf32> to vector<8x64xbf16>
    %cst_11 = arith.constant dense<0.000000e+00> : vector<8x256xf32>
    %13 = tpu.matmul %12, %7, %cst_11 {dimension_numbers = #tpu.dot_dimension_numbers<[1], [0], [0], [1], [0, 0, 1, 1], [], []>} : vector<8x64xbf16>, vector<64x256xbf16>, vector<8x256xf32> -> vector<8x256xf32>
    %14 = arith.addf %11, %13 : vector<8x256xf32>
    %15 = vector.extract_strided_slice %14 {offsets = [0, 0], sizes = [8, 192], strides = [1, 1]} : vector<8x256xf32> to vector<8x192xf32>
    %16 = arith.negf %15 : vector<8x192xf32>
    %17 = math.exp %16 : vector<8x192xf32>
    %cst_12 = arith.constant 1.000000e+00 : f32
    %18 = vector.broadcast %cst_12 : f32 to vector<8x192xf32>
    %19 = arith.addf %18, %17 : vector<8x192xf32>
    %20 = arith.divf %18, %19 : vector<8x192xf32>
    %21 = vector.extract_strided_slice %20 {offsets = [0, 0], sizes = [8, 64], strides = [1, 1]} : vector<8x192xf32> to vector<8x64xf32>
    %22 = vector.extract_strided_slice %20 {offsets = [0, 64], sizes = [8, 64], strides = [1, 1]} : vector<8x192xf32> to vector<8x64xf32>
    %23 = vector.extract_strided_slice %20 {offsets = [0, 128], sizes = [8, 64], strides = [1, 1]} : vector<8x192xf32> to vector<8x64xf32>
    %24 = vector.extract_strided_slice %14 {offsets = [0, 192], sizes = [8, 64], strides = [1, 1]} : vector<8x256xf32> to vector<8x64xf32>
    %25 = math.tanh %24 : vector<8x64xf32>
    %26 = arith.mulf %21, %8 : vector<8x64xf32>
    %27 = arith.mulf %22, %25 : vector<8x64xf32>
    %28 = arith.addf %26, %27 : vector<8x64xf32>
    %29 = math.tanh %28 : vector<8x64xf32>
    %30 = arith.mulf %23, %29 : vector<8x64xf32>
    %31 = vector.extract_strided_slice %30 {offsets = [0, 0], sizes = [8, 32], strides = [1, 1]} : vector<8x64xf32> to vector<8x32xf32>
    %c8_i32_13 = arith.constant 8 : i32
    %32 = arith.muli %c0_i32, %c8_i32_13 : i32
    %33 = arith.index_cast %32 : i32 to index
    %c0_14 = arith.constant 0 : index
    %34 = vector.load %arg11[%33, %c0_14] : memref<256x64xf32, #tpu.memory_space<vmem>>, vector<8x32xf32>
    tpu.vector_store %arg11[%33, %c0_14], %31 {strides = array<i32>} : memref<256x64xf32, #tpu.memory_space<vmem>>, vector<8x32xf32>,
    %35 = vector.extract_strided_slice %30 {offsets = [0, 32], sizes = [8, 32], strides = [1, 1]} : vector<8x64xf32> to vector<8x32xf32>
    %c31_i32 = arith.constant 31 : i32
    %36 = arith.subi %c31_i32, %c0_i32 : i32
    %c8_i32_15 = arith.constant 8 : i32
    %37 = arith.muli %36, %c8_i32_15 : i32
    %38 = arith.index_cast %37 : i32 to index
    %c32 = arith.constant 32 : index
    %39 = vector.load %arg11[%38, %c32] : memref<256x64xf32, #tpu.memory_space<vmem>>, vector<8x32xf32>
    tpu.vector_store %arg11[%38, %c32], %35 {strides = array<i32>} : memref<256x64xf32, #tpu.memory_space<vmem>>, vector<8x32xf32>,
    %c1_i32 = arith.constant 1 : i32
    %c8_i32_16 = arith.constant 8 : i32
    %40 = arith.muli %c1_i32, %c8_i32_16 : i32
    %41 = arith.index_cast %40 : i32 to index
    %c0_17 = arith.constant 0 : index
    %42 = vector.load %arg10[%41, %c0_17] : memref<256x256xf32, #tpu.memory_space<vmem>>, vector<8x256xf32>
    %43 = arith.truncf %30 : vector<8x64xf32> to vector<8x64xbf16>
    %cst_18 = arith.constant dense<0.000000e+00> : vector<8x256xf32>
    %44 = tpu.matmul %43, %7, %cst_18 {dimension_numbers = #tpu.dot_dimension_numbers<[1], [0], [0], [1], [0, 0, 1, 1], [], []>} : vector<8x64xbf16>, vector<64x256xbf16>, vector<8x256xf32> -> vector<8x256xf32>
    %45 = arith.addf %42, %44 : vector<8x256xf32>
    %46 = vector.extract_strided_slice %45 {offsets = [0, 0], sizes = [8, 192], strides = [1, 1]} : vector<8x256xf32> to vector<8x192xf32>
    %47 = arith.negf %46 : vector<8x192xf32>
    %48 = math.exp %47 : vector<8x192xf32>
    %cst_19 = arith.constant 1.000000e+00 : f32
    %49 = vector.broadcast %cst_19 : f32 to vector<8x192xf32>
    %50 = arith.addf %49, %48 : vector<8x192xf32>
    %51 = arith.divf %49, %50 : vector<8x192xf32>
    %52 = vector.extract_strided_slice %51 {offsets = [0, 0], sizes = [8, 64], strides = [1, 1]} : vector<8x192xf32> to vector<8x64xf32>
    %53 = vector.extract_strided_slice %51 {offsets = [0, 64], sizes = [8, 64], strides = [1, 1]} : vector<8x192xf32> to vector<8x64xf32>
    %54 = vector.extract_strided_slice %51 {offsets = [0, 128], sizes = [8, 64], strides = [1, 1]} : vector<8x192xf32> to vector<8x64xf32>
    %55 = vector.extract_strided_slice %45 {offsets = [0, 192], sizes = [8, 64], strides = [1, 1]} : vector<8x256xf32> to vector<8x64xf32>
    %56 = math.tanh %55 : vector<8x64xf32>
    %57 = arith.mulf %52, %28 : vector<8x64xf32>
    %58 = arith.mulf %53, %56 : vector<8x64xf32>
    %59 = arith.addf %57, %58 : vector<8x64xf32>
    %60 = math.tanh %59 : vector<8x64xf32>
    %61 = arith.mulf %54, %60 : vector<8x64xf32>
    %62 = vector.extract_strided_slice %61 {offsets = [0, 0], sizes = [8, 32], strides = [1, 1]} : vector<8x64xf32> to vector<8x32xf32>
    %c8_i32_20 = arith.constant 8 : i32
    %63 = arith.muli %c1_i32, %c8_i32_20 : i32
    %64 = arith.index_cast %63 : i32 to index
    %c0_21 = arith.constant 0 : index
    %65 = vector.load %arg11[%64, %c0_21] : memref<256x64xf32, #tpu.memory_space<vmem>>, vector<8x32xf32>
    tpu.vector_store %arg11[%64, %c0_21], %62 {strides = array<i32>} : memref<256x64xf32, #tpu.memory_space<vmem>>, vector<8x32xf32>,
    %66 = vector.extract_strided_slice %61 {offsets = [0, 32], sizes = [8, 32], strides = [1, 1]} : vector<8x64xf32> to vector<8x32xf32>
    %c31_i32_22 = arith.constant 31 : i32
    %67 = arith.subi %c31_i32_22, %c1_i32 : i32
    %c8_i32_23 = arith.constant 8 : i32
    %68 = arith.muli %67, %c8_i32_23 : i32
    %69 = arith.index_cast %68 : i32 to index
    %c32_24 = arith.constant 32 : index
    %70 = vector.load %arg11[%69, %c32_24] : memref<256x64xf32, #tpu.memory_space<vmem>>, vector<8x32xf32>
    tpu.vector_store %arg11[%69, %c32_24], %66 {strides = array<i32>} : memref<256x64xf32, #tpu.memory_space<vmem>>, vector<8x32xf32>,
    %c2_i32 = arith.constant 2 : i32
    %c8_i32_25 = arith.constant 8 : i32
    %71 = arith.muli %c2_i32, %c8_i32_25 : i32
    %72 = arith.index_cast %71 : i32 to index
    %c0_26 = arith.constant 0 : index
    %73 = vector.load %arg10[%72, %c0_26] : memref<256x256xf32, #tpu.memory_space<vmem>>, vector<8x256xf32>
    %74 = arith.truncf %61 : vector<8x64xf32> to vector<8x64xbf16>
    %cst_27 = arith.constant dense<0.000000e+00> : vector<8x256xf32>
    %75 = tpu.matmul %74, %7, %cst_27 {dimension_numbers = #tpu.dot_dimension_numbers<[1], [0], [0], [1], [0, 0, 1, 1], [], []>} : vector<8x64xbf16>, vector<64x256xbf16>, vector<8x256xf32> -> vector<8x256xf32>
    %76 = arith.addf %73, %75 : vector<8x256xf32>
    %77 = vector.extract_strided_slice %76 {offsets = [0, 0], sizes = [8, 192], strides = [1, 1]} : vector<8x256xf32> to vector<8x192xf32>
    %78 = arith.negf %77 : vector<8x192xf32>
    %79 = math.exp %78 : vector<8x192xf32>
    %cst_28 = arith.constant 1.000000e+00 : f32
    %80 = vector.broadcast %cst_28 : f32 to vector<8x192xf32>
    %81 = arith.addf %80, %79 : vector<8x192xf32>
    %82 = arith.divf %80, %81 : vector<8x192xf32>
    %83 = vector.extract_strided_slice %82 {offsets = [0, 0], sizes = [8, 64], strides = [1, 1]} : vector<8x192xf32> to vector<8x64xf32>
    %84 = vector.extract_strided_slice %82 {offsets = [0, 64], sizes = [8, 64], strides = [1, 1]} : vector<8x192xf32> to vector<8x64xf32>
    %85 = vector.extract_strided_slice %82 {offsets = [0, 128], sizes = [8, 64], strides = [1, 1]} : vector<8x192xf32> to vector<8x64xf32>
    %86 = vector.extract_strided_slice %76 {offsets = [0, 192], sizes = [8, 64], strides = [1, 1]} : vector<8x256xf32> to vector<8x64xf32>
    %87 = math.tanh %86 : vector<8x64xf32>
    %88 = arith.mulf %83, %59 : vector<8x64xf32>
    %89 = arith.mulf %84, %87 : vector<8x64xf32>
    %90 = arith.addf %88, %89 : vector<8x64xf32>
    %91 = math.tanh %90 : vector<8x64xf32>
    %92 = arith.mulf %85, %91 : vector<8x64xf32>
    %93 = vector.extract_strided_slice %92 {offsets = [0, 0], sizes = [8, 32], strides = [1, 1]} : vector<8x64xf32> to vector<8x32xf32>
    %c8_i32_29 = arith.constant 8 : i32
    %94 = arith.muli %c2_i32, %c8_i32_29 : i32
    %95 = arith.index_cast %94 : i32 to index
    %c0_30 = arith.constant 0 : index
    %96 = vector.load %arg11[%95, %c0_30] : memref<256x64xf32, #tpu.memory_space<vmem>>, vector<8x32xf32>
    tpu.vector_store %arg11[%95, %c0_30], %93 {strides = array<i32>} : memref<256x64xf32, #tpu.memory_space<vmem>>, vector<8x32xf32>,
    %97 = vector.extract_strided_slice %92 {offsets = [0, 32], sizes = [8, 32], strides = [1, 1]} : vector<8x64xf32> to vector<8x32xf32>
    %c31_i32_31 = arith.constant 31 : i32
    %98 = arith.subi %c31_i32_31, %c2_i32 : i32
    %c8_i32_32 = arith.constant 8 : i32
    %99 = arith.muli %98, %c8_i32_32 : i32
    %100 = arith.index_cast %99 : i32 to index
    %c32_33 = arith.constant 32 : index
    %101 = vector.load %arg11[%100, %c32_33] : memref<256x64xf32, #tpu.memory_space<vmem>>, vector<8x32xf32>
    tpu.vector_store %arg11[%100, %c32_33], %97 {strides = array<i32>} : memref<256x64xf32, #tpu.memory_space<vmem>>, vector<8x32xf32>,
    %c3_i32 = arith.constant 3 : i32
    %c8_i32_34 = arith.constant 8 : i32
    %102 = arith.muli %c3_i32, %c8_i32_34 : i32
    %103 = arith.index_cast %102 : i32 to index
    %c0_35 = arith.constant 0 : index
    %104 = vector.load %arg10[%103, %c0_35] : memref<256x256xf32, #tpu.memory_space<vmem>>, vector<8x256xf32>
    %105 = arith.truncf %92 : vector<8x64xf32> to vector<8x64xbf16>
    %cst_36 = arith.constant dense<0.000000e+00> : vector<8x256xf32>
    %106 = tpu.matmul %105, %7, %cst_36 {dimension_numbers = #tpu.dot_dimension_numbers<[1], [0], [0], [1], [0, 0, 1, 1], [], []>} : vector<8x64xbf16>, vector<64x256xbf16>, vector<8x256xf32> -> vector<8x256xf32>
    %107 = arith.addf %104, %106 : vector<8x256xf32>
    %108 = vector.extract_strided_slice %107 {offsets = [0, 0], sizes = [8, 192], strides = [1, 1]} : vector<8x256xf32> to vector<8x192xf32>
    %109 = arith.negf %108 : vector<8x192xf32>
    %110 = math.exp %109 : vector<8x192xf32>
    %cst_37 = arith.constant 1.000000e+00 : f32
    %111 = vector.broadcast %cst_37 : f32 to vector<8x192xf32>
    %112 = arith.addf %111, %110 : vector<8x192xf32>
    %113 = arith.divf %111, %112 : vector<8x192xf32>
    %114 = vector.extract_strided_slice %113 {offsets = [0, 0], sizes = [8, 64], strides = [1, 1]} : vector<8x192xf32> to vector<8x64xf32>
    %115 = vector.extract_strided_slice %113 {offsets = [0, 64], sizes = [8, 64], strides = [1, 1]} : vector<8x192xf32> to vector<8x64xf32>
    %116 = vector.extract_strided_slice %113 {offsets = [0, 128], sizes = [8, 64], strides = [1, 1]} : vector<8x192xf32> to vector<8x64xf32>
    %117 = vector.extract_strided_slice %107 {offsets = [0, 192], sizes = [8, 64], strides = [1, 1]} : vector<8x256xf32> to vector<8x64xf32>
    %118 = math.tanh %117 : vector<8x64xf32>
    %119 = arith.mulf %114, %90 : vector<8x64xf32>
    %120 = arith.mulf %115, %118 : vector<8x64xf32>
    %121 = arith.addf %119, %120 : vector<8x64xf32>
    %122 = math.tanh %121 : vector<8x64xf32>
    %123 = arith.mulf %116, %122 : vector<8x64xf32>
    %124 = vector.extract_strided_slice %123 {offsets = [0, 0], sizes = [8, 32], strides = [1, 1]} : vector<8x64xf32> to vector<8x32xf32>
    %c8_i32_38 = arith.constant 8 : i32
    %125 = arith.muli %c3_i32, %c8_i32_38 : i32
    %126 = arith.index_cast %125 : i32 to index
    %c0_39 = arith.constant 0 : index
    %127 = vector.load %arg11[%126, %c0_39] : memref<256x64xf32, #tpu.memory_space<vmem>>, vector<8x32xf32>
    tpu.vector_store %arg11[%126, %c0_39], %124 {strides = array<i32>} : memref<256x64xf32, #tpu.memory_space<vmem>>, vector<8x32xf32>,
    %128 = vector.extract_strided_slice %123 {offsets = [0, 32], sizes = [8, 32], strides = [1, 1]} : vector<8x64xf32> to vector<8x32xf32>
    %c31_i32_40 = arith.constant 31 : i32
    %129 = arith.subi %c31_i32_40, %c3_i32 : i32
    %c8_i32_41 = arith.constant 8 : i32
    %130 = arith.muli %129, %c8_i32_41 : i32
    %131 = arith.index_cast %130 : i32 to index
    %c32_42 = arith.constant 32 : index
    %132 = vector.load %arg11[%131, %c32_42] : memref<256x64xf32, #tpu.memory_space<vmem>>, vector<8x32xf32>
    tpu.vector_store %arg11[%131, %c32_42], %128 {strides = array<i32>} : memref<256x64xf32, #tpu.memory_space<vmem>>, vector<8x32xf32>,
    %c4_i32 = arith.constant 4 : i32
    %c8_i32_43 = arith.constant 8 : i32
    %133 = arith.muli %c4_i32, %c8_i32_43 : i32
    %134 = arith.index_cast %133 : i32 to index
    %c0_44 = arith.constant 0 : index
    %135 = vector.load %arg10[%134, %c0_44] : memref<256x256xf32, #tpu.memory_space<vmem>>, vector<8x256xf32>
    %136 = arith.truncf %123 : vector<8x64xf32> to vector<8x64xbf16>
    %cst_45 = arith.constant dense<0.000000e+00> : vector<8x256xf32>
    %137 = tpu.matmul %136, %7, %cst_45 {dimension_numbers = #tpu.dot_dimension_numbers<[1], [0], [0], [1], [0, 0, 1, 1], [], []>} : vector<8x64xbf16>, vector<64x256xbf16>, vector<8x256xf32> -> vector<8x256xf32>
    %138 = arith.addf %135, %137 : vector<8x256xf32>
    %139 = vector.extract_strided_slice %138 {offsets = [0, 0], sizes = [8, 192], strides = [1, 1]} : vector<8x256xf32> to vector<8x192xf32>
    %140 = arith.negf %139 : vector<8x192xf32>
    %141 = math.exp %140 : vector<8x192xf32>
    %cst_46 = arith.constant 1.000000e+00 : f32
    %142 = vector.broadcast %cst_46 : f32 to vector<8x192xf32>
    %143 = arith.addf %142, %141 : vector<8x192xf32>
    %144 = arith.divf %142, %143 : vector<8x192xf32>
    %145 = vector.extract_strided_slice %144 {offsets = [0, 0], sizes = [8, 64], strides = [1, 1]} : vector<8x192xf32> to vector<8x64xf32>
    %146 = vector.extract_strided_slice %144 {offsets = [0, 64], sizes = [8, 64], strides = [1, 1]} : vector<8x192xf32> to vector<8x64xf32>
    %147 = vector.extract_strided_slice %144 {offsets = [0, 128], sizes = [8, 64], strides = [1, 1]} : vector<8x192xf32> to vector<8x64xf32>
    %148 = vector.extract_strided_slice %138 {offsets = [0, 192], sizes = [8, 64], strides = [1, 1]} : vector<8x256xf32> to vector<8x64xf32>
    %149 = math.tanh %148 : vector<8x64xf32>
    %150 = arith.mulf %145, %121 : vector<8x64xf32>
    %151 = arith.mulf %146, %149 : vector<8x64xf32>
    %152 = arith.addf %150, %151 : vector<8x64xf32>
    %153 = math.tanh %152 : vector<8x64xf32>
    %154 = arith.mulf %147, %153 : vector<8x64xf32>
    %155 = vector.extract_strided_slice %154 {offsets = [0, 0], sizes = [8, 32], strides = [1, 1]} : vector<8x64xf32> to vector<8x32xf32>
    %c8_i32_47 = arith.constant 8 : i32
    %156 = arith.muli %c4_i32, %c8_i32_47 : i32
    %157 = arith.index_cast %156 : i32 to index
    %c0_48 = arith.constant 0 : index
    %158 = vector.load %arg11[%157, %c0_48] : memref<256x64xf32, #tpu.memory_space<vmem>>, vector<8x32xf32>
    tpu.vector_store %arg11[%157, %c0_48], %155 {strides = array<i32>} : memref<256x64xf32, #tpu.memory_space<vmem>>, vector<8x32xf32>,
    %159 = vector.extract_strided_slice %154 {offsets = [0, 32], sizes = [8, 32], strides = [1, 1]} : vector<8x64xf32> to vector<8x32xf32>
    %c31_i32_49 = arith.constant 31 : i32
    %160 = arith.subi %c31_i32_49, %c4_i32 : i32
    %c8_i32_50 = arith.constant 8 : i32
    %161 = arith.muli %160, %c8_i32_50 : i32
    %162 = arith.index_cast %161 : i32 to index
    %c32_51 = arith.constant 32 : index
    %163 = vector.load %arg11[%162, %c32_51] : memref<256x64xf32, #tpu.memory_space<vmem>>, vector<8x32xf32>
    tpu.vector_store %arg11[%162, %c32_51], %159 {strides = array<i32>} : memref<256x64xf32, #tpu.memory_space<vmem>>, vector<8x32xf32>,
    %c5_i32 = arith.constant 5 : i32
    %c8_i32_52 = arith.constant 8 : i32
    %164 = arith.muli %c5_i32, %c8_i32_52 : i32
    %165 = arith.index_cast %164 : i32 to index
    %c0_53 = arith.constant 0 : index
    %166 = vector.load %arg10[%165, %c0_53] : memref<256x256xf32, #tpu.memory_space<vmem>>, vector<8x256xf32>
    %167 = arith.truncf %154 : vector<8x64xf32> to vector<8x64xbf16>
    %cst_54 = arith.constant dense<0.000000e+00> : vector<8x256xf32>
    %168 = tpu.matmul %167, %7, %cst_54 {dimension_numbers = #tpu.dot_dimension_numbers<[1], [0], [0], [1], [0, 0, 1, 1], [], []>} : vector<8x64xbf16>, vector<64x256xbf16>, vector<8x256xf32> -> vector<8x256xf32>
    %169 = arith.addf %166, %168 : vector<8x256xf32>
    %170 = vector.extract_strided_slice %169 {offsets = [0, 0], sizes = [8, 192], strides = [1, 1]} : vector<8x256xf32> to vector<8x192xf32>
    %171 = arith.negf %170 : vector<8x192xf32>
    %172 = math.exp %171 : vector<8x192xf32>
    %cst_55 = arith.constant 1.000000e+00 : f32
    %173 = vector.broadcast %cst_55 : f32 to vector<8x192xf32>
    %174 = arith.addf %173, %172 : vector<8x192xf32>
    %175 = arith.divf %173, %174 : vector<8x192xf32>
    %176 = vector.extract_strided_slice %175 {offsets = [0, 0], sizes = [8, 64], strides = [1, 1]} : vector<8x192xf32> to vector<8x64xf32>
    %177 = vector.extract_strided_slice %175 {offsets = [0, 64], sizes = [8, 64], strides = [1, 1]} : vector<8x192xf32> to vector<8x64xf32>
    %178 = vector.extract_strided_slice %175 {offsets = [0, 128], sizes = [8, 64], strides = [1, 1]} : vector<8x192xf32> to vector<8x64xf32>
    %179 = vector.extract_strided_slice %169 {offsets = [0, 192], sizes = [8, 64], strides = [1, 1]} : vector<8x256xf32> to vector<8x64xf32>
    %180 = math.tanh %179 : vector<8x64xf32>
    %181 = arith.mulf %176, %152 : vector<8x64xf32>
    %182 = arith.mulf %177, %180 : vector<8x64xf32>
    %183 = arith.addf %181, %182 : vector<8x64xf32>
    %184 = math.tanh %183 : vector<8x64xf32>
    %185 = arith.mulf %178, %184 : vector<8x64xf32>
    %186 = vector.extract_strided_slice %185 {offsets = [0, 0], sizes = [8, 32], strides = [1, 1]} : vector<8x64xf32> to vector<8x32xf32>
    %c8_i32_56 = arith.constant 8 : i32
    %187 = arith.muli %c5_i32, %c8_i32_56 : i32
    %188 = arith.index_cast %187 : i32 to index
    %c0_57 = arith.constant 0 : index
    %189 = vector.load %arg11[%188, %c0_57] : memref<256x64xf32, #tpu.memory_space<vmem>>, vector<8x32xf32>
    tpu.vector_store %arg11[%188, %c0_57], %186 {strides = array<i32>} : memref<256x64xf32, #tpu.memory_space<vmem>>, vector<8x32xf32>,
    %190 = vector.extract_strided_slice %185 {offsets = [0, 32], sizes = [8, 32], strides = [1, 1]} : vector<8x64xf32> to vector<8x32xf32>
    %c31_i32_58 = arith.constant 31 : i32
    %191 = arith.subi %c31_i32_58, %c5_i32 : i32
    %c8_i32_59 = arith.constant 8 : i32
    %192 = arith.muli %191, %c8_i32_59 : i32
    %193 = arith.index_cast %192 : i32 to index
    %c32_60 = arith.constant 32 : index
    %194 = vector.load %arg11[%193, %c32_60] : memref<256x64xf32, #tpu.memory_space<vmem>>, vector<8x32xf32>
    tpu.vector_store %arg11[%193, %c32_60], %190 {strides = array<i32>} : memref<256x64xf32, #tpu.memory_space<vmem>>, vector<8x32xf32>,
    %c6_i32 = arith.constant 6 : i32
    %c8_i32_61 = arith.constant 8 : i32
    %195 = arith.muli %c6_i32, %c8_i32_61 : i32
    %196 = arith.index_cast %195 : i32 to index
    %c0_62 = arith.constant 0 : index
    %197 = vector.load %arg10[%196, %c0_62] : memref<256x256xf32, #tpu.memory_space<vmem>>, vector<8x256xf32>
    %198 = arith.truncf %185 : vector<8x64xf32> to vector<8x64xbf16>
    %cst_63 = arith.constant dense<0.000000e+00> : vector<8x256xf32>
    %199 = tpu.matmul %198, %7, %cst_63 {dimension_numbers = #tpu.dot_dimension_numbers<[1], [0], [0], [1], [0, 0, 1, 1], [], []>} : vector<8x64xbf16>, vector<64x256xbf16>, vector<8x256xf32> -> vector<8x256xf32>
    %200 = arith.addf %197, %199 : vector<8x256xf32>
    %201 = vector.extract_strided_slice %200 {offsets = [0, 0], sizes = [8, 192], strides = [1, 1]} : vector<8x256xf32> to vector<8x192xf32>
    %202 = arith.negf %201 : vector<8x192xf32>
    %203 = math.exp %202 : vector<8x192xf32>
    %cst_64 = arith.constant 1.000000e+00 : f32
    %204 = vector.broadcast %cst_64 : f32 to vector<8x192xf32>
    %205 = arith.addf %204, %203 : vector<8x192xf32>
    %206 = arith.divf %204, %205 : vector<8x192xf32>
    %207 = vector.extract_strided_slice %206 {offsets = [0, 0], sizes = [8, 64], strides = [1, 1]} : vector<8x192xf32> to vector<8x64xf32>
    %208 = vector.extract_strided_slice %206 {offsets = [0, 64], sizes = [8, 64], strides = [1, 1]} : vector<8x192xf32> to vector<8x64xf32>
    %209 = vector.extract_strided_slice %206 {offsets = [0, 128], sizes = [8, 64], strides = [1, 1]} : vector<8x192xf32> to vector<8x64xf32>
    %210 = vector.extract_strided_slice %200 {offsets = [0, 192], sizes = [8, 64], strides = [1, 1]} : vector<8x256xf32> to vector<8x64xf32>
    %211 = math.tanh %210 : vector<8x64xf32>
    %212 = arith.mulf %207, %183 : vector<8x64xf32>
    %213 = arith.mulf %208, %211 : vector<8x64xf32>
    %214 = arith.addf %212, %213 : vector<8x64xf32>
    %215 = math.tanh %214 : vector<8x64xf32>
    %216 = arith.mulf %209, %215 : vector<8x64xf32>
    %217 = vector.extract_strided_slice %216 {offsets = [0, 0], sizes = [8, 32], strides = [1, 1]} : vector<8x64xf32> to vector<8x32xf32>
    %c8_i32_65 = arith.constant 8 : i32
    %218 = arith.muli %c6_i32, %c8_i32_65 : i32
    %219 = arith.index_cast %218 : i32 to index
    %c0_66 = arith.constant 0 : index
    %220 = vector.load %arg11[%219, %c0_66] : memref<256x64xf32, #tpu.memory_space<vmem>>, vector<8x32xf32>
    tpu.vector_store %arg11[%219, %c0_66], %217 {strides = array<i32>} : memref<256x64xf32, #tpu.memory_space<vmem>>, vector<8x32xf32>,
    %221 = vector.extract_strided_slice %216 {offsets = [0, 32], sizes = [8, 32], strides = [1, 1]} : vector<8x64xf32> to vector<8x32xf32>
    %c31_i32_67 = arith.constant 31 : i32
    %222 = arith.subi %c31_i32_67, %c6_i32 : i32
    %c8_i32_68 = arith.constant 8 : i32
    %223 = arith.muli %222, %c8_i32_68 : i32
    %224 = arith.index_cast %223 : i32 to index
    %c32_69 = arith.constant 32 : index
    %225 = vector.load %arg11[%224, %c32_69] : memref<256x64xf32, #tpu.memory_space<vmem>>, vector<8x32xf32>
    tpu.vector_store %arg11[%224, %c32_69], %221 {strides = array<i32>} : memref<256x64xf32, #tpu.memory_space<vmem>>, vector<8x32xf32>,
    %c7_i32 = arith.constant 7 : i32
    %c8_i32_70 = arith.constant 8 : i32
    %226 = arith.muli %c7_i32, %c8_i32_70 : i32
    %227 = arith.index_cast %226 : i32 to index
    %c0_71 = arith.constant 0 : index
    %228 = vector.load %arg10[%227, %c0_71] : memref<256x256xf32, #tpu.memory_space<vmem>>, vector<8x256xf32>
    %229 = arith.truncf %216 : vector<8x64xf32> to vector<8x64xbf16>
    %cst_72 = arith.constant dense<0.000000e+00> : vector<8x256xf32>
    %230 = tpu.matmul %229, %7, %cst_72 {dimension_numbers = #tpu.dot_dimension_numbers<[1], [0], [0], [1], [0, 0, 1, 1], [], []>} : vector<8x64xbf16>, vector<64x256xbf16>, vector<8x256xf32> -> vector<8x256xf32>
    %231 = arith.addf %228, %230 : vector<8x256xf32>
    %232 = vector.extract_strided_slice %231 {offsets = [0, 0], sizes = [8, 192], strides = [1, 1]} : vector<8x256xf32> to vector<8x192xf32>
    %233 = arith.negf %232 : vector<8x192xf32>
    %234 = math.exp %233 : vector<8x192xf32>
    %cst_73 = arith.constant 1.000000e+00 : f32
    %235 = vector.broadcast %cst_73 : f32 to vector<8x192xf32>
    %236 = arith.addf %235, %234 : vector<8x192xf32>
    %237 = arith.divf %235, %236 : vector<8x192xf32>
    %238 = vector.extract_strided_slice %237 {offsets = [0, 0], sizes = [8, 64], strides = [1, 1]} : vector<8x192xf32> to vector<8x64xf32>
    %239 = vector.extract_strided_slice %237 {offsets = [0, 64], sizes = [8, 64], strides = [1, 1]} : vector<8x192xf32> to vector<8x64xf32>
    %240 = vector.extract_strided_slice %237 {offsets = [0, 128], sizes = [8, 64], strides = [1, 1]} : vector<8x192xf32> to vector<8x64xf32>
    %241 = vector.extract_strided_slice %231 {offsets = [0, 192], sizes = [8, 64], strides = [1, 1]} : vector<8x256xf32> to vector<8x64xf32>
    %242 = math.tanh %241 : vector<8x64xf32>
    %243 = arith.mulf %238, %214 : vector<8x64xf32>
    %244 = arith.mulf %239, %242 : vector<8x64xf32>
    %245 = arith.addf %243, %244 : vector<8x64xf32>
    %246 = math.tanh %245 : vector<8x64xf32>
    %247 = arith.mulf %240, %246 : vector<8x64xf32>
    %248 = vector.extract_strided_slice %247 {offsets = [0, 0], sizes = [8, 32], strides = [1, 1]} : vector<8x64xf32> to vector<8x32xf32>
    %c8_i32_74 = arith.constant 8 : i32
    %249 = arith.muli %c7_i32, %c8_i32_74 : i32
    %250 = arith.index_cast %249 : i32 to index
    %c0_75 = arith.constant 0 : index
    %251 = vector.load %arg11[%250, %c0_75] : memref<256x64xf32, #tpu.memory_space<vmem>>, vector<8x32xf32>
    tpu.vector_store %arg11[%250, %c0_75], %248 {strides = array<i32>} : memref<256x64xf32, #tpu.memory_space<vmem>>, vector<8x32xf32>,
    %252 = vector.extract_strided_slice %247 {offsets = [0, 32], sizes = [8, 32], strides = [1, 1]} : vector<8x64xf32> to vector<8x32xf32>
    %c31_i32_76 = arith.constant 31 : i32
    %253 = arith.subi %c31_i32_76, %c7_i32 : i32
    %c8_i32_77 = arith.constant 8 : i32
    %254 = arith.muli %253, %c8_i32_77 : i32
    %255 = arith.index_cast %254 : i32 to index
    %c32_78 = arith.constant 32 : index
    %256 = vector.load %arg11[%255, %c32_78] : memref<256x64xf32, #tpu.memory_space<vmem>>, vector<8x32xf32>
    tpu.vector_store %arg11[%255, %c32_78], %252 {strides = array<i32>} : memref<256x64xf32, #tpu.memory_space<vmem>>, vector<8x32xf32>,
    %c8_i32_79 = arith.constant 8 : i32
    %c8_i32_80 = arith.constant 8 : i32
    %257 = arith.muli %c8_i32_79, %c8_i32_80 : i32
    %258 = arith.index_cast %257 : i32 to index
    %c0_81 = arith.constant 0 : index
    %259 = vector.load %arg10[%258, %c0_81] : memref<256x256xf32, #tpu.memory_space<vmem>>, vector<8x256xf32>
    %260 = arith.truncf %247 : vector<8x64xf32> to vector<8x64xbf16>
    %cst_82 = arith.constant dense<0.000000e+00> : vector<8x256xf32>
    %261 = tpu.matmul %260, %7, %cst_82 {dimension_numbers = #tpu.dot_dimension_numbers<[1], [0], [0], [1], [0, 0, 1, 1], [], []>} : vector<8x64xbf16>, vector<64x256xbf16>, vector<8x256xf32> -> vector<8x256xf32>
    %262 = arith.addf %259, %261 : vector<8x256xf32>
    %263 = vector.extract_strided_slice %262 {offsets = [0, 0], sizes = [8, 192], strides = [1, 1]} : vector<8x256xf32> to vector<8x192xf32>
    %264 = arith.negf %263 : vector<8x192xf32>
    %265 = math.exp %264 : vector<8x192xf32>
    %cst_83 = arith.constant 1.000000e+00 : f32
    %266 = vector.broadcast %cst_83 : f32 to vector<8x192xf32>
    %267 = arith.addf %266, %265 : vector<8x192xf32>
    %268 = arith.divf %266, %267 : vector<8x192xf32>
    %269 = vector.extract_strided_slice %268 {offsets = [0, 0], sizes = [8, 64], strides = [1, 1]} : vector<8x192xf32> to vector<8x64xf32>
    %270 = vector.extract_strided_slice %268 {offsets = [0, 64], sizes = [8, 64], strides = [1, 1]} : vector<8x192xf32> to vector<8x64xf32>
    %271 = vector.extract_strided_slice %268 {offsets = [0, 128], sizes = [8, 64], strides = [1, 1]} : vector<8x192xf32> to vector<8x64xf32>
    %272 = vector.extract_strided_slice %262 {offsets = [0, 192], sizes = [8, 64], strides = [1, 1]} : vector<8x256xf32> to vector<8x64xf32>
    %273 = math.tanh %272 : vector<8x64xf32>
    %274 = arith.mulf %269, %245 : vector<8x64xf32>
    %275 = arith.mulf %270, %273 : vector<8x64xf32>
    %276 = arith.addf %274, %275 : vector<8x64xf32>
    %277 = math.tanh %276 : vector<8x64xf32>
    %278 = arith.mulf %271, %277 : vector<8x64xf32>
    %279 = vector.extract_strided_slice %278 {offsets = [0, 0], sizes = [8, 32], strides = [1, 1]} : vector<8x64xf32> to vector<8x32xf32>
    %c8_i32_84 = arith.constant 8 : i32
    %280 = arith.muli %c8_i32_79, %c8_i32_84 : i32
    %281 = arith.index_cast %280 : i32 to index
    %c0_85 = arith.constant 0 : index
    %282 = vector.load %arg11[%281, %c0_85] : memref<256x64xf32, #tpu.memory_space<vmem>>, vector<8x32xf32>
    tpu.vector_store %arg11[%281, %c0_85], %279 {strides = array<i32>} : memref<256x64xf32, #tpu.memory_space<vmem>>, vector<8x32xf32>,
    %283 = vector.extract_strided_slice %278 {offsets = [0, 32], sizes = [8, 32], strides = [1, 1]} : vector<8x64xf32> to vector<8x32xf32>
    %c31_i32_86 = arith.constant 31 : i32
    %284 = arith.subi %c31_i32_86, %c8_i32_79 : i32
    %c8_i32_87 = arith.constant 8 : i32
    %285 = arith.muli %284, %c8_i32_87 : i32
    %286 = arith.index_cast %285 : i32 to index
    %c32_88 = arith.constant 32 : index
    %287 = vector.load %arg11[%286, %c32_88] : memref<256x64xf32, #tpu.memory_space<vmem>>, vector<8x32xf32>
    tpu.vector_store %arg11[%286, %c32_88], %283 {strides = array<i32>} : memref<256x64xf32, #tpu.memory_space<vmem>>, vector<8x32xf32>,
    %c9_i32 = arith.constant 9 : i32
    %c8_i32_89 = arith.constant 8 : i32
    %288 = arith.muli %c9_i32, %c8_i32_89 : i32
    %289 = arith.index_cast %288 : i32 to index
    %c0_90 = arith.constant 0 : index
    %290 = vector.load %arg10[%289, %c0_90] : memref<256x256xf32, #tpu.memory_space<vmem>>, vector<8x256xf32>
    %291 = arith.truncf %278 : vector<8x64xf32> to vector<8x64xbf16>
    %cst_91 = arith.constant dense<0.000000e+00> : vector<8x256xf32>
    %292 = tpu.matmul %291, %7, %cst_91 {dimension_numbers = #tpu.dot_dimension_numbers<[1], [0], [0], [1], [0, 0, 1, 1], [], []>} : vector<8x64xbf16>, vector<64x256xbf16>, vector<8x256xf32> -> vector<8x256xf32>
    %293 = arith.addf %290, %292 : vector<8x256xf32>
    %294 = vector.extract_strided_slice %293 {offsets = [0, 0], sizes = [8, 192], strides = [1, 1]} : vector<8x256xf32> to vector<8x192xf32>
    %295 = arith.negf %294 : vector<8x192xf32>
    %296 = math.exp %295 : vector<8x192xf32>
    %cst_92 = arith.constant 1.000000e+00 : f32
    %297 = vector.broadcast %cst_92 : f32 to vector<8x192xf32>
    %298 = arith.addf %297, %296 : vector<8x192xf32>
    %299 = arith.divf %297, %298 : vector<8x192xf32>
    %300 = vector.extract_strided_slice %299 {offsets = [0, 0], sizes = [8, 64], strides = [1, 1]} : vector<8x192xf32> to vector<8x64xf32>
    %301 = vector.extract_strided_slice %299 {offsets = [0, 64], sizes = [8, 64], strides = [1, 1]} : vector<8x192xf32> to vector<8x64xf32>
    %302 = vector.extract_strided_slice %299 {offsets = [0, 128], sizes = [8, 64], strides = [1, 1]} : vector<8x192xf32> to vector<8x64xf32>
    %303 = vector.extract_strided_slice %293 {offsets = [0, 192], sizes = [8, 64], strides = [1, 1]} : vector<8x256xf32> to vector<8x64xf32>
    %304 = math.tanh %303 : vector<8x64xf32>
    %305 = arith.mulf %300, %276 : vector<8x64xf32>
    %306 = arith.mulf %301, %304 : vector<8x64xf32>
    %307 = arith.addf %305, %306 : vector<8x64xf32>
    %308 = math.tanh %307 : vector<8x64xf32>
    %309 = arith.mulf %302, %308 : vector<8x64xf32>
    %310 = vector.extract_strided_slice %309 {offsets = [0, 0], sizes = [8, 32], strides = [1, 1]} : vector<8x64xf32> to vector<8x32xf32>
    %c8_i32_93 = arith.constant 8 : i32
    %311 = arith.muli %c9_i32, %c8_i32_93 : i32
    %312 = arith.index_cast %311 : i32 to index
    %c0_94 = arith.constant 0 : index
    %313 = vector.load %arg11[%312, %c0_94] : memref<256x64xf32, #tpu.memory_space<vmem>>, vector<8x32xf32>
    tpu.vector_store %arg11[%312, %c0_94], %310 {strides = array<i32>} : memref<256x64xf32, #tpu.memory_space<vmem>>, vector<8x32xf32>,
    %314 = vector.extract_strided_slice %309 {offsets = [0, 32], sizes = [8, 32], strides = [1, 1]} : vector<8x64xf32> to vector<8x32xf32>
    %c31_i32_95 = arith.constant 31 : i32
    %315 = arith.subi %c31_i32_95, %c9_i32 : i32
    %c8_i32_96 = arith.constant 8 : i32
    %316 = arith.muli %315, %c8_i32_96 : i32
    %317 = arith.index_cast %316 : i32 to index
    %c32_97 = arith.constant 32 : index
    %318 = vector.load %arg11[%317, %c32_97] : memref<256x64xf32, #tpu.memory_space<vmem>>, vector<8x32xf32>
    tpu.vector_store %arg11[%317, %c32_97], %314 {strides = array<i32>} : memref<256x64xf32, #tpu.memory_space<vmem>>, vector<8x32xf32>,
    %c10_i32 = arith.constant 10 : i32
    %c8_i32_98 = arith.constant 8 : i32
    %319 = arith.muli %c10_i32, %c8_i32_98 : i32
    %320 = arith.index_cast %319 : i32 to index
    %c0_99 = arith.constant 0 : index
    %321 = vector.load %arg10[%320, %c0_99] : memref<256x256xf32, #tpu.memory_space<vmem>>, vector<8x256xf32>
    %322 = arith.truncf %309 : vector<8x64xf32> to vector<8x64xbf16>
    %cst_100 = arith.constant dense<0.000000e+00> : vector<8x256xf32>
    %323 = tpu.matmul %322, %7, %cst_100 {dimension_numbers = #tpu.dot_dimension_numbers<[1], [0], [0], [1], [0, 0, 1, 1], [], []>} : vector<8x64xbf16>, vector<64x256xbf16>, vector<8x256xf32> -> vector<8x256xf32>
    %324 = arith.addf %321, %323 : vector<8x256xf32>
    %325 = vector.extract_strided_slice %324 {offsets = [0, 0], sizes = [8, 192], strides = [1, 1]} : vector<8x256xf32> to vector<8x192xf32>
    %326 = arith.negf %325 : vector<8x192xf32>
    %327 = math.exp %326 : vector<8x192xf32>
    %cst_101 = arith.constant 1.000000e+00 : f32
    %328 = vector.broadcast %cst_101 : f32 to vector<8x192xf32>
    %329 = arith.addf %328, %327 : vector<8x192xf32>
    %330 = arith.divf %328, %329 : vector<8x192xf32>
    %331 = vector.extract_strided_slice %330 {offsets = [0, 0], sizes = [8, 64], strides = [1, 1]} : vector<8x192xf32> to vector<8x64xf32>
    %332 = vector.extract_strided_slice %330 {offsets = [0, 64], sizes = [8, 64], strides = [1, 1]} : vector<8x192xf32> to vector<8x64xf32>
    %333 = vector.extract_strided_slice %330 {offsets = [0, 128], sizes = [8, 64], strides = [1, 1]} : vector<8x192xf32> to vector<8x64xf32>
    %334 = vector.extract_strided_slice %324 {offsets = [0, 192], sizes = [8, 64], strides = [1, 1]} : vector<8x256xf32> to vector<8x64xf32>
    %335 = math.tanh %334 : vector<8x64xf32>
    %336 = arith.mulf %331, %307 : vector<8x64xf32>
    %337 = arith.mulf %332, %335 : vector<8x64xf32>
    %338 = arith.addf %336, %337 : vector<8x64xf32>
    %339 = math.tanh %338 : vector<8x64xf32>
    %340 = arith.mulf %333, %339 : vector<8x64xf32>
    %341 = vector.extract_strided_slice %340 {offsets = [0, 0], sizes = [8, 32], strides = [1, 1]} : vector<8x64xf32> to vector<8x32xf32>
    %c8_i32_102 = arith.constant 8 : i32
    %342 = arith.muli %c10_i32, %c8_i32_102 : i32
    %343 = arith.index_cast %342 : i32 to index
    %c0_103 = arith.constant 0 : index
    %344 = vector.load %arg11[%343, %c0_103] : memref<256x64xf32, #tpu.memory_space<vmem>>, vector<8x32xf32>
    tpu.vector_store %arg11[%343, %c0_103], %341 {strides = array<i32>} : memref<256x64xf32, #tpu.memory_space<vmem>>, vector<8x32xf32>,
    %345 = vector.extract_strided_slice %340 {offsets = [0, 32], sizes = [8, 32], strides = [1, 1]} : vector<8x64xf32> to vector<8x32xf32>
    %c31_i32_104 = arith.constant 31 : i32
    %346 = arith.subi %c31_i32_104, %c10_i32 : i32
    %c8_i32_105 = arith.constant 8 : i32
    %347 = arith.muli %346, %c8_i32_105 : i32
    %348 = arith.index_cast %347 : i32 to index
    %c32_106 = arith.constant 32 : index
    %349 = vector.load %arg11[%348, %c32_106] : memref<256x64xf32, #tpu.memory_space<vmem>>, vector<8x32xf32>
    tpu.vector_store %arg11[%348, %c32_106], %345 {strides = array<i32>} : memref<256x64xf32, #tpu.memory_space<vmem>>, vector<8x32xf32>,
    %c11_i32 = arith.constant 11 : i32
    %c8_i32_107 = arith.constant 8 : i32
    %350 = arith.muli %c11_i32, %c8_i32_107 : i32
    %351 = arith.index_cast %350 : i32 to index
    %c0_108 = arith.constant 0 : index
    %352 = vector.load %arg10[%351, %c0_108] : memref<256x256xf32, #tpu.memory_space<vmem>>, vector<8x256xf32>
    %353 = arith.truncf %340 : vector<8x64xf32> to vector<8x64xbf16>
    %cst_109 = arith.constant dense<0.000000e+00> : vector<8x256xf32>
    %354 = tpu.matmul %353, %7, %cst_109 {dimension_numbers = #tpu.dot_dimension_numbers<[1], [0], [0], [1], [0, 0, 1, 1], [], []>} : vector<8x64xbf16>, vector<64x256xbf16>, vector<8x256xf32> -> vector<8x256xf32>
    %355 = arith.addf %352, %354 : vector<8x256xf32>
    %356 = vector.extract_strided_slice %355 {offsets = [0, 0], sizes = [8, 192], strides = [1, 1]} : vector<8x256xf32> to vector<8x192xf32>
    %357 = arith.negf %356 : vector<8x192xf32>
    %358 = math.exp %357 : vector<8x192xf32>
    %cst_110 = arith.constant 1.000000e+00 : f32
    %359 = vector.broadcast %cst_110 : f32 to vector<8x192xf32>
    %360 = arith.addf %359, %358 : vector<8x192xf32>
    %361 = arith.divf %359, %360 : vector<8x192xf32>
    %362 = vector.extract_strided_slice %361 {offsets = [0, 0], sizes = [8, 64], strides = [1, 1]} : vector<8x192xf32> to vector<8x64xf32>
    %363 = vector.extract_strided_slice %361 {offsets = [0, 64], sizes = [8, 64], strides = [1, 1]} : vector<8x192xf32> to vector<8x64xf32>
    %364 = vector.extract_strided_slice %361 {offsets = [0, 128], sizes = [8, 64], strides = [1, 1]} : vector<8x192xf32> to vector<8x64xf32>
    %365 = vector.extract_strided_slice %355 {offsets = [0, 192], sizes = [8, 64], strides = [1, 1]} : vector<8x256xf32> to vector<8x64xf32>
    %366 = math.tanh %365 : vector<8x64xf32>
    %367 = arith.mulf %362, %338 : vector<8x64xf32>
    %368 = arith.mulf %363, %366 : vector<8x64xf32>
    %369 = arith.addf %367, %368 : vector<8x64xf32>
    %370 = math.tanh %369 : vector<8x64xf32>
    %371 = arith.mulf %364, %370 : vector<8x64xf32>
    %372 = vector.extract_strided_slice %371 {offsets = [0, 0], sizes = [8, 32], strides = [1, 1]} : vector<8x64xf32> to vector<8x32xf32>
    %c8_i32_111 = arith.constant 8 : i32
    %373 = arith.muli %c11_i32, %c8_i32_111 : i32
    %374 = arith.index_cast %373 : i32 to index
    %c0_112 = arith.constant 0 : index
    %375 = vector.load %arg11[%374, %c0_112] : memref<256x64xf32, #tpu.memory_space<vmem>>, vector<8x32xf32>
    tpu.vector_store %arg11[%374, %c0_112], %372 {strides = array<i32>} : memref<256x64xf32, #tpu.memory_space<vmem>>, vector<8x32xf32>,
    %376 = vector.extract_strided_slice %371 {offsets = [0, 32], sizes = [8, 32], strides = [1, 1]} : vector<8x64xf32> to vector<8x32xf32>
    %c31_i32_113 = arith.constant 31 : i32
    %377 = arith.subi %c31_i32_113, %c11_i32 : i32
    %c8_i32_114 = arith.constant 8 : i32
    %378 = arith.muli %377, %c8_i32_114 : i32
    %379 = arith.index_cast %378 : i32 to index
    %c32_115 = arith.constant 32 : index
    %380 = vector.load %arg11[%379, %c32_115] : memref<256x64xf32, #tpu.memory_space<vmem>>, vector<8x32xf32>
    tpu.vector_store %arg11[%379, %c32_115], %376 {strides = array<i32>} : memref<256x64xf32, #tpu.memory_space<vmem>>, vector<8x32xf32>,
    %c12_i32 = arith.constant 12 : i32
    %c8_i32_116 = arith.constant 8 : i32
    %381 = arith.muli %c12_i32, %c8_i32_116 : i32
    %382 = arith.index_cast %381 : i32 to index
    %c0_117 = arith.constant 0 : index
    %383 = vector.load %arg10[%382, %c0_117] : memref<256x256xf32, #tpu.memory_space<vmem>>, vector<8x256xf32>
    %384 = arith.truncf %371 : vector<8x64xf32> to vector<8x64xbf16>
    %cst_118 = arith.constant dense<0.000000e+00> : vector<8x256xf32>
    %385 = tpu.matmul %384, %7, %cst_118 {dimension_numbers = #tpu.dot_dimension_numbers<[1], [0], [0], [1], [0, 0, 1, 1], [], []>} : vector<8x64xbf16>, vector<64x256xbf16>, vector<8x256xf32> -> vector<8x256xf32>
    %386 = arith.addf %383, %385 : vector<8x256xf32>
    %387 = vector.extract_strided_slice %386 {offsets = [0, 0], sizes = [8, 192], strides = [1, 1]} : vector<8x256xf32> to vector<8x192xf32>
    %388 = arith.negf %387 : vector<8x192xf32>
    %389 = math.exp %388 : vector<8x192xf32>
    %cst_119 = arith.constant 1.000000e+00 : f32
    %390 = vector.broadcast %cst_119 : f32 to vector<8x192xf32>
    %391 = arith.addf %390, %389 : vector<8x192xf32>
    %392 = arith.divf %390, %391 : vector<8x192xf32>
    %393 = vector.extract_strided_slice %392 {offsets = [0, 0], sizes = [8, 64], strides = [1, 1]} : vector<8x192xf32> to vector<8x64xf32>
    %394 = vector.extract_strided_slice %392 {offsets = [0, 64], sizes = [8, 64], strides = [1, 1]} : vector<8x192xf32> to vector<8x64xf32>
    %395 = vector.extract_strided_slice %392 {offsets = [0, 128], sizes = [8, 64], strides = [1, 1]} : vector<8x192xf32> to vector<8x64xf32>
    %396 = vector.extract_strided_slice %386 {offsets = [0, 192], sizes = [8, 64], strides = [1, 1]} : vector<8x256xf32> to vector<8x64xf32>
    %397 = math.tanh %396 : vector<8x64xf32>
    %398 = arith.mulf %393, %369 : vector<8x64xf32>
    %399 = arith.mulf %394, %397 : vector<8x64xf32>
    %400 = arith.addf %398, %399 : vector<8x64xf32>
    %401 = math.tanh %400 : vector<8x64xf32>
    %402 = arith.mulf %395, %401 : vector<8x64xf32>
    %403 = vector.extract_strided_slice %402 {offsets = [0, 0], sizes = [8, 32], strides = [1, 1]} : vector<8x64xf32> to vector<8x32xf32>
    %c8_i32_120 = arith.constant 8 : i32
    %404 = arith.muli %c12_i32, %c8_i32_120 : i32
    %405 = arith.index_cast %404 : i32 to index
    %c0_121 = arith.constant 0 : index
    %406 = vector.load %arg11[%405, %c0_121] : memref<256x64xf32, #tpu.memory_space<vmem>>, vector<8x32xf32>
    tpu.vector_store %arg11[%405, %c0_121], %403 {strides = array<i32>} : memref<256x64xf32, #tpu.memory_space<vmem>>, vector<8x32xf32>,
    %407 = vector.extract_strided_slice %402 {offsets = [0, 32], sizes = [8, 32], strides = [1, 1]} : vector<8x64xf32> to vector<8x32xf32>
    %c31_i32_122 = arith.constant 31 : i32
    %408 = arith.subi %c31_i32_122, %c12_i32 : i32
    %c8_i32_123 = arith.constant 8 : i32
    %409 = arith.muli %408, %c8_i32_123 : i32
    %410 = arith.index_cast %409 : i32 to index
    %c32_124 = arith.constant 32 : index
    %411 = vector.load %arg11[%410, %c32_124] : memref<256x64xf32, #tpu.memory_space<vmem>>, vector<8x32xf32>
    tpu.vector_store %arg11[%410, %c32_124], %407 {strides = array<i32>} : memref<256x64xf32, #tpu.memory_space<vmem>>, vector<8x32xf32>,
    %c13_i32 = arith.constant 13 : i32
    %c8_i32_125 = arith.constant 8 : i32
    %412 = arith.muli %c13_i32, %c8_i32_125 : i32
    %413 = arith.index_cast %412 : i32 to index
    %c0_126 = arith.constant 0 : index
    %414 = vector.load %arg10[%413, %c0_126] : memref<256x256xf32, #tpu.memory_space<vmem>>, vector<8x256xf32>
    %415 = arith.truncf %402 : vector<8x64xf32> to vector<8x64xbf16>
    %cst_127 = arith.constant dense<0.000000e+00> : vector<8x256xf32>
    %416 = tpu.matmul %415, %7, %cst_127 {dimension_numbers = #tpu.dot_dimension_numbers<[1], [0], [0], [1], [0, 0, 1, 1], [], []>} : vector<8x64xbf16>, vector<64x256xbf16>, vector<8x256xf32> -> vector<8x256xf32>
    %417 = arith.addf %414, %416 : vector<8x256xf32>
    %418 = vector.extract_strided_slice %417 {offsets = [0, 0], sizes = [8, 192], strides = [1, 1]} : vector<8x256xf32> to vector<8x192xf32>
    %419 = arith.negf %418 : vector<8x192xf32>
    %420 = math.exp %419 : vector<8x192xf32>
    %cst_128 = arith.constant 1.000000e+00 : f32
    %421 = vector.broadcast %cst_128 : f32 to vector<8x192xf32>
    %422 = arith.addf %421, %420 : vector<8x192xf32>
    %423 = arith.divf %421, %422 : vector<8x192xf32>
    %424 = vector.extract_strided_slice %423 {offsets = [0, 0], sizes = [8, 64], strides = [1, 1]} : vector<8x192xf32> to vector<8x64xf32>
    %425 = vector.extract_strided_slice %423 {offsets = [0, 64], sizes = [8, 64], strides = [1, 1]} : vector<8x192xf32> to vector<8x64xf32>
    %426 = vector.extract_strided_slice %423 {offsets = [0, 128], sizes = [8, 64], strides = [1, 1]} : vector<8x192xf32> to vector<8x64xf32>
    %427 = vector.extract_strided_slice %417 {offsets = [0, 192], sizes = [8, 64], strides = [1, 1]} : vector<8x256xf32> to vector<8x64xf32>
    %428 = math.tanh %427 : vector<8x64xf32>
    %429 = arith.mulf %424, %400 : vector<8x64xf32>
    %430 = arith.mulf %425, %428 : vector<8x64xf32>
    %431 = arith.addf %429, %430 : vector<8x64xf32>
    %432 = math.tanh %431 : vector<8x64xf32>
    %433 = arith.mulf %426, %432 : vector<8x64xf32>
    %434 = vector.extract_strided_slice %433 {offsets = [0, 0], sizes = [8, 32], strides = [1, 1]} : vector<8x64xf32> to vector<8x32xf32>
    %c8_i32_129 = arith.constant 8 : i32
    %435 = arith.muli %c13_i32, %c8_i32_129 : i32
    %436 = arith.index_cast %435 : i32 to index
    %c0_130 = arith.constant 0 : index
    %437 = vector.load %arg11[%436, %c0_130] : memref<256x64xf32, #tpu.memory_space<vmem>>, vector<8x32xf32>
    tpu.vector_store %arg11[%436, %c0_130], %434 {strides = array<i32>} : memref<256x64xf32, #tpu.memory_space<vmem>>, vector<8x32xf32>,
    %438 = vector.extract_strided_slice %433 {offsets = [0, 32], sizes = [8, 32], strides = [1, 1]} : vector<8x64xf32> to vector<8x32xf32>
    %c31_i32_131 = arith.constant 31 : i32
    %439 = arith.subi %c31_i32_131, %c13_i32 : i32
    %c8_i32_132 = arith.constant 8 : i32
    %440 = arith.muli %439, %c8_i32_132 : i32
    %441 = arith.index_cast %440 : i32 to index
    %c32_133 = arith.constant 32 : index
    %442 = vector.load %arg11[%441, %c32_133] : memref<256x64xf32, #tpu.memory_space<vmem>>, vector<8x32xf32>
    tpu.vector_store %arg11[%441, %c32_133], %438 {strides = array<i32>} : memref<256x64xf32, #tpu.memory_space<vmem>>, vector<8x32xf32>,
    %c14_i32 = arith.constant 14 : i32
    %c8_i32_134 = arith.constant 8 : i32
    %443 = arith.muli %c14_i32, %c8_i32_134 : i32
    %444 = arith.index_cast %443 : i32 to index
    %c0_135 = arith.constant 0 : index
    %445 = vector.load %arg10[%444, %c0_135] : memref<256x256xf32, #tpu.memory_space<vmem>>, vector<8x256xf32>
    %446 = arith.truncf %433 : vector<8x64xf32> to vector<8x64xbf16>
    %cst_136 = arith.constant dense<0.000000e+00> : vector<8x256xf32>
    %447 = tpu.matmul %446, %7, %cst_136 {dimension_numbers = #tpu.dot_dimension_numbers<[1], [0], [0], [1], [0, 0, 1, 1], [], []>} : vector<8x64xbf16>, vector<64x256xbf16>, vector<8x256xf32> -> vector<8x256xf32>
    %448 = arith.addf %445, %447 : vector<8x256xf32>
    %449 = vector.extract_strided_slice %448 {offsets = [0, 0], sizes = [8, 192], strides = [1, 1]} : vector<8x256xf32> to vector<8x192xf32>
    %450 = arith.negf %449 : vector<8x192xf32>
    %451 = math.exp %450 : vector<8x192xf32>
    %cst_137 = arith.constant 1.000000e+00 : f32
    %452 = vector.broadcast %cst_137 : f32 to vector<8x192xf32>
    %453 = arith.addf %452, %451 : vector<8x192xf32>
    %454 = arith.divf %452, %453 : vector<8x192xf32>
    %455 = vector.extract_strided_slice %454 {offsets = [0, 0], sizes = [8, 64], strides = [1, 1]} : vector<8x192xf32> to vector<8x64xf32>
    %456 = vector.extract_strided_slice %454 {offsets = [0, 64], sizes = [8, 64], strides = [1, 1]} : vector<8x192xf32> to vector<8x64xf32>
    %457 = vector.extract_strided_slice %454 {offsets = [0, 128], sizes = [8, 64], strides = [1, 1]} : vector<8x192xf32> to vector<8x64xf32>
    %458 = vector.extract_strided_slice %448 {offsets = [0, 192], sizes = [8, 64], strides = [1, 1]} : vector<8x256xf32> to vector<8x64xf32>
    %459 = math.tanh %458 : vector<8x64xf32>
    %460 = arith.mulf %455, %431 : vector<8x64xf32>
    %461 = arith.mulf %456, %459 : vector<8x64xf32>
    %462 = arith.addf %460, %461 : vector<8x64xf32>
    %463 = math.tanh %462 : vector<8x64xf32>
    %464 = arith.mulf %457, %463 : vector<8x64xf32>
    %465 = vector.extract_strided_slice %464 {offsets = [0, 0], sizes = [8, 32], strides = [1, 1]} : vector<8x64xf32> to vector<8x32xf32>
    %c8_i32_138 = arith.constant 8 : i32
    %466 = arith.muli %c14_i32, %c8_i32_138 : i32
    %467 = arith.index_cast %466 : i32 to index
    %c0_139 = arith.constant 0 : index
    %468 = vector.load %arg11[%467, %c0_139] : memref<256x64xf32, #tpu.memory_space<vmem>>, vector<8x32xf32>
    tpu.vector_store %arg11[%467, %c0_139], %465 {strides = array<i32>} : memref<256x64xf32, #tpu.memory_space<vmem>>, vector<8x32xf32>,
    %469 = vector.extract_strided_slice %464 {offsets = [0, 32], sizes = [8, 32], strides = [1, 1]} : vector<8x64xf32> to vector<8x32xf32>
    %c31_i32_140 = arith.constant 31 : i32
    %470 = arith.subi %c31_i32_140, %c14_i32 : i32
    %c8_i32_141 = arith.constant 8 : i32
    %471 = arith.muli %470, %c8_i32_141 : i32
    %472 = arith.index_cast %471 : i32 to index
    %c32_142 = arith.constant 32 : index
    %473 = vector.load %arg11[%472, %c32_142] : memref<256x64xf32, #tpu.memory_space<vmem>>, vector<8x32xf32>
    tpu.vector_store %arg11[%472, %c32_142], %469 {strides = array<i32>} : memref<256x64xf32, #tpu.memory_space<vmem>>, vector<8x32xf32>,
    %c15_i32 = arith.constant 15 : i32
    %c8_i32_143 = arith.constant 8 : i32
    %474 = arith.muli %c15_i32, %c8_i32_143 : i32
    %475 = arith.index_cast %474 : i32 to index
    %c0_144 = arith.constant 0 : index
    %476 = vector.load %arg10[%475, %c0_144] : memref<256x256xf32, #tpu.memory_space<vmem>>, vector<8x256xf32>
    %477 = arith.truncf %464 : vector<8x64xf32> to vector<8x64xbf16>
    %cst_145 = arith.constant dense<0.000000e+00> : vector<8x256xf32>
    %478 = tpu.matmul %477, %7, %cst_145 {dimension_numbers = #tpu.dot_dimension_numbers<[1], [0], [0], [1], [0, 0, 1, 1], [], []>} : vector<8x64xbf16>, vector<64x256xbf16>, vector<8x256xf32> -> vector<8x256xf32>
    %479 = arith.addf %476, %478 : vector<8x256xf32>
    %480 = vector.extract_strided_slice %479 {offsets = [0, 0], sizes = [8, 192], strides = [1, 1]} : vector<8x256xf32> to vector<8x192xf32>
    %481 = arith.negf %480 : vector<8x192xf32>
    %482 = math.exp %481 : vector<8x192xf32>
    %cst_146 = arith.constant 1.000000e+00 : f32
    %483 = vector.broadcast %cst_146 : f32 to vector<8x192xf32>
    %484 = arith.addf %483, %482 : vector<8x192xf32>
    %485 = arith.divf %483, %484 : vector<8x192xf32>
    %486 = vector.extract_strided_slice %485 {offsets = [0, 0], sizes = [8, 64], strides = [1, 1]} : vector<8x192xf32> to vector<8x64xf32>
    %487 = vector.extract_strided_slice %485 {offsets = [0, 64], sizes = [8, 64], strides = [1, 1]} : vector<8x192xf32> to vector<8x64xf32>
    %488 = vector.extract_strided_slice %485 {offsets = [0, 128], sizes = [8, 64], strides = [1, 1]} : vector<8x192xf32> to vector<8x64xf32>
    %489 = vector.extract_strided_slice %479 {offsets = [0, 192], sizes = [8, 64], strides = [1, 1]} : vector<8x256xf32> to vector<8x64xf32>
    %490 = math.tanh %489 : vector<8x64xf32>
    %491 = arith.mulf %486, %462 : vector<8x64xf32>
    %492 = arith.mulf %487, %490 : vector<8x64xf32>
    %493 = arith.addf %491, %492 : vector<8x64xf32>
    %494 = math.tanh %493 : vector<8x64xf32>
    %495 = arith.mulf %488, %494 : vector<8x64xf32>
    %496 = vector.extract_strided_slice %495 {offsets = [0, 0], sizes = [8, 32], strides = [1, 1]} : vector<8x64xf32> to vector<8x32xf32>
    %c8_i32_147 = arith.constant 8 : i32
    %497 = arith.muli %c15_i32, %c8_i32_147 : i32
    %498 = arith.index_cast %497 : i32 to index
    %c0_148 = arith.constant 0 : index
    %499 = vector.load %arg11[%498, %c0_148] : memref<256x64xf32, #tpu.memory_space<vmem>>, vector<8x32xf32>
    tpu.vector_store %arg11[%498, %c0_148], %496 {strides = array<i32>} : memref<256x64xf32, #tpu.memory_space<vmem>>, vector<8x32xf32>,
    %500 = vector.extract_strided_slice %495 {offsets = [0, 32], sizes = [8, 32], strides = [1, 1]} : vector<8x64xf32> to vector<8x32xf32>
    %c31_i32_149 = arith.constant 31 : i32
    %501 = arith.subi %c31_i32_149, %c15_i32 : i32
    %c8_i32_150 = arith.constant 8 : i32
    %502 = arith.muli %501, %c8_i32_150 : i32
    %503 = arith.index_cast %502 : i32 to index
    %c32_151 = arith.constant 32 : index
    %504 = vector.load %arg11[%503, %c32_151] : memref<256x64xf32, #tpu.memory_space<vmem>>, vector<8x32xf32>
    tpu.vector_store %arg11[%503, %c32_151], %500 {strides = array<i32>} : memref<256x64xf32, #tpu.memory_space<vmem>>, vector<8x32xf32>,
    %c16_i32 = arith.constant 16 : i32
    %c8_i32_152 = arith.constant 8 : i32
    %505 = arith.muli %c16_i32, %c8_i32_152 : i32
    %506 = arith.index_cast %505 : i32 to index
    %c0_153 = arith.constant 0 : index
    %507 = vector.load %arg10[%506, %c0_153] : memref<256x256xf32, #tpu.memory_space<vmem>>, vector<8x256xf32>
    %508 = arith.truncf %495 : vector<8x64xf32> to vector<8x64xbf16>
    %cst_154 = arith.constant dense<0.000000e+00> : vector<8x256xf32>
    %509 = tpu.matmul %508, %7, %cst_154 {dimension_numbers = #tpu.dot_dimension_numbers<[1], [0], [0], [1], [0, 0, 1, 1], [], []>} : vector<8x64xbf16>, vector<64x256xbf16>, vector<8x256xf32> -> vector<8x256xf32>
    %510 = arith.addf %507, %509 : vector<8x256xf32>
    %511 = vector.extract_strided_slice %510 {offsets = [0, 0], sizes = [8, 192], strides = [1, 1]} : vector<8x256xf32> to vector<8x192xf32>
    %512 = arith.negf %511 : vector<8x192xf32>
    %513 = math.exp %512 : vector<8x192xf32>
    %cst_155 = arith.constant 1.000000e+00 : f32
    %514 = vector.broadcast %cst_155 : f32 to vector<8x192xf32>
    %515 = arith.addf %514, %513 : vector<8x192xf32>
    %516 = arith.divf %514, %515 : vector<8x192xf32>
    %517 = vector.extract_strided_slice %516 {offsets = [0, 0], sizes = [8, 64], strides = [1, 1]} : vector<8x192xf32> to vector<8x64xf32>
    %518 = vector.extract_strided_slice %516 {offsets = [0, 64], sizes = [8, 64], strides = [1, 1]} : vector<8x192xf32> to vector<8x64xf32>
    %519 = vector.extract_strided_slice %516 {offsets = [0, 128], sizes = [8, 64], strides = [1, 1]} : vector<8x192xf32> to vector<8x64xf32>
    %520 = vector.extract_strided_slice %510 {offsets = [0, 192], sizes = [8, 64], strides = [1, 1]} : vector<8x256xf32> to vector<8x64xf32>
    %521 = math.tanh %520 : vector<8x64xf32>
    %522 = arith.mulf %517, %493 : vector<8x64xf32>
    %523 = arith.mulf %518, %521 : vector<8x64xf32>
    %524 = arith.addf %522, %523 : vector<8x64xf32>
    %525 = math.tanh %524 : vector<8x64xf32>
    %526 = arith.mulf %519, %525 : vector<8x64xf32>
    %527 = vector.extract_strided_slice %526 {offsets = [0, 0], sizes = [8, 32], strides = [1, 1]} : vector<8x64xf32> to vector<8x32xf32>
    %c8_i32_156 = arith.constant 8 : i32
    %528 = arith.muli %c16_i32, %c8_i32_156 : i32
    %529 = arith.index_cast %528 : i32 to index
    %c0_157 = arith.constant 0 : index
    %530 = vector.load %arg11[%529, %c0_157] : memref<256x64xf32, #tpu.memory_space<vmem>>, vector<8x32xf32>
    tpu.vector_store %arg11[%529, %c0_157], %527 {strides = array<i32>} : memref<256x64xf32, #tpu.memory_space<vmem>>, vector<8x32xf32>,
    %531 = vector.extract_strided_slice %526 {offsets = [0, 32], sizes = [8, 32], strides = [1, 1]} : vector<8x64xf32> to vector<8x32xf32>
    %c31_i32_158 = arith.constant 31 : i32
    %532 = arith.subi %c31_i32_158, %c16_i32 : i32
    %c8_i32_159 = arith.constant 8 : i32
    %533 = arith.muli %532, %c8_i32_159 : i32
    %534 = arith.index_cast %533 : i32 to index
    %c32_160 = arith.constant 32 : index
    %535 = vector.load %arg11[%534, %c32_160] : memref<256x64xf32, #tpu.memory_space<vmem>>, vector<8x32xf32>
    tpu.vector_store %arg11[%534, %c32_160], %531 {strides = array<i32>} : memref<256x64xf32, #tpu.memory_space<vmem>>, vector<8x32xf32>,
    %c17_i32 = arith.constant 17 : i32
    %c8_i32_161 = arith.constant 8 : i32
    %536 = arith.muli %c17_i32, %c8_i32_161 : i32
    %537 = arith.index_cast %536 : i32 to index
    %c0_162 = arith.constant 0 : index
    %538 = vector.load %arg10[%537, %c0_162] : memref<256x256xf32, #tpu.memory_space<vmem>>, vector<8x256xf32>
    %539 = arith.truncf %526 : vector<8x64xf32> to vector<8x64xbf16>
    %cst_163 = arith.constant dense<0.000000e+00> : vector<8x256xf32>
    %540 = tpu.matmul %539, %7, %cst_163 {dimension_numbers = #tpu.dot_dimension_numbers<[1], [0], [0], [1], [0, 0, 1, 1], [], []>} : vector<8x64xbf16>, vector<64x256xbf16>, vector<8x256xf32> -> vector<8x256xf32>
    %541 = arith.addf %538, %540 : vector<8x256xf32>
    %542 = vector.extract_strided_slice %541 {offsets = [0, 0], sizes = [8, 192], strides = [1, 1]} : vector<8x256xf32> to vector<8x192xf32>
    %543 = arith.negf %542 : vector<8x192xf32>
    %544 = math.exp %543 : vector<8x192xf32>
    %cst_164 = arith.constant 1.000000e+00 : f32
    %545 = vector.broadcast %cst_164 : f32 to vector<8x192xf32>
    %546 = arith.addf %545, %544 : vector<8x192xf32>
    %547 = arith.divf %545, %546 : vector<8x192xf32>
    %548 = vector.extract_strided_slice %547 {offsets = [0, 0], sizes = [8, 64], strides = [1, 1]} : vector<8x192xf32> to vector<8x64xf32>
    %549 = vector.extract_strided_slice %547 {offsets = [0, 64], sizes = [8, 64], strides = [1, 1]} : vector<8x192xf32> to vector<8x64xf32>
    %550 = vector.extract_strided_slice %547 {offsets = [0, 128], sizes = [8, 64], strides = [1, 1]} : vector<8x192xf32> to vector<8x64xf32>
    %551 = vector.extract_strided_slice %541 {offsets = [0, 192], sizes = [8, 64], strides = [1, 1]} : vector<8x256xf32> to vector<8x64xf32>
    %552 = math.tanh %551 : vector<8x64xf32>
    %553 = arith.mulf %548, %524 : vector<8x64xf32>
    %554 = arith.mulf %549, %552 : vector<8x64xf32>
    %555 = arith.addf %553, %554 : vector<8x64xf32>
    %556 = math.tanh %555 : vector<8x64xf32>
    %557 = arith.mulf %550, %556 : vector<8x64xf32>
    %558 = vector.extract_strided_slice %557 {offsets = [0, 0], sizes = [8, 32], strides = [1, 1]} : vector<8x64xf32> to vector<8x32xf32>
    %c8_i32_165 = arith.constant 8 : i32
    %559 = arith.muli %c17_i32, %c8_i32_165 : i32
    %560 = arith.index_cast %559 : i32 to index
    %c0_166 = arith.constant 0 : index
    %561 = vector.load %arg11[%560, %c0_166] : memref<256x64xf32, #tpu.memory_space<vmem>>, vector<8x32xf32>
    tpu.vector_store %arg11[%560, %c0_166], %558 {strides = array<i32>} : memref<256x64xf32, #tpu.memory_space<vmem>>, vector<8x32xf32>,
    %562 = vector.extract_strided_slice %557 {offsets = [0, 32], sizes = [8, 32], strides = [1, 1]} : vector<8x64xf32> to vector<8x32xf32>
    %c31_i32_167 = arith.constant 31 : i32
    %563 = arith.subi %c31_i32_167, %c17_i32 : i32
    %c8_i32_168 = arith.constant 8 : i32
    %564 = arith.muli %563, %c8_i32_168 : i32
    %565 = arith.index_cast %564 : i32 to index
    %c32_169 = arith.constant 32 : index
    %566 = vector.load %arg11[%565, %c32_169] : memref<256x64xf32, #tpu.memory_space<vmem>>, vector<8x32xf32>
    tpu.vector_store %arg11[%565, %c32_169], %562 {strides = array<i32>} : memref<256x64xf32, #tpu.memory_space<vmem>>, vector<8x32xf32>,
    %c18_i32 = arith.constant 18 : i32
    %c8_i32_170 = arith.constant 8 : i32
    %567 = arith.muli %c18_i32, %c8_i32_170 : i32
    %568 = arith.index_cast %567 : i32 to index
    %c0_171 = arith.constant 0 : index
    %569 = vector.load %arg10[%568, %c0_171] : memref<256x256xf32, #tpu.memory_space<vmem>>, vector<8x256xf32>
    %570 = arith.truncf %557 : vector<8x64xf32> to vector<8x64xbf16>
    %cst_172 = arith.constant dense<0.000000e+00> : vector<8x256xf32>
    %571 = tpu.matmul %570, %7, %cst_172 {dimension_numbers = #tpu.dot_dimension_numbers<[1], [0], [0], [1], [0, 0, 1, 1], [], []>} : vector<8x64xbf16>, vector<64x256xbf16>, vector<8x256xf32> -> vector<8x256xf32>
    %572 = arith.addf %569, %571 : vector<8x256xf32>
    %573 = vector.extract_strided_slice %572 {offsets = [0, 0], sizes = [8, 192], strides = [1, 1]} : vector<8x256xf32> to vector<8x192xf32>
    %574 = arith.negf %573 : vector<8x192xf32>
    %575 = math.exp %574 : vector<8x192xf32>
    %cst_173 = arith.constant 1.000000e+00 : f32
    %576 = vector.broadcast %cst_173 : f32 to vector<8x192xf32>
    %577 = arith.addf %576, %575 : vector<8x192xf32>
    %578 = arith.divf %576, %577 : vector<8x192xf32>
    %579 = vector.extract_strided_slice %578 {offsets = [0, 0], sizes = [8, 64], strides = [1, 1]} : vector<8x192xf32> to vector<8x64xf32>
    %580 = vector.extract_strided_slice %578 {offsets = [0, 64], sizes = [8, 64], strides = [1, 1]} : vector<8x192xf32> to vector<8x64xf32>
    %581 = vector.extract_strided_slice %578 {offsets = [0, 128], sizes = [8, 64], strides = [1, 1]} : vector<8x192xf32> to vector<8x64xf32>
    %582 = vector.extract_strided_slice %572 {offsets = [0, 192], sizes = [8, 64], strides = [1, 1]} : vector<8x256xf32> to vector<8x64xf32>
    %583 = math.tanh %582 : vector<8x64xf32>
    %584 = arith.mulf %579, %555 : vector<8x64xf32>
    %585 = arith.mulf %580, %583 : vector<8x64xf32>
    %586 = arith.addf %584, %585 : vector<8x64xf32>
    %587 = math.tanh %586 : vector<8x64xf32>
    %588 = arith.mulf %581, %587 : vector<8x64xf32>
    %589 = vector.extract_strided_slice %588 {offsets = [0, 0], sizes = [8, 32], strides = [1, 1]} : vector<8x64xf32> to vector<8x32xf32>
    %c8_i32_174 = arith.constant 8 : i32
    %590 = arith.muli %c18_i32, %c8_i32_174 : i32
    %591 = arith.index_cast %590 : i32 to index
    %c0_175 = arith.constant 0 : index
    %592 = vector.load %arg11[%591, %c0_175] : memref<256x64xf32, #tpu.memory_space<vmem>>, vector<8x32xf32>
    tpu.vector_store %arg11[%591, %c0_175], %589 {strides = array<i32>} : memref<256x64xf32, #tpu.memory_space<vmem>>, vector<8x32xf32>,
    %593 = vector.extract_strided_slice %588 {offsets = [0, 32], sizes = [8, 32], strides = [1, 1]} : vector<8x64xf32> to vector<8x32xf32>
    %c31_i32_176 = arith.constant 31 : i32
    %594 = arith.subi %c31_i32_176, %c18_i32 : i32
    %c8_i32_177 = arith.constant 8 : i32
    %595 = arith.muli %594, %c8_i32_177 : i32
    %596 = arith.index_cast %595 : i32 to index
    %c32_178 = arith.constant 32 : index
    %597 = vector.load %arg11[%596, %c32_178] : memref<256x64xf32, #tpu.memory_space<vmem>>, vector<8x32xf32>
    tpu.vector_store %arg11[%596, %c32_178], %593 {strides = array<i32>} : memref<256x64xf32, #tpu.memory_space<vmem>>, vector<8x32xf32>,
    %c19_i32 = arith.constant 19 : i32
    %c8_i32_179 = arith.constant 8 : i32
    %598 = arith.muli %c19_i32, %c8_i32_179 : i32
    %599 = arith.index_cast %598 : i32 to index
    %c0_180 = arith.constant 0 : index
    %600 = vector.load %arg10[%599, %c0_180] : memref<256x256xf32, #tpu.memory_space<vmem>>, vector<8x256xf32>
    %601 = arith.truncf %588 : vector<8x64xf32> to vector<8x64xbf16>
    %cst_181 = arith.constant dense<0.000000e+00> : vector<8x256xf32>
    %602 = tpu.matmul %601, %7, %cst_181 {dimension_numbers = #tpu.dot_dimension_numbers<[1], [0], [0], [1], [0, 0, 1, 1], [], []>} : vector<8x64xbf16>, vector<64x256xbf16>, vector<8x256xf32> -> vector<8x256xf32>
    %603 = arith.addf %600, %602 : vector<8x256xf32>
    %604 = vector.extract_strided_slice %603 {offsets = [0, 0], sizes = [8, 192], strides = [1, 1]} : vector<8x256xf32> to vector<8x192xf32>
    %605 = arith.negf %604 : vector<8x192xf32>
    %606 = math.exp %605 : vector<8x192xf32>
    %cst_182 = arith.constant 1.000000e+00 : f32
    %607 = vector.broadcast %cst_182 : f32 to vector<8x192xf32>
    %608 = arith.addf %607, %606 : vector<8x192xf32>
    %609 = arith.divf %607, %608 : vector<8x192xf32>
    %610 = vector.extract_strided_slice %609 {offsets = [0, 0], sizes = [8, 64], strides = [1, 1]} : vector<8x192xf32> to vector<8x64xf32>
    %611 = vector.extract_strided_slice %609 {offsets = [0, 64], sizes = [8, 64], strides = [1, 1]} : vector<8x192xf32> to vector<8x64xf32>
    %612 = vector.extract_strided_slice %609 {offsets = [0, 128], sizes = [8, 64], strides = [1, 1]} : vector<8x192xf32> to vector<8x64xf32>
    %613 = vector.extract_strided_slice %603 {offsets = [0, 192], sizes = [8, 64], strides = [1, 1]} : vector<8x256xf32> to vector<8x64xf32>
    %614 = math.tanh %613 : vector<8x64xf32>
    %615 = arith.mulf %610, %586 : vector<8x64xf32>
    %616 = arith.mulf %611, %614 : vector<8x64xf32>
    %617 = arith.addf %615, %616 : vector<8x64xf32>
    %618 = math.tanh %617 : vector<8x64xf32>
    %619 = arith.mulf %612, %618 : vector<8x64xf32>
    %620 = vector.extract_strided_slice %619 {offsets = [0, 0], sizes = [8, 32], strides = [1, 1]} : vector<8x64xf32> to vector<8x32xf32>
    %c8_i32_183 = arith.constant 8 : i32
    %621 = arith.muli %c19_i32, %c8_i32_183 : i32
    %622 = arith.index_cast %621 : i32 to index
    %c0_184 = arith.constant 0 : index
    %623 = vector.load %arg11[%622, %c0_184] : memref<256x64xf32, #tpu.memory_space<vmem>>, vector<8x32xf32>
    tpu.vector_store %arg11[%622, %c0_184], %620 {strides = array<i32>} : memref<256x64xf32, #tpu.memory_space<vmem>>, vector<8x32xf32>,
    %624 = vector.extract_strided_slice %619 {offsets = [0, 32], sizes = [8, 32], strides = [1, 1]} : vector<8x64xf32> to vector<8x32xf32>
    %c31_i32_185 = arith.constant 31 : i32
    %625 = arith.subi %c31_i32_185, %c19_i32 : i32
    %c8_i32_186 = arith.constant 8 : i32
    %626 = arith.muli %625, %c8_i32_186 : i32
    %627 = arith.index_cast %626 : i32 to index
    %c32_187 = arith.constant 32 : index
    %628 = vector.load %arg11[%627, %c32_187] : memref<256x64xf32, #tpu.memory_space<vmem>>, vector<8x32xf32>
    tpu.vector_store %arg11[%627, %c32_187], %624 {strides = array<i32>} : memref<256x64xf32, #tpu.memory_space<vmem>>, vector<8x32xf32>,
    %c20_i32 = arith.constant 20 : i32
    %c8_i32_188 = arith.constant 8 : i32
    %629 = arith.muli %c20_i32, %c8_i32_188 : i32
    %630 = arith.index_cast %629 : i32 to index
    %c0_189 = arith.constant 0 : index
    %631 = vector.load %arg10[%630, %c0_189] : memref<256x256xf32, #tpu.memory_space<vmem>>, vector<8x256xf32>
    %632 = arith.truncf %619 : vector<8x64xf32> to vector<8x64xbf16>
    %cst_190 = arith.constant dense<0.000000e+00> : vector<8x256xf32>
    %633 = tpu.matmul %632, %7, %cst_190 {dimension_numbers = #tpu.dot_dimension_numbers<[1], [0], [0], [1], [0, 0, 1, 1], [], []>} : vector<8x64xbf16>, vector<64x256xbf16>, vector<8x256xf32> -> vector<8x256xf32>
    %634 = arith.addf %631, %633 : vector<8x256xf32>
    %635 = vector.extract_strided_slice %634 {offsets = [0, 0], sizes = [8, 192], strides = [1, 1]} : vector<8x256xf32> to vector<8x192xf32>
    %636 = arith.negf %635 : vector<8x192xf32>
    %637 = math.exp %636 : vector<8x192xf32>
    %cst_191 = arith.constant 1.000000e+00 : f32
    %638 = vector.broadcast %cst_191 : f32 to vector<8x192xf32>
    %639 = arith.addf %638, %637 : vector<8x192xf32>
    %640 = arith.divf %638, %639 : vector<8x192xf32>
    %641 = vector.extract_strided_slice %640 {offsets = [0, 0], sizes = [8, 64], strides = [1, 1]} : vector<8x192xf32> to vector<8x64xf32>
    %642 = vector.extract_strided_slice %640 {offsets = [0, 64], sizes = [8, 64], strides = [1, 1]} : vector<8x192xf32> to vector<8x64xf32>
    %643 = vector.extract_strided_slice %640 {offsets = [0, 128], sizes = [8, 64], strides = [1, 1]} : vector<8x192xf32> to vector<8x64xf32>
    %644 = vector.extract_strided_slice %634 {offsets = [0, 192], sizes = [8, 64], strides = [1, 1]} : vector<8x256xf32> to vector<8x64xf32>
    %645 = math.tanh %644 : vector<8x64xf32>
    %646 = arith.mulf %641, %617 : vector<8x64xf32>
    %647 = arith.mulf %642, %645 : vector<8x64xf32>
    %648 = arith.addf %646, %647 : vector<8x64xf32>
    %649 = math.tanh %648 : vector<8x64xf32>
    %650 = arith.mulf %643, %649 : vector<8x64xf32>
    %651 = vector.extract_strided_slice %650 {offsets = [0, 0], sizes = [8, 32], strides = [1, 1]} : vector<8x64xf32> to vector<8x32xf32>
    %c8_i32_192 = arith.constant 8 : i32
    %652 = arith.muli %c20_i32, %c8_i32_192 : i32
    %653 = arith.index_cast %652 : i32 to index
    %c0_193 = arith.constant 0 : index
    %654 = vector.load %arg11[%653, %c0_193] : memref<256x64xf32, #tpu.memory_space<vmem>>, vector<8x32xf32>
    tpu.vector_store %arg11[%653, %c0_193], %651 {strides = array<i32>} : memref<256x64xf32, #tpu.memory_space<vmem>>, vector<8x32xf32>,
    %655 = vector.extract_strided_slice %650 {offsets = [0, 32], sizes = [8, 32], strides = [1, 1]} : vector<8x64xf32> to vector<8x32xf32>
    %c31_i32_194 = arith.constant 31 : i32
    %656 = arith.subi %c31_i32_194, %c20_i32 : i32
    %c8_i32_195 = arith.constant 8 : i32
    %657 = arith.muli %656, %c8_i32_195 : i32
    %658 = arith.index_cast %657 : i32 to index
    %c32_196 = arith.constant 32 : index
    %659 = vector.load %arg11[%658, %c32_196] : memref<256x64xf32, #tpu.memory_space<vmem>>, vector<8x32xf32>
    tpu.vector_store %arg11[%658, %c32_196], %655 {strides = array<i32>} : memref<256x64xf32, #tpu.memory_space<vmem>>, vector<8x32xf32>,
    %c21_i32 = arith.constant 21 : i32
    %c8_i32_197 = arith.constant 8 : i32
    %660 = arith.muli %c21_i32, %c8_i32_197 : i32
    %661 = arith.index_cast %660 : i32 to index
    %c0_198 = arith.constant 0 : index
    %662 = vector.load %arg10[%661, %c0_198] : memref<256x256xf32, #tpu.memory_space<vmem>>, vector<8x256xf32>
    %663 = arith.truncf %650 : vector<8x64xf32> to vector<8x64xbf16>
    %cst_199 = arith.constant dense<0.000000e+00> : vector<8x256xf32>
    %664 = tpu.matmul %663, %7, %cst_199 {dimension_numbers = #tpu.dot_dimension_numbers<[1], [0], [0], [1], [0, 0, 1, 1], [], []>} : vector<8x64xbf16>, vector<64x256xbf16>, vector<8x256xf32> -> vector<8x256xf32>
    %665 = arith.addf %662, %664 : vector<8x256xf32>
    %666 = vector.extract_strided_slice %665 {offsets = [0, 0], sizes = [8, 192], strides = [1, 1]} : vector<8x256xf32> to vector<8x192xf32>
    %667 = arith.negf %666 : vector<8x192xf32>
    %668 = math.exp %667 : vector<8x192xf32>
    %cst_200 = arith.constant 1.000000e+00 : f32
    %669 = vector.broadcast %cst_200 : f32 to vector<8x192xf32>
    %670 = arith.addf %669, %668 : vector<8x192xf32>
    %671 = arith.divf %669, %670 : vector<8x192xf32>
    %672 = vector.extract_strided_slice %671 {offsets = [0, 0], sizes = [8, 64], strides = [1, 1]} : vector<8x192xf32> to vector<8x64xf32>
    %673 = vector.extract_strided_slice %671 {offsets = [0, 64], sizes = [8, 64], strides = [1, 1]} : vector<8x192xf32> to vector<8x64xf32>
    %674 = vector.extract_strided_slice %671 {offsets = [0, 128], sizes = [8, 64], strides = [1, 1]} : vector<8x192xf32> to vector<8x64xf32>
    %675 = vector.extract_strided_slice %665 {offsets = [0, 192], sizes = [8, 64], strides = [1, 1]} : vector<8x256xf32> to vector<8x64xf32>
    %676 = math.tanh %675 : vector<8x64xf32>
    %677 = arith.mulf %672, %648 : vector<8x64xf32>
    %678 = arith.mulf %673, %676 : vector<8x64xf32>
    %679 = arith.addf %677, %678 : vector<8x64xf32>
    %680 = math.tanh %679 : vector<8x64xf32>
    %681 = arith.mulf %674, %680 : vector<8x64xf32>
    %682 = vector.extract_strided_slice %681 {offsets = [0, 0], sizes = [8, 32], strides = [1, 1]} : vector<8x64xf32> to vector<8x32xf32>
    %c8_i32_201 = arith.constant 8 : i32
    %683 = arith.muli %c21_i32, %c8_i32_201 : i32
    %684 = arith.index_cast %683 : i32 to index
    %c0_202 = arith.constant 0 : index
    %685 = vector.load %arg11[%684, %c0_202] : memref<256x64xf32, #tpu.memory_space<vmem>>, vector<8x32xf32>
    tpu.vector_store %arg11[%684, %c0_202], %682 {strides = array<i32>} : memref<256x64xf32, #tpu.memory_space<vmem>>, vector<8x32xf32>,
    %686 = vector.extract_strided_slice %681 {offsets = [0, 32], sizes = [8, 32], strides = [1, 1]} : vector<8x64xf32> to vector<8x32xf32>
    %c31_i32_203 = arith.constant 31 : i32
    %687 = arith.subi %c31_i32_203, %c21_i32 : i32
    %c8_i32_204 = arith.constant 8 : i32
    %688 = arith.muli %687, %c8_i32_204 : i32
    %689 = arith.index_cast %688 : i32 to index
    %c32_205 = arith.constant 32 : index
    %690 = vector.load %arg11[%689, %c32_205] : memref<256x64xf32, #tpu.memory_space<vmem>>, vector<8x32xf32>
    tpu.vector_store %arg11[%689, %c32_205], %686 {strides = array<i32>} : memref<256x64xf32, #tpu.memory_space<vmem>>, vector<8x32xf32>,
    %c22_i32 = arith.constant 22 : i32
    %c8_i32_206 = arith.constant 8 : i32
    %691 = arith.muli %c22_i32, %c8_i32_206 : i32
    %692 = arith.index_cast %691 : i32 to index
    %c0_207 = arith.constant 0 : index
    %693 = vector.load %arg10[%692, %c0_207] : memref<256x256xf32, #tpu.memory_space<vmem>>, vector<8x256xf32>
    %694 = arith.truncf %681 : vector<8x64xf32> to vector<8x64xbf16>
    %cst_208 = arith.constant dense<0.000000e+00> : vector<8x256xf32>
    %695 = tpu.matmul %694, %7, %cst_208 {dimension_numbers = #tpu.dot_dimension_numbers<[1], [0], [0], [1], [0, 0, 1, 1], [], []>} : vector<8x64xbf16>, vector<64x256xbf16>, vector<8x256xf32> -> vector<8x256xf32>
    %696 = arith.addf %693, %695 : vector<8x256xf32>
    %697 = vector.extract_strided_slice %696 {offsets = [0, 0], sizes = [8, 192], strides = [1, 1]} : vector<8x256xf32> to vector<8x192xf32>
    %698 = arith.negf %697 : vector<8x192xf32>
    %699 = math.exp %698 : vector<8x192xf32>
    %cst_209 = arith.constant 1.000000e+00 : f32
    %700 = vector.broadcast %cst_209 : f32 to vector<8x192xf32>
    %701 = arith.addf %700, %699 : vector<8x192xf32>
    %702 = arith.divf %700, %701 : vector<8x192xf32>
    %703 = vector.extract_strided_slice %702 {offsets = [0, 0], sizes = [8, 64], strides = [1, 1]} : vector<8x192xf32> to vector<8x64xf32>
    %704 = vector.extract_strided_slice %702 {offsets = [0, 64], sizes = [8, 64], strides = [1, 1]} : vector<8x192xf32> to vector<8x64xf32>
    %705 = vector.extract_strided_slice %702 {offsets = [0, 128], sizes = [8, 64], strides = [1, 1]} : vector<8x192xf32> to vector<8x64xf32>
    %706 = vector.extract_strided_slice %696 {offsets = [0, 192], sizes = [8, 64], strides = [1, 1]} : vector<8x256xf32> to vector<8x64xf32>
    %707 = math.tanh %706 : vector<8x64xf32>
    %708 = arith.mulf %703, %679 : vector<8x64xf32>
    %709 = arith.mulf %704, %707 : vector<8x64xf32>
    %710 = arith.addf %708, %709 : vector<8x64xf32>
    %711 = math.tanh %710 : vector<8x64xf32>
    %712 = arith.mulf %705, %711 : vector<8x64xf32>
    %713 = vector.extract_strided_slice %712 {offsets = [0, 0], sizes = [8, 32], strides = [1, 1]} : vector<8x64xf32> to vector<8x32xf32>
    %c8_i32_210 = arith.constant 8 : i32
    %714 = arith.muli %c22_i32, %c8_i32_210 : i32
    %715 = arith.index_cast %714 : i32 to index
    %c0_211 = arith.constant 0 : index
    %716 = vector.load %arg11[%715, %c0_211] : memref<256x64xf32, #tpu.memory_space<vmem>>, vector<8x32xf32>
    tpu.vector_store %arg11[%715, %c0_211], %713 {strides = array<i32>} : memref<256x64xf32, #tpu.memory_space<vmem>>, vector<8x32xf32>,
    %717 = vector.extract_strided_slice %712 {offsets = [0, 32], sizes = [8, 32], strides = [1, 1]} : vector<8x64xf32> to vector<8x32xf32>
    %c31_i32_212 = arith.constant 31 : i32
    %718 = arith.subi %c31_i32_212, %c22_i32 : i32
    %c8_i32_213 = arith.constant 8 : i32
    %719 = arith.muli %718, %c8_i32_213 : i32
    %720 = arith.index_cast %719 : i32 to index
    %c32_214 = arith.constant 32 : index
    %721 = vector.load %arg11[%720, %c32_214] : memref<256x64xf32, #tpu.memory_space<vmem>>, vector<8x32xf32>
    tpu.vector_store %arg11[%720, %c32_214], %717 {strides = array<i32>} : memref<256x64xf32, #tpu.memory_space<vmem>>, vector<8x32xf32>,
    %c23_i32 = arith.constant 23 : i32
    %c8_i32_215 = arith.constant 8 : i32
    %722 = arith.muli %c23_i32, %c8_i32_215 : i32
    %723 = arith.index_cast %722 : i32 to index
    %c0_216 = arith.constant 0 : index
    %724 = vector.load %arg10[%723, %c0_216] : memref<256x256xf32, #tpu.memory_space<vmem>>, vector<8x256xf32>
    %725 = arith.truncf %712 : vector<8x64xf32> to vector<8x64xbf16>
    %cst_217 = arith.constant dense<0.000000e+00> : vector<8x256xf32>
    %726 = tpu.matmul %725, %7, %cst_217 {dimension_numbers = #tpu.dot_dimension_numbers<[1], [0], [0], [1], [0, 0, 1, 1], [], []>} : vector<8x64xbf16>, vector<64x256xbf16>, vector<8x256xf32> -> vector<8x256xf32>
    %727 = arith.addf %724, %726 : vector<8x256xf32>
    %728 = vector.extract_strided_slice %727 {offsets = [0, 0], sizes = [8, 192], strides = [1, 1]} : vector<8x256xf32> to vector<8x192xf32>
    %729 = arith.negf %728 : vector<8x192xf32>
    %730 = math.exp %729 : vector<8x192xf32>
    %cst_218 = arith.constant 1.000000e+00 : f32
    %731 = vector.broadcast %cst_218 : f32 to vector<8x192xf32>
    %732 = arith.addf %731, %730 : vector<8x192xf32>
    %733 = arith.divf %731, %732 : vector<8x192xf32>
    %734 = vector.extract_strided_slice %733 {offsets = [0, 0], sizes = [8, 64], strides = [1, 1]} : vector<8x192xf32> to vector<8x64xf32>
    %735 = vector.extract_strided_slice %733 {offsets = [0, 64], sizes = [8, 64], strides = [1, 1]} : vector<8x192xf32> to vector<8x64xf32>
    %736 = vector.extract_strided_slice %733 {offsets = [0, 128], sizes = [8, 64], strides = [1, 1]} : vector<8x192xf32> to vector<8x64xf32>
    %737 = vector.extract_strided_slice %727 {offsets = [0, 192], sizes = [8, 64], strides = [1, 1]} : vector<8x256xf32> to vector<8x64xf32>
    %738 = math.tanh %737 : vector<8x64xf32>
    %739 = arith.mulf %734, %710 : vector<8x64xf32>
    %740 = arith.mulf %735, %738 : vector<8x64xf32>
    %741 = arith.addf %739, %740 : vector<8x64xf32>
    %742 = math.tanh %741 : vector<8x64xf32>
    %743 = arith.mulf %736, %742 : vector<8x64xf32>
    %744 = vector.extract_strided_slice %743 {offsets = [0, 0], sizes = [8, 32], strides = [1, 1]} : vector<8x64xf32> to vector<8x32xf32>
    %c8_i32_219 = arith.constant 8 : i32
    %745 = arith.muli %c23_i32, %c8_i32_219 : i32
    %746 = arith.index_cast %745 : i32 to index
    %c0_220 = arith.constant 0 : index
    %747 = vector.load %arg11[%746, %c0_220] : memref<256x64xf32, #tpu.memory_space<vmem>>, vector<8x32xf32>
    tpu.vector_store %arg11[%746, %c0_220], %744 {strides = array<i32>} : memref<256x64xf32, #tpu.memory_space<vmem>>, vector<8x32xf32>,
    %748 = vector.extract_strided_slice %743 {offsets = [0, 32], sizes = [8, 32], strides = [1, 1]} : vector<8x64xf32> to vector<8x32xf32>
    %c31_i32_221 = arith.constant 31 : i32
    %749 = arith.subi %c31_i32_221, %c23_i32 : i32
    %c8_i32_222 = arith.constant 8 : i32
    %750 = arith.muli %749, %c8_i32_222 : i32
    %751 = arith.index_cast %750 : i32 to index
    %c32_223 = arith.constant 32 : index
    %752 = vector.load %arg11[%751, %c32_223] : memref<256x64xf32, #tpu.memory_space<vmem>>, vector<8x32xf32>
    tpu.vector_store %arg11[%751, %c32_223], %748 {strides = array<i32>} : memref<256x64xf32, #tpu.memory_space<vmem>>, vector<8x32xf32>,
    %c24_i32 = arith.constant 24 : i32
    %c8_i32_224 = arith.constant 8 : i32
    %753 = arith.muli %c24_i32, %c8_i32_224 : i32
    %754 = arith.index_cast %753 : i32 to index
    %c0_225 = arith.constant 0 : index
    %755 = vector.load %arg10[%754, %c0_225] : memref<256x256xf32, #tpu.memory_space<vmem>>, vector<8x256xf32>
    %756 = arith.truncf %743 : vector<8x64xf32> to vector<8x64xbf16>
    %cst_226 = arith.constant dense<0.000000e+00> : vector<8x256xf32>
    %757 = tpu.matmul %756, %7, %cst_226 {dimension_numbers = #tpu.dot_dimension_numbers<[1], [0], [0], [1], [0, 0, 1, 1], [], []>} : vector<8x64xbf16>, vector<64x256xbf16>, vector<8x256xf32> -> vector<8x256xf32>
    %758 = arith.addf %755, %757 : vector<8x256xf32>
    %759 = vector.extract_strided_slice %758 {offsets = [0, 0], sizes = [8, 192], strides = [1, 1]} : vector<8x256xf32> to vector<8x192xf32>
    %760 = arith.negf %759 : vector<8x192xf32>
    %761 = math.exp %760 : vector<8x192xf32>
    %cst_227 = arith.constant 1.000000e+00 : f32
    %762 = vector.broadcast %cst_227 : f32 to vector<8x192xf32>
    %763 = arith.addf %762, %761 : vector<8x192xf32>
    %764 = arith.divf %762, %763 : vector<8x192xf32>
    %765 = vector.extract_strided_slice %764 {offsets = [0, 0], sizes = [8, 64], strides = [1, 1]} : vector<8x192xf32> to vector<8x64xf32>
    %766 = vector.extract_strided_slice %764 {offsets = [0, 64], sizes = [8, 64], strides = [1, 1]} : vector<8x192xf32> to vector<8x64xf32>
    %767 = vector.extract_strided_slice %764 {offsets = [0, 128], sizes = [8, 64], strides = [1, 1]} : vector<8x192xf32> to vector<8x64xf32>
    %768 = vector.extract_strided_slice %758 {offsets = [0, 192], sizes = [8, 64], strides = [1, 1]} : vector<8x256xf32> to vector<8x64xf32>
    %769 = math.tanh %768 : vector<8x64xf32>
    %770 = arith.mulf %765, %741 : vector<8x64xf32>
    %771 = arith.mulf %766, %769 : vector<8x64xf32>
    %772 = arith.addf %770, %771 : vector<8x64xf32>
    %773 = math.tanh %772 : vector<8x64xf32>
    %774 = arith.mulf %767, %773 : vector<8x64xf32>
    %775 = vector.extract_strided_slice %774 {offsets = [0, 0], sizes = [8, 32], strides = [1, 1]} : vector<8x64xf32> to vector<8x32xf32>
    %c8_i32_228 = arith.constant 8 : i32
    %776 = arith.muli %c24_i32, %c8_i32_228 : i32
    %777 = arith.index_cast %776 : i32 to index
    %c0_229 = arith.constant 0 : index
    %778 = vector.load %arg11[%777, %c0_229] : memref<256x64xf32, #tpu.memory_space<vmem>>, vector<8x32xf32>
    tpu.vector_store %arg11[%777, %c0_229], %775 {strides = array<i32>} : memref<256x64xf32, #tpu.memory_space<vmem>>, vector<8x32xf32>,
    %779 = vector.extract_strided_slice %774 {offsets = [0, 32], sizes = [8, 32], strides = [1, 1]} : vector<8x64xf32> to vector<8x32xf32>
    %c31_i32_230 = arith.constant 31 : i32
    %780 = arith.subi %c31_i32_230, %c24_i32 : i32
    %c8_i32_231 = arith.constant 8 : i32
    %781 = arith.muli %780, %c8_i32_231 : i32
    %782 = arith.index_cast %781 : i32 to index
    %c32_232 = arith.constant 32 : index
    %783 = vector.load %arg11[%782, %c32_232] : memref<256x64xf32, #tpu.memory_space<vmem>>, vector<8x32xf32>
    tpu.vector_store %arg11[%782, %c32_232], %779 {strides = array<i32>} : memref<256x64xf32, #tpu.memory_space<vmem>>, vector<8x32xf32>,
    %c25_i32 = arith.constant 25 : i32
    %c8_i32_233 = arith.constant 8 : i32
    %784 = arith.muli %c25_i32, %c8_i32_233 : i32
    %785 = arith.index_cast %784 : i32 to index
    %c0_234 = arith.constant 0 : index
    %786 = vector.load %arg10[%785, %c0_234] : memref<256x256xf32, #tpu.memory_space<vmem>>, vector<8x256xf32>
    %787 = arith.truncf %774 : vector<8x64xf32> to vector<8x64xbf16>
    %cst_235 = arith.constant dense<0.000000e+00> : vector<8x256xf32>
    %788 = tpu.matmul %787, %7, %cst_235 {dimension_numbers = #tpu.dot_dimension_numbers<[1], [0], [0], [1], [0, 0, 1, 1], [], []>} : vector<8x64xbf16>, vector<64x256xbf16>, vector<8x256xf32> -> vector<8x256xf32>
    %789 = arith.addf %786, %788 : vector<8x256xf32>
    %790 = vector.extract_strided_slice %789 {offsets = [0, 0], sizes = [8, 192], strides = [1, 1]} : vector<8x256xf32> to vector<8x192xf32>
    %791 = arith.negf %790 : vector<8x192xf32>
    %792 = math.exp %791 : vector<8x192xf32>
    %cst_236 = arith.constant 1.000000e+00 : f32
    %793 = vector.broadcast %cst_236 : f32 to vector<8x192xf32>
    %794 = arith.addf %793, %792 : vector<8x192xf32>
    %795 = arith.divf %793, %794 : vector<8x192xf32>
    %796 = vector.extract_strided_slice %795 {offsets = [0, 0], sizes = [8, 64], strides = [1, 1]} : vector<8x192xf32> to vector<8x64xf32>
    %797 = vector.extract_strided_slice %795 {offsets = [0, 64], sizes = [8, 64], strides = [1, 1]} : vector<8x192xf32> to vector<8x64xf32>
    %798 = vector.extract_strided_slice %795 {offsets = [0, 128], sizes = [8, 64], strides = [1, 1]} : vector<8x192xf32> to vector<8x64xf32>
    %799 = vector.extract_strided_slice %789 {offsets = [0, 192], sizes = [8, 64], strides = [1, 1]} : vector<8x256xf32> to vector<8x64xf32>
    %800 = math.tanh %799 : vector<8x64xf32>
    %801 = arith.mulf %796, %772 : vector<8x64xf32>
    %802 = arith.mulf %797, %800 : vector<8x64xf32>
    %803 = arith.addf %801, %802 : vector<8x64xf32>
    %804 = math.tanh %803 : vector<8x64xf32>
    %805 = arith.mulf %798, %804 : vector<8x64xf32>
    %806 = vector.extract_strided_slice %805 {offsets = [0, 0], sizes = [8, 32], strides = [1, 1]} : vector<8x64xf32> to vector<8x32xf32>
    %c8_i32_237 = arith.constant 8 : i32
    %807 = arith.muli %c25_i32, %c8_i32_237 : i32
    %808 = arith.index_cast %807 : i32 to index
    %c0_238 = arith.constant 0 : index
    %809 = vector.load %arg11[%808, %c0_238] : memref<256x64xf32, #tpu.memory_space<vmem>>, vector<8x32xf32>
    tpu.vector_store %arg11[%808, %c0_238], %806 {strides = array<i32>} : memref<256x64xf32, #tpu.memory_space<vmem>>, vector<8x32xf32>,
    %810 = vector.extract_strided_slice %805 {offsets = [0, 32], sizes = [8, 32], strides = [1, 1]} : vector<8x64xf32> to vector<8x32xf32>
    %c31_i32_239 = arith.constant 31 : i32
    %811 = arith.subi %c31_i32_239, %c25_i32 : i32
    %c8_i32_240 = arith.constant 8 : i32
    %812 = arith.muli %811, %c8_i32_240 : i32
    %813 = arith.index_cast %812 : i32 to index
    %c32_241 = arith.constant 32 : index
    %814 = vector.load %arg11[%813, %c32_241] : memref<256x64xf32, #tpu.memory_space<vmem>>, vector<8x32xf32>
    tpu.vector_store %arg11[%813, %c32_241], %810 {strides = array<i32>} : memref<256x64xf32, #tpu.memory_space<vmem>>, vector<8x32xf32>,
    %c26_i32 = arith.constant 26 : i32
    %c8_i32_242 = arith.constant 8 : i32
    %815 = arith.muli %c26_i32, %c8_i32_242 : i32
    %816 = arith.index_cast %815 : i32 to index
    %c0_243 = arith.constant 0 : index
    %817 = vector.load %arg10[%816, %c0_243] : memref<256x256xf32, #tpu.memory_space<vmem>>, vector<8x256xf32>
    %818 = arith.truncf %805 : vector<8x64xf32> to vector<8x64xbf16>
    %cst_244 = arith.constant dense<0.000000e+00> : vector<8x256xf32>
    %819 = tpu.matmul %818, %7, %cst_244 {dimension_numbers = #tpu.dot_dimension_numbers<[1], [0], [0], [1], [0, 0, 1, 1], [], []>} : vector<8x64xbf16>, vector<64x256xbf16>, vector<8x256xf32> -> vector<8x256xf32>
    %820 = arith.addf %817, %819 : vector<8x256xf32>
    %821 = vector.extract_strided_slice %820 {offsets = [0, 0], sizes = [8, 192], strides = [1, 1]} : vector<8x256xf32> to vector<8x192xf32>
    %822 = arith.negf %821 : vector<8x192xf32>
    %823 = math.exp %822 : vector<8x192xf32>
    %cst_245 = arith.constant 1.000000e+00 : f32
    %824 = vector.broadcast %cst_245 : f32 to vector<8x192xf32>
    %825 = arith.addf %824, %823 : vector<8x192xf32>
    %826 = arith.divf %824, %825 : vector<8x192xf32>
    %827 = vector.extract_strided_slice %826 {offsets = [0, 0], sizes = [8, 64], strides = [1, 1]} : vector<8x192xf32> to vector<8x64xf32>
    %828 = vector.extract_strided_slice %826 {offsets = [0, 64], sizes = [8, 64], strides = [1, 1]} : vector<8x192xf32> to vector<8x64xf32>
    %829 = vector.extract_strided_slice %826 {offsets = [0, 128], sizes = [8, 64], strides = [1, 1]} : vector<8x192xf32> to vector<8x64xf32>
    %830 = vector.extract_strided_slice %820 {offsets = [0, 192], sizes = [8, 64], strides = [1, 1]} : vector<8x256xf32> to vector<8x64xf32>
    %831 = math.tanh %830 : vector<8x64xf32>
    %832 = arith.mulf %827, %803 : vector<8x64xf32>
    %833 = arith.mulf %828, %831 : vector<8x64xf32>
    %834 = arith.addf %832, %833 : vector<8x64xf32>
    %835 = math.tanh %834 : vector<8x64xf32>
    %836 = arith.mulf %829, %835 : vector<8x64xf32>
    %837 = vector.extract_strided_slice %836 {offsets = [0, 0], sizes = [8, 32], strides = [1, 1]} : vector<8x64xf32> to vector<8x32xf32>
    %c8_i32_246 = arith.constant 8 : i32
    %838 = arith.muli %c26_i32, %c8_i32_246 : i32
    %839 = arith.index_cast %838 : i32 to index
    %c0_247 = arith.constant 0 : index
    %840 = vector.load %arg11[%839, %c0_247] : memref<256x64xf32, #tpu.memory_space<vmem>>, vector<8x32xf32>
    tpu.vector_store %arg11[%839, %c0_247], %837 {strides = array<i32>} : memref<256x64xf32, #tpu.memory_space<vmem>>, vector<8x32xf32>,
    %841 = vector.extract_strided_slice %836 {offsets = [0, 32], sizes = [8, 32], strides = [1, 1]} : vector<8x64xf32> to vector<8x32xf32>
    %c31_i32_248 = arith.constant 31 : i32
    %842 = arith.subi %c31_i32_248, %c26_i32 : i32
    %c8_i32_249 = arith.constant 8 : i32
    %843 = arith.muli %842, %c8_i32_249 : i32
    %844 = arith.index_cast %843 : i32 to index
    %c32_250 = arith.constant 32 : index
    %845 = vector.load %arg11[%844, %c32_250] : memref<256x64xf32, #tpu.memory_space<vmem>>, vector<8x32xf32>
    tpu.vector_store %arg11[%844, %c32_250], %841 {strides = array<i32>} : memref<256x64xf32, #tpu.memory_space<vmem>>, vector<8x32xf32>,
    %c27_i32 = arith.constant 27 : i32
    %c8_i32_251 = arith.constant 8 : i32
    %846 = arith.muli %c27_i32, %c8_i32_251 : i32
    %847 = arith.index_cast %846 : i32 to index
    %c0_252 = arith.constant 0 : index
    %848 = vector.load %arg10[%847, %c0_252] : memref<256x256xf32, #tpu.memory_space<vmem>>, vector<8x256xf32>
    %849 = arith.truncf %836 : vector<8x64xf32> to vector<8x64xbf16>
    %cst_253 = arith.constant dense<0.000000e+00> : vector<8x256xf32>
    %850 = tpu.matmul %849, %7, %cst_253 {dimension_numbers = #tpu.dot_dimension_numbers<[1], [0], [0], [1], [0, 0, 1, 1], [], []>} : vector<8x64xbf16>, vector<64x256xbf16>, vector<8x256xf32> -> vector<8x256xf32>
    %851 = arith.addf %848, %850 : vector<8x256xf32>
    %852 = vector.extract_strided_slice %851 {offsets = [0, 0], sizes = [8, 192], strides = [1, 1]} : vector<8x256xf32> to vector<8x192xf32>
    %853 = arith.negf %852 : vector<8x192xf32>
    %854 = math.exp %853 : vector<8x192xf32>
    %cst_254 = arith.constant 1.000000e+00 : f32
    %855 = vector.broadcast %cst_254 : f32 to vector<8x192xf32>
    %856 = arith.addf %855, %854 : vector<8x192xf32>
    %857 = arith.divf %855, %856 : vector<8x192xf32>
    %858 = vector.extract_strided_slice %857 {offsets = [0, 0], sizes = [8, 64], strides = [1, 1]} : vector<8x192xf32> to vector<8x64xf32>
    %859 = vector.extract_strided_slice %857 {offsets = [0, 64], sizes = [8, 64], strides = [1, 1]} : vector<8x192xf32> to vector<8x64xf32>
    %860 = vector.extract_strided_slice %857 {offsets = [0, 128], sizes = [8, 64], strides = [1, 1]} : vector<8x192xf32> to vector<8x64xf32>
    %861 = vector.extract_strided_slice %851 {offsets = [0, 192], sizes = [8, 64], strides = [1, 1]} : vector<8x256xf32> to vector<8x64xf32>
    %862 = math.tanh %861 : vector<8x64xf32>
    %863 = arith.mulf %858, %834 : vector<8x64xf32>
    %864 = arith.mulf %859, %862 : vector<8x64xf32>
    %865 = arith.addf %863, %864 : vector<8x64xf32>
    %866 = math.tanh %865 : vector<8x64xf32>
    %867 = arith.mulf %860, %866 : vector<8x64xf32>
    %868 = vector.extract_strided_slice %867 {offsets = [0, 0], sizes = [8, 32], strides = [1, 1]} : vector<8x64xf32> to vector<8x32xf32>
    %c8_i32_255 = arith.constant 8 : i32
    %869 = arith.muli %c27_i32, %c8_i32_255 : i32
    %870 = arith.index_cast %869 : i32 to index
    %c0_256 = arith.constant 0 : index
    %871 = vector.load %arg11[%870, %c0_256] : memref<256x64xf32, #tpu.memory_space<vmem>>, vector<8x32xf32>
    tpu.vector_store %arg11[%870, %c0_256], %868 {strides = array<i32>} : memref<256x64xf32, #tpu.memory_space<vmem>>, vector<8x32xf32>,
    %872 = vector.extract_strided_slice %867 {offsets = [0, 32], sizes = [8, 32], strides = [1, 1]} : vector<8x64xf32> to vector<8x32xf32>
    %c31_i32_257 = arith.constant 31 : i32
    %873 = arith.subi %c31_i32_257, %c27_i32 : i32
    %c8_i32_258 = arith.constant 8 : i32
    %874 = arith.muli %873, %c8_i32_258 : i32
    %875 = arith.index_cast %874 : i32 to index
    %c32_259 = arith.constant 32 : index
    %876 = vector.load %arg11[%875, %c32_259] : memref<256x64xf32, #tpu.memory_space<vmem>>, vector<8x32xf32>
    tpu.vector_store %arg11[%875, %c32_259], %872 {strides = array<i32>} : memref<256x64xf32, #tpu.memory_space<vmem>>, vector<8x32xf32>,
    %c28_i32 = arith.constant 28 : i32
    %c8_i32_260 = arith.constant 8 : i32
    %877 = arith.muli %c28_i32, %c8_i32_260 : i32
    %878 = arith.index_cast %877 : i32 to index
    %c0_261 = arith.constant 0 : index
    %879 = vector.load %arg10[%878, %c0_261] : memref<256x256xf32, #tpu.memory_space<vmem>>, vector<8x256xf32>
    %880 = arith.truncf %867 : vector<8x64xf32> to vector<8x64xbf16>
    %cst_262 = arith.constant dense<0.000000e+00> : vector<8x256xf32>
    %881 = tpu.matmul %880, %7, %cst_262 {dimension_numbers = #tpu.dot_dimension_numbers<[1], [0], [0], [1], [0, 0, 1, 1], [], []>} : vector<8x64xbf16>, vector<64x256xbf16>, vector<8x256xf32> -> vector<8x256xf32>
    %882 = arith.addf %879, %881 : vector<8x256xf32>
    %883 = vector.extract_strided_slice %882 {offsets = [0, 0], sizes = [8, 192], strides = [1, 1]} : vector<8x256xf32> to vector<8x192xf32>
    %884 = arith.negf %883 : vector<8x192xf32>
    %885 = math.exp %884 : vector<8x192xf32>
    %cst_263 = arith.constant 1.000000e+00 : f32
    %886 = vector.broadcast %cst_263 : f32 to vector<8x192xf32>
    %887 = arith.addf %886, %885 : vector<8x192xf32>
    %888 = arith.divf %886, %887 : vector<8x192xf32>
    %889 = vector.extract_strided_slice %888 {offsets = [0, 0], sizes = [8, 64], strides = [1, 1]} : vector<8x192xf32> to vector<8x64xf32>
    %890 = vector.extract_strided_slice %888 {offsets = [0, 64], sizes = [8, 64], strides = [1, 1]} : vector<8x192xf32> to vector<8x64xf32>
    %891 = vector.extract_strided_slice %888 {offsets = [0, 128], sizes = [8, 64], strides = [1, 1]} : vector<8x192xf32> to vector<8x64xf32>
    %892 = vector.extract_strided_slice %882 {offsets = [0, 192], sizes = [8, 64], strides = [1, 1]} : vector<8x256xf32> to vector<8x64xf32>
    %893 = math.tanh %892 : vector<8x64xf32>
    %894 = arith.mulf %889, %865 : vector<8x64xf32>
    %895 = arith.mulf %890, %893 : vector<8x64xf32>
    %896 = arith.addf %894, %895 : vector<8x64xf32>
    %897 = math.tanh %896 : vector<8x64xf32>
    %898 = arith.mulf %891, %897 : vector<8x64xf32>
    %899 = vector.extract_strided_slice %898 {offsets = [0, 0], sizes = [8, 32], strides = [1, 1]} : vector<8x64xf32> to vector<8x32xf32>
    %c8_i32_264 = arith.constant 8 : i32
    %900 = arith.muli %c28_i32, %c8_i32_264 : i32
    %901 = arith.index_cast %900 : i32 to index
    %c0_265 = arith.constant 0 : index
    %902 = vector.load %arg11[%901, %c0_265] : memref<256x64xf32, #tpu.memory_space<vmem>>, vector<8x32xf32>
    tpu.vector_store %arg11[%901, %c0_265], %899 {strides = array<i32>} : memref<256x64xf32, #tpu.memory_space<vmem>>, vector<8x32xf32>,
    %903 = vector.extract_strided_slice %898 {offsets = [0, 32], sizes = [8, 32], strides = [1, 1]} : vector<8x64xf32> to vector<8x32xf32>
    %c31_i32_266 = arith.constant 31 : i32
    %904 = arith.subi %c31_i32_266, %c28_i32 : i32
    %c8_i32_267 = arith.constant 8 : i32
    %905 = arith.muli %904, %c8_i32_267 : i32
    %906 = arith.index_cast %905 : i32 to index
    %c32_268 = arith.constant 32 : index
    %907 = vector.load %arg11[%906, %c32_268] : memref<256x64xf32, #tpu.memory_space<vmem>>, vector<8x32xf32>
    tpu.vector_store %arg11[%906, %c32_268], %903 {strides = array<i32>} : memref<256x64xf32, #tpu.memory_space<vmem>>, vector<8x32xf32>,
    %c29_i32 = arith.constant 29 : i32
    %c8_i32_269 = arith.constant 8 : i32
    %908 = arith.muli %c29_i32, %c8_i32_269 : i32
    %909 = arith.index_cast %908 : i32 to index
    %c0_270 = arith.constant 0 : index
    %910 = vector.load %arg10[%909, %c0_270] : memref<256x256xf32, #tpu.memory_space<vmem>>, vector<8x256xf32>
    %911 = arith.truncf %898 : vector<8x64xf32> to vector<8x64xbf16>
    %cst_271 = arith.constant dense<0.000000e+00> : vector<8x256xf32>
    %912 = tpu.matmul %911, %7, %cst_271 {dimension_numbers = #tpu.dot_dimension_numbers<[1], [0], [0], [1], [0, 0, 1, 1], [], []>} : vector<8x64xbf16>, vector<64x256xbf16>, vector<8x256xf32> -> vector<8x256xf32>
    %913 = arith.addf %910, %912 : vector<8x256xf32>
    %914 = vector.extract_strided_slice %913 {offsets = [0, 0], sizes = [8, 192], strides = [1, 1]} : vector<8x256xf32> to vector<8x192xf32>
    %915 = arith.negf %914 : vector<8x192xf32>
    %916 = math.exp %915 : vector<8x192xf32>
    %cst_272 = arith.constant 1.000000e+00 : f32
    %917 = vector.broadcast %cst_272 : f32 to vector<8x192xf32>
    %918 = arith.addf %917, %916 : vector<8x192xf32>
    %919 = arith.divf %917, %918 : vector<8x192xf32>
    %920 = vector.extract_strided_slice %919 {offsets = [0, 0], sizes = [8, 64], strides = [1, 1]} : vector<8x192xf32> to vector<8x64xf32>
    %921 = vector.extract_strided_slice %919 {offsets = [0, 64], sizes = [8, 64], strides = [1, 1]} : vector<8x192xf32> to vector<8x64xf32>
    %922 = vector.extract_strided_slice %919 {offsets = [0, 128], sizes = [8, 64], strides = [1, 1]} : vector<8x192xf32> to vector<8x64xf32>
    %923 = vector.extract_strided_slice %913 {offsets = [0, 192], sizes = [8, 64], strides = [1, 1]} : vector<8x256xf32> to vector<8x64xf32>
    %924 = math.tanh %923 : vector<8x64xf32>
    %925 = arith.mulf %920, %896 : vector<8x64xf32>
    %926 = arith.mulf %921, %924 : vector<8x64xf32>
    %927 = arith.addf %925, %926 : vector<8x64xf32>
    %928 = math.tanh %927 : vector<8x64xf32>
    %929 = arith.mulf %922, %928 : vector<8x64xf32>
    %930 = vector.extract_strided_slice %929 {offsets = [0, 0], sizes = [8, 32], strides = [1, 1]} : vector<8x64xf32> to vector<8x32xf32>
    %c8_i32_273 = arith.constant 8 : i32
    %931 = arith.muli %c29_i32, %c8_i32_273 : i32
    %932 = arith.index_cast %931 : i32 to index
    %c0_274 = arith.constant 0 : index
    %933 = vector.load %arg11[%932, %c0_274] : memref<256x64xf32, #tpu.memory_space<vmem>>, vector<8x32xf32>
    tpu.vector_store %arg11[%932, %c0_274], %930 {strides = array<i32>} : memref<256x64xf32, #tpu.memory_space<vmem>>, vector<8x32xf32>,
    %934 = vector.extract_strided_slice %929 {offsets = [0, 32], sizes = [8, 32], strides = [1, 1]} : vector<8x64xf32> to vector<8x32xf32>
    %c31_i32_275 = arith.constant 31 : i32
    %935 = arith.subi %c31_i32_275, %c29_i32 : i32
    %c8_i32_276 = arith.constant 8 : i32
    %936 = arith.muli %935, %c8_i32_276 : i32
    %937 = arith.index_cast %936 : i32 to index
    %c32_277 = arith.constant 32 : index
    %938 = vector.load %arg11[%937, %c32_277] : memref<256x64xf32, #tpu.memory_space<vmem>>, vector<8x32xf32>
    tpu.vector_store %arg11[%937, %c32_277], %934 {strides = array<i32>} : memref<256x64xf32, #tpu.memory_space<vmem>>, vector<8x32xf32>,
    %c30_i32 = arith.constant 30 : i32
    %c8_i32_278 = arith.constant 8 : i32
    %939 = arith.muli %c30_i32, %c8_i32_278 : i32
    %940 = arith.index_cast %939 : i32 to index
    %c0_279 = arith.constant 0 : index
    %941 = vector.load %arg10[%940, %c0_279] : memref<256x256xf32, #tpu.memory_space<vmem>>, vector<8x256xf32>
    %942 = arith.truncf %929 : vector<8x64xf32> to vector<8x64xbf16>
    %cst_280 = arith.constant dense<0.000000e+00> : vector<8x256xf32>
    %943 = tpu.matmul %942, %7, %cst_280 {dimension_numbers = #tpu.dot_dimension_numbers<[1], [0], [0], [1], [0, 0, 1, 1], [], []>} : vector<8x64xbf16>, vector<64x256xbf16>, vector<8x256xf32> -> vector<8x256xf32>
    %944 = arith.addf %941, %943 : vector<8x256xf32>
    %945 = vector.extract_strided_slice %944 {offsets = [0, 0], sizes = [8, 192], strides = [1, 1]} : vector<8x256xf32> to vector<8x192xf32>
    %946 = arith.negf %945 : vector<8x192xf32>
    %947 = math.exp %946 : vector<8x192xf32>
    %cst_281 = arith.constant 1.000000e+00 : f32
    %948 = vector.broadcast %cst_281 : f32 to vector<8x192xf32>
    %949 = arith.addf %948, %947 : vector<8x192xf32>
    %950 = arith.divf %948, %949 : vector<8x192xf32>
    %951 = vector.extract_strided_slice %950 {offsets = [0, 0], sizes = [8, 64], strides = [1, 1]} : vector<8x192xf32> to vector<8x64xf32>
    %952 = vector.extract_strided_slice %950 {offsets = [0, 64], sizes = [8, 64], strides = [1, 1]} : vector<8x192xf32> to vector<8x64xf32>
    %953 = vector.extract_strided_slice %950 {offsets = [0, 128], sizes = [8, 64], strides = [1, 1]} : vector<8x192xf32> to vector<8x64xf32>
    %954 = vector.extract_strided_slice %944 {offsets = [0, 192], sizes = [8, 64], strides = [1, 1]} : vector<8x256xf32> to vector<8x64xf32>
    %955 = math.tanh %954 : vector<8x64xf32>
    %956 = arith.mulf %951, %927 : vector<8x64xf32>
    %957 = arith.mulf %952, %955 : vector<8x64xf32>
    %958 = arith.addf %956, %957 : vector<8x64xf32>
    %959 = math.tanh %958 : vector<8x64xf32>
    %960 = arith.mulf %953, %959 : vector<8x64xf32>
    %961 = vector.extract_strided_slice %960 {offsets = [0, 0], sizes = [8, 32], strides = [1, 1]} : vector<8x64xf32> to vector<8x32xf32>
    %c8_i32_282 = arith.constant 8 : i32
    %962 = arith.muli %c30_i32, %c8_i32_282 : i32
    %963 = arith.index_cast %962 : i32 to index
    %c0_283 = arith.constant 0 : index
    %964 = vector.load %arg11[%963, %c0_283] : memref<256x64xf32, #tpu.memory_space<vmem>>, vector<8x32xf32>
    tpu.vector_store %arg11[%963, %c0_283], %961 {strides = array<i32>} : memref<256x64xf32, #tpu.memory_space<vmem>>, vector<8x32xf32>,
    %965 = vector.extract_strided_slice %960 {offsets = [0, 32], sizes = [8, 32], strides = [1, 1]} : vector<8x64xf32> to vector<8x32xf32>
    %c31_i32_284 = arith.constant 31 : i32
    %966 = arith.subi %c31_i32_284, %c30_i32 : i32
    %c8_i32_285 = arith.constant 8 : i32
    %967 = arith.muli %966, %c8_i32_285 : i32
    %968 = arith.index_cast %967 : i32 to index
    %c32_286 = arith.constant 32 : index
    %969 = vector.load %arg11[%968, %c32_286] : memref<256x64xf32, #tpu.memory_space<vmem>>, vector<8x32xf32>
    tpu.vector_store %arg11[%968, %c32_286], %965 {strides = array<i32>} : memref<256x64xf32, #tpu.memory_space<vmem>>, vector<8x32xf32>,
    %c31_i32_287 = arith.constant 31 : i32
    %c8_i32_288 = arith.constant 8 : i32
    %970 = arith.muli %c31_i32_287, %c8_i32_288 : i32
    %971 = arith.index_cast %970 : i32 to index
    %c0_289 = arith.constant 0 : index
    %972 = vector.load %arg10[%971, %c0_289] : memref<256x256xf32, #tpu.memory_space<vmem>>, vector<8x256xf32>
    %973 = arith.truncf %960 : vector<8x64xf32> to vector<8x64xbf16>
    %cst_290 = arith.constant dense<0.000000e+00> : vector<8x256xf32>
    %974 = tpu.matmul %973, %7, %cst_290 {dimension_numbers = #tpu.dot_dimension_numbers<[1], [0], [0], [1], [0, 0, 1, 1], [], []>} : vector<8x64xbf16>, vector<64x256xbf16>, vector<8x256xf32> -> vector<8x256xf32>
    %975 = arith.addf %972, %974 : vector<8x256xf32>
    %976 = vector.extract_strided_slice %975 {offsets = [0, 0], sizes = [8, 192], strides = [1, 1]} : vector<8x256xf32> to vector<8x192xf32>
    %977 = arith.negf %976 : vector<8x192xf32>
    %978 = math.exp %977 : vector<8x192xf32>
    %cst_291 = arith.constant 1.000000e+00 : f32
    %979 = vector.broadcast %cst_291 : f32 to vector<8x192xf32>
    %980 = arith.addf %979, %978 : vector<8x192xf32>
    %981 = arith.divf %979, %980 : vector<8x192xf32>
    %982 = vector.extract_strided_slice %981 {offsets = [0, 0], sizes = [8, 64], strides = [1, 1]} : vector<8x192xf32> to vector<8x64xf32>
    %983 = vector.extract_strided_slice %981 {offsets = [0, 64], sizes = [8, 64], strides = [1, 1]} : vector<8x192xf32> to vector<8x64xf32>
    %984 = vector.extract_strided_slice %981 {offsets = [0, 128], sizes = [8, 64], strides = [1, 1]} : vector<8x192xf32> to vector<8x64xf32>
    %985 = vector.extract_strided_slice %975 {offsets = [0, 192], sizes = [8, 64], strides = [1, 1]} : vector<8x256xf32> to vector<8x64xf32>
    %986 = math.tanh %985 : vector<8x64xf32>
    %987 = arith.mulf %982, %958 : vector<8x64xf32>
    %988 = arith.mulf %983, %986 : vector<8x64xf32>
    %989 = arith.addf %987, %988 : vector<8x64xf32>
    %990 = math.tanh %989 : vector<8x64xf32>
    %991 = arith.mulf %984, %990 : vector<8x64xf32>
    %992 = vector.extract_strided_slice %991 {offsets = [0, 0], sizes = [8, 32], strides = [1, 1]} : vector<8x64xf32> to vector<8x32xf32>
    %c8_i32_292 = arith.constant 8 : i32
    %993 = arith.muli %c31_i32_287, %c8_i32_292 : i32
    %994 = arith.index_cast %993 : i32 to index
    %c0_293 = arith.constant 0 : index
    %995 = vector.load %arg11[%994, %c0_293] : memref<256x64xf32, #tpu.memory_space<vmem>>, vector<8x32xf32>
    tpu.vector_store %arg11[%994, %c0_293], %992 {strides = array<i32>} : memref<256x64xf32, #tpu.memory_space<vmem>>, vector<8x32xf32>,
    %996 = vector.extract_strided_slice %991 {offsets = [0, 32], sizes = [8, 32], strides = [1, 1]} : vector<8x64xf32> to vector<8x32xf32>
    %c31_i32_294 = arith.constant 31 : i32
    %997 = arith.subi %c31_i32_294, %c31_i32_287 : i32
    %c8_i32_295 = arith.constant 8 : i32
    %998 = arith.muli %997, %c8_i32_295 : i32
    %999 = arith.index_cast %998 : i32 to index
    %c32_296 = arith.constant 32 : index
    %1000 = vector.load %arg11[%999, %c32_296] : memref<256x64xf32, #tpu.memory_space<vmem>>, vector<8x32xf32>
    tpu.vector_store %arg11[%999, %c32_296], %996 {strides = array<i32>} : memref<256x64xf32, #tpu.memory_space<vmem>>, vector<8x32xf32>,
    %c32_i32 = arith.constant 32 : i32
    %c0_297 = arith.constant 0 : index
    %c0_298 = arith.constant 0 : index
    %1001 = vector.load %arg11[%c0_297, %c0_298] : memref<256x64xf32, #tpu.memory_space<vmem>>, vector<256x64xf32>
    %c0_299 = arith.constant 0 : index
    %c0_300 = arith.constant 0 : index
    %1002 = vector.load %arg5[%c0_299, %c0_300] : memref<64x128xf32, #tpu.memory_space<vmem>>, vector<64x128xf32>
    %cst_301 = arith.constant dense<0.000000e+00> : vector<256x128xf32>
    %1003 = tpu.matmul %1001, %1002, %cst_301 {dimension_numbers = #tpu.dot_dimension_numbers<[1], [0], [0], [1], [0, 0, 1, 1], [], []>} : vector<256x64xf32>, vector<64x128xf32>, vector<256x128xf32> -> vector<256x128xf32>
    %c0_302 = arith.constant 0 : index
    %c0_303 = arith.constant 0 : index
    %1004 = vector.load %arg6[%c0_302, %c0_303] : memref<1x128xf32, #tpu.memory_space<vmem>>, vector<1x128xf32>
    %1005 = vector.broadcast %1004 : vector<1x128xf32> to vector<256x128xf32>
    %1006 = arith.addf %1003, %1005 : vector<256x128xf32>
    %c0_304 = arith.constant 0 : index
    %c0_305 = arith.constant 0 : index
    %1007 = vector.load %arg8[%c0_304, %c0_305] : memref<256x128xf32, #tpu.memory_space<vmem>>, vector<256x128xf32>
    tpu.vector_store %arg8[%c0_304, %c0_305], %1006 {strides = array<i32>} : memref<256x128xf32, #tpu.memory_space<vmem>>, vector<256x128xf32>,
    %c0_306 = arith.constant 0 : index
    %c0_307 = arith.constant 0 : index
    %1008 = vector.load %arg7[%c0_306, %c0_307] : memref<256x1xi32, #tpu.memory_space<vmem>>, vector<256x1xi32>
    %1009 = tpu.iota {dimensions = array<i32: 1>} : vector<256x128xi32>
    %c8_i32_308 = arith.constant 8 : i32
    %1010 = vector.broadcast %c8_i32_308 : i32 to vector<256x128xi32>
    %1011 = arith.cmpi slt, %1009, %1010 : vector<256x128xi32>
    %cst_309 = arith.constant -1.000000e+30 : f32
    %1012 = vector.broadcast %cst_309 : f32 to vector<256x128xf32>
    %1013 = arith.select %1011, %1006, %1012 : vector<256x128xi1>, vector<256x128xf32>
    %cst_310 = arith.constant dense<0xFF800000> : vector<256xf32>
    %1014 = vector.multi_reduction <maximumf>, %1013, %cst_310 [1] : vector<256x128xf32> to vector<256xf32>
    %1015 = vector.shape_cast %1014 : vector<256xf32> to vector<256x1xf32>
    %1016 = vector.broadcast %1015 : vector<256x1xf32> to vector<256x128xf32>
    %1017 = arith.subf %1013, %1016 : vector<256x128xf32>
    %1018 = math.exp %1017 : vector<256x128xf32>
    %cst_311 = arith.constant 0.000000e+00 : f32
    %1019 = vector.broadcast %cst_311 : f32 to vector<256x128xf32>
    %1020 = arith.select %1011, %1018, %1019 : vector<256x128xi1>, vector<256x128xf32>
    %cst_312 = arith.constant dense<0.000000e+00> : vector<256xf32>
    %1021 = vector.multi_reduction <add>, %1020, %cst_312 [1] : vector<256x128xf32> to vector<256xf32>
    %1022 = vector.shape_cast %1021 : vector<256xf32> to vector<256x1xf32>
    %1023 = math.log %1022 : vector<256x1xf32>
    %1024 = vector.broadcast %1008 : vector<256x1xi32> to vector<256x128xi32>
    %1025 = arith.cmpi eq, %1009, %1024 : vector<256x128xi32>
    %1026 = vector.broadcast %1015 : vector<256x1xf32> to vector<256x128xf32>
    %1027 = arith.subf %1013, %1026 : vector<256x128xf32>
    %cst_313 = arith.constant 0.000000e+00 : f32
    %1028 = vector.broadcast %cst_313 : f32 to vector<256x128xf32>
    %1029 = arith.select %1025, %1027, %1028 : vector<256x128xi1>, vector<256x128xf32>
    %cst_314 = arith.constant dense<0.000000e+00> : vector<256xf32>
    %1030 = vector.multi_reduction <add>, %1029, %cst_314 [1] : vector<256x128xf32> to vector<256xf32>
    %1031 = vector.shape_cast %1030 : vector<256xf32> to vector<256x1xf32>
    %1032 = arith.subf %1023, %1031 : vector<256x1xf32>
    %c0_i32_315 = arith.constant 0 : i32
    %1033 = vector.broadcast %c0_i32_315 : i32 to vector<256x1xi32>
    %1034 = arith.cmpi ne, %1008, %1033 : vector<256x1xi32>
    %1035 = arith.extui %1034 : vector<256x1xi1> to vector<256x1xi32>
    %1036 = arith.sitofp %1035 : vector<256x1xi32> to vector<256x1xf32>
    %1037 = arith.mulf %1032, %1036 : vector<256x1xf32>
    %1038 = vector.shape_cast %1037 : vector<256x1xf32> to vector<1x256x1xf32>
    %cst_316 = arith.constant dense<0.000000e+00> : vector<1xf32>
    %1039 = vector.multi_reduction <add>, %1038, %cst_316 [1, 2] : vector<1x256x1xf32> to vector<1xf32>
    %1040 = vector.shape_cast %1039 : vector<1xf32> to vector<1x1x1xf32>
    %1041 = vector.extract %1040[0, 0, 0] : f32 from vector<1x1x1xf32>
    %1042 = vector.shape_cast %1036 : vector<256x1xf32> to vector<1x256x1xf32>
    %cst_317 = arith.constant dense<0.000000e+00> : vector<1xf32>
    %1043 = vector.multi_reduction <add>, %1042, %cst_317 [1, 2] : vector<1x256x1xf32> to vector<1xf32>
    %1044 = vector.shape_cast %1043 : vector<1xf32> to vector<1x1x1xf32>
    %1045 = vector.extract %1044[0, 0, 0] : f32 from vector<1x1x1xf32>
    %cst_318 = arith.constant 1.000000e+00 : f32
    %1046 = arith.maximumf %1045, %cst_318 : f32
    %1047 = arith.divf %1041, %1046 : f32
    %c0_319 = arith.constant 0 : index
    %c0_320 = arith.constant 0 : index
    %1048 = memref.load %arg9[%c0_319, %c0_320] : memref<1x1xf32, #tpu.memory_space<smem>>
    memref.store %1047, %arg9[%c0_319, %c0_320] : memref<1x1xf32, #tpu.memory_space<smem>>
    return
  }
  func.func @transform_0(%arg0: i32) -> (i32, i32) {
    %c0_i32 = arith.constant 0 : i32
    %c0_i32_0 = arith.constant 0 : i32
    %c0_i32_1 = arith.constant 0 : i32
    return %c0_i32, %c0_i32_0 : i32, i32
  }
  func.func @transform_1(%arg0: i32) -> (i32, i32) {
    %c0_i32 = arith.constant 0 : i32
    %c0_i32_0 = arith.constant 0 : i32
    %c0_i32_1 = arith.constant 0 : i32
    return %c0_i32, %c0_i32_0 : i32, i32
  }
  func.func @transform_2(%arg0: i32) -> (i32, i32) {
    %c0_i32 = arith.constant 0 : i32
    %c0_i32_0 = arith.constant 0 : i32
    %c0_i32_1 = arith.constant 0 : i32
    return %c0_i32, %c0_i32_0 : i32, i32
  }
  func.func @transform_3(%arg0: i32) -> (i32, i32) {
    %c0_i32 = arith.constant 0 : i32
    %c0_i32_0 = arith.constant 0 : i32
    %c0_i32_1 = arith.constant 0 : i32
    return %c0_i32, %c0_i32_0 : i32, i32
  }
  func.func @transform_4(%arg0: i32) -> (i32, i32) {
    %c0_i32 = arith.constant 0 : i32
    %c0_i32_0 = arith.constant 0 : i32
    %c0_i32_1 = arith.constant 0 : i32
    return %c0_i32, %c0_i32_0 : i32, i32
  }
  func.func @transform_5(%arg0: i32) -> (i32, i32) {
    %c0_i32 = arith.constant 0 : i32
    %c0_i32_0 = arith.constant 0 : i32
    %c0_i32_1 = arith.constant 0 : i32
    return %c0_i32, %c0_i32_0 : i32, i32
  }
  func.func @transform_6(%arg0: i32) -> (i32, i32) {
    %c0_i32 = arith.constant 0 : i32
    %c0_i32_0 = arith.constant 0 : i32
    %c0_i32_1 = arith.constant 0 : i32
    return %c0_i32, %c0_i32_0 : i32, i32
  }
  func.func @transform_7(%arg0: i32) -> (i32, i32) {
    %c0_i32 = arith.constant 0 : i32
    %c0_i32_0 = arith.constant 0 : i32
    %c0_i32_1 = arith.constant 0 : i32
    return %c0_i32, %c0_i32_0 : i32, i32
  }
  func.func @transform_8(%arg0: i32) -> (i32, i32) {
    %c0_i32 = arith.constant 0 : i32
    %c0_i32_0 = arith.constant 0 : i32
    %c0_i32_1 = arith.constant 0 : i32
    return %c0_i32, %c0_i32_0 : i32, i32
  }
}

</mosaic_0001>

<bundles_post_ra>
// kernel: kie_decoder_trie_forward.1
= control target key start
LH: loop header
LB: loop body
LE: loop exit
PB: predicated region body
PF: predicated region fallthrough
CT: control target
= control target key end

     0   :  { %v7460_v2 = vmov 0   ;;  %s7450_s0 = inlined_call_operand.vmem [shape: bf16[256,128], index: 0, kind: input, shape index: {}]   ;;  %s7451_s1 = inlined_call_operand.vmem [shape: bf16[128,256], index: 1, kind: input, shape index: {}]   ;;  %s7452_s2 = inlined_call_operand.vmem [shape: f32[1,256], index: 2, kind: input, shape index: {}]   ;;  %s7453_s3 = inlined_call_operand.vmem [shape: bf16[64,256], index: 3, kind: input, shape index: {}]   ;;  %s7454_s4 = inlined_call_operand.vmem [shape: f32[64,128], index: 4, kind: input, shape index: {}]   ;;  %s7455_s5 = inlined_call_operand.vmem [shape: f32[1,128], index: 5, kind: input, shape index: {}]   ;;  %s7456_s6 = inlined_call_operand.vmem [shape: s32[256,1], index: 6, kind: input, shape index: {}]   ;;  %s7457_s7 = inlined_call_operand.vmem [shape: f32[256,128], index: 7, kind: output, shape index: {0}]   ;;  %s7458_s8 = inlined_call_operand.hbm [shape: f32[1,1], index: 8, kind: output, shape index: {1}]  }
   0x1   :  { %v4582_v0 = vld [vmem:[%s7451_s1 + $0x74] ss:$8 sps:$4 sm:$0xff]   ;;  %v4584_v1 = vld [vmem:[%s7451_s1 + $0x70] ss:$8 sps:$4 sm:$0xff]   ;;  %609 = vmatprep.mubr.bf16.mxu1 %v7460_v2  ;;  %298 = vmatprep.mubr.bf16.mxu0 %v7460_v2  ;;  %v4585_v3 = vld [vmem:[%s7451_s1 + $0x64] ss:$8 sps:$4 sm:$0xff]  }
   0x2   :  { %266 = vmatprep.subr.bf16.mxu0 %v4582_v0  ;;  %4581 = vset.pattern.permute.xlu0 %v7460_v2  ;;  %v4587_v4 = vld [vmem:[%s7451_s1 + $0x60] ss:$8 sps:$4 sm:$0xff]   ;;  %v4588_v5 = vld [vmem:[%s7451_s1 + $0x54] ss:$8 sps:$4 sm:$0xff]   ;;  %v5272_v7 = vld [vmem:[%s7453_s3 + $0x30] ss:$8 sps:$4 sm:$0xff]  }
   0x3   :  { %267 = vmatpush1.bf16.msra.mxu0 %v4584_v1  ;;  %4580 = vset.pattern.permute.xlu1 %v7460_v2  ;;  %v5267_v6 = vld [vmem:[%s7453_s3 + $0x34] ss:$8 sps:$4 sm:$0xff]   ;;  %v4590_v8 = vld [vmem:[%s7451_s1 + $0x50] ss:$8 sps:$4 sm:$0xff]   ;;  %v4591_v9 = vld [vmem:[%s7451_s1 + $0x44] ss:$8 sps:$4 sm:$0xff]  }
   0x4   :  { %268 = vmatprep.subr.bf16.mxu0 %v4585_v3  ;;  %585 = vmatprep.subr.bf16.mxu1 %v5267_v6  ;;  %v5285_v10 = vld [vmem:[%s7453_s3 + $0x24] ss:$8 sps:$4 sm:$0xff]   ;;  %v5290_v11 = vld [vmem:[%s7453_s3 + $0x20] ss:$8 sps:$4 sm:$0xff]   ;;  %v4597_v13 = vld [vmem:[%s7451_s1 + $0x34] ss:$8 sps:$4 sm:$0xff]  }
   0x5   :  { %586 = vmatpush1.bf16.msra.mxu1 %v5272_v7  ;;  %v4595_v12 = vld [vmem:[%s7451_s1 + $0x40] ss:$8 sps:$4 sm:$0xff]   ;;  %v5302_v14 = vld [vmem:[%s7453_s3 + $0x14] ss:$8 sps:$4 sm:$0xff]   ;;  %v5308_v15 = vld [vmem:[%s7453_s3 + $0x10] ss:$8 sps:$4 sm:$0xff]  }
   0x6   :  { %587 = vmatprep.subr.bf16.mxu1 %v5285_v10  ;;  %v5314_v16 = vld [vmem:[%s7453_s3 + $0x4] ss:$8 sps:$4 sm:$0xff]   ;;  %v4601_v17 = vld [vmem:[%s7451_s1 + $0x30] ss:$8 sps:$4 sm:$0xff]   ;;  %v5326_v19 = vld [vmem:[%s7453_s3] ss:$8 sps:$4 sm:$0xff]  }
   0x7   :  { %269 = vmatpush1.bf16.msra.mxu0 %v4587_v4  ;;  %v4603_v18 = vld [vmem:[%s7451_s1 + $0x24] ss:$8 sps:$4 sm:$0xff]   ;;  %v4607_v20 = vld [vmem:[%s7451_s1 + $0x20] ss:$8 sps:$4 sm:$0xff]   ;;  %v4609_v21 = vld [vmem:[%s7451_s1 + $0x14] ss:$8 sps:$4 sm:$0xff]  }
   0x8   :  { %270 = vmatprep.subr.bf16.mxu0 %v4588_v5  ;;  %v4613_v22 = vld [vmem:[%s7451_s1 + $0x10] ss:$8 sps:$4 sm:$0xff]   ;;  %v4615_v23 = vld [vmem:[%s7451_s1 + $0x4] ss:$8 sps:$4 sm:$0xff]   ;;  %v4617_v24 = vld [vmem:[%s7451_s1] ss:$8 sps:$4 sm:$0xff]  }
   0x9   :  { %588 = vmatpush1.bf16.msra.mxu1 %v5290_v11 }
   0xa   :  { %589 = vmatprep.subr.bf16.mxu1 %v5302_v14 }
   0xb   :  { %271 = vmatpush1.bf16.msra.mxu0 %v4590_v8 }
   0xc   :  { %272 = vmatprep.subr.bf16.mxu0 %v4591_v9 }
   0xd   :  { %590 = vmatpush1.bf16.msra.mxu1 %v5308_v15 }
   0xe   :  { %591 = vmatprep.subr.bf16.mxu1 %v5314_v16 }
   0xf   :  { %273 = vmatpush1.bf16.msra.mxu0 %v4595_v12 }
  0x10   :  { %274 = vmatprep.subr.bf16.mxu0 %v4597_v13 }
  0x11   :  { %592 = vmatpush1.bf16.msra.mxu1 %v5326_v19 }
  0x12   :  { %660 = vmatprep.subr.bf16.mxu1 %v5267_v6 }
  0x13   :  { %275 = vmatpush1.bf16.msra.mxu0 %v4601_v17 }
  0x14   :  { %276 = vmatprep.subr.bf16.mxu0 %v4603_v18  ;;  %610 = vmatmul.mubr.bf16.vlgmr.msra.gmra.mxu1 %v7460_v2 }
  0x15   :  { %661 = vmatpush1.bf16.msra.mxu1 %v5272_v7  ;;  %684 = vmatprep.mubr.bf16.mxu1 %v7460_v2 }
  0x16   :  { %662 = vmatprep.subr.bf16.mxu1 %v5285_v10 }
  0x17   :  { %277 = vmatpush1.bf16.msra.mxu0 %v4607_v20 }
  0x18   :  { %278 = vmatprep.subr.bf16.mxu0 %v4609_v21 }
  0x1b   :  { %279 = vmatpush1.bf16.msra.mxu0 %v4613_v22 }
  0x1c   :  { %14 = vsyncpa [#allocation5], 0  ;;  %280 = vmatprep.subr.bf16.mxu0 %v4615_v23  ;;  %663 = vmatpush1.bf16.msra.mxu1 %v5290_v11  ;;  %v4618_v25 = vld [vmem:[%s7450_s0] sm:$0xff]   ;;  %v7459_v26 = vlaneseq  ;;  %vm642_vm0 = vcmask 261120   ;;  %vm644_vm1 = vcmask 523520   ;;  %vm573_vm2 = vcmask 523264  }
  0x1d   :  { %664 = vmatprep.subr.bf16.mxu1 %v5302_v14  ;;  %v78_v32 = vld [vmem:[%s7452_s2] sm:$0x3]  ;;  %s5196_s2 = smov 64   ;;  %v4619_v13 = vld [vmem:[%s7450_s0 + $0x8] sm:$0xff]   ;;  %s5199_s23 = smov [#allocation4]  }
  0x1e   :  { %v81_v28 = vshrl.u32 %v7459_v26, 7 }
  0x1f   :  { %281 = vmatpush1.bf16.msra.mxu0 %v4617_v24 }
  0x20   :  { %665 = vmatpush1.bf16.msra.mxu1 %v5308_v15  ;;  %1244 = vmatprep.subr.bf16.mxu0 %v5267_v6  ;;  %v82_v30 = vsub.s32 0, %v81_v28  ;;  %v86_v39 = vsub.s32 1, %v81_v28 }
  0x21   :  { %666 = vmatprep.subr.bf16.mxu1 %v5314_v16 }
  0x22   :  { %299 = vmatmul.mubr.bf16.vlgmr.msra.gmra.mxu0 %v4618_v25  ;;  %v5373_v34 = vrot.slane %v78_v32, %v82_v30  ;;  %v5376_v40 = vrot.slane %v78_v32, %v86_v39 }
  0x23   :  { %308 = vmatprep.mubr.bf16.mxu0 %v7460_v2  ;;  %1245 = vmatpush1.bf16.msra.mxu0 %v5272_v7 }
  0x24   :  { %667 = vmatpush1.bf16.msra.mxu1 %v5326_v19  ;;  %1246 = vmatprep.subr.bf16.mxu0 %v5285_v10 }
  0x25   :  { %733 = vmatprep.subr.bf16.mxu1 %v5267_v6 }
  0x27   :  { %1247 = vmatpush1.bf16.msra.mxu0 %v5290_v11 }
  0x28   :  { %1248 = vmatprep.subr.bf16.mxu0 %v5302_v14 }
  0x2a   :  { %309 = vmatmul.mubr.bf16.gmra.mxu0 %v4619_v13 }
  0x2b   :  { %1249 = vmatpush1.bf16.msra.mxu0 %v5308_v15  ;;  %318 = vmatprep.mubr.bf16.mxu0 %v7460_v2 }
  0x2c   :  { %1250 = vmatprep.subr.bf16.mxu0 %v5314_v16 }
  0x2f   :  { %1251 = vmatpush1.bf16.msra.mxu0 %v5326_v19 }
  0x30   :  { %1390 = vmatprep.subr.bf16.mxu0 %v5267_v6 }
  0xd4   :  { %v611_v27 = vpop.f32.mrf.mxu1 }
  0xd6   :  { %v613_v29 = vpop.f32.mrf.mxu1 }
  0xd8   :  { %v615_v31 = vpop.f32.mrf.mxu1 }
  0xda   :  { %v616_v33 = vpop.f32.mrf.mxu1 }
  0xe2   :  { %v300_v35 = vpop.f32.mrf.mxu0 }
  0xe3   :  { %v301_v36 = vadd.f32 %v300_v35, %v5373_v34 }
  0xe4   :  { %v302_v41 = vpop.f32.mrf.mxu0 }
  0xe5   :  { %v618_v37 = vadd.f32 %v611_v27, %v301_v36  ;;  %v303_v42 = vadd.f32 %v302_v41, %v5376_v40 }
  0xe6   :  { %v304_v59 = vpop.f32.mrf.mxu0 }
  0xe7   :  { %v4289_v38 = vmul.f32 -1.442695, %v618_v37  ;;  %v619_v43 = vadd.f32 %v613_v29, %v303_v42  ;;  %v305_v60 = vadd.f32 %v304_v59, %v5373_v34 }
  0xe8   :  { %v306_v4 = vpop.f32.mrf.mxu0 }
  0xe9   :  { %4634 = vpow2.f32 %v4289_v38  ;;  %v4290_v49 = vmul.f32 -1.442695, %v619_v43  ;;  %v307_v5 = vadd.f32 %v306_v4, %v5376_v40 }
  0xea   :  { %4636 = vtanh.f32 %v619_v43  ;;  %v310_v32 = vpop.f32.mrf.mxu0 }
  0xeb   :  { %v311_v33 = vadd.f32 %v310_v32, %v5373_v34 }
  0xec   :  { %v312_v42 = vpop.f32.mrf.mxu0 }
  0xed   :  { %v313_v43 = vadd.f32 %v312_v42, %v5376_v40 }
  0xf6   :  { %v4635_v44 = vpop.eup %4634 }
  0xf7   :  { %v626_v45 = vadd.f32 1.0, %v4635_v44  ;;  %v4637_v46 = vpop.eup %4636 }
  0xf9   :  { %4638 = vrcp.f32 %v626_v45 }
  0xfa   :  { %4640 = vpow2.f32 %v4290_v49 }
 0x106   :  { %v4639_v47 = vpop.eup %4638 }
 0x107   :  { %v634_v48 = vmul.f32 %v4639_v47, %v4637_v46  ;;  %v4641_v50 = vpop.eup %4640  ;;  %v633_v52 = vmul.f32 0.0, %v4639_v47 }
 0x108   :  { %v627_v51 = vadd.f32 1.0, %v4641_v50 }
 0x109   :  { %636 = vrot.lane.b32.xlu0 %v634_v48, %s5196_s2 }
 0x10a   :  { %4642 = vrcp.f32 %v627_v51 }
 0x117   :  { %v4643_v55 = vpop.eup %4642 }
 0x17b   :  { %v637_v53 = vpop.permute.xlu0 %636 }
 0x17c   :  { %v639_v54 = vadd.f32 %v637_v53, %v633_v52 }
 0x17e   :  { %4644 = vtanh.f32 %v639_v54 }
 0x18b   :  { %v4645_v56 = vpop.eup %4644 }
 0x18c   :  { %v641_v57 = vmul.f32 %v4645_v56, %v4643_v55 }
 0x18e   :  { %643 = vst.msk [vmem:[#allocation3] sm:$0xff] %vm642_vm0, %v641_v57  ;;  %v648_v58 = vpack.c.bf16 %v641_v57, %v641_v57 }
 0x18f   :  { %645 = vst.msk [vmem:[#allocation3 + $0xf8] sm:$0xff] %vm644_vm1, %v641_v57 }
 0x190   :  { %4291 = vmatmul.mubr.msk.bf16.vlgmr.msra.gmra.mxu1 %vm573_vm2, %v648_v58 }
 0x191   :  { %734 = vmatpush1.bf16.msra.mxu1 %v5272_v7  ;;  %757 = vmatprep.mubr.bf16.mxu1 %v7460_v2 }
 0x192   :  { %735 = vmatprep.subr.bf16.mxu1 %v5285_v10 }
 0x195   :  { %736 = vmatpush1.bf16.msra.mxu1 %v5290_v11 }
 0x196   :  { %737 = vmatprep.subr.bf16.mxu1 %v5302_v14 }
 0x199   :  { %738 = vmatpush1.bf16.msra.mxu1 %v5308_v15 }
 0x19a   :  { %739 = vmatprep.subr.bf16.mxu1 %v5314_v16 }
 0x19d   :  { %740 = vmatpush1.bf16.msra.mxu1 %v5326_v19 }
 0x19e   :  { %806 = vmatprep.subr.bf16.mxu1 %v5267_v6 }
 0x250   :  { %v686_v61 = vpop.f32.mrf.mxu1 }
 0x251   :  { %v693_v62 = vadd.f32 %v686_v61, %v305_v60  ;;  %v314_v60 = vpop.f32.mrf.mxu0 }
 0x252   :  { %v688_v63 = vpop.f32.mrf.mxu1  ;;  %v315_v61 = vadd.f32 %v314_v60, %v5373_v34 }
 0x253   :  { %v4292_v0 = vmul.f32 -1.442695, %v693_v62  ;;  %v694_v8 = vadd.f32 %v688_v63, %v307_v5  ;;  %v316_v5 = vpop.f32.mrf.mxu0 }
 0x254   :  { %v690_v1 = vpop.f32.mrf.mxu1 }
 0x255   :  { %4646 = vpow2.f32 %v4292_v0  ;;  %v4293_v21 = vmul.f32 -1.442695, %v694_v8 }
 0x256   :  { %v691_v3 = vpop.f32.mrf.mxu1  ;;  %4648 = vtanh.f32 %v694_v8  ;;  %v317_v8 = vadd.f32 %v316_v5, %v5376_v40 }
 0x262   :  { %v4647_v9 = vpop.eup %4646 }
 0x263   :  { %v701_v12 = vadd.f32 1.0, %v4647_v9  ;;  %v4649_v17 = vpop.eup %4648 }
 0x265   :  { %4650 = vrcp.f32 %v701_v12 }
 0x266   :  { %4652 = vpow2.f32 %v4293_v21 }
 0x272   :  { %v4651_v18 = vpop.eup %4650 }
 0x273   :  { %v709_v20 = vmul.f32 %v4651_v18, %v4649_v17  ;;  %v4653_v22 = vpop.eup %4652  ;;  %v708_v24 = vmul.f32 %v4651_v18, %v639_v54  ;;  %v4620_v17 = vld [vmem:[%s7450_s0 + $0x10] sm:$0xff]  }
 0x274   :  { %v702_v23 = vadd.f32 1.0, %v4653_v22  ;;  %319 = vmatmul.mubr.bf16.gmra.mxu0 %v4620_v17 }
 0x275   :  { %711 = vrot.lane.b32.xlu0 %v709_v20, %s5196_s2  ;;  %328 = vmatprep.mubr.bf16.mxu0 %v7460_v2 }
 0x276   :  { %4654 = vrcp.f32 %v702_v23 }
 0x283   :  { %v4655_v28 = vpop.eup %4654 }
 0x2e7   :  { %v712_v25 = vpop.permute.xlu0 %711 }
 0x2e8   :  { %v714_v27 = vadd.f32 %v712_v25, %v708_v24 }
 0x2ea   :  { %4656 = vtanh.f32 %v714_v27 }
 0x2f7   :  { %v4657_v29 = vpop.eup %4656 }
 0x2f8   :  { %v716_v30 = vmul.f32 %v4657_v29, %v4655_v28 }
 0x2fa   :  { %717 = vst.msk [vmem:[#allocation3 + $0x8] sm:$0xff] %vm642_vm0, %v716_v30  ;;  %v721_v31 = vpack.c.bf16 %v716_v30, %v716_v30 }
 0x2fb   :  { %718 = vst.msk [vmem:[#allocation3 + $0xf0] sm:$0xff] %vm644_vm1, %v716_v30 }
 0x2fc   :  { %4294 = vmatmul.mubr.msk.bf16.vlgmr.msra.gmra.mxu1 %vm573_vm2, %v721_v31 }
 0x2fd   :  { %807 = vmatpush1.bf16.msra.mxu1 %v5272_v7  ;;  %830 = vmatprep.mubr.bf16.mxu1 %v7460_v2 }
 0x2fe   :  { %808 = vmatprep.subr.bf16.mxu1 %v5285_v10 }
 0x301   :  { %809 = vmatpush1.bf16.msra.mxu1 %v5290_v11 }
 0x302   :  { %810 = vmatprep.subr.bf16.mxu1 %v5302_v14 }
 0x305   :  { %811 = vmatpush1.bf16.msra.mxu1 %v5308_v15 }
 0x306   :  { %812 = vmatprep.subr.bf16.mxu1 %v5314_v16 }
 0x309   :  { %813 = vmatpush1.bf16.msra.mxu1 %v5326_v19 }
 0x30a   :  { %879 = vmatprep.subr.bf16.mxu1 %v5267_v6 }
 0x3bc   :  { %v759_v35 = vpop.f32.mrf.mxu1 }
 0x3bd   :  { %v766_v36 = vadd.f32 %v759_v35, %v311_v33  ;;  %v320_v33 = vpop.f32.mrf.mxu0 }
 0x3be   :  { %v761_v37 = vpop.f32.mrf.mxu1  ;;  %v321_v35 = vadd.f32 %v320_v33, %v5373_v34 }
 0x3bf   :  { %v4295_v38 = vmul.f32 -1.442695, %v766_v36  ;;  %v767_v44 = vadd.f32 %v761_v37, %v313_v43  ;;  %v322_v43 = vpop.f32.mrf.mxu0 }
 0x3c0   :  { %v763_v39 = vpop.f32.mrf.mxu1 }
 0x3c1   :  { %4658 = vpow2.f32 %v4295_v38  ;;  %v4296_v50 = vmul.f32 -1.442695, %v767_v44 }
 0x3c2   :  { %v764_v41 = vpop.f32.mrf.mxu1  ;;  %4660 = vtanh.f32 %v767_v44  ;;  %v323_v44 = vadd.f32 %v322_v43, %v5376_v40 }
 0x3ce   :  { %v4659_v45 = vpop.eup %4658 }
 0x3cf   :  { %v774_v46 = vadd.f32 1.0, %v4659_v45  ;;  %v4661_v47 = vpop.eup %4660 }
 0x3d1   :  { %4662 = vrcp.f32 %v774_v46 }
 0x3d2   :  { %4664 = vpow2.f32 %v4296_v50 }
 0x3de   :  { %v4663_v48 = vpop.eup %4662 }
 0x3df   :  { %v782_v49 = vmul.f32 %v4663_v48, %v4661_v47  ;;  %v4665_v51 = vpop.eup %4664  ;;  %v781_v53 = vmul.f32 %v4663_v48, %v714_v27 }
 0x3e0   :  { %v775_v52 = vadd.f32 1.0, %v4665_v51 }
 0x3e1   :  { %784 = vrot.lane.b32.xlu1 %v782_v49, %s5196_s2 }
 0x3e2   :  { %4666 = vrcp.f32 %v775_v52 }
 0x3ef   :  { %v4667_v56 = vpop.eup %4666 }
 0x453   :  { %v785_v54 = vpop.permute.xlu1 %784 }
 0x454   :  { %v787_v55 = vadd.f32 %v785_v54, %v781_v53 }
 0x456   :  { %4668 = vtanh.f32 %v787_v55 }
 0x463   :  { %v4669_v57 = vpop.eup %4668 }
 0x464   :  { %v789_v58 = vmul.f32 %v4669_v57, %v4667_v56 }
 0x466   :  { %790 = vst.msk [vmem:[#allocation3 + $0x10] sm:$0xff] %vm642_vm0, %v789_v58  ;;  %v794_v59 = vpack.c.bf16 %v789_v58, %v789_v58 }
 0x467   :  { %791 = vst.msk [vmem:[#allocation3 + $0xe8] sm:$0xff] %vm644_vm1, %v789_v58 }
 0x468   :  { %4297 = vmatmul.mubr.msk.bf16.vlgmr.msra.gmra.mxu1 %vm573_vm2, %v794_v59 }
 0x469   :  { %880 = vmatpush1.bf16.msra.mxu1 %v5272_v7  ;;  %903 = vmatprep.mubr.bf16.mxu1 %v7460_v2 }
 0x46a   :  { %881 = vmatprep.subr.bf16.mxu1 %v5285_v10 }
 0x46d   :  { %882 = vmatpush1.bf16.msra.mxu1 %v5290_v11 }
 0x46e   :  { %883 = vmatprep.subr.bf16.mxu1 %v5302_v14 }
 0x471   :  { %884 = vmatpush1.bf16.msra.mxu1 %v5308_v15 }
 0x472   :  { %885 = vmatprep.subr.bf16.mxu1 %v5314_v16 }
 0x475   :  { %886 = vmatpush1.bf16.msra.mxu1 %v5326_v19 }
 0x476   :  { %952 = vmatprep.subr.bf16.mxu1 %v5267_v6 }
 0x528   :  { %v832_v62 = vpop.f32.mrf.mxu1 }
 0x529   :  { %v839_v63 = vadd.f32 %v832_v62, %v315_v61  ;;  %v324_v61 = vpop.f32.mrf.mxu0 }
 0x52a   :  { %v834_v0 = vpop.f32.mrf.mxu1  ;;  %v325_v62 = vadd.f32 %v324_v61, %v5373_v34 }
 0x52b   :  { %v4298_v1 = vmul.f32 -1.442695, %v839_v63  ;;  %v840_v9 = vadd.f32 %v834_v0, %v317_v8  ;;  %v326_v8 = vpop.f32.mrf.mxu0 }
 0x52c   :  { %v836_v3 = vpop.f32.mrf.mxu1 }
 0x52d   :  { %4670 = vpow2.f32 %v4298_v1  ;;  %v4299_v22 = vmul.f32 -1.442695, %v840_v9 }
 0x52e   :  { %v837_v4 = vpop.f32.mrf.mxu1  ;;  %4672 = vtanh.f32 %v840_v9  ;;  %v327_v9 = vadd.f32 %v326_v8, %v5376_v40 }
 0x53a   :  { %v4671_v12 = vpop.eup %4670 }
 0x53b   :  { %v847_v13 = vadd.f32 1.0, %v4671_v12  ;;  %v4673_v18 = vpop.eup %4672 }
 0x53d   :  { %4674 = vrcp.f32 %v847_v13 }
 0x53e   :  { %4676 = vpow2.f32 %v4299_v22 }
 0x54a   :  { %v4675_v20 = vpop.eup %4674 }
 0x54b   :  { %v855_v21 = vmul.f32 %v4675_v20, %v4673_v18  ;;  %v4677_v23 = vpop.eup %4676  ;;  %v854_v25 = vmul.f32 %v4675_v20, %v787_v55  ;;  %v4621_v18 = vld [vmem:[%s7450_s0 + $0x18] sm:$0xff]  }
 0x54c   :  { %v848_v24 = vadd.f32 1.0, %v4677_v23  ;;  %329 = vmatmul.mubr.bf16.gmra.mxu0 %v4621_v18 }
 0x54d   :  { %857 = vrot.lane.b32.xlu1 %v855_v21, %s5196_s2  ;;  %338 = vmatprep.mubr.bf16.mxu0 %v7460_v2 }
 0x54e   :  { %4678 = vrcp.f32 %v848_v24 }
 0x55b   :  { %v4679_v29 = vpop.eup %4678 }
 0x5bf   :  { %v858_v27 = vpop.permute.xlu1 %857 }
 0x5c0   :  { %v860_v28 = vadd.f32 %v858_v27, %v854_v25 }
 0x5c2   :  { %4680 = vtanh.f32 %v860_v28 }
 0x5cf   :  { %v4681_v30 = vpop.eup %4680 }
 0x5d0   :  { %v862_v31 = vmul.f32 %v4681_v30, %v4679_v29 }
 0x5d2   :  { %863 = vst.msk [vmem:[#allocation3 + $0x18] sm:$0xff] %vm642_vm0, %v862_v31  ;;  %v867_v32 = vpack.c.bf16 %v862_v31, %v862_v31 }
 0x5d3   :  { %864 = vst.msk [vmem:[#allocation3 + $0xe0] sm:$0xff] %vm644_vm1, %v862_v31 }
 0x5d4   :  { %4300 = vmatmul.mubr.msk.bf16.vlgmr.msra.gmra.mxu1 %vm573_vm2, %v867_v32 }
 0x5d5   :  { %953 = vmatpush1.bf16.msra.mxu1 %v5272_v7  ;;  %976 = vmatprep.mubr.bf16.mxu1 %v7460_v2 }
 0x5d6   :  { %954 = vmatprep.subr.bf16.mxu1 %v5285_v10 }
 0x5d9   :  { %955 = vmatpush1.bf16.msra.mxu1 %v5290_v11 }
 0x5da   :  { %956 = vmatprep.subr.bf16.mxu1 %v5302_v14 }
 0x5dd   :  { %957 = vmatpush1.bf16.msra.mxu1 %v5308_v15 }
 0x5de   :  { %958 = vmatprep.subr.bf16.mxu1 %v5314_v16 }
 0x5e1   :  { %959 = vmatpush1.bf16.msra.mxu1 %v5326_v19 }
 0x5e2   :  { %1025 = vmatprep.subr.bf16.mxu1 %v5267_v6 }
 0x694   :  { %v905_v36 = vpop.f32.mrf.mxu1 }
 0x695   :  { %v912_v37 = vadd.f32 %v905_v36, %v321_v35  ;;  %v330_v35 = vpop.f32.mrf.mxu0 }
 0x696   :  { %v907_v38 = vpop.f32.mrf.mxu1  ;;  %v331_v36 = vadd.f32 %v330_v35, %v5373_v34 }
 0x697   :  { %v4301_v39 = vmul.f32 -1.442695, %v912_v37  ;;  %v913_v45 = vadd.f32 %v907_v38, %v323_v44  ;;  %v332_v44 = vpop.f32.mrf.mxu0 }
 0x698   :  { %v909_v41 = vpop.f32.mrf.mxu1 }
 0x699   :  { %4682 = vpow2.f32 %v4301_v39  ;;  %v4302_v51 = vmul.f32 -1.442695, %v913_v45 }
 0x69a   :  { %v910_v42 = vpop.f32.mrf.mxu1  ;;  %4684 = vtanh.f32 %v913_v45  ;;  %v333_v45 = vadd.f32 %v332_v44, %v5376_v40 }
 0x6a6   :  { %v4683_v46 = vpop.eup %4682 }
 0x6a7   :  { %v920_v47 = vadd.f32 1.0, %v4683_v46  ;;  %v4685_v48 = vpop.eup %4684 }
 0x6a9   :  { %4686 = vrcp.f32 %v920_v47 }
 0x6aa   :  { %4688 = vpow2.f32 %v4302_v51 }
 0x6b6   :  { %v4687_v49 = vpop.eup %4686 }
 0x6b7   :  { %v928_v50 = vmul.f32 %v4687_v49, %v4685_v48  ;;  %v4689_v52 = vpop.eup %4688  ;;  %v927_v54 = vmul.f32 %v4687_v49, %v860_v28 }
 0x6b8   :  { %v921_v53 = vadd.f32 1.0, %v4689_v52 }
 0x6b9   :  { %930 = vrot.lane.b32.xlu0 %v928_v50, %s5196_s2 }
 0x6ba   :  { %4690 = vrcp.f32 %v921_v53 }
 0x6c7   :  { %v4691_v57 = vpop.eup %4690 }
 0x72b   :  { %v931_v55 = vpop.permute.xlu0 %930 }
 0x72c   :  { %v933_v56 = vadd.f32 %v931_v55, %v927_v54 }
 0x72e   :  { %4692 = vtanh.f32 %v933_v56 }
 0x73b   :  { %v4693_v58 = vpop.eup %4692 }
 0x73c   :  { %v935_v59 = vmul.f32 %v4693_v58, %v4691_v57 }
 0x73e   :  { %936 = vst.msk [vmem:[#allocation3 + $0x20] sm:$0xff] %vm642_vm0, %v935_v59  ;;  %v940_v60 = vpack.c.bf16 %v935_v59, %v935_v59 }
 0x73f   :  { %937 = vst.msk [vmem:[#allocation3 + $0xd8] sm:$0xff] %vm644_vm1, %v935_v59 }
 0x740   :  { %4303 = vmatmul.mubr.msk.bf16.vlgmr.msra.gmra.mxu1 %vm573_vm2, %v940_v60 }
 0x741   :  { %1026 = vmatpush1.bf16.msra.mxu1 %v5272_v7  ;;  %1049 = vmatprep.mubr.bf16.mxu1 %v7460_v2 }
 0x742   :  { %1027 = vmatprep.subr.bf16.mxu1 %v5285_v10 }
 0x745   :  { %1028 = vmatpush1.bf16.msra.mxu1 %v5290_v11 }
 0x746   :  { %1029 = vmatprep.subr.bf16.mxu1 %v5302_v14 }
 0x749   :  { %1030 = vmatpush1.bf16.msra.mxu1 %v5308_v15 }
 0x74a   :  { %1031 = vmatprep.subr.bf16.mxu1 %v5314_v16 }
 0x74d   :  { %1032 = vmatpush1.bf16.msra.mxu1 %v5326_v19 }
 0x74e   :  { %1098 = vmatprep.subr.bf16.mxu1 %v5267_v6 }
 0x800   :  { %v978_v63 = vpop.f32.mrf.mxu1 }
 0x801   :  { %v985_v0 = vadd.f32 %v978_v63, %v325_v62  ;;  %v334_v62 = vpop.f32.mrf.mxu0 }
 0x802   :  { %v980_v1 = vpop.f32.mrf.mxu1  ;;  %v335_v63 = vadd.f32 %v334_v62, %v5373_v34 }
 0x803   :  { %v4304_v3 = vmul.f32 -1.442695, %v985_v0  ;;  %v986_v12 = vadd.f32 %v980_v1, %v327_v9  ;;  %v336_v9 = vpop.f32.mrf.mxu0 }
 0x804   :  { %v982_v4 = vpop.f32.mrf.mxu1 }
 0x805   :  { %4694 = vpow2.f32 %v4304_v3  ;;  %v4305_v23 = vmul.f32 -1.442695, %v986_v12 }
 0x806   :  { %v983_v5 = vpop.f32.mrf.mxu1  ;;  %4696 = vtanh.f32 %v986_v12  ;;  %v337_v12 = vadd.f32 %v336_v9, %v5376_v40  ;;  %v5598_v9 = vld [vmem:[%s7453_s3 + $0x10] ss:$8 sps:$4 sm:$0xff]  }
 0x812   :  { %v4695_v13 = vpop.eup %4694 }
 0x813   :  { %v993_v17 = vadd.f32 1.0, %v4695_v13  ;;  %v4697_v20 = vpop.eup %4696 }
 0x815   :  { %4698 = vrcp.f32 %v993_v17 }
 0x816   :  { %4700 = vpow2.f32 %v4305_v23 }
 0x822   :  { %v4699_v21 = vpop.eup %4698 }
 0x823   :  { %v1001_v22 = vmul.f32 %v4699_v21, %v4697_v20  ;;  %v4701_v24 = vpop.eup %4700  ;;  %v1000_v27 = vmul.f32 %v4699_v21, %v933_v56  ;;  %v4622_v20 = vld [vmem:[%s7450_s0 + $0x20] sm:$0xff]  }
 0x824   :  { %v994_v25 = vadd.f32 1.0, %v4701_v24  ;;  %339 = vmatmul.mubr.bf16.gmra.mxu0 %v4622_v20 }
 0x825   :  { %1003 = vrot.lane.b32.xlu1 %v1001_v22, %s5196_s2  ;;  %348 = vmatprep.mubr.bf16.mxu0 %v7460_v2 }
 0x826   :  { %4702 = vrcp.f32 %v994_v25 }
 0x833   :  { %v4703_v30 = vpop.eup %4702 }
 0x897   :  { %v1004_v28 = vpop.permute.xlu1 %1003 }
 0x898   :  { %v1006_v29 = vadd.f32 %v1004_v28, %v1000_v27 }
 0x89a   :  { %4704 = vtanh.f32 %v1006_v29 }
 0x8a7   :  { %v4705_v31 = vpop.eup %4704 }
 0x8a8   :  { %v1008_v32 = vmul.f32 %v4705_v31, %v4703_v30 }
 0x8aa   :  { %1009 = vst.msk [vmem:[#allocation3 + $0x28] sm:$0xff] %vm642_vm0, %v1008_v32  ;;  %v1013_v33 = vpack.c.bf16 %v1008_v32, %v1008_v32 }
 0x8ab   :  { %1010 = vst.msk [vmem:[#allocation3 + $0xd0] sm:$0xff] %vm644_vm1, %v1008_v32 }
 0x8ac   :  { %4306 = vmatmul.mubr.msk.bf16.vlgmr.msra.gmra.mxu1 %vm573_vm2, %v1013_v33 }
 0x8ad   :  { %1099 = vmatpush1.bf16.msra.mxu1 %v5272_v7  ;;  %1122 = vmatprep.mubr.bf16.mxu1 %v7460_v2 }
 0x8ae   :  { %1100 = vmatprep.subr.bf16.mxu1 %v5285_v10 }
 0x8b1   :  { %1101 = vmatpush1.bf16.msra.mxu1 %v5290_v11 }
 0x8b2   :  { %1102 = vmatprep.subr.bf16.mxu1 %v5302_v14 }
 0x8b5   :  { %1103 = vmatpush1.bf16.msra.mxu1 %v5308_v15 }
 0x8b6   :  { %1104 = vmatprep.subr.bf16.mxu1 %v5314_v16 }
 0x8b9   :  { %1105 = vmatpush1.bf16.msra.mxu1 %v5326_v19 }
 0x8ba   :  { %1171 = vmatprep.subr.bf16.mxu1 %v5267_v6 }
 0x96c   :  { %v1051_v37 = vpop.f32.mrf.mxu1 }
 0x96d   :  { %v1058_v38 = vadd.f32 %v1051_v37, %v331_v36  ;;  %v4631_v36 = vld [vmem:[%s7450_s0 + $0x68] sm:$0xff]   ;;  %v4632_v37 = vld [vmem:[%s7450_s0 + $0x70] sm:$0xff]  }
 0x96e   :  { %v1053_v39 = vpop.f32.mrf.mxu1 }
 0x96f   :  { %v4307_v41 = vmul.f32 -1.442695, %v1058_v38  ;;  %v1059_v46 = vadd.f32 %v1053_v39, %v333_v45  ;;  %v340_v38 = vpop.f32.mrf.mxu0 }
 0x970   :  { %v1055_v42 = vpop.f32.mrf.mxu1  ;;  %v341_v39 = vadd.f32 %v340_v38, %v5373_v34 }
 0x971   :  { %4706 = vpow2.f32 %v4307_v41  ;;  %v4308_v52 = vmul.f32 -1.442695, %v1059_v46 }
 0x972   :  { %v1056_v43 = vpop.f32.mrf.mxu1  ;;  %4708 = vtanh.f32 %v1059_v46 }
 0x97e   :  { %v4707_v47 = vpop.eup %4706 }
 0x97f   :  { %v1066_v48 = vadd.f32 1.0, %v4707_v47  ;;  %v4709_v49 = vpop.eup %4708  ;;  %v342_v47 = vpop.f32.mrf.mxu0 }
 0x981   :  { %4710 = vrcp.f32 %v1066_v48  ;;  %v343_v48 = vadd.f32 %v342_v47, %v5376_v40 }
 0x982   :  { %4712 = vpow2.f32 %v4308_v52  ;;  %v4633_v52 = vld [vmem:[%s7450_s0 + $0x78] sm:$0xff]  }
 0x98e   :  { %v4711_v50 = vpop.eup %4710 }
 0x98f   :  { %v1074_v51 = vmul.f32 %v4711_v50, %v4709_v49  ;;  %v4713_v53 = vpop.eup %4712  ;;  %v1073_v55 = vmul.f32 %v4711_v50, %v1006_v29 }
 0x990   :  { %v1067_v54 = vadd.f32 1.0, %v4713_v53 }
 0x991   :  { %1076 = vrot.lane.b32.xlu0 %v1074_v51, %s5196_s2 }
 0x992   :  { %4714 = vrcp.f32 %v1067_v54 }
 0x99f   :  { %v4715_v58 = vpop.eup %4714 }
 0xa03   :  { %v1077_v56 = vpop.permute.xlu0 %1076 }
 0xa04   :  { %v1079_v57 = vadd.f32 %v1077_v56, %v1073_v55 }
 0xa06   :  { %4716 = vtanh.f32 %v1079_v57 }
 0xa13   :  { %v4717_v59 = vpop.eup %4716 }
 0xa14   :  { %v1081_v60 = vmul.f32 %v4717_v59, %v4715_v58 }
 0xa16   :  { %1082 = vst.msk [vmem:[#allocation3 + $0x30] sm:$0xff] %vm642_vm0, %v1081_v60  ;;  %v1086_v61 = vpack.c.bf16 %v1081_v60, %v1081_v60 }
 0xa17   :  { %1083 = vst.msk [vmem:[#allocation3 + $0xc8] sm:$0xff] %vm644_vm1, %v1081_v60 }
 0xa18   :  { %4309 = vmatmul.mubr.msk.bf16.vlgmr.msra.gmra.mxu1 %vm573_vm2, %v1086_v61 }
 0xa19   :  { %1172 = vmatpush1.bf16.msra.mxu1 %v5272_v7  ;;  %1195 = vmatprep.mubr.bf16.mxu1 %v7460_v2 }
 0xa1a   :  { %1173 = vmatprep.subr.bf16.mxu1 %v5285_v10 }
 0xa1d   :  { %1174 = vmatpush1.bf16.msra.mxu1 %v5290_v11 }
 0xa1e   :  { %1175 = vmatprep.subr.bf16.mxu1 %v5302_v14 }
 0xa21   :  { %1176 = vmatpush1.bf16.msra.mxu1 %v5308_v15 }
 0xa22   :  { %1177 = vmatprep.subr.bf16.mxu1 %v5314_v16 }
 0xa25   :  { %1178 = vmatpush1.bf16.msra.mxu1 %v5326_v19 }
 0xa26   :  { %1317 = vmatprep.subr.bf16.mxu1 %v5267_v6 }
 0xad8   :  { %v1124_v0 = vpop.f32.mrf.mxu1 }
 0xad9   :  { %v1131_v1 = vadd.f32 %v1124_v0, %v335_v63 }
 0xada   :  { %v1126_v3 = vpop.f32.mrf.mxu1 }
 0xadb   :  { %v4310_v4 = vmul.f32 -1.442695, %v1131_v1  ;;  %v1132_v13 = vadd.f32 %v1126_v3, %v337_v12  ;;  %v5573_v3 = vld [vmem:[%s7453_s3 + $0x30] ss:$8 sps:$4 sm:$0xff]   ;;  %v5604_v12 = vld [vmem:[%s7453_s3 + $0x4] ss:$8 sps:$4 sm:$0xff]  }
 0xadc   :  { %v1128_v5 = vpop.f32.mrf.mxu1 }
 0xadd   :  { %4718 = vpow2.f32 %v4310_v4  ;;  %v4311_v24 = vmul.f32 -1.442695, %v1132_v13  ;;  %v5580_v4 = vld [vmem:[%s7453_s3 + $0x24] ss:$8 sps:$4 sm:$0xff]   ;;  %v5586_v5 = vld [vmem:[%s7453_s3 + $0x20] ss:$8 sps:$4 sm:$0xff]  }
 0xade   :  { %v1129_v8 = vpop.f32.mrf.mxu1  ;;  %4720 = vtanh.f32 %v1132_v13  ;;  %v344_v13 = vpop.f32.mrf.mxu0 }
 0xadf   :  { %v5592_v8 = vld [vmem:[%s7453_s3 + $0x14] ss:$8 sps:$4 sm:$0xff]  }
 0xae0   :  { %v346_v20 = vpop.f32.mrf.mxu0 }
 0xaea   :  { %v4719_v17 = vpop.eup %4718 }
 0xaeb   :  { %v1139_v18 = vadd.f32 1.0, %v4719_v17  ;;  %v4721_v21 = vpop.eup %4720  ;;  %v5610_v17 = vld [vmem:[%s7453_s3] ss:$8 sps:$4 sm:$0xff]  }
 0xaed   :  { %4722 = vrcp.f32 %v1139_v18  ;;  %v5616_v18 = vld [vmem:[%s7453_s3 + $0x34] ss:$8 sps:$4 sm:$0xff]  }
 0xaee   :  { %4724 = vpow2.f32 %v4311_v24 }
 0xafa   :  { %v4723_v22 = vpop.eup %4722 }
 0xafb   :  { %v1147_v23 = vmul.f32 %v4723_v22, %v4721_v21  ;;  %v4725_v25 = vpop.eup %4724  ;;  %v1146_v28 = vmul.f32 %v4723_v22, %v1079_v57 }
 0xafc   :  { %v1140_v27 = vadd.f32 1.0, %v4725_v25 }
 0xafd   :  { %1149 = vrot.lane.b32.xlu1 %v1147_v23, %s5196_s2 }
 0xafe   :  { %4726 = vrcp.f32 %v1140_v27 }
 0xb0b   :  { %v4727_v31 = vpop.eup %4726 }
 0xb6f   :  { %v1150_v29 = vpop.permute.xlu1 %1149 }
 0xb70   :  { %v5501_v30 = vadd.f32 %v1150_v29, %v1146_v28 }
 0xb72   :  { %4728 = vtanh.f32 %v5501_v30 }
 0xb7f   :  { %v4729_v32 = vpop.eup %4728 }
 0xb80   :  { %v1154_v33 = vmul.f32 %v4729_v32, %v4727_v31 }
 0xb82   :  { %1155 = vst.msk [vmem:[#allocation3 + $0x38] sm:$0xff] %vm642_vm0, %v1154_v33  ;;  %v1159_v35 = vpack.c.bf16 %v1154_v33, %v1154_v33 }
 0xb83   :  { %1156 = vst.msk [vmem:[#allocation3 + $0xc0] sm:$0xff] %vm644_vm1, %v1154_v33 }
 0xb84   :  { %4312 = vmatmul.mubr.msk.bf16.vlgmr.msra.gmra.mxu1 %vm573_vm2, %v1159_v35 }
 0xb85   :  { %1318 = vmatpush1.bf16.msra.mxu1 %v5272_v7  ;;  %1341 = vmatprep.mubr.bf16.mxu1 %v7460_v2  ;;  %v4623_v7 = vld [vmem:[%s7450_s0 + $0x28] sm:$0xff]  }
 0xb86   :  { %1319 = vmatprep.subr.bf16.mxu1 %v5285_v10  ;;  %349 = vmatmul.mubr.bf16.gmra.mxu0 %v4623_v7  ;;  %v4624_v10 = vld [vmem:[%s7450_s0 + $0x30] sm:$0xff]  }
 0xb87   :  { %358 = vmatprep.mubr.bf16.mxu0 %v7460_v2 }
 0xb89   :  { %1320 = vmatpush1.bf16.msra.mxu1 %v5290_v11  ;;  %v4625_v11 = vld [vmem:[%s7450_s0 + $0x38] sm:$0xff]  }
 0xb8a   :  { %1321 = vmatprep.subr.bf16.mxu1 %v5302_v14  ;;  %v4627_v14 = vld [vmem:[%s7450_s0 + $0x48] sm:$0xff]  }
 0xb8d   :  { %1322 = vmatpush1.bf16.msra.mxu1 %v5308_v15  ;;  %v4628_v15 = vld [vmem:[%s7450_s0 + $0x50] sm:$0xff]  }
 0xb8e   :  { %1323 = vmatprep.subr.bf16.mxu1 %v5314_v16  ;;  %359 = vmatmul.mubr.bf16.gmra.mxu0 %v4624_v10  ;;  %v4629_v16 = vld [vmem:[%s7450_s0 + $0x58] sm:$0xff]  }
 0xb8f   :  { %368 = vmatprep.mubr.bf16.mxu0 %v7460_v2 }
 0xb91   :  { %1324 = vmatpush1.bf16.msra.mxu1 %v5326_v19  ;;  %v4630_v19 = vld [vmem:[%s7450_s0 + $0x60] sm:$0xff]  }
 0xb92   :  { %1463 = vmatprep.subr.bf16.mxu1 %v5267_v6  ;;  %v4626_v6 = vld [vmem:[%s7450_s0 + $0x40] sm:$0xff]  }
 0xb96   :  { %369 = vmatmul.mubr.bf16.gmra.mxu0 %v4625_v11 }
 0xb97   :  { %378 = vmatprep.mubr.bf16.mxu0 %v7460_v2 }
 0xb9e   :  { %379 = vmatmul.mubr.bf16.gmra.mxu0 %v4626_v6 }
 0xb9f   :  { %388 = vmatprep.mubr.bf16.mxu0 %v7460_v2 }
 0xba6   :  { %389 = vmatmul.mubr.bf16.gmra.mxu0 %v4627_v14 }
 0xba7   :  { %398 = vmatprep.mubr.bf16.mxu0 %v7460_v2 }
 0xbae   :  { %399 = vmatmul.mubr.bf16.gmra.mxu0 %v4628_v15 }
 0xbaf   :  { %408 = vmatprep.mubr.bf16.mxu0 %v7460_v2 }
 0xbb6   :  { %409 = vmatmul.mubr.bf16.gmra.mxu0 %v4629_v16 }
 0xbb7   :  { %418 = vmatprep.mubr.bf16.mxu0 %v7460_v2 }
 0xbbe   :  { %419 = vmatmul.mubr.bf16.gmra.mxu0 %v4630_v19 }
 0xbbf   :  { %428 = vmatprep.mubr.bf16.mxu0 %v7460_v2 }
 0xbc6   :  { %429 = vmatmul.mubr.bf16.gmra.mxu0 %v4631_v36 }
 0xbc7   :  { %438 = vmatprep.mubr.bf16.mxu0 %v7460_v2 }
 0xbce   :  { %439 = vmatmul.mubr.bf16.gmra.mxu0 %v4632_v37 }
 0xbcf   :  { %448 = vmatprep.mubr.bf16.mxu0 %v7460_v2 }
 0xbd6   :  { %449 = vmatmul.mubr.bf16.gmra.mxu0 %v4633_v52 }
 0xbd7   :  { %1268 = vmatprep.mubr.bf16.mxu0 %v7460_v2 }
 0xc44   :  { %v1197_v41 = vpop.f32.mrf.mxu1 }
 0xc45   :  { %v1204_v42 = vadd.f32 %v1197_v41, %v341_v39 }
 0xc46   :  { %v1199_v43 = vpop.f32.mrf.mxu1  ;;  %v5619_v21 = vpop.f32.mrf.mxu0 }
 0xc47   :  { %v4313_v44 = vmul.f32 -1.442695, %v1204_v42  ;;  %v1205_v49 = vadd.f32 %v1199_v43, %v343_v48 }
 0xc48   :  { %v1201_v45 = vpop.f32.mrf.mxu1  ;;  %v5621_v22 = vpop.f32.mrf.mxu0 }
 0xc49   :  { %4730 = vpow2.f32 %v4313_v44  ;;  %v4314_v56 = vmul.f32 -1.442695, %v1205_v49 }
 0xc4a   :  { %v1202_v46 = vpop.f32.mrf.mxu1  ;;  %4732 = vtanh.f32 %v1205_v49  ;;  %v5623_v23 = vpop.f32.mrf.mxu0 }
 0xc4c   :  { %v5625_v24 = vpop.f32.mrf.mxu0 }
 0xc4e   :  { %v5627_v25 = vpop.f32.mrf.mxu0 }
 0xc50   :  { %v5629_v27 = vpop.f32.mrf.mxu0 }
 0xc52   :  { %v5631_v28 = vpop.f32.mrf.mxu0 }
 0xc54   :  { %v5633_v29 = vpop.f32.mrf.mxu0 }
 0xc56   :  { %v4731_v50 = vpop.eup %4730 }
 0xc57   :  { %v1212_v51 = vadd.f32 1.0, %v4731_v50  ;;  %v4733_v53 = vpop.eup %4732 }
 0xc59   :  { %4734 = vrcp.f32 %v1212_v51 }
 0xc5a   :  { %4736 = vpow2.f32 %v4314_v56 }
 0xc66   :  { %v4735_v54 = vpop.eup %4734 }
 0xc67   :  { %v1220_v55 = vmul.f32 %v4735_v54, %v4733_v53  ;;  %v4737_v57 = vpop.eup %4736  ;;  %v1219_v59 = vmul.f32 %v4735_v54, %v5501_v30  ;;  %v5635_v30 = vpop.f32.mrf.mxu0 }
 0xc68   :  { %v1213_v58 = vadd.f32 1.0, %v4737_v57 }
 0xc69   :  { %1222 = vrot.lane.b32.xlu0 %v1220_v55, %s5196_s2  ;;  %v5637_v31 = vpop.f32.mrf.mxu0 }
 0xc6a   :  { %4738 = vrcp.f32 %v1213_v58 }
 0xc6b   :  { %v5639_v32 = vpop.f32.mrf.mxu0 }
 0xc6d   :  { %v5641_v33 = vpop.f32.mrf.mxu0 }
 0xc6f   :  { %v5643_v35 = vpop.f32.mrf.mxu0 }
 0xc71   :  { %v5645_v7 = vpop.f32.mrf.mxu0 }
 0xc73   :  { %v5647_v10 = vpop.f32.mrf.mxu0 }
 0xc75   :  { %v5649_v11 = vpop.f32.mrf.mxu0 }
 0xc77   :  { %v4739_v62 = vpop.eup %4738  ;;  %v5651_v6 = vpop.f32.mrf.mxu0 }
 0xc79   :  { %v5653_v14 = vpop.f32.mrf.mxu0 }
 0xc7b   :  { %v5655_v15 = vpop.f32.mrf.mxu0 }
 0xc7d   :  { %v5657_v16 = vpop.f32.mrf.mxu0 }
 0xc7f   :  { %v5659_v19 = vpop.f32.mrf.mxu0 }
 0xc81   :  { %v5661_v36 = vpop.f32.mrf.mxu0 }
 0xc83   :  { %v5663_v37 = vpop.f32.mrf.mxu0 }
 0xc85   :  { %v5665_v38 = vpop.f32.mrf.mxu0 }
 0xc87   :  { %v5667_v39 = vpop.f32.mrf.mxu0 }
 0xc89   :  { %v5669_v41 = vpop.f32.mrf.mxu0 }
 0xc8b   :  { %v5671_v42 = vpop.f32.mrf.mxu0 }
 0xc8d   :  { %v5673_v43 = vpop.f32.mrf.mxu0 }
 0xc8f   :  { %v5675_v44 = vpop.f32.mrf.mxu0 }
 0xc91   :  { %v5677_v45 = vpop.f32.mrf.mxu0 }
 0xc93   :  { %v5679_v46 = vpop.f32.mrf.mxu0 }
 0xc95   :  { %v5681_v47 = vpop.f32.mrf.mxu0 }
 0xc97   :  { %v5683_v48 = vpop.f32.mrf.mxu0 }
 0xc99   :  { %v5685_v49 = vpop.f32.mrf.mxu0 }
 0xc9b   :  { %v5687_v50 = vpop.f32.mrf.mxu0 }
 0xc9d   :  { %v5689_v51 = vpop.f32.mrf.mxu0 }
 0xc9f   :  { %v5691_v52 = vpop.f32.mrf.mxu0 }
 0xca0   :  { %7484 = vst [vmem:[#allocation7_spill] sm:$0xff] %v5691_v52 }
 0xca1   :  { %v5693_v53 = vpop.f32.mrf.mxu0 }
 0xca2   :  { %7485 = vst [vmem:[#allocation8_spill] sm:$0xff] %v5693_v53 }
 0xca3   :  { %v5695_v54 = vpop.f32.mrf.mxu0 }
 0xca4   :  { %7486 = vst [vmem:[#allocation9_spill] sm:$0xff] %v5695_v54  ;;  %v347_v54 = vadd.f32 %v346_v20, %v5376_v40 }
 0xca5   :  { %v5697_v55 = vpop.f32.mrf.mxu0 }
 0xca6   :  { %7487 = vst [vmem:[#allocation10_spill] sm:$0xff] %v5697_v55 }
 0xca7   :  { %v5699_v56 = vpop.f32.mrf.mxu0 }
 0xca8   :  { %7488 = vst [vmem:[#allocation11_spill] sm:$0xff] %v5699_v56 }
 0xca9   :  { %v5701_v57 = vpop.f32.mrf.mxu0 }
 0xcaa   :  { %7489 = vst [vmem:[#allocation12_spill] sm:$0xff] %v5701_v57 }
 0xcab   :  { %v5703_v58 = vpop.f32.mrf.mxu0 }
 0xcac   :  { %7490 = vst [vmem:[#allocation13_spill] sm:$0xff] %v5703_v58 }
 0xcdb   :  { %v1223_v60 = vpop.permute.xlu0 %1222 }
 0xcdc   :  { %v5564_v61 = vadd.f32 %v1223_v60, %v1219_v59  ;;  %v5705_v59 = vpop.f32.mrf.mxu0  ;;  %v345_v60 = vadd.f32 %v344_v13, %v5373_v34 }
 0xcde   :  { %4740 = vtanh.f32 %v5564_v61 }
 0xceb   :  { %v4741_v63 = vpop.eup %4740 }
 0xcec   :  { %v1227_v0 = vmul.f32 %v4741_v63, %v4739_v62 }
 0xcee   :  { %1228 = vst.msk [vmem:[#allocation3 + $0x40] sm:$0xff] %vm642_vm0, %v1227_v0  ;;  %v1232_v1 = vpack.c.bf16 %v1227_v0, %v1227_v0 }
 0xcef   :  { %1229 = vst.msk [vmem:[#allocation3 + $0xb8] sm:$0xff] %vm644_vm1, %v1227_v0 }
 0xcf0   :  { %4315 = vmatmul.mubr.msk.bf16.vlgmr.msra.gmra.mxu0 %vm573_vm2, %v1232_v1 }
 0xcf1   :  { %1391 = vmatpush1.bf16.msra.mxu0 %v5573_v3  ;;  %1414 = vmatprep.mubr.bf16.mxu0 %v7460_v2 }
 0xcf2   :  { %1392 = vmatprep.subr.bf16.mxu0 %v5580_v4 }
 0xcf5   :  { %1393 = vmatpush1.bf16.msra.mxu0 %v5586_v5 }
 0xcf6   :  { %1394 = vmatprep.subr.bf16.mxu0 %v5592_v8 }
 0xcf9   :  { %1395 = vmatpush1.bf16.msra.mxu0 %v5598_v9 }
 0xcfa   :  { %1396 = vmatprep.subr.bf16.mxu0 %v5604_v12 }
 0xcfd   :  { %1397 = vmatpush1.bf16.msra.mxu0 %v5610_v17 }
 0xcfe   :  { %1536 = vmatprep.subr.bf16.mxu0 %v5616_v18 }
 0xdb0   :  { %v1270_v62 = vpop.f32.mrf.mxu0 }
 0xdb1   :  { %v1277_v63 = vadd.f32 %v1270_v62, %v345_v60 }
 0xdb2   :  { %v1272_v0 = vpop.f32.mrf.mxu0 }
 0xdb3   :  { %v4316_v1 = vmul.f32 -1.442695, %v1277_v63  ;;  %v1278_v55 = vadd.f32 %v1272_v0, %v347_v54 }
 0xdb4   :  { %v1274_v26 = vpop.f32.mrf.mxu0 }
 0xdb5   :  { %4742 = vpow2.f32 %v4316_v1  ;;  %v4317_v13 = vmul.f32 -1.442695, %v1278_v55 }
 0xdb6   :  { %v1275_v2 = vpop.f32.mrf.mxu0  ;;  %4744 = vtanh.f32 %v1278_v55 }
 0xdc2   :  { %v4743_v53 = vpop.eup %4742 }
 0xdc3   :  { %v1285_v56 = vadd.f32 1.0, %v4743_v53  ;;  %v4745_v57 = vpop.eup %4744 }
 0xdc5   :  { %4746 = vrcp.f32 %v1285_v56 }
 0xdc6   :  { %4748 = vpow2.f32 %v4317_v13 }
 0xdd2   :  { %v4747_v58 = vpop.eup %4746 }
 0xdd3   :  { %v1293_v52 = vmul.f32 %v4747_v58, %v4745_v57  ;;  %v4749_v60 = vpop.eup %4748  ;;  %v1292_v26 = vmul.f32 %v4747_v58, %v5564_v61  ;;  %v351_v61 = vadd.f32 %v5619_v21, %v5373_v34 }
 0xdd4   :  { %v1286_v62 = vadd.f32 1.0, %v4749_v60  ;;  %v353_v60 = vadd.f32 %v5621_v22, %v5376_v40 }
 0xdd5   :  { %1295 = vrot.lane.b32.xlu1 %v1293_v52, %s5196_s2  ;;  %v7491_v52 = vmov 0  }
 0xdd6   :  { %4750 = vrcp.f32 %v1286_v62 }
 0xde3   :  { %v4751_v20 = vpop.eup %4750 }
 0xe47   :  { %v1296_v63 = vpop.permute.xlu1 %1295 }
 0xe48   :  { %v1298_v2 = vadd.f32 %v1296_v63, %v1292_v26 }
 0xe4a   :  { %4752 = vtanh.f32 %v1298_v2 }
 0xe57   :  { %v4753_v54 = vpop.eup %4752 }
 0xe58   :  { %v1300_v53 = vmul.f32 %v4753_v54, %v4751_v20 }
 0xe5a   :  { %1301 = vst.msk [vmem:[#allocation3 + $0x48] sm:$0xff] %vm642_vm0, %v1300_v53  ;;  %v1305_v56 = vpack.c.bf16 %v1300_v53, %v1300_v53 }
 0xe5b   :  { %1302 = vst.msk [vmem:[#allocation3 + $0xb0] sm:$0xff] %vm644_vm1, %v1300_v53 }
 0xe5c   :  { %4318 = vmatmul.mubr.msk.bf16.vlgmr.msra.gmra.mxu1 %vm573_vm2, %v1305_v56 }
 0xe5d   :  { %1464 = vmatpush1.bf16.msra.mxu1 %v5573_v3  ;;  %1487 = vmatprep.mubr.bf16.mxu1 %v7491_v52 }
 0xe5e   :  { %1465 = vmatprep.subr.bf16.mxu1 %v5580_v4 }
 0xe61   :  { %1466 = vmatpush1.bf16.msra.mxu1 %v5586_v5 }
 0xe62   :  { %1467 = vmatprep.subr.bf16.mxu1 %v5592_v8 }
 0xe65   :  { %1468 = vmatpush1.bf16.msra.mxu1 %v5598_v9 }
 0xe66   :  { %1469 = vmatprep.subr.bf16.mxu1 %v5604_v12 }
 0xe69   :  { %1470 = vmatpush1.bf16.msra.mxu1 %v5610_v17 }
 0xe6a   :  { %1609 = vmatprep.subr.bf16.mxu1 %v5616_v18 }
 0xf1c   :  { %v1343_v55 = vpop.f32.mrf.mxu1 }
 0xf1d   :  { %v1350_v57 = vadd.f32 %v1343_v55, %v351_v61 }
 0xf1e   :  { %v1345_v58 = vpop.f32.mrf.mxu1 }
 0xf1f   :  { %v4319_v0 = vmul.f32 -1.442695, %v1350_v57  ;;  %v1351_v62 = vadd.f32 %v1345_v58, %v353_v60 }
 0xf20   :  { %v1347_v1 = vpop.f32.mrf.mxu1 }
 0xf21   :  { %4754 = vpow2.f32 %v4319_v0  ;;  %v4320_v21 = vmul.f32 -1.442695, %v1351_v62 }
 0xf22   :  { %v1348_v13 = vpop.f32.mrf.mxu1  ;;  %4756 = vtanh.f32 %v1351_v62 }
 0xf2e   :  { %v4755_v26 = vpop.eup %4754 }
 0xf2f   :  { %v1358_v63 = vadd.f32 1.0, %v4755_v26  ;;  %v4757_v20 = vpop.eup %4756 }
 0xf31   :  { %4758 = vrcp.f32 %v1358_v63 }
 0xf32   :  { %4760 = vpow2.f32 %v4320_v21 }
 0xf3e   :  { %v4759_v54 = vpop.eup %4758 }
 0xf3f   :  { %v1366_v53 = vmul.f32 %v4759_v54, %v4757_v20  ;;  %v4761_v56 = vpop.eup %4760  ;;  %v1365_v55 = vmul.f32 %v4759_v54, %v1298_v2  ;;  %v355_v2 = vadd.f32 %v5623_v23, %v5373_v34 }
 0xf40   :  { %v1359_v61 = vadd.f32 1.0, %v4761_v56 }
 0xf41   :  { %1368 = vrot.lane.b32.xlu0 %v1366_v53, %s5196_s2  ;;  %v357_v53 = vadd.f32 %v5625_v24, %v5376_v40 }
 0xf42   :  { %4762 = vrcp.f32 %v1359_v61 }
 0xf4f   :  { %v4763_v22 = vpop.eup %4762 }
 0xfb3   :  { %v1369_v57 = vpop.permute.xlu0 %1368 }
 0xfb4   :  { %v1371_v0 = vadd.f32 %v1369_v57, %v1365_v55 }
 0xfb6   :  { %4764 = vtanh.f32 %v1371_v0 }
 0xfc3   :  { %v4765_v58 = vpop.eup %4764 }
 0xfc4   :  { %v1373_v1 = vmul.f32 %v4765_v58, %v4763_v22 }
 0xfc6   :  { %1374 = vst.msk [vmem:[#allocation3 + $0x50] sm:$0xff] %vm642_vm0, %v1373_v1  ;;  %v1378_v13 = vpack.c.bf16 %v1373_v1, %v1373_v1 }
 0xfc7   :  { %1375 = vst.msk [vmem:[#allocation3 + $0xa8] sm:$0xff] %vm644_vm1, %v1373_v1 }
 0xfc8   :  { %4321 = vmatmul.mubr.msk.bf16.vlgmr.msra.gmra.mxu0 %vm573_vm2, %v1378_v13 }
 0xfc9   :  { %1537 = vmatpush1.bf16.msra.mxu0 %v5573_v3  ;;  %1560 = vmatprep.mubr.bf16.mxu0 %v7491_v52 }
 0xfca   :  { %1538 = vmatprep.subr.bf16.mxu0 %v5580_v4 }
 0xfcd   :  { %1539 = vmatpush1.bf16.msra.mxu0 %v5586_v5 }
 0xfce   :  { %1540 = vmatprep.subr.bf16.mxu0 %v5592_v8 }
 0xfd1   :  { %1541 = vmatpush1.bf16.msra.mxu0 %v5598_v9 }
 0xfd2   :  { %1542 = vmatprep.subr.bf16.mxu0 %v5604_v12 }
 0xfd5   :  { %1543 = vmatpush1.bf16.msra.mxu0 %v5610_v17 }
 0xfd6   :  { %1682 = vmatprep.subr.bf16.mxu0 %v5616_v18 }
0x1088   :  { %v1416_v60 = vpop.f32.mrf.mxu0 }
0x1089   :  { %v1423_v62 = vadd.f32 %v1416_v60, %v355_v2 }
0x108a   :  { %v1418_v26 = vpop.f32.mrf.mxu0 }
0x108b   :  { %v4322_v63 = vmul.f32 -1.442695, %v1423_v62  ;;  %v1424_v21 = vadd.f32 %v1418_v26, %v357_v53 }
0x108c   :  { %v1420_v20 = vpop.f32.mrf.mxu0 }
0x108d   :  { %4766 = vpow2.f32 %v4322_v63  ;;  %v4323_v23 = vmul.f32 -1.442695, %v1424_v21 }
0x108e   :  { %v1421_v54 = vpop.f32.mrf.mxu0  ;;  %4768 = vtanh.f32 %v1424_v21 }
0x109a   :  { %v4767_v56 = vpop.eup %4766 }
0x109b   :  { %v1431_v61 = vadd.f32 1.0, %v4767_v56  ;;  %v4769_v55 = vpop.eup %4768 }
0x109d   :  { %4770 = vrcp.f32 %v1431_v61 }
0x109e   :  { %4772 = vpow2.f32 %v4323_v23 }
0x10aa   :  { %v4771_v57 = vpop.eup %4770 }
0x10ab   :  { %v1439_v22 = vmul.f32 %v4771_v57, %v4769_v55  ;;  %v4773_v58 = vpop.eup %4772  ;;  %v1438_v13 = vmul.f32 %v4771_v57, %v1371_v0  ;;  %v361_v0 = vadd.f32 %v5627_v25, %v5373_v34  ;;  %v363_v55 = vadd.f32 %v5629_v27, %v5376_v40 }
0x10ac   :  { %v1432_v1 = vadd.f32 1.0, %v4773_v58 }
0x10ad   :  { %1441 = vrot.lane.b32.xlu1 %v1439_v22, %s5196_s2 }
0x10ae   :  { %4774 = vrcp.f32 %v1432_v1 }
0x10bb   :  { %v4775_v24 = vpop.eup %4774 }
0x111f   :  { %v1442_v2 = vpop.permute.xlu1 %1441 }
0x1120   :  { %v1444_v60 = vadd.f32 %v1442_v2, %v1438_v13 }
0x1122   :  { %4776 = vtanh.f32 %v1444_v60 }
0x112f   :  { %v4777_v62 = vpop.eup %4776 }
0x1130   :  { %v1446_v26 = vmul.f32 %v4777_v62, %v4775_v24 }
0x1132   :  { %1447 = vst.msk [vmem:[#allocation3 + $0x58] sm:$0xff] %vm642_vm0, %v1446_v26  ;;  %v1451_v63 = vpack.c.bf16 %v1446_v26, %v1446_v26 }
0x1133   :  { %1448 = vst.msk [vmem:[#allocation3 + $0xa0] sm:$0xff] %vm644_vm1, %v1446_v26 }
0x1134   :  { %4324 = vmatmul.mubr.msk.bf16.vlgmr.msra.gmra.mxu1 %vm573_vm2, %v1451_v63 }
0x1135   :  { %1610 = vmatpush1.bf16.msra.mxu1 %v5573_v3  ;;  %1633 = vmatprep.mubr.bf16.mxu1 %v7491_v52 }
0x1136   :  { %1611 = vmatprep.subr.bf16.mxu1 %v5580_v4 }
0x1139   :  { %1612 = vmatpush1.bf16.msra.mxu1 %v5586_v5 }
0x113a   :  { %1613 = vmatprep.subr.bf16.mxu1 %v5592_v8 }
0x113d   :  { %1614 = vmatpush1.bf16.msra.mxu1 %v5598_v9 }
0x113e   :  { %1615 = vmatprep.subr.bf16.mxu1 %v5604_v12 }
0x1141   :  { %1616 = vmatpush1.bf16.msra.mxu1 %v5610_v17 }
0x1142   :  { %1755 = vmatprep.subr.bf16.mxu1 %v5616_v18 }
0x11f4   :  { %v1489_v20 = vpop.f32.mrf.mxu1 }
0x11f5   :  { %v1496_v54 = vadd.f32 %v1489_v20, %v361_v0 }
0x11f6   :  { %v1491_v53 = vpop.f32.mrf.mxu1 }
0x11f7   :  { %v4325_v21 = vmul.f32 -1.442695, %v1496_v54  ;;  %v1497_v57 = vadd.f32 %v1491_v53, %v363_v55 }
0x11f8   :  { %v1493_v56 = vpop.f32.mrf.mxu1 }
0x11f9   :  { %4778 = vpow2.f32 %v4325_v21  ;;  %v4326_v25 = vmul.f32 -1.442695, %v1497_v57 }
0x11fa   :  { %v1494_v61 = vpop.f32.mrf.mxu1  ;;  %4780 = vtanh.f32 %v1497_v57 }
0x1206   :  { %v4779_v22 = vpop.eup %4778 }
0x1207   :  { %v1504_v23 = vadd.f32 1.0, %v4779_v22  ;;  %v4781_v58 = vpop.eup %4780  ;;  %v367_v22 = vadd.f32 %v5633_v29, %v5376_v40 }
0x1209   :  { %4782 = vrcp.f32 %v1504_v23 }
0x120a   :  { %4784 = vpow2.f32 %v4326_v25 }
0x1216   :  { %v4783_v1 = vpop.eup %4782 }
0x1217   :  { %v1512_v13 = vmul.f32 %v4783_v1, %v4781_v58  ;;  %v4785_v2 = vpop.eup %4784  ;;  %v1511_v62 = vmul.f32 %v4783_v1, %v1444_v60  ;;  %v365_v60 = vadd.f32 %v5631_v28, %v5373_v34 }
0x1218   :  { %v1505_v24 = vadd.f32 1.0, %v4785_v2 }
0x1219   :  { %1514 = vrot.lane.b32.xlu0 %v1512_v13, %s5196_s2 }
0x121a   :  { %4786 = vrcp.f32 %v1505_v24 }
0x1227   :  { %v4787_v27 = vpop.eup %4786 }
0x128b   :  { %v1515_v26 = vpop.permute.xlu0 %1514 }
0x128c   :  { %v1517_v63 = vadd.f32 %v1515_v26, %v1511_v62 }
0x128e   :  { %4788 = vtanh.f32 %v1517_v63 }
0x129b   :  { %v4789_v0 = vpop.eup %4788 }
0x129c   :  { %v1519_v20 = vmul.f32 %v4789_v0, %v4787_v27 }
0x129e   :  { %1520 = vst.msk [vmem:[#allocation3 + $0x60] sm:$0xff] %vm642_vm0, %v1519_v20  ;;  %v1524_v54 = vpack.c.bf16 %v1519_v20, %v1519_v20 }
0x129f   :  { %1521 = vst.msk [vmem:[#allocation3 + $0x98] sm:$0xff] %vm644_vm1, %v1519_v20 }
0x12a0   :  { %4327 = vmatmul.mubr.msk.bf16.vlgmr.msra.gmra.mxu0 %vm573_vm2, %v1524_v54 }
0x12a1   :  { %1683 = vmatpush1.bf16.msra.mxu0 %v5573_v3  ;;  %1706 = vmatprep.mubr.bf16.mxu0 %v7491_v52 }
0x12a2   :  { %1684 = vmatprep.subr.bf16.mxu0 %v5580_v4 }
0x12a5   :  { %1685 = vmatpush1.bf16.msra.mxu0 %v5586_v5 }
0x12a6   :  { %1686 = vmatprep.subr.bf16.mxu0 %v5592_v8 }
0x12a9   :  { %1687 = vmatpush1.bf16.msra.mxu0 %v5598_v9 }
0x12aa   :  { %1688 = vmatprep.subr.bf16.mxu0 %v5604_v12 }
0x12ad   :  { %1689 = vmatpush1.bf16.msra.mxu0 %v5610_v17 }
0x12ae   :  { %1828 = vmatprep.subr.bf16.mxu0 %v5616_v18 }
0x1360   :  { %v1562_v53 = vpop.f32.mrf.mxu0 }
0x1361   :  { %v1569_v21 = vadd.f32 %v1562_v53, %v365_v60 }
0x1362   :  { %v1564_v56 = vpop.f32.mrf.mxu0 }
0x1363   :  { %v4328_v61 = vmul.f32 -1.442695, %v1569_v21  ;;  %v1570_v23 = vadd.f32 %v1564_v56, %v367_v22  ;;  %v373_v22 = vadd.f32 %v5637_v31, %v5376_v40 }
0x1364   :  { %v1566_v55 = vpop.f32.mrf.mxu0 }
0x1365   :  { %4790 = vpow2.f32 %v4328_v61  ;;  %v4329_v28 = vmul.f32 -1.442695, %v1570_v23 }
0x1366   :  { %v1567_v57 = vpop.f32.mrf.mxu0  ;;  %4792 = vtanh.f32 %v1570_v23 }
0x1372   :  { %v4791_v58 = vpop.eup %4790 }
0x1373   :  { %v1577_v1 = vadd.f32 1.0, %v4791_v58  ;;  %v4793_v13 = vpop.eup %4792 }
0x1375   :  { %4794 = vrcp.f32 %v1577_v1 }
0x1376   :  { %4796 = vpow2.f32 %v4329_v28 }
0x1382   :  { %v4795_v25 = vpop.eup %4794 }
0x1383   :  { %v1585_v2 = vmul.f32 %v4795_v25, %v4793_v13  ;;  %v4797_v24 = vpop.eup %4796  ;;  %v1584_v26 = vmul.f32 %v4795_v25, %v1517_v63  ;;  %v371_v63 = vadd.f32 %v5635_v30, %v5373_v34 }
0x1384   :  { %v1578_v62 = vadd.f32 1.0, %v4797_v24 }
0x1385   :  { %1587 = vrot.lane.b32.xlu1 %v1585_v2, %s5196_s2 }
0x1386   :  { %4798 = vrcp.f32 %v1578_v62 }
0x1393   :  { %v4799_v29 = vpop.eup %4798 }
0x13f7   :  { %v1588_v27 = vpop.permute.xlu1 %1587 }
0x13f8   :  { %v1590_v0 = vadd.f32 %v1588_v27, %v1584_v26 }
0x13fa   :  { %4800 = vtanh.f32 %v1590_v0 }
0x1407   :  { %v4801_v20 = vpop.eup %4800 }
0x1408   :  { %v1592_v54 = vmul.f32 %v4801_v20, %v4799_v29 }
0x140a   :  { %1593 = vst.msk [vmem:[#allocation3 + $0x68] sm:$0xff] %vm642_vm0, %v1592_v54  ;;  %v1597_v60 = vpack.c.bf16 %v1592_v54, %v1592_v54 }
0x140b   :  { %1594 = vst.msk [vmem:[#allocation3 + $0x90] sm:$0xff] %vm644_vm1, %v1592_v54 }
0x140c   :  { %4330 = vmatmul.mubr.msk.bf16.vlgmr.msra.gmra.mxu1 %vm573_vm2, %v1597_v60 }
0x140d   :  { %1756 = vmatpush1.bf16.msra.mxu1 %v5573_v3  ;;  %1779 = vmatprep.mubr.bf16.mxu1 %v7491_v52 }
0x140e   :  { %1757 = vmatprep.subr.bf16.mxu1 %v5580_v4 }
0x1411   :  { %1758 = vmatpush1.bf16.msra.mxu1 %v5586_v5 }
0x1412   :  { %1759 = vmatprep.subr.bf16.mxu1 %v5592_v8 }
0x1415   :  { %1760 = vmatpush1.bf16.msra.mxu1 %v5598_v9 }
0x1416   :  { %1761 = vmatprep.subr.bf16.mxu1 %v5604_v12 }
0x1419   :  { %1762 = vmatpush1.bf16.msra.mxu1 %v5610_v17 }
0x141a   :  { %1901 = vmatprep.subr.bf16.mxu1 %v5616_v18 }
0x14cc   :  { %v1635_v53 = vpop.f32.mrf.mxu1 }
0x14cd   :  { %v1642_v21 = vadd.f32 %v1635_v53, %v371_v63 }
0x14ce   :  { %v1637_v56 = vpop.f32.mrf.mxu1 }
0x14cf   :  { %v4331_v61 = vmul.f32 -1.442695, %v1642_v21  ;;  %v1643_v23 = vadd.f32 %v1637_v56, %v373_v22 }
0x14d0   :  { %v1639_v55 = vpop.f32.mrf.mxu1 }
0x14d1   :  { %4802 = vpow2.f32 %v4331_v61  ;;  %v4332_v30 = vmul.f32 -1.442695, %v1643_v23  ;;  %v377_v55 = vadd.f32 %v5641_v33, %v5376_v40 }
0x14d2   :  { %v1640_v57 = vpop.f32.mrf.mxu1  ;;  %4804 = vtanh.f32 %v1643_v23 }
0x14de   :  { %v4803_v58 = vpop.eup %4802 }
0x14df   :  { %v1650_v1 = vadd.f32 1.0, %v4803_v58  ;;  %v4805_v13 = vpop.eup %4804 }
0x14e1   :  { %4806 = vrcp.f32 %v1650_v1 }
0x14e2   :  { %4808 = vpow2.f32 %v4332_v30 }
0x14ee   :  { %v4807_v25 = vpop.eup %4806 }
0x14ef   :  { %v1658_v2 = vmul.f32 %v4807_v25, %v4805_v13  ;;  %v4809_v28 = vpop.eup %4808  ;;  %v1657_v62 = vmul.f32 %v4807_v25, %v1590_v0  ;;  %v375_v0 = vadd.f32 %v5639_v32, %v5373_v34 }
0x14f0   :  { %v1651_v24 = vadd.f32 1.0, %v4809_v28 }
0x14f1   :  { %1660 = vrot.lane.b32.xlu0 %v1658_v2, %s5196_s2 }
0x14f2   :  { %4810 = vrcp.f32 %v1651_v24 }
0x14ff   :  { %v4811_v31 = vpop.eup %4810 }
0x1563   :  { %v1661_v26 = vpop.permute.xlu0 %1660 }
0x1564   :  { %v1663_v27 = vadd.f32 %v1661_v26, %v1657_v62 }
0x1566   :  { %4812 = vtanh.f32 %v1663_v27 }
0x1573   :  { %v4813_v29 = vpop.eup %4812 }
0x1574   :  { %v1665_v20 = vmul.f32 %v4813_v29, %v4811_v31 }
0x1576   :  { %1666 = vst.msk [vmem:[#allocation3 + $0x70] sm:$0xff] %vm642_vm0, %v1665_v20  ;;  %v1670_v54 = vpack.c.bf16 %v1665_v20, %v1665_v20 }
0x1577   :  { %1667 = vst.msk [vmem:[#allocation3 + $0x88] sm:$0xff] %vm644_vm1, %v1665_v20 }
0x1578   :  { %4333 = vmatmul.mubr.msk.bf16.vlgmr.msra.gmra.mxu0 %vm573_vm2, %v1670_v54 }
0x1579   :  { %1829 = vmatpush1.bf16.msra.mxu0 %v5573_v3  ;;  %1852 = vmatprep.mubr.bf16.mxu0 %v7491_v52 }
0x157a   :  { %1830 = vmatprep.subr.bf16.mxu0 %v5580_v4 }
0x157d   :  { %1831 = vmatpush1.bf16.msra.mxu0 %v5586_v5 }
0x157e   :  { %1832 = vmatprep.subr.bf16.mxu0 %v5592_v8 }
0x1581   :  { %1833 = vmatpush1.bf16.msra.mxu0 %v5598_v9 }
0x1582   :  { %1834 = vmatprep.subr.bf16.mxu0 %v5604_v12 }
0x1585   :  { %1835 = vmatpush1.bf16.msra.mxu0 %v5610_v17 }
0x1586   :  { %1974 = vmatprep.subr.bf16.mxu0 %v5616_v18 }
0x1638   :  { %v1708_v60 = vpop.f32.mrf.mxu0 }
0x1639   :  { %v1715_v63 = vadd.f32 %v1708_v60, %v375_v0 }
0x163a   :  { %v1710_v53 = vpop.f32.mrf.mxu0 }
0x163b   :  { %v4334_v21 = vmul.f32 -1.442695, %v1715_v63  ;;  %v1716_v57 = vadd.f32 %v1710_v53, %v377_v55  ;;  %v383_v53 = vadd.f32 %v5645_v7, %v5376_v40 }
0x163c   :  { %v1712_v56 = vpop.f32.mrf.mxu0 }
0x163d   :  { %4814 = vpow2.f32 %v4334_v21  ;;  %v4335_v32 = vmul.f32 -1.442695, %v1716_v57 }
0x163e   :  { %v1713_v61 = vpop.f32.mrf.mxu0  ;;  %4816 = vtanh.f32 %v1716_v57 }
0x164a   :  { %v4815_v22 = vpop.eup %4814 }
0x164b   :  { %v1723_v23 = vadd.f32 1.0, %v4815_v22  ;;  %v4817_v58 = vpop.eup %4816 }
0x164d   :  { %4818 = vrcp.f32 %v1723_v23 }
0x164e   :  { %4820 = vpow2.f32 %v4335_v32 }
0x165a   :  { %v4819_v1 = vpop.eup %4818 }
0x165b   :  { %v1731_v13 = vmul.f32 %v4819_v1, %v4817_v58  ;;  %v4821_v25 = vpop.eup %4820  ;;  %v1730_v30 = vmul.f32 %v4819_v1, %v1663_v27  ;;  %v381_v27 = vadd.f32 %v5643_v35, %v5373_v34 }
0x165c   :  { %v1724_v2 = vadd.f32 1.0, %v4821_v25 }
0x165d   :  { %1733 = vrot.lane.b32.xlu1 %v1731_v13, %s5196_s2 }
0x165e   :  { %4822 = vrcp.f32 %v1724_v2 }
0x166b   :  { %v4823_v33 = vpop.eup %4822 }
0x16cf   :  { %v1734_v28 = vpop.permute.xlu1 %1733 }
0x16d0   :  { %v1736_v24 = vadd.f32 %v1734_v28, %v1730_v30  ;;  %v385_v28 = vadd.f32 %v5647_v10, %v5373_v34 }
0x16d2   :  { %4824 = vtanh.f32 %v1736_v24 }
0x16df   :  { %v4825_v62 = vpop.eup %4824 }
0x16e0   :  { %v1738_v26 = vmul.f32 %v4825_v62, %v4823_v33 }
0x16e2   :  { %1739 = vst.msk [vmem:[#allocation3 + $0x78] sm:$0xff] %vm642_vm0, %v1738_v26  ;;  %v1743_v31 = vpack.c.bf16 %v1738_v26, %v1738_v26 }
0x16e3   :  { %1740 = vst.msk [vmem:[#allocation3 + $0x80] sm:$0xff] %vm644_vm1, %v1738_v26 }
0x16e4   :  { %4336 = vmatmul.mubr.msk.bf16.vlgmr.msra.gmra.mxu1 %vm573_vm2, %v1743_v31 }
0x16e5   :  { %1902 = vmatpush1.bf16.msra.mxu1 %v5573_v3  ;;  %1925 = vmatprep.mubr.bf16.mxu1 %v7491_v52 }
0x16e6   :  { %1903 = vmatprep.subr.bf16.mxu1 %v5580_v4 }
0x16e9   :  { %1904 = vmatpush1.bf16.msra.mxu1 %v5586_v5 }
0x16ea   :  { %1905 = vmatprep.subr.bf16.mxu1 %v5592_v8 }
0x16ed   :  { %1906 = vmatpush1.bf16.msra.mxu1 %v5598_v9 }
0x16ee   :  { %1907 = vmatprep.subr.bf16.mxu1 %v5604_v12 }
0x16f1   :  { %1908 = vmatpush1.bf16.msra.mxu1 %v5610_v17 }
0x16f2   :  { %2047 = vmatprep.subr.bf16.mxu1 %v5616_v18 }
0x17a4   :  { %v1781_v29 = vpop.f32.mrf.mxu1 }
0x17a5   :  { %v1788_v20 = vadd.f32 %v1781_v29, %v381_v27  ;;  %v387_v29 = vadd.f32 %v5649_v11, %v5376_v40 }
0x17a6   :  { %v1783_v54 = vpop.f32.mrf.mxu1 }
0x17a7   :  { %v4337_v0 = vmul.f32 -1.442695, %v1788_v20  ;;  %v1789_v21 = vadd.f32 %v1783_v54, %v383_v53 }
0x17a8   :  { %v1785_v60 = vpop.f32.mrf.mxu1 }
0x17a9   :  { %4826 = vpow2.f32 %v4337_v0  ;;  %v4338_v35 = vmul.f32 -1.442695, %v1789_v21 }
0x17aa   :  { %v1786_v63 = vpop.f32.mrf.mxu1  ;;  %4828 = vtanh.f32 %v1789_v21 }
0x17b6   :  { %v4827_v56 = vpop.eup %4826 }
0x17b7   :  { %v1796_v61 = vadd.f32 1.0, %v4827_v56  ;;  %v4829_v55 = vpop.eup %4828 }
0x17b9   :  { %4830 = vrcp.f32 %v1796_v61 }
0x17ba   :  { %4832 = vpow2.f32 %v4338_v35 }
0x17c6   :  { %v4831_v57 = vpop.eup %4830 }
0x17c7   :  { %v1804_v22 = vmul.f32 %v4831_v57, %v4829_v55  ;;  %v4833_v23 = vpop.eup %4832  ;;  %v1803_v1 = vmul.f32 %v4831_v57, %v1736_v24 }
0x17c8   :  { %v1797_v58 = vadd.f32 1.0, %v4833_v23 }
0x17c9   :  { %1806 = vrot.lane.b32.xlu0 %v1804_v22, %s5196_s2 }
0x17ca   :  { %4834 = vrcp.f32 %v1797_v58  ;;  %v391_v58 = vadd.f32 %v5651_v6, %v5373_v34 }
0x17d7   :  { %v4835_v7 = vpop.eup %4834 }
0x183b   :  { %v1807_v13 = vpop.permute.xlu0 %1806 }
0x183c   :  { %v1809_v32 = vadd.f32 %v1807_v13, %v1803_v1 }
0x183e   :  { %4836 = vtanh.f32 %v1809_v32 }
0x184b   :  { %v4837_v25 = vpop.eup %4836 }
0x184c   :  { %v1811_v2 = vmul.f32 %v4837_v25, %v4835_v7 }
0x184e   :  { %1812 = vst.msk [vmem:[#allocation3 + $0x80] sm:$0xff] %vm642_vm0, %v1811_v2  ;;  %v1816_v30 = vpack.c.bf16 %v1811_v2, %v1811_v2 }
0x184f   :  { %1813 = vst.msk [vmem:[#allocation3 + $0x78] sm:$0xff] %vm644_vm1, %v1811_v2 }
0x1850   :  { %4339 = vmatmul.mubr.msk.bf16.vlgmr.msra.gmra.mxu0 %vm573_vm2, %v1816_v30  ;;  %v393_v30 = vadd.f32 %v5653_v14, %v5376_v40 }
0x1851   :  { %1975 = vmatpush1.bf16.msra.mxu0 %v5573_v3  ;;  %1998 = vmatprep.mubr.bf16.mxu0 %v7491_v52 }
0x1852   :  { %1976 = vmatprep.subr.bf16.mxu0 %v5580_v4 }
0x1855   :  { %1977 = vmatpush1.bf16.msra.mxu0 %v5586_v5 }
0x1856   :  { %1978 = vmatprep.subr.bf16.mxu0 %v5592_v8 }
0x1859   :  { %1979 = vmatpush1.bf16.msra.mxu0 %v5598_v9 }
0x185a   :  { %1980 = vmatprep.subr.bf16.mxu0 %v5604_v12 }
0x185d   :  { %1981 = vmatpush1.bf16.msra.mxu0 %v5610_v17 }
0x185e   :  { %2120 = vmatprep.subr.bf16.mxu0 %v5616_v18 }
0x1910   :  { %v1854_v24 = vpop.f32.mrf.mxu0 }
0x1911   :  { %v1861_v33 = vadd.f32 %v1854_v24, %v385_v28 }
0x1912   :  { %v1856_v62 = vpop.f32.mrf.mxu0 }
0x1913   :  { %v4340_v26 = vmul.f32 -1.442695, %v1861_v33  ;;  %v1862_v20 = vadd.f32 %v1856_v62, %v387_v29 }
0x1914   :  { %v1858_v31 = vpop.f32.mrf.mxu0 }
0x1915   :  { %4838 = vpow2.f32 %v4340_v26  ;;  %v4341_v10 = vmul.f32 -1.442695, %v1862_v20 }
0x1916   :  { %v1859_v27 = vpop.f32.mrf.mxu0  ;;  %4840 = vtanh.f32 %v1862_v20 }
0x1922   :  { %v4839_v54 = vpop.eup %4838 }
0x1923   :  { %v1869_v0 = vadd.f32 1.0, %v4839_v54  ;;  %v4841_v60 = vpop.eup %4840 }
0x1925   :  { %4842 = vrcp.f32 %v1869_v0 }
0x1926   :  { %4844 = vpow2.f32 %v4341_v10  ;;  %v395_v10 = vadd.f32 %v5655_v15, %v5373_v34 }
0x1932   :  { %v4843_v63 = vpop.eup %4842 }
0x1933   :  { %v1877_v53 = vmul.f32 %v4843_v63, %v4841_v60  ;;  %v4845_v21 = vpop.eup %4844  ;;  %v1876_v61 = vmul.f32 %v4843_v63, %v1809_v32 }
0x1934   :  { %v1870_v56 = vadd.f32 1.0, %v4845_v21 }
0x1935   :  { %1879 = vrot.lane.b32.xlu1 %v1877_v53, %s5196_s2 }
0x1936   :  { %4846 = vrcp.f32 %v1870_v56 }
0x1943   :  { %v4847_v11 = vpop.eup %4846 }
0x19a7   :  { %v1880_v55 = vpop.permute.xlu1 %1879 }
0x19a8   :  { %v1882_v57 = vadd.f32 %v1880_v55, %v1876_v61 }
0x19aa   :  { %4848 = vtanh.f32 %v1882_v57 }
0x19b7   :  { %v4849_v22 = vpop.eup %4848 }
0x19b8   :  { %v1884_v35 = vmul.f32 %v4849_v22, %v4847_v11 }
0x19ba   :  { %1885 = vst.msk [vmem:[#allocation3 + $0x88] sm:$0xff] %vm642_vm0, %v1884_v35  ;;  %v1889_v23 = vpack.c.bf16 %v1884_v35, %v1884_v35 }
0x19bb   :  { %1886 = vst.msk [vmem:[#allocation3 + $0x70] sm:$0xff] %vm644_vm1, %v1884_v35 }
0x19bc   :  { %4342 = vmatmul.mubr.msk.bf16.vlgmr.msra.gmra.mxu1 %vm573_vm2, %v1889_v23 }
0x19bd   :  { %2048 = vmatpush1.bf16.msra.mxu1 %v5573_v3  ;;  %2071 = vmatprep.mubr.bf16.mxu1 %v7491_v52 }
0x19be   :  { %2049 = vmatprep.subr.bf16.mxu1 %v5580_v4 }
0x19c1   :  { %2050 = vmatpush1.bf16.msra.mxu1 %v5586_v5 }
0x19c2   :  { %2051 = vmatprep.subr.bf16.mxu1 %v5592_v8 }
0x19c5   :  { %2052 = vmatpush1.bf16.msra.mxu1 %v5598_v9 }
0x19c6   :  { %2053 = vmatprep.subr.bf16.mxu1 %v5604_v12 }
0x19c9   :  { %2054 = vmatpush1.bf16.msra.mxu1 %v5610_v17 }
0x19ca   :  { %2193 = vmatprep.subr.bf16.mxu1 %v5616_v18 }
0x1a7c   :  { %v1927_v1 = vpop.f32.mrf.mxu1 }
0x1a7d   :  { %v1934_v13 = vadd.f32 %v1927_v1, %v391_v58 }
0x1a7e   :  { %v1929_v32 = vpop.f32.mrf.mxu1 }
0x1a7f   :  { %v4343_v7 = vmul.f32 -1.442695, %v1934_v13  ;;  %v1935_v28 = vadd.f32 %v1929_v32, %v393_v30  ;;  %v5906_v30 = vld [vmem:[%s7453_s3 + $0x14] ss:$8 sps:$4 sm:$0xff]  }
0x1a80   :  { %v1931_v25 = vpop.f32.mrf.mxu1 }
0x1a81   :  { %4850 = vpow2.f32 %v4343_v7  ;;  %v4344_v6 = vmul.f32 -1.442695, %v1935_v28  ;;  %v5887_v7 = vld [vmem:[%s7453_s3 + $0x30] ss:$8 sps:$4 sm:$0xff]   ;;  %v5894_v25 = vld [vmem:[%s7453_s3 + $0x24] ss:$8 sps:$4 sm:$0xff]  }
0x1a82   :  { %v1932_v2 = vpop.f32.mrf.mxu1  ;;  %4852 = vtanh.f32 %v1935_v28  ;;  %v5912_v28 = vld [vmem:[%s7453_s3 + $0x10] ss:$8 sps:$4 sm:$0xff]  }
0x1a83   :  { %v5900_v2 = vld [vmem:[%s7453_s3 + $0x20] ss:$8 sps:$4 sm:$0xff]  }
0x1a8e   :  { %v4851_v24 = vpop.eup %4850 }
0x1a8f   :  { %v1942_v33 = vadd.f32 1.0, %v4851_v24  ;;  %v4853_v62 = vpop.eup %4852  ;;  %v5918_v24 = vld [vmem:[%s7453_s3 + $0x4] ss:$8 sps:$4 sm:$0xff]  }
0x1a91   :  { %4854 = vrcp.f32 %v1942_v33  ;;  %v5924_v33 = vld [vmem:[%s7453_s3] ss:$8 sps:$4 sm:$0xff]  }
0x1a92   :  { %4856 = vpow2.f32 %v4344_v6 }
0x1a9e   :  { %v4855_v26 = vpop.eup %4854 }
0x1a9f   :  { %v1950_v31 = vmul.f32 %v4855_v26, %v4853_v62  ;;  %v4857_v27 = vpop.eup %4856  ;;  %v1949_v20 = vmul.f32 %v4855_v26, %v1882_v57  ;;  %v5930_v62 = vld [vmem:[%s7453_s3 + $0x34] ss:$8 sps:$4 sm:$0xff]   ;;  %v401_v26 = vadd.f32 %v5659_v19, %v5373_v34 }
0x1aa0   :  { %v1943_v29 = vadd.f32 1.0, %v4857_v27 }
0x1aa1   :  { %1952 = vrot.lane.b32.xlu0 %v1950_v31, %s5196_s2 }
0x1aa2   :  { %4858 = vrcp.f32 %v1943_v29 }
0x1aaf   :  { %v4859_v14 = vpop.eup %4858 }
0x1b13   :  { %v1953_v54 = vpop.permute.xlu0 %1952 }
0x1b14   :  { %v1955_v0 = vadd.f32 %v1953_v54, %v1949_v20 }
0x1b16   :  { %4860 = vtanh.f32 %v1955_v0 }
0x1b23   :  { %v4861_v60 = vpop.eup %4860 }
0x1b24   :  { %v1957_v63 = vmul.f32 %v4861_v60, %v4859_v14 }
0x1b26   :  { %1958 = vst.msk [vmem:[#allocation3 + $0x90] sm:$0xff] %vm642_vm0, %v1957_v63  ;;  %v1962_v53 = vpack.c.bf16 %v1957_v63, %v1957_v63 }
0x1b27   :  { %1959 = vst.msk [vmem:[#allocation3 + $0x68] sm:$0xff] %vm644_vm1, %v1957_v63 }
0x1b28   :  { %4345 = vmatmul.mubr.msk.bf16.vlgmr.msra.gmra.mxu0 %vm573_vm2, %v1962_v53 }
0x1b29   :  { %2121 = vmatpush1.bf16.msra.mxu0 %v5573_v3  ;;  %2144 = vmatprep.mubr.bf16.mxu0 %v7491_v52 }
0x1b2a   :  { %2122 = vmatprep.subr.bf16.mxu0 %v5580_v4 }
0x1b2d   :  { %2123 = vmatpush1.bf16.msra.mxu0 %v5586_v5 }
0x1b2e   :  { %2124 = vmatprep.subr.bf16.mxu0 %v5592_v8  ;;  %v397_v8 = vadd.f32 %v5657_v16, %v5376_v40 }
0x1b31   :  { %2125 = vmatpush1.bf16.msra.mxu0 %v5598_v9 }
0x1b32   :  { %2126 = vmatprep.subr.bf16.mxu0 %v5604_v12 }
0x1b35   :  { %2127 = vmatpush1.bf16.msra.mxu0 %v5610_v17 }
0x1b36   :  { %2266 = vmatprep.subr.bf16.mxu0 %v5616_v18 }
0x1be8   :  { %v2000_v3 = vpop.f32.mrf.mxu0 }
0x1be9   :  { %v2007_v21 = vadd.f32 %v2000_v3, %v395_v10 }
0x1bea   :  { %v2002_v56 = vpop.f32.mrf.mxu0 }
0x1beb   :  { %v4346_v61 = vmul.f32 -1.442695, %v2007_v21  ;;  %v2008_v9 = vadd.f32 %v2002_v56, %v397_v8 }
0x1bec   :  { %v2004_v4 = vpop.f32.mrf.mxu0 }
0x1bed   :  { %4862 = vpow2.f32 %v4346_v61  ;;  %v4347_v15 = vmul.f32 -1.442695, %v2008_v9 }
0x1bee   :  { %v2005_v5 = vpop.f32.mrf.mxu0  ;;  %4864 = vtanh.f32 %v2008_v9 }
0x1bfa   :  { %v4863_v55 = vpop.eup %4862 }
0x1bfb   :  { %v2015_v12 = vadd.f32 1.0, %v4863_v55  ;;  %v4865_v17 = vpop.eup %4864 }
0x1bfd   :  { %4866 = vrcp.f32 %v2015_v12  ;;  %v405_v12 = vadd.f32 %v5663_v37, %v5373_v34 }
0x1bfe   :  { %4868 = vpow2.f32 %v4347_v15 }
0x1c0a   :  { %v4867_v18 = vpop.eup %4866 }
0x1c0b   :  { %v2023_v57 = vmul.f32 %v4867_v18, %v4865_v17  ;;  %v4869_v11 = vpop.eup %4868  ;;  %v2022_v35 = vmul.f32 %v4867_v18, %v1955_v0  ;;  %v403_v0 = vadd.f32 %v5661_v36, %v5376_v40 }
0x1c0c   :  { %v2016_v22 = vadd.f32 1.0, %v4869_v11 }
0x1c0d   :  { %2025 = vrot.lane.b32.xlu1 %v2023_v57, %s5196_s2 }
0x1c0e   :  { %4870 = vrcp.f32 %v2016_v22 }
0x1c1b   :  { %v4871_v16 = vpop.eup %4870 }
0x1c7f   :  { %v2026_v23 = vpop.permute.xlu1 %2025 }
0x1c80   :  { %v2028_v58 = vadd.f32 %v2026_v23, %v2022_v35  ;;  %v407_v35 = vadd.f32 %v5665_v38, %v5376_v40 }
0x1c82   :  { %4872 = vtanh.f32 %v2028_v58 }
0x1c8f   :  { %v4873_v1 = vpop.eup %4872 }
0x1c90   :  { %v2030_v13 = vmul.f32 %v4873_v1, %v4871_v16 }
0x1c92   :  { %2031 = vst.msk [vmem:[#allocation3 + $0x98] sm:$0xff] %vm642_vm0, %v2030_v13  ;;  %v2035_v32 = vpack.c.bf16 %v2030_v13, %v2030_v13 }
0x1c93   :  { %2032 = vst.msk [vmem:[#allocation3 + $0x60] sm:$0xff] %vm644_vm1, %v2030_v13 }
0x1c94   :  { %4348 = vmatmul.mubr.msk.bf16.vlgmr.msra.gmra.mxu1 %vm573_vm2, %v2035_v32 }
0x1c95   :  { %2194 = vmatpush1.bf16.msra.mxu1 %v5887_v7  ;;  %2217 = vmatprep.mubr.bf16.mxu1 %v7491_v52 }
0x1c96   :  { %2195 = vmatprep.subr.bf16.mxu1 %v5894_v25 }
0x1c99   :  { %2196 = vmatpush1.bf16.msra.mxu1 %v5900_v2 }
0x1c9a   :  { %2197 = vmatprep.subr.bf16.mxu1 %v5906_v30 }
0x1c9d   :  { %2198 = vmatpush1.bf16.msra.mxu1 %v5912_v28 }
0x1c9e   :  { %2199 = vmatprep.subr.bf16.mxu1 %v5918_v24 }
0x1ca1   :  { %2200 = vmatpush1.bf16.msra.mxu1 %v5924_v33 }
0x1ca2   :  { %2339 = vmatprep.subr.bf16.mxu1 %v5930_v62 }
0x1d54   :  { %v2073_v31 = vpop.f32.mrf.mxu1 }
0x1d55   :  { %v2080_v6 = vadd.f32 %v2073_v31, %v401_v26 }
0x1d56   :  { %v2075_v27 = vpop.f32.mrf.mxu1 }
0x1d57   :  { %v4349_v29 = vmul.f32 -1.442695, %v2080_v6  ;;  %v2081_v14 = vadd.f32 %v2075_v27, %v403_v0 }
0x1d58   :  { %v2077_v20 = vpop.f32.mrf.mxu1 }
0x1d59   :  { %4874 = vpow2.f32 %v4349_v29  ;;  %v4350_v19 = vmul.f32 -1.442695, %v2081_v14 }
0x1d5a   :  { %v2078_v54 = vpop.f32.mrf.mxu1  ;;  %4876 = vtanh.f32 %v2081_v14  ;;  %v411_v14 = vadd.f32 %v5667_v39, %v5373_v34 }
0x1d66   :  { %v4875_v60 = vpop.eup %4874 }
0x1d67   :  { %v2088_v63 = vadd.f32 1.0, %v4875_v60  ;;  %v4877_v53 = vpop.eup %4876 }
0x1d69   :  { %4878 = vrcp.f32 %v2088_v63 }
0x1d6a   :  { %4880 = vpow2.f32 %v4350_v19 }
0x1d76   :  { %v4879_v10 = vpop.eup %4878 }
0x1d77   :  { %v2096_v3 = vmul.f32 %v4879_v10, %v4877_v53  ;;  %v4881_v21 = vpop.eup %4880  ;;  %v2095_v61 = vmul.f32 %v4879_v10, %v2028_v58 }
0x1d78   :  { %v2089_v56 = vadd.f32 1.0, %v4881_v21  ;;  %v413_v21 = vadd.f32 %v5669_v41, %v5376_v40 }
0x1d79   :  { %2098 = vrot.lane.b32.xlu0 %v2096_v3, %s5196_s2 }
0x1d7a   :  { %4882 = vrcp.f32 %v2089_v56 }
0x1d87   :  { %v4883_v36 = vpop.eup %4882 }
0x1deb   :  { %v2099_v4 = vpop.permute.xlu0 %2098 }
0x1dec   :  { %v2101_v5 = vadd.f32 %v2099_v4, %v2095_v61 }
0x1dee   :  { %4884 = vtanh.f32 %v2101_v5 }
0x1dfb   :  { %v4885_v8 = vpop.eup %4884 }
0x1dfc   :  { %v2103_v9 = vmul.f32 %v4885_v8, %v4883_v36 }
0x1dfe   :  { %2104 = vst.msk [vmem:[#allocation3 + $0xa0] sm:$0xff] %vm642_vm0, %v2103_v9  ;;  %v2108_v55 = vpack.c.bf16 %v2103_v9, %v2103_v9 }
0x1dff   :  { %2105 = vst.msk [vmem:[#allocation3 + $0x58] sm:$0xff] %vm644_vm1, %v2103_v9 }
0x1e00   :  { %4351 = vmatmul.mubr.msk.bf16.vlgmr.msra.gmra.mxu0 %vm573_vm2, %v2108_v55 }
0x1e01   :  { %2267 = vmatpush1.bf16.msra.mxu0 %v5887_v7  ;;  %2290 = vmatprep.mubr.bf16.mxu0 %v7491_v52 }
0x1e02   :  { %2268 = vmatprep.subr.bf16.mxu0 %v5894_v25 }
0x1e05   :  { %2269 = vmatpush1.bf16.msra.mxu0 %v5900_v2 }
0x1e06   :  { %2270 = vmatprep.subr.bf16.mxu0 %v5906_v30 }
0x1e09   :  { %2271 = vmatpush1.bf16.msra.mxu0 %v5912_v28 }
0x1e0a   :  { %2272 = vmatprep.subr.bf16.mxu0 %v5918_v24 }
0x1e0d   :  { %2273 = vmatpush1.bf16.msra.mxu0 %v5924_v33 }
0x1e0e   :  { %2412 = vmatprep.subr.bf16.mxu0 %v5930_v62 }
0x1ec0   :  { %v2146_v17 = vpop.f32.mrf.mxu0 }
0x1ec1   :  { %v2153_v18 = vadd.f32 %v2146_v17, %v405_v12 }
0x1ec2   :  { %v2148_v57 = vpop.f32.mrf.mxu0 }
0x1ec3   :  { %v4352_v15 = vmul.f32 -1.442695, %v2153_v18  ;;  %v2154_v23 = vadd.f32 %v2148_v57, %v407_v35 }
0x1ec4   :  { %v2150_v11 = vpop.f32.mrf.mxu0 }
0x1ec5   :  { %4886 = vpow2.f32 %v4352_v15  ;;  %v4353_v37 = vmul.f32 -1.442695, %v2154_v23 }
0x1ec6   :  { %v2151_v22 = vpop.f32.mrf.mxu0  ;;  %4888 = vtanh.f32 %v2154_v23 }
0x1ec7   :  { %v415_v22 = vadd.f32 %v5671_v42, %v5373_v34 }
0x1ed2   :  { %v4887_v58 = vpop.eup %4886 }
0x1ed3   :  { %v2161_v16 = vadd.f32 1.0, %v4887_v58  ;;  %v4889_v1 = vpop.eup %4888 }
0x1ed5   :  { %4890 = vrcp.f32 %v2161_v16 }
0x1ed6   :  { %4892 = vpow2.f32 %v4353_v37 }
0x1ee2   :  { %v4891_v13 = vpop.eup %4890 }
0x1ee3   :  { %v2169_v32 = vmul.f32 %v4891_v13, %v4889_v1  ;;  %v4893_v26 = vpop.eup %4892  ;;  %v2168_v6 = vmul.f32 %v4891_v13, %v2101_v5 }
0x1ee4   :  { %v2162_v31 = vadd.f32 1.0, %v4893_v26 }
0x1ee5   :  { %2171 = vrot.lane.b32.xlu1 %v2169_v32, %s5196_s2  ;;  %v417_v32 = vadd.f32 %v5673_v43, %v5376_v40 }
0x1ee6   :  { %4894 = vrcp.f32 %v2162_v31 }
0x1ef3   :  { %v4895_v38 = vpop.eup %4894 }
0x1f57   :  { %v2172_v27 = vpop.permute.xlu1 %2171 }
0x1f58   :  { %v2174_v29 = vadd.f32 %v2172_v27, %v2168_v6 }
0x1f5a   :  { %4896 = vtanh.f32 %v2174_v29 }
0x1f67   :  { %v4897_v20 = vpop.eup %4896 }
0x1f68   :  { %v2176_v54 = vmul.f32 %v4897_v20, %v4895_v38 }
0x1f6a   :  { %2177 = vst.msk [vmem:[#allocation3 + $0xa8] sm:$0xff] %vm642_vm0, %v2176_v54  ;;  %v2181_v0 = vpack.c.bf16 %v2176_v54, %v2176_v54 }
0x1f6b   :  { %2178 = vst.msk [vmem:[#allocation3 + $0x50] sm:$0xff] %vm644_vm1, %v2176_v54 }
0x1f6c   :  { %4354 = vmatmul.mubr.msk.bf16.vlgmr.msra.gmra.mxu1 %vm573_vm2, %v2181_v0 }
0x1f6d   :  { %2340 = vmatpush1.bf16.msra.mxu1 %v5887_v7  ;;  %2363 = vmatprep.mubr.bf16.mxu1 %v7491_v52 }
0x1f6e   :  { %2341 = vmatprep.subr.bf16.mxu1 %v5894_v25 }
0x1f71   :  { %2342 = vmatpush1.bf16.msra.mxu1 %v5900_v2 }
0x1f72   :  { %2343 = vmatprep.subr.bf16.mxu1 %v5906_v30 }
0x1f75   :  { %2344 = vmatpush1.bf16.msra.mxu1 %v5912_v28 }
0x1f76   :  { %2345 = vmatprep.subr.bf16.mxu1 %v5918_v24 }
0x1f79   :  { %2346 = vmatpush1.bf16.msra.mxu1 %v5924_v33 }
0x1f7a   :  { %2485 = vmatprep.subr.bf16.mxu1 %v5930_v62 }
0x202c   :  { %v2219_v60 = vpop.f32.mrf.mxu1 }
0x202d   :  { %v2226_v63 = vadd.f32 %v2219_v60, %v411_v14 }
0x202e   :  { %v2221_v53 = vpop.f32.mrf.mxu1 }
0x202f   :  { %v4355_v10 = vmul.f32 -1.442695, %v2226_v63  ;;  %v2227_v56 = vadd.f32 %v2221_v53, %v413_v21 }
0x2030   :  { %v2223_v3 = vpop.f32.mrf.mxu1 }
0x2031   :  { %4898 = vpow2.f32 %v4355_v10  ;;  %v4356_v39 = vmul.f32 -1.442695, %v2227_v56  ;;  %v421_v10 = vadd.f32 %v5675_v44, %v5373_v34 }
0x2032   :  { %v2224_v19 = vpop.f32.mrf.mxu1  ;;  %4900 = vtanh.f32 %v2227_v56 }
0x203e   :  { %v4899_v61 = vpop.eup %4898 }
0x203f   :  { %v2234_v4 = vadd.f32 1.0, %v4899_v61  ;;  %v4901_v5 = vpop.eup %4900 }
0x2041   :  { %4902 = vrcp.f32 %v2234_v4 }
0x2042   :  { %4904 = vpow2.f32 %v4356_v39 }
0x204e   :  { %v4903_v36 = vpop.eup %4902 }
0x204f   :  { %v2242_v8 = vmul.f32 %v4903_v36, %v4901_v5  ;;  %v4905_v9 = vpop.eup %4904  ;;  %v2241_v12 = vmul.f32 %v4903_v36, %v2174_v29  ;;  %v423_v5 = vadd.f32 %v5677_v45, %v5376_v40 }
0x2050   :  { %v2235_v55 = vadd.f32 1.0, %v4905_v9 }
0x2051   :  { %2244 = vrot.lane.b32.xlu0 %v2242_v8, %s5196_s2 }
0x2052   :  { %4906 = vrcp.f32 %v2235_v55 }
0x205f   :  { %v4907_v41 = vpop.eup %4906 }
0x20c3   :  { %v2245_v17 = vpop.permute.xlu0 %2244 }
0x20c4   :  { %v2247_v18 = vadd.f32 %v2245_v17, %v2241_v12 }
0x20c6   :  { %4908 = vtanh.f32 %v2247_v18 }
0x20d3   :  { %v4909_v57 = vpop.eup %4908 }
0x20d4   :  { %v2249_v15 = vmul.f32 %v4909_v57, %v4907_v41 }
0x20d6   :  { %2250 = vst.msk [vmem:[#allocation3 + $0xb0] sm:$0xff] %vm642_vm0, %v2249_v15  ;;  %v2254_v11 = vpack.c.bf16 %v2249_v15, %v2249_v15 }
0x20d7   :  { %2251 = vst.msk [vmem:[#allocation3 + $0x48] sm:$0xff] %vm644_vm1, %v2249_v15 }
0x20d8   :  { %4357 = vmatmul.mubr.msk.bf16.vlgmr.msra.gmra.mxu0 %vm573_vm2, %v2254_v11 }
0x20d9   :  { %2413 = vmatpush1.bf16.msra.mxu0 %v5887_v7  ;;  %2436 = vmatprep.mubr.bf16.mxu0 %v7491_v52 }
0x20da   :  { %2414 = vmatprep.subr.bf16.mxu0 %v5894_v25 }
0x20dd   :  { %2415 = vmatpush1.bf16.msra.mxu0 %v5900_v2 }
0x20de   :  { %2416 = vmatprep.subr.bf16.mxu0 %v5906_v30 }
0x20e1   :  { %2417 = vmatpush1.bf16.msra.mxu0 %v5912_v28 }
0x20e2   :  { %2418 = vmatprep.subr.bf16.mxu0 %v5918_v24 }
0x20e5   :  { %2419 = vmatpush1.bf16.msra.mxu0 %v5924_v33 }
0x20e6   :  { %2558 = vmatprep.subr.bf16.mxu0 %v5930_v62 }
0x2198   :  { %v2292_v35 = vpop.f32.mrf.mxu0 }
0x2199   :  { %v2299_v23 = vadd.f32 %v2292_v35, %v415_v22 }
0x219a   :  { %v2294_v58 = vpop.f32.mrf.mxu0 }
0x219b   :  { %v4358_v16 = vmul.f32 -1.442695, %v2299_v23  ;;  %v2300_v37 = vadd.f32 %v2294_v58, %v417_v32  ;;  %v425_v23 = vadd.f32 %v5679_v46, %v5373_v34 }
0x219c   :  { %v2296_v1 = vpop.f32.mrf.mxu0 }
0x219d   :  { %4910 = vpow2.f32 %v4358_v16  ;;  %v4359_v42 = vmul.f32 -1.442695, %v2300_v37 }
0x219e   :  { %v2297_v13 = vpop.f32.mrf.mxu0  ;;  %4912 = vtanh.f32 %v2300_v37 }
0x21aa   :  { %v4911_v26 = vpop.eup %4910 }
0x21ab   :  { %v2307_v31 = vadd.f32 1.0, %v4911_v26  ;;  %v4913_v6 = vpop.eup %4912  ;;  %v427_v26 = vadd.f32 %v5681_v47, %v5376_v40 }
0x21ad   :  { %4914 = vrcp.f32 %v2307_v31 }
0x21ae   :  { %4916 = vpow2.f32 %v4359_v42 }
0x21ba   :  { %v4915_v27 = vpop.eup %4914 }
0x21bb   :  { %v2315_v29 = vmul.f32 %v4915_v27, %v4913_v6  ;;  %v4917_v38 = vpop.eup %4916  ;;  %v2314_v54 = vmul.f32 %v4915_v27, %v2247_v18 }
0x21bc   :  { %v2308_v20 = vadd.f32 1.0, %v4917_v38 }
0x21bd   :  { %2317 = vrot.lane.b32.xlu1 %v2315_v29, %s5196_s2 }
0x21be   :  { %4918 = vrcp.f32 %v2308_v20 }
0x21cb   :  { %v4919_v43 = vpop.eup %4918 }
0x222f   :  { %v2318_v0 = vpop.permute.xlu1 %2317 }
0x2230   :  { %v2320_v14 = vadd.f32 %v2318_v0, %v2314_v54 }
0x2232   :  { %4920 = vtanh.f32 %v2320_v14 }
0x223f   :  { %v4921_v60 = vpop.eup %4920 }
0x2240   :  { %v2322_v63 = vmul.f32 %v4921_v60, %v4919_v43 }
0x2242   :  { %2323 = vst.msk [vmem:[#allocation3 + $0xb8] sm:$0xff] %vm642_vm0, %v2322_v63  ;;  %v2327_v53 = vpack.c.bf16 %v2322_v63, %v2322_v63 }
0x2243   :  { %2324 = vst.msk [vmem:[#allocation3 + $0x40] sm:$0xff] %vm644_vm1, %v2322_v63 }
0x2244   :  { %4360 = vmatmul.mubr.msk.bf16.vlgmr.msra.gmra.mxu1 %vm573_vm2, %v2327_v53 }
0x2245   :  { %2486 = vmatpush1.bf16.msra.mxu1 %v5887_v7  ;;  %2509 = vmatprep.mubr.bf16.mxu1 %v7491_v52 }
0x2246   :  { %2487 = vmatprep.subr.bf16.mxu1 %v5894_v25 }
0x2249   :  { %2488 = vmatpush1.bf16.msra.mxu1 %v5900_v2 }
0x224a   :  { %2489 = vmatprep.subr.bf16.mxu1 %v5906_v30 }
0x224d   :  { %2490 = vmatpush1.bf16.msra.mxu1 %v5912_v28 }
0x224e   :  { %2491 = vmatprep.subr.bf16.mxu1 %v5918_v24 }
0x2251   :  { %2492 = vmatpush1.bf16.msra.mxu1 %v5924_v33 }
0x2252   :  { %2631 = vmatprep.subr.bf16.mxu1 %v5930_v62 }
0x2304   :  { %v2365_v3 = vpop.f32.mrf.mxu1 }
0x2305   :  { %v2372_v19 = vadd.f32 %v2365_v3, %v421_v10  ;;  %v431_v10 = vadd.f32 %v5683_v48, %v5373_v34 }
0x2306   :  { %v2367_v21 = vpop.f32.mrf.mxu1 }
0x2307   :  { %v4361_v56 = vmul.f32 -1.442695, %v2372_v19  ;;  %v2373_v36 = vadd.f32 %v2367_v21, %v423_v5  ;;  %v433_v5 = vadd.f32 %v5685_v49, %v5376_v40 }
0x2308   :  { %v2369_v61 = vpop.f32.mrf.mxu1 }
0x2309   :  { %4922 = vpow2.f32 %v4361_v56  ;;  %v4362_v44 = vmul.f32 -1.442695, %v2373_v36 }
0x230a   :  { %v2370_v4 = vpop.f32.mrf.mxu1  ;;  %4924 = vtanh.f32 %v2373_v36 }
0x2316   :  { %v4923_v8 = vpop.eup %4922 }
0x2317   :  { %v2380_v39 = vadd.f32 1.0, %v4923_v8  ;;  %v4925_v9 = vpop.eup %4924 }
0x2319   :  { %4926 = vrcp.f32 %v2380_v39 }
0x231a   :  { %4928 = vpow2.f32 %v4362_v44 }
0x2326   :  { %v4927_v55 = vpop.eup %4926 }
0x2327   :  { %v2388_v12 = vmul.f32 %v4927_v55, %v4925_v9  ;;  %v4929_v17 = vpop.eup %4928  ;;  %v2387_v41 = vmul.f32 %v4927_v55, %v2320_v14 }
0x2328   :  { %v2381_v18 = vadd.f32 1.0, %v4929_v17 }
0x2329   :  { %2390 = vrot.lane.b32.xlu0 %v2388_v12, %s5196_s2 }
0x232a   :  { %4930 = vrcp.f32 %v2381_v18 }
0x2337   :  { %v4931_v45 = vpop.eup %4930 }
0x239b   :  { %v2391_v57 = vpop.permute.xlu0 %2390 }
0x239c   :  { %v2393_v15 = vadd.f32 %v2391_v57, %v2387_v41 }
0x239e   :  { %4932 = vtanh.f32 %v2393_v15 }
0x23ab   :  { %v4933_v11 = vpop.eup %4932 }
0x23ac   :  { %v2395_v22 = vmul.f32 %v4933_v11, %v4931_v45 }
0x23ae   :  { %2396 = vst.msk [vmem:[#allocation3 + $0xc0] sm:$0xff] %vm642_vm0, %v2395_v22  ;;  %v2400_v35 = vpack.c.bf16 %v2395_v22, %v2395_v22 }
0x23af   :  { %2397 = vst.msk [vmem:[#allocation3 + $0x38] sm:$0xff] %vm644_vm1, %v2395_v22  ;;  %v435_v22 = vadd.f32 %v5687_v50, %v5373_v34 }
0x23b0   :  { %4363 = vmatmul.mubr.msk.bf16.vlgmr.msra.gmra.mxu0 %vm573_vm2, %v2400_v35 }
0x23b1   :  { %2559 = vmatpush1.bf16.msra.mxu0 %v5887_v7  ;;  %2582 = vmatprep.mubr.bf16.mxu0 %v7491_v52 }
0x23b2   :  { %2560 = vmatprep.subr.bf16.mxu0 %v5894_v25 }
0x23b5   :  { %2561 = vmatpush1.bf16.msra.mxu0 %v5900_v2 }
0x23b6   :  { %2562 = vmatprep.subr.bf16.mxu0 %v5906_v30 }
0x23b9   :  { %2563 = vmatpush1.bf16.msra.mxu0 %v5912_v28 }
0x23ba   :  { %2564 = vmatprep.subr.bf16.mxu0 %v5918_v24 }
0x23bd   :  { %2565 = vmatpush1.bf16.msra.mxu0 %v5924_v33 }
0x23be   :  { %2704 = vmatprep.subr.bf16.mxu0 %v5930_v62 }
0x2470   :  { %v2438_v58 = vpop.f32.mrf.mxu0 }
0x2471   :  { %v2445_v16 = vadd.f32 %v2438_v58, %v425_v23 }
0x2472   :  { %v2440_v1 = vpop.f32.mrf.mxu0 }
0x2473   :  { %v4364_v13 = vmul.f32 -1.442695, %v2445_v16  ;;  %v2446_v31 = vadd.f32 %v2440_v1, %v427_v26 }
0x2474   :  { %v2442_v32 = vpop.f32.mrf.mxu0 }
0x2475   :  { %4934 = vpow2.f32 %v4364_v13  ;;  %v4365_v46 = vmul.f32 -1.442695, %v2446_v31  ;;  %v437_v32 = vadd.f32 %v5689_v51, %v5376_v40 }
0x2476   :  { %v2443_v37 = vpop.f32.mrf.mxu0  ;;  %4936 = vtanh.f32 %v2446_v31 }
0x2482   :  { %v4935_v6 = vpop.eup %4934 }
0x2483   :  { %v2453_v27 = vadd.f32 1.0, %v4935_v6  ;;  %v4937_v29 = vpop.eup %4936 }
0x2485   :  { %4938 = vrcp.f32 %v2453_v27 }
0x2486   :  { %4940 = vpow2.f32 %v4365_v46 }
0x2492   :  { %v4939_v42 = vpop.eup %4938 }
0x2493   :  { %v2461_v38 = vmul.f32 %v4939_v42, %v4937_v29  ;;  %v4941_v20 = vpop.eup %4940  ;;  %v2460_v0 = vmul.f32 %v4939_v42, %v2393_v15 }
0x2494   :  { %v2454_v54 = vadd.f32 1.0, %v4941_v20 }
0x2495   :  { %2463 = vrot.lane.b32.xlu1 %v2461_v38, %s5196_s2 }
0x2496   :  { %4942 = vrcp.f32 %v2454_v54 }
0x24a3   :  { %v4943_v47 = vpop.eup %4942 }
0x2507   :  { %v2464_v14 = vpop.permute.xlu1 %2463 }
0x2508   :  { %v2466_v43 = vadd.f32 %v2464_v14, %v2460_v0 }
0x250a   :  { %4944 = vtanh.f32 %v2466_v43 }
0x2517   :  { %v4945_v60 = vpop.eup %4944 }
0x2518   :  { %v2468_v63 = vmul.f32 %v4945_v60, %v4943_v47 }
0x251a   :  { %2469 = vst.msk [vmem:[#allocation3 + $0xc8] sm:$0xff] %vm642_vm0, %v2468_v63  ;;  %v2473_v53 = vpack.c.bf16 %v2468_v63, %v2468_v63 }
0x251b   :  { %2470 = vst.msk [vmem:[#allocation3 + $0x30] sm:$0xff] %vm644_vm1, %v2468_v63 }
0x251c   :  { %4366 = vmatmul.mubr.msk.bf16.vlgmr.msra.gmra.mxu1 %vm573_vm2, %v2473_v53 }
0x251d   :  { %2632 = vmatpush1.bf16.msra.mxu1 %v5887_v7  ;;  %2655 = vmatprep.mubr.bf16.mxu1 %v7491_v52 }
0x251e   :  { %2633 = vmatprep.subr.bf16.mxu1 %v5894_v25 }
0x2521   :  { %2634 = vmatpush1.bf16.msra.mxu1 %v5900_v2 }
0x2522   :  { %2635 = vmatprep.subr.bf16.mxu1 %v5906_v30 }
0x2525   :  { %2636 = vmatpush1.bf16.msra.mxu1 %v5912_v28 }
0x2526   :  { %2637 = vmatprep.subr.bf16.mxu1 %v5918_v24 }
0x2529   :  { %2638 = vmatpush1.bf16.msra.mxu1 %v5924_v33 }
0x252a   :  { %2777 = vmatprep.subr.bf16.mxu1 %v5930_v62 }
0x25dc   :  { %v2511_v3 = vpop.f32.mrf.mxu1 }
0x25dd   :  { %v2518_v19 = vadd.f32 %v2511_v3, %v431_v10 }
0x25de   :  { %v2513_v21 = vpop.f32.mrf.mxu1 }
0x25df   :  { %v4367_v56 = vmul.f32 -1.442695, %v2518_v19  ;;  %v2519_v36 = vadd.f32 %v2513_v21, %v433_v5  ;;  %v7493_v21 = vld [vmem:[#allocation8_spill] sm:$0xff] }
0x25e0   :  { %v2515_v61 = vpop.f32.mrf.mxu1 }
0x25e1   :  { %4946 = vpow2.f32 %v4367_v56  ;;  %v4368_v48 = vmul.f32 -1.442695, %v2519_v36  ;;  %v443_v56 = vadd.f32 %v7493_v21, %v5376_v40  ;;  %v2930_v21 = vld [vmem:[#allocation3 + $0xa8] sm:$0xff] }
0x25e2   :  { %v2516_v4 = vpop.f32.mrf.mxu1  ;;  %4948 = vtanh.f32 %v2519_v36 }
0x25ee   :  { %v4947_v8 = vpop.eup %4946 }
0x25ef   :  { %v2526_v39 = vadd.f32 1.0, %v4947_v8  ;;  %v4949_v9 = vpop.eup %4948 }
0x25f1   :  { %4950 = vrcp.f32 %v2526_v39 }
0x25f2   :  { %4952 = vpow2.f32 %v4368_v48 }
0x25fe   :  { %v4951_v55 = vpop.eup %4950 }
0x25ff   :  { %v2534_v12 = vmul.f32 %v4951_v55, %v4949_v9  ;;  %v4953_v44 = vpop.eup %4952  ;;  %v2533_v18 = vmul.f32 %v4951_v55, %v2466_v43  ;;  %v7492_v43 = vld [vmem:[#allocation7_spill] sm:$0xff] }
0x2600   :  { %v2527_v17 = vadd.f32 1.0, %v4953_v44  ;;  %v441_v47 = vadd.f32 %v7492_v43, %v5373_v34  ;;  %v2922_v43 = vld [vmem:[#allocation3 + $0x68] sm:$0xff] }
0x2601   :  { %2536 = vrot.lane.b32.xlu0 %v2534_v12, %s5196_s2 }
0x2602   :  { %4954 = vrcp.f32 %v2527_v17 }
0x260f   :  { %v4955_v49 = vpop.eup %4954 }
0x2673   :  { %v2537_v41 = vpop.permute.xlu0 %2536 }
0x2674   :  { %v2539_v57 = vadd.f32 %v2537_v41, %v2533_v18 }
0x2676   :  { %4956 = vtanh.f32 %v2539_v57 }
0x2683   :  { %v4957_v15 = vpop.eup %4956 }
0x2684   :  { %v2541_v45 = vmul.f32 %v4957_v15, %v4955_v49  ;;  %v7494_v15 = vld [vmem:[#allocation9_spill] sm:$0xff] }
0x2686   :  { %2542 = vst.msk [vmem:[#allocation3 + $0xd0] sm:$0xff] %vm642_vm0, %v2541_v45  ;;  %v2546_v11 = vpack.c.bf16 %v2541_v45, %v2541_v45 }
0x2687   :  { %2543 = vst.msk [vmem:[#allocation3 + $0x28] sm:$0xff] %vm644_vm1, %v2541_v45  ;;  %v445_v45 = vadd.f32 %v7494_v15, %v5373_v34 }
0x2688   :  { %4369 = vmatmul.mubr.msk.bf16.vlgmr.msra.gmra.mxu0 %vm573_vm2, %v2546_v11 }
0x2689   :  { %2705 = vmatpush1.bf16.msra.mxu0 %v5887_v7  ;;  %2728 = vmatprep.mubr.bf16.mxu0 %v7491_v52 }
0x268a   :  { %2706 = vmatprep.subr.bf16.mxu0 %v5894_v25 }
0x268d   :  { %2707 = vmatpush1.bf16.msra.mxu0 %v5900_v2 }
0x268e   :  { %2708 = vmatprep.subr.bf16.mxu0 %v5906_v30 }
0x2691   :  { %2709 = vmatpush1.bf16.msra.mxu0 %v5912_v28 }
0x2692   :  { %2710 = vmatprep.subr.bf16.mxu0 %v5918_v24 }
0x2695   :  { %2711 = vmatpush1.bf16.msra.mxu0 %v5924_v33 }
0x2696   :  { %2850 = vmatprep.subr.bf16.mxu0 %v5930_v62 }
0x2748   :  { %v2584_v35 = vpop.f32.mrf.mxu0 }
0x2749   :  { %v2591_v23 = vadd.f32 %v2584_v35, %v435_v22 }
0x274a   :  { %v2586_v58 = vpop.f32.mrf.mxu0 }
0x274b   :  { %v4370_v16 = vmul.f32 -1.442695, %v2591_v23  ;;  %v2592_v37 = vadd.f32 %v2586_v58, %v437_v32 }
0x274c   :  { %v2588_v1 = vpop.f32.mrf.mxu0 }
0x274d   :  { %4958 = vpow2.f32 %v4370_v16  ;;  %v4371_v50 = vmul.f32 -1.442695, %v2592_v37 }
0x274e   :  { %v2589_v13 = vpop.f32.mrf.mxu0  ;;  %4960 = vtanh.f32 %v2592_v37 }
0x275a   :  { %v4959_v26 = vpop.eup %4958 }
0x275b   :  { %v2599_v31 = vadd.f32 1.0, %v4959_v26  ;;  %v4961_v6 = vpop.eup %4960 }
0x275d   :  { %4962 = vrcp.f32 %v2599_v31 }
0x275e   :  { %4964 = vpow2.f32 %v4371_v50 }
0x276a   :  { %v4963_v62 = vpop.eup %4962 }
0x276b   :  { %v2607_v27 = vmul.f32 %v4963_v62, %v4961_v6  ;;  %v4965_v29 = vpop.eup %4964  ;;  %v2606_v38 = vmul.f32 %v4963_v62, %v2539_v57 }
0x276c   :  { %v2600_v42 = vadd.f32 1.0, %v4965_v29 }
0x276d   :  { %2609 = vrot.lane.b32.xlu1 %v2607_v27, %s5196_s2 }
0x276e   :  { %4966 = vrcp.f32 %v2600_v42  ;;  %v6104_v42 = vld [vmem:[%s7454_s4 + $0x30] sm:$0xff] }
0x277b   :  { %v4967_v51 = vpop.eup %4966 }
0x27df   :  { %v2610_v46 = vpop.permute.xlu1 %2609 }
0x27e0   :  { %v2612_v20 = vadd.f32 %v2610_v46, %v2606_v38  ;;  %v2921_v38 = vld [vmem:[#allocation3 + $0x60] sm:$0xff]  ;;  %v6112_v46 = vld [vmem:[%s7454_s4 + $0x28] sm:$0xff] }
0x27e2   :  { %4968 = vtanh.f32 %v2612_v20 }
0x27ef   :  { %v4969_v54 = vpop.eup %4968 }
0x27f0   :  { %v2614_v0 = vmul.f32 %v4969_v54, %v4967_v51  ;;  %v6126_v51 = vld [vmem:[%s7454_s4 + $0x18] sm:$0xff]  ;;  %v6133_v54 = vld [vmem:[%s7454_s4 + $0x10] sm:$0xff] }
0x27f2   :  { %2615 = vst.msk [vmem:[#allocation3 + $0xd8] sm:$0xff] %vm642_vm0, %v2614_v0  ;;  %v2619_v14 = vpack.c.bf16 %v2614_v0, %v2614_v0 }
0x27f3   :  { %2616 = vst.msk [vmem:[#allocation3 + $0x20] sm:$0xff] %vm644_vm1, %v2614_v0  ;;  %v6140_v0 = vld [vmem:[%s7454_s4 + $0x8] sm:$0xff] }
0x27f4   :  { %4372 = vmatmul.mubr.msk.bf16.vlgmr.msra.gmra.mxu1 %vm573_vm2, %v2619_v14  ;;  %v6147_v14 = vld [vmem:[%s7454_s4] sm:$0xff] }
0x27f5   :  { %2778 = vmatpush1.bf16.msra.mxu1 %v5887_v7  ;;  %2801 = vmatprep.mubr.bf16.mxu1 %v7491_v52 }
0x27f6   :  { %2779 = vmatprep.subr.bf16.mxu1 %v5894_v25 }
0x27f9   :  { %2780 = vmatpush1.bf16.msra.mxu1 %v5900_v2 }
0x27fa   :  { %2781 = vmatprep.subr.bf16.mxu1 %v5906_v30 }
0x27fd   :  { %2782 = vmatpush1.bf16.msra.mxu1 %v5912_v28 }
0x27fe   :  { %2783 = vmatprep.subr.bf16.mxu1 %v5918_v24 }
0x2801   :  { %2784 = vmatpush1.bf16.msra.mxu1 %v5924_v33 }
0x28b4   :  { %v2657_v60 = vpop.f32.mrf.mxu1 }
0x28b5   :  { %v2664_v63 = vadd.f32 %v2657_v60, %v441_v47  ;;  %v2923_v47 = vld [vmem:[#allocation3 + $0x70] sm:$0xff]  ;;  %v2924_v60 = vld [vmem:[#allocation3 + $0x78] sm:$0xff] }
0x28b6   :  { %v2659_v53 = vpop.f32.mrf.mxu1 }
0x28b7   :  { %v4373_v10 = vmul.f32 -1.442695, %v2664_v63  ;;  %v2665_v61 = vadd.f32 %v2659_v53, %v443_v56  ;;  %v2925_v63 = vld [vmem:[#allocation3 + $0x80] sm:$0xff]  ;;  %v2926_v53 = vld [vmem:[#allocation3 + $0x88] sm:$0xff]  ;;  %v2931_v56 = vld [vmem:[#allocation3 + $0xb0] sm:$0xff] }
0x28b8   :  { %v2661_v3 = vpop.f32.mrf.mxu1 }
0x28b9   :  { %4970 = vpow2.f32 %v4373_v10  ;;  %v4374_v9 = vmul.f32 -1.442695, %v2665_v61  ;;  %v2927_v10 = vld [vmem:[#allocation3 + $0x90] sm:$0xff]  ;;  %v2928_v3 = vld [vmem:[#allocation3 + $0x98] sm:$0xff] }
0x28ba   :  { %v2662_v19 = vpop.f32.mrf.mxu1  ;;  %4972 = vtanh.f32 %v2665_v61  ;;  %v2932_v61 = vld [vmem:[#allocation3 + $0xb8] sm:$0xff] }
0x28bb   :  { %v2929_v19 = vld [vmem:[#allocation3 + $0xa0] sm:$0xff] }
0x28c6   :  { %v4971_v4 = vpop.eup %4970 }
0x28c7   :  { %v2672_v5 = vadd.f32 1.0, %v4971_v4  ;;  %v4973_v36 = vpop.eup %4972  ;;  %v2933_v4 = vld [vmem:[#allocation3 + $0xc0] sm:$0xff] }
0x28c9   :  { %4974 = vrcp.f32 %v2672_v5  ;;  %v2934_v5 = vld [vmem:[#allocation3 + $0xc8] sm:$0xff] }
0x28ca   :  { %4976 = vpow2.f32 %v4374_v9 }
0x28d6   :  { %v4975_v8 = vpop.eup %4974 }
0x28d7   :  { %v2680_v39 = vmul.f32 %v4975_v8, %v4973_v36  ;;  %v4977_v55 = vpop.eup %4976  ;;  %v2679_v48 = vmul.f32 %v4975_v8, %v2612_v20  ;;  %v6119_v20 = vld [vmem:[%s7454_s4 + $0x20] sm:$0xff]  ;;  %v2935_v36 = vld [vmem:[#allocation3 + $0xd0] sm:$0xff]  ;;  %v2936_v8 = vld [vmem:[#allocation3 + $0xd8] sm:$0xff] }
0x28d8   :  { %v2673_v12 = vadd.f32 1.0, %v4977_v55  ;;  %v7496_v55 = vld [vmem:[#allocation11_spill] sm:$0xff] }
0x28d9   :  { %2682 = vrot.lane.b32.xlu0 %v2680_v39, %s5196_s2 }
0x28da   :  { %4978 = vrcp.f32 %v2673_v12  ;;  %v451_v12 = vadd.f32 %v7496_v55, %v5373_v34 }
0x28e7   :  { %v4979_v18 = vpop.eup %4978 }
0x294b   :  { %v2683_v44 = vpop.permute.xlu0 %2682 }
0x294c   :  { %v2685_v17 = vadd.f32 %v2683_v44, %v2679_v48 }
0x294e   :  { %4980 = vtanh.f32 %v2685_v17 }
0x295b   :  { %v4981_v41 = vpop.eup %4980 }
0x295c   :  { %v2687_v57 = vmul.f32 %v4981_v41, %v4979_v18 }
0x295e   :  { %2688 = vst.msk [vmem:[#allocation3 + $0xe0] sm:$0xff] %vm642_vm0, %v2687_v57  ;;  %v2692_v49 = vpack.c.bf16 %v2687_v57, %v2687_v57 }
0x295f   :  { %2689 = vst.msk [vmem:[#allocation3 + $0x18] sm:$0xff] %vm644_vm1, %v2687_v57 }
0x2960   :  { %4375 = vmatmul.mubr.msk.bf16.vlgmr.msra.gmra.mxu0 %vm573_vm2, %v2692_v49  ;;  %v7497_v49 = vld [vmem:[#allocation12_spill] sm:$0xff] }
0x2961   :  { %2851 = vmatpush1.bf16.msra.mxu0 %v5887_v7  ;;  %2874 = vmatprep.mubr.bf16.mxu0 %v7491_v52  ;;  %v453_v15 = vadd.f32 %v7497_v49, %v5376_v40 }
0x2962   :  { %2852 = vmatprep.subr.bf16.mxu0 %v5894_v25 }
0x2965   :  { %2853 = vmatpush1.bf16.msra.mxu0 %v5900_v2  ;;  %v7495_v2 = vld [vmem:[#allocation10_spill] sm:$0xff]  ;;  %v2937_v39 = vld [vmem:[#allocation3 + $0xe0] sm:$0xff] }
0x2966   :  { %2854 = vmatprep.subr.bf16.mxu0 %v5906_v30  ;;  %v447_v23 = vadd.f32 %v7495_v2, %v5376_v40 }
0x2969   :  { %2855 = vmatpush1.bf16.msra.mxu0 %v5912_v28 }
0x296a   :  { %2856 = vmatprep.subr.bf16.mxu0 %v5918_v24  ;;  %v6091_v24 = vld [vmem:[%s7454_s4 + $0x38] sm:$0xff] }
0x296b   :  { %4553 = vmatprep.subr.mxu1 %v6091_v24 }
0x296d   :  { %2857 = vmatpush1.bf16.msra.mxu0 %v5924_v33 }
0x296e   :  { %4489 = vmatprep.subr.mxu0 %v6091_v24 }
0x2a20   :  { %v2730_v11 = vpop.f32.mrf.mxu0 }
0x2a21   :  { %v2737_v22 = vadd.f32 %v2730_v11, %v445_v45  ;;  %v6177_v45 = vld [vmem:[%s7455_s5] ss:$0 sm:$0xff]  ;;  %s5198_s5 = smov 1.0  }
0x2a22   :  { %v2732_v7 = vpop.f32.mrf.mxu0 }
0x2a23   :  { %v4376_v35 = vmul.f32 -1.442695, %v2737_v22  ;;  %v2738_v30 = vadd.f32 %v2732_v7, %v447_v23 }
0x2a24   :  { %v2734_v52 = vpop.f32.mrf.mxu0 }
0x2a25   :  { %4982 = vpow2.f32 %v4376_v35  ;;  %v4377_v13 = vmul.f32 -1.442695, %v2738_v30 }
0x2a26   :  { %v2735_v25 = vpop.f32.mrf.mxu0  ;;  %4984 = vtanh.f32 %v2738_v30 }
0x2a32   :  { %v4983_v58 = vpop.eup %4982 }
0x2a33   :  { %v2745_v28 = vadd.f32 1.0, %v4983_v58  ;;  %v4985_v33 = vpop.eup %4984 }
0x2a35   :  { %4986 = vrcp.f32 %v2745_v28 }
0x2a36   :  { %4988 = vpow2.f32 %v4377_v13 }
0x2a42   :  { %v4987_v16 = vpop.eup %4986 }
0x2a43   :  { %v2753_v1 = vmul.f32 %v4987_v16, %v4985_v33  ;;  %v4989_v32 = vpop.eup %4988  ;;  %v2752_v26 = vmul.f32 %v4987_v16, %v2685_v17 }
0x2a44   :  { %v2746_v37 = vadd.f32 1.0, %v4989_v32 }
0x2a45   :  { %2755 = vrot.lane.b32.xlu1 %v2753_v1, %s5196_s2 }
0x2a46   :  { %4990 = vrcp.f32 %v2746_v37 }
0x2a53   :  { %v4991_v62 = vpop.eup %4990 }
0x2ab7   :  { %v2756_v31 = vpop.permute.xlu1 %2755 }
0x2ab8   :  { %v6096_v6 = vadd.f32 %v2756_v31, %v2752_v26 }
0x2aba   :  { %4992 = vtanh.f32 %v6096_v6 }
0x2ac7   :  { %v4993_v27 = vpop.eup %4992 }
0x2ac8   :  { %v2760_v50 = vmul.f32 %v4993_v27, %v4991_v62 }
0x2aca   :  { %2761 = vst.msk [vmem:[#allocation3 + $0xe8] sm:$0xff] %vm642_vm0, %v2760_v50  ;;  %v2765_v29 = vpack.c.bf16 %v2760_v50, %v2760_v50 }
0x2acb   :  { %2762 = vst.msk [vmem:[#allocation3 + $0x10] sm:$0xff] %vm644_vm1, %v2760_v50 }
0x2acc   :  { %4378 = vmatmul.mubr.msk.bf16.vlgmr.msra.gmra.mxu1 %vm573_vm2, %v2765_v29 }
0x2acd   :  { %4561 = vmatpush3.msra.mxu1 %v6091_v24  ;;  %4523 = vmatprep.mubr.msk.f32.mxu1 %vm573_vm2, %v2921_v38 }
0x2ace   :  { %4554 = vmatprep.subr.mxu1 %v6104_v42 }
0x2acf   :  { %4562 = vmatpush3.msra.mxu1 %v6104_v42 }
0x2ad0   :  { %4555 = vmatprep.subr.mxu1 %v6112_v46 }
0x2ad1   :  { %4563 = vmatpush3.msra.mxu1 %v6112_v46  ;;  %v2938_v9 = vld [vmem:[#allocation3 + $0xe8] sm:$0xff] }
0x2ad2   :  { %4556 = vmatprep.subr.mxu1 %v6119_v20 }
0x2ad3   :  { %4564 = vmatpush3.msra.mxu1 %v6119_v20 }
0x2ad4   :  { %4557 = vmatprep.subr.mxu1 %v6126_v51 }
0x2ad5   :  { %4565 = vmatpush3.msra.mxu1 %v6126_v51 }
0x2ad6   :  { %4558 = vmatprep.subr.mxu1 %v6133_v54 }
0x2ad7   :  { %4566 = vmatpush3.msra.mxu1 %v6133_v54 }
0x2ad8   :  { %4559 = vmatprep.subr.mxu1 %v6140_v0 }
0x2ad9   :  { %4567 = vmatpush3.msra.mxu1 %v6140_v0 }
0x2ada   :  { %4560 = vmatprep.subr.mxu1 %v6147_v14 }
0x2adb   :  { %4568 = vmatpush3.msra.mxu1 %v6147_v14 }
0x2adc   :  { %4524 = vmatmul.mubr.msk.f32.vlgmr.msra.gmra.mxu1 %vm573_vm2, %v2922_v43 }
0x2add   :  { %4526 = vmatprep.mubr.msk.f32.mxu1 %vm573_vm2, %v2923_v47 }
0x2ae0   :  { %4527 = vmatmul.mubr.msk.f32.gmra.mxu1 %vm573_vm2, %v2924_v60 }
0x2ae1   :  { %4529 = vmatprep.mubr.msk.f32.mxu1 %vm573_vm2, %v2925_v63 }
0x2ae4   :  { %4530 = vmatmul.mubr.msk.f32.gmra.mxu1 %vm573_vm2, %v2926_v53 }
0x2ae5   :  { %4532 = vmatprep.mubr.msk.f32.mxu1 %vm573_vm2, %v2927_v10 }
0x2ae8   :  { %4533 = vmatmul.mubr.msk.f32.gmra.mxu1 %vm573_vm2, %v2928_v3 }
0x2ae9   :  { %4535 = vmatprep.mubr.msk.f32.mxu1 %vm573_vm2, %v2929_v19 }
0x2aec   :  { %4536 = vmatmul.mubr.msk.f32.gmra.mxu1 %vm573_vm2, %v2930_v21 }
0x2aed   :  { %4538 = vmatprep.mubr.msk.f32.mxu1 %vm573_vm2, %v2931_v56 }
0x2af0   :  { %4539 = vmatmul.mubr.msk.f32.gmra.mxu1 %vm573_vm2, %v2932_v61 }
0x2af1   :  { %4541 = vmatprep.mubr.msk.f32.mxu1 %vm573_vm2, %v2933_v4 }
0x2af4   :  { %4542 = vmatmul.mubr.msk.f32.gmra.mxu1 %vm573_vm2, %v2934_v5 }
0x2af5   :  { %4544 = vmatprep.mubr.msk.f32.mxu1 %vm573_vm2, %v2935_v36 }
0x2af8   :  { %4545 = vmatmul.mubr.msk.f32.gmra.mxu1 %vm573_vm2, %v2936_v8 }
0x2af9   :  { %4547 = vmatprep.mubr.msk.f32.mxu1 %vm573_vm2, %v2937_v39 }
0x2afc   :  { %4548 = vmatmul.mubr.msk.f32.gmra.mxu1 %vm573_vm2, %v2938_v9 }
0x2b8c   :  { %v2803_v48 = vpop.f32.mrf.mxu1 }
0x2b8d   :  { %v2810_v44 = vadd.f32 %v2803_v48, %v451_v12  ;;  %v7498_v12 = vlaneseq }
0x2b8e   :  { %v2805_v17 = vpop.f32.mrf.mxu1 }
0x2b8f   :  { %v4379_v18 = vmul.f32 -1.442695, %v2810_v44  ;;  %v6179_v11 = vadd.f32 %v2805_v17, %v453_v15  ;;  %v6289_v48 = vand.u32 127, %v7498_v12  ;;  %v6490_v12 = vld [vmem:[%s7456_s6 + $0x58] sm:$0xff] }
0x2b90   :  { %v2807_v41 = vpop.f32.mrf.mxu1  ;;  %7507 = vst [vmem:[#allocation14_spill] sm:$0xff] %v6490_v12 }
0x2b91   :  { %4994 = vpow2.f32 %v4379_v18  ;;  %vm3343_vm3 = vcmp.lt.s32.totalorder %v6289_v48, 8 }
0x2b92   :  { %v2808_v57 = vpop.f32.mrf.mxu1  ;;  %4996 = vtanh.f32 %v6179_v11 }
0x2b9c   :  { %v4525_v22 = vpop.f32.mrf.mxu1 }
0x2b9d   :  { %v6182_v7 = vadd.f32 %v4525_v22, %v6177_v45 }
0x2b9e   :  { %v4995_v35 = vpop.eup %4994  ;;  %v3178_v52 = vpop.f32.mrf.mxu1 }
0x2b9f   :  { %v2818_v25 = vadd.f32 1.0, %v4995_v35  ;;  %3290 = vst [vmem:[%s7457_s7 + $0x68] sm:$0xff] %v6182_v7  ;;  %v6189_v2 = vadd.f32 %v6177_v45, %v3178_v52  ;;  %v4997_v27 = vpop.eup %4996  ;;  %v6295_v44 = vsel %vm3343_vm3, %v6182_v7, -1e+30  ;;  %v6341_v35 = vld [vmem:[%s7456_s6 + $0x8] sm:$0xff]  ;;  %v3311_v52 = vld [vmem:[%s7456_s6 + $0x10] sm:$0xff] }
0x2ba0   :  { %v4528_v23 = vpop.f32.mrf.mxu1  ;;  %7500 = vst [vmem:[#allocation8_spill] sm:$0xff] %v6341_v35 }
0x2ba1   :  { %4998 = vrcp.f32 %v2818_v25  ;;  %3289 = vst [vmem:[%s7457_s7 + $0x60] sm:$0xff] %v6189_v2  ;;  %v3194_v30 = vadd.f32 %v4528_v23, %v6177_v45  ;;  %v3313_v25 = vld [vmem:[%s7456_s6 + $0x20] sm:$0xff]  ;;  %v4380_v23 = vmul.f32 -1.442695, %v6179_v11  ;;  %v3324_v11 = vld [vmem:[%s7456_s6 + $0x78] sm:$0xff] }
0x2ba2   :  { %v3188_v58 = vpop.f32.mrf.mxu1 }
0x2ba3   :  { %3292 = vst [vmem:[%s7457_s7 + $0x78] sm:$0xff] %v3194_v30  ;;  %v6201_v28 = vadd.f32 %v6177_v45, %v3188_v58  ;;  %v6300_v17 = vsel %vm3343_vm3, %v3194_v30, -1e+30  ;;  %v3315_v30 = vld [vmem:[%s7456_s6 + $0x30] sm:$0xff]  ;;  %5000 = vpow2.f32 %v4380_v23  ;;  %v3317_v58 = vld [vmem:[%s7456_s6 + $0x40] sm:$0xff] }
0x2ba4   :  { %v4531_v33 = vpop.f32.mrf.mxu1 }
0x2ba5   :  { %3291 = vst [vmem:[%s7457_s7 + $0x70] sm:$0xff] %v6201_v28  ;;  %v3204_v16 = vadd.f32 %v4531_v33, %v6177_v45  ;;  %v3319_v33 = vld [vmem:[%s7456_s6 + $0x50] sm:$0xff] }
0x2ba6   :  { %v3198_v1 = vpop.f32.mrf.mxu1 }
0x2ba7   :  { %3294 = vst [vmem:[%s7457_s7 + $0x88] sm:$0xff] %v3204_v16  ;;  %v6212_v13 = vadd.f32 %v6177_v45, %v3198_v1  ;;  %v6305_v18 = vsel %vm3343_vm3, %v3204_v16, -1e+30 }
0x2ba8   :  { %v4534_v32 = vpop.f32.mrf.mxu1 }
0x2ba9   :  { %3293 = vst [vmem:[%s7457_s7 + $0x80] sm:$0xff] %v6212_v13  ;;  %v3214_v37 = vadd.f32 %v4534_v32, %v6177_v45 }
0x2baa   :  { %v3208_v26 = vpop.f32.mrf.mxu1 }
0x2bab   :  { %3296 = vst [vmem:[%s7457_s7 + $0x98] sm:$0xff] %v3214_v37  ;;  %v6223_v31 = vadd.f32 %v6177_v45, %v3208_v26  ;;  %v6310_v41 = vsel %vm3343_vm3, %v3214_v37, -1e+30 }
0x2bac   :  { %v4537_v62 = vpop.f32.mrf.mxu1 }
0x2bad   :  { %3295 = vst [vmem:[%s7457_s7 + $0x90] sm:$0xff] %v6223_v31  ;;  %v3224_v50 = vadd.f32 %v4537_v62, %v6177_v45 }
0x2bae   :  { %v6230_v29 = vpop.eup %4998  ;;  %v3218_v38 = vpop.f32.mrf.mxu1 }
0x2baf   :  { %3298 = vst [vmem:[%s7457_s7 + $0xa8] sm:$0xff] %v3224_v50  ;;  %v6236_v43 = vadd.f32 %v6177_v45, %v3218_v38  ;;  %v2826_v47 = vmul.f32 %v6230_v29, %v4997_v27  ;;  %v6315_v57 = vsel %vm3343_vm3, %v3224_v50, -1e+30  ;;  %v2825_v32 = vmul.f32 %v6230_v29, %v6096_v6 }
0x2bb0   :  { %v4540_v60 = vpop.f32.mrf.mxu1  ;;  %v5001_v16 = vpop.eup %5000 }
0x2bb1   :  { %3297 = vst [vmem:[%s7457_s7 + $0xa0] sm:$0xff] %v6236_v43  ;;  %v3234_v63 = vadd.f32 %v4540_v60, %v6177_v45  ;;  %2828 = vrot.lane.b32.xlu0 %v2826_v47, %s5196_s2  ;;  %v2819_v1 = vadd.f32 1.0, %v5001_v16 }
0x2bb2   :  { %v3228_v53 = vpop.f32.mrf.mxu1 }
0x2bb3   :  { %3300 = vst [vmem:[%s7457_s7 + $0xb8] sm:$0xff] %v3234_v63  ;;  %v6249_v10 = vadd.f32 %v6177_v45, %v3228_v53  ;;  %v6320_v49 = vsel %vm3343_vm3, %v3234_v63, -1e+30  ;;  %5002 = vrcp.f32 %v2819_v1  ;;  %v457_v63 = vadd.f32 %v5705_v59, %v5376_v40  ;;  %v3323_v1 = vld [vmem:[%s7456_s6 + $0x70] sm:$0xff] }
0x2bb4   :  { %v4543_v3 = vpop.f32.mrf.mxu1  ;;  %v6410_v40 = vsel %vm3343_vm3, %v6201_v28, -1e+30  ;;  %v6416_v59 = vsel %vm3343_vm3, %v6212_v13, -1e+30  ;;  %v6428_v28 = vsel %vm3343_vm3, %v6236_v43, -1e+30 }
0x2bb5   :  { %3299 = vst [vmem:[%s7457_s7 + $0xb0] sm:$0xff] %v6249_v10  ;;  %v3244_v19 = vadd.f32 %v4543_v3, %v6177_v45  ;;  %v6434_v13 = vsel %vm3343_vm3, %v6249_v10, -1e+30 }
0x2bb6   :  { %v3238_v21 = vpop.f32.mrf.mxu1 }
0x2bb7   :  { %3302 = vst [vmem:[%s7457_s7 + $0xc8] sm:$0xff] %v3244_v19  ;;  %v6260_v56 = vadd.f32 %v6177_v45, %v3238_v21  ;;  %v6325_v15 = vsel %vm3343_vm3, %v3244_v19, -1e+30 }
0x2bb8   :  { %v4546_v61 = vpop.f32.mrf.mxu1 }
0x2bb9   :  { %3301 = vst [vmem:[%s7457_s7 + $0xc0] sm:$0xff] %v6260_v56  ;;  %v3254_v4 = vadd.f32 %v4546_v61, %v6177_v45 }
0x2bba   :  { %v3248_v5 = vpop.f32.mrf.mxu1 }
0x2bbb   :  { %3304 = vst [vmem:[%s7457_s7 + $0xd8] sm:$0xff] %v3254_v4  ;;  %v6271_v36 = vadd.f32 %v6177_v45, %v3248_v5  ;;  %v6330_v22 = vsel %vm3343_vm3, %v3254_v4, -1e+30  ;;  %v6464_v5 = vld [vmem:[%s7456_s6 + $0x18] sm:$0xff] }
0x2bbc   :  { %v4549_v8 = vpop.f32.mrf.mxu1  ;;  %7503 = vst [vmem:[#allocation10_spill] sm:$0xff] %v6464_v5 }
0x2bbd   :  { %3303 = vst [vmem:[%s7457_s7 + $0xd0] sm:$0xff] %v6271_v36  ;;  %v3264_v39 = vadd.f32 %v4549_v8, %v6177_v45  ;;  %v6446_v43 = vsel %vm3343_vm3, %v6271_v36, -1e+30  ;;  %v6470_v36 = vld [vmem:[%s7456_s6 + $0x28] sm:$0xff] }
0x2bbe   :  { %v3258_v9 = vpop.f32.mrf.mxu1  ;;  %7504 = vst [vmem:[#allocation11_spill] sm:$0xff] %v6470_v36 }
0x2bbf   :  { %3306 = vst [vmem:[%s7457_s7 + $0xe8] sm:$0xff] %v3264_v39  ;;  %v6282_v55 = vadd.f32 %v6177_v45, %v3258_v9  ;;  %v6335_v7 = vsel %vm3343_vm3, %v3264_v39, -1e+30  ;;  %v6476_v39 = vld [vmem:[%s7456_s6 + $0x38] sm:$0xff] }
0x2bc0   :  { %7499 = vst [vmem:[#allocation7_spill] sm:$0xff] %v6335_v7  ;;  %v5003_v62 = vpop.eup %5002  ;;  %7505 = vst [vmem:[#allocation12_spill] sm:$0xff] %v6476_v39 }
0x2bc1   :  { %3305 = vst [vmem:[%s7457_s7 + $0xe0] sm:$0xff] %v6282_v55  ;;  %v6452_v10 = vsel %vm3343_vm3, %v6282_v55, -1e+30  ;;  %v6484_v55 = vld [vmem:[%s7456_s6 + $0x48] sm:$0xff] }
0x2bd0   :  { %3402 = vmax.xlane.f32.xlu0 %v6295_v44 }
0x2bd4   :  { %3406 = vmax.xlane.f32.xlu0 %v6300_v17 }
0x2bd8   :  { %3410 = vmax.xlane.f32.xlu0 %v6305_v18 }
0x2bdc   :  { %3414 = vmax.xlane.f32.xlu0 %v6310_v41 }
0x2be0   :  { %3418 = vmax.xlane.f32.xlu0 %v6315_v57 }
0x2be4   :  { %3422 = vmax.xlane.f32.xlu0 %v6320_v49 }
0x2be8   :  { %3426 = vmax.xlane.f32.xlu0 %v6325_v15 }
0x2bec   :  { %3430 = vmax.xlane.f32.xlu0 %v6330_v22 }
0x2bf0   :  { %3434 = vmax.xlane.f32.xlu0 %v6335_v7 }
0x2c06   :  { %3700 = vperm.xlu0 %4581, %v6341_v35  }
0x2c0a   :  { %3703 = vperm.xlu0 %4581, %v3311_v52  }
0x2c0e   :  { %3709 = vperm.xlu0 %4581, %v3313_v25   ;;  %v6498_v25 = vld [vmem:[%s7456_s6 + $0x60] sm:$0xff] }
0x2c0f   :  { %7508 = vst [vmem:[#allocation15_spill] sm:$0xff] %v6498_v25 }
0x2c12   :  { %3715 = vperm.xlu0 %4581, %v3315_v30  }
0x2c16   :  { %3721 = vperm.xlu0 %4581, %v3317_v58   ;;  %v3322_v58 = vld [vmem:[%s7456_s6 + $0x68] sm:$0xff] }
0x2c1a   :  { %3727 = vperm.xlu0 %4581, %v3319_v33  }
0x2c1e   :  { %3742 = vperm.xlu0 %4581, %v3324_v11  }
0x2c23   :  { %v2829_v37 = vpop.permute.xlu0 %2828 }
0x2c24   :  { %v6365_v26 = vadd.f32 %v2829_v37, %v2825_v32 }
0x2c26   :  { %5004 = vtanh.f32 %v6365_v26 }
0x2c33   :  { %v5005_v27 = vpop.eup %5004 }
0x2c34   :  { %v2833_v50 = vmul.f32 %v5005_v27, %v5003_v62  ;;  %v3325_v62 = vld [vmem:[%s7456_s6 + $0x80] sm:$0xff] }
0x2c36   :  { %2834 = vst.msk [vmem:[#allocation3 + $0xf0] sm:$0xff] %vm642_vm0, %v2833_v50  ;;  %v2838_v38 = vpack.c.bf16 %v2833_v50, %v2833_v50 }
0x2c37   :  { %2835 = vst.msk [vmem:[#allocation3 + $0x8] sm:$0xff] %vm644_vm1, %v2833_v50  ;;  %v3327_v50 = vld [vmem:[%s7456_s6 + $0x90] sm:$0xff] }
0x2c38   :  { %4381 = vmatmul.mubr.msk.bf16.vlgmr.msra.gmra.mxu0 %vm573_vm2, %v2838_v38 }
0x2c39   :  { %4490 = vmatpush3.msra.mxu0 %v6091_v24  ;;  %v3331_v24 = vld [vmem:[%s7456_s6 + $0xb0] sm:$0xff] }
0x2c3a   :  { %4491 = vmatprep.subr.mxu0 %v6104_v42  ;;  %3763 = vperm.xlu0 %4581, %v3331_v24  }
0x2c3b   :  { %4492 = vmatpush3.msra.mxu0 %v6104_v42  ;;  %v3333_v42 = vld [vmem:[%s7456_s6 + $0xc0] sm:$0xff] }
0x2c3c   :  { %4493 = vmatprep.subr.mxu0 %v6112_v46 }
0x2c3d   :  { %v2939_v6 = vld [vmem:[#allocation3 + $0xf0] sm:$0xff]  ;;  %4494 = vmatpush3.msra.mxu0 %v6112_v46 }
0x2c3e   :  { %4550 = vmatprep.mubr.msk.f32.mxu1 %vm573_vm2, %v2939_v6  ;;  %4495 = vmatprep.subr.mxu0 %v6119_v20  ;;  %v3335_v46 = vld [vmem:[%s7456_s6 + $0xd0] sm:$0xff] }
0x2c3f   :  { %4496 = vmatpush3.msra.mxu0 %v6119_v20  ;;  %3769 = vperm.xlu0 %4581, %v3333_v42   ;;  %v7501_v20 = vld [vmem:[#allocation13_spill] sm:$0xff]  ;;  %v3328_v42 = vld [vmem:[%s7456_s6 + $0x98] sm:$0xff] }
0x2c40   :  { %4497 = vmatprep.subr.mxu0 %v6126_v51  ;;  %7506 = vst [vmem:[#allocation13_spill] sm:$0xff] %v6484_v55 }
0x2c41   :  { %4498 = vmatpush3.msra.mxu0 %v6126_v51  ;;  %v455_v51 = vadd.f32 %v7501_v20, %v5373_v34  ;;  %v6404_v34 = vsel %vm3343_vm3, %v6189_v2, -1e+30  ;;  %v6422_v2 = vsel %vm3343_vm3, %v6223_v31, -1e+30  ;;  %v6440_v31 = vsel %vm3343_vm3, %v6260_v56, -1e+30 }
0x2c42   :  { %4499 = vmatprep.subr.mxu0 %v6133_v54  ;;  %v6458_v56 = vld [vmem:[%s7456_s6] sm:$0xff] }
0x2c43   :  { %4500 = vmatpush3.msra.mxu0 %v6133_v54  ;;  %3775 = vperm.xlu0 %4581, %v3335_v46   ;;  %7502 = vst [vmem:[#allocation9_spill] sm:$0xff] %v6458_v56 }
0x2c44   :  { %4501 = vmatprep.subr.mxu0 %v6140_v0 }
0x2c45   :  { %4502 = vmatpush3.msra.mxu0 %v6140_v0 }
0x2c46   :  { %4503 = vmatprep.subr.mxu0 %v6147_v14 }
0x2c47   :  { %4504 = vmatpush3.msra.mxu0 %v6147_v14 }
0x2c59   :  { %v6479_v9 = vpop.xlane.xlu0 %3402 }
0x2c5d   :  { %v6492_v52 = vpop.xlane.xlu0 %3406 }
0x2c61   :  { %v6501_v30 = vpop.xlane.xlu0 %3410 }
0x2c65   :  { %v6510_v37 = vpop.xlane.xlu0 %3414 }
0x2c69   :  { %v6515_v27 = vpop.xlane.xlu0 %3418 }
0x2c6d   :  { %v6523_v38 = vpop.xlane.xlu0 %3422 }
0x2c71   :  { %v6530_v20 = vpop.xlane.xlu0 %3426 }
0x2cf8   :  { %v2876_v54 = vpop.f32.mrf.mxu0 }
0x2cf9   :  { %v2883_v0 = vadd.f32 %v2876_v54, %v455_v51  ;;  %v3329_v51 = vld [vmem:[%s7456_s6 + $0xa0] sm:$0xff]  ;;  %v3330_v54 = vld [vmem:[%s7456_s6 + $0xa8] sm:$0xff] }
0x2cfa   :  { %v2878_v14 = vpop.f32.mrf.mxu0 }
0x2cfb   :  { %v4382_v29 = vmul.f32 -1.442695, %v2883_v0  ;;  %v2884_v53 = vadd.f32 %v2878_v14, %v457_v63  ;;  %v6538_v0 = vpop.xlane.xlu0 %3430  ;;  %v3332_v63 = vld [vmem:[%s7456_s6 + $0xb8] sm:$0xff] }
0x2cfc   :  { %v2880_v47 = vpop.f32.mrf.mxu0 }
0x2cfd   :  { %5006 = vpow2.f32 %v4382_v29  ;;  %v4383_v8 = vmul.f32 -1.442695, %v2884_v53  ;;  %v2910_v47 = vld [vmem:[#allocation3 + $0x8] sm:$0xff] }
0x2cfe   :  { %v2881_v60 = vpop.f32.mrf.mxu0  ;;  %5008 = vtanh.f32 %v2884_v53  ;;  %v2912_v53 = vld [vmem:[#allocation3 + $0x18] sm:$0xff] }
0x2cff   :  { %v2911_v60 = vld [vmem:[#allocation3 + $0x10] sm:$0xff] }
0x2d0a   :  { %v5007_v3 = vpop.eup %5006 }
0x2d0b   :  { %v2891_v19 = vadd.f32 1.0, %v5007_v3  ;;  %v5009_v21 = vpop.eup %5008  ;;  %v6547_v3 = vpop.xlane.xlu0 %3434 }
0x2d0d   :  { %5010 = vrcp.f32 %v2891_v19  ;;  %v2913_v19 = vld [vmem:[#allocation3 + $0x20] sm:$0xff] }
0x2d0e   :  { %5012 = vpow2.f32 %v4383_v8  ;;  %v2915_v8 = vld [vmem:[#allocation3 + $0x30] sm:$0xff] }
0x2d1a   :  { %v5011_v61 = vpop.eup %5010 }
0x2d1b   :  { %v2899_v4 = vmul.f32 %v5011_v61, %v5009_v21  ;;  %v5013_v23 = vpop.eup %5012  ;;  %v2898_v11 = vmul.f32 %v5011_v61, %v6365_v26  ;;  %v3326_v26 = vld [vmem:[%s7456_s6 + $0x88] sm:$0xff] }
0x2d1c   :  { %v2892_v33 = vadd.f32 1.0, %v5013_v23  ;;  %v3334_v21 = vld [vmem:[%s7456_s6 + $0xc8] sm:$0xff]  ;;  %v3336_v23 = vld [vmem:[%s7456_s6 + $0xd8] sm:$0xff] }
0x2d1d   :  { %2901 = vrot.lane.b32.xlu1 %v2899_v4, %s5196_s2  ;;  %v2914_v61 = vld [vmem:[#allocation3 + $0x28] sm:$0xff]  ;;  %v6554_v4 = vpop.permute.xlu0 %3700 }
0x2d1e   :  { %5014 = vrcp.f32 %v2892_v33  ;;  %v2917_v33 = vld [vmem:[#allocation3 + $0x40] sm:$0xff]  ;;  %vm3793_vm7 = vcmp.eq.s32.totalorder %v6289_v48, %v6554_v4 }
0x2d2b   :  { %v5015_v6 = vpop.eup %5014 }
0x2d41   :  { %3400 = vmax.xlane.f32.xlu1 %v6404_v34 }
0x2d45   :  { %3404 = vmax.xlane.f32.xlu1 %v6410_v40 }
0x2d49   :  { %3408 = vmax.xlane.f32.xlu1 %v6416_v59 }
0x2d4d   :  { %3412 = vmax.xlane.f32.xlu1 %v6422_v2 }
0x2d51   :  { %3416 = vmax.xlane.f32.xlu1 %v6428_v28 }
0x2d55   :  { %3420 = vmax.xlane.f32.xlu1 %v6434_v13 }
0x2d59   :  { %3424 = vmax.xlane.f32.xlu1 %v6440_v31 }
0x2d5d   :  { %3428 = vmax.xlane.f32.xlu1 %v6446_v43 }
0x2d61   :  { %3432 = vmax.xlane.f32.xlu1 %v6452_v10 }
0x2d72   :  { %3697 = vperm.xlu1 %4580, %v6458_v56  }
0x2d76   :  { %3706 = vperm.xlu1 %4580, %v6464_v5  }
0x2d7a   :  { %3712 = vperm.xlu1 %4580, %v6470_v36  }
0x2d7e   :  { %3718 = vperm.xlu1 %4580, %v6476_v39  }
0x2d82   :  { %3724 = vperm.xlu1 %4580, %v6484_v55  }
0x2d86   :  { %3730 = vperm.xlu1 %4580, %v6490_v12  }
0x2d8a   :  { %3733 = vperm.xlu1 %4580, %v6498_v25  }
0x2d8e   :  { %3736 = vperm.xlu1 %4580, %v3322_v58   ;;  %v2916_v58 = vld [vmem:[#allocation3 + $0x38] sm:$0xff] }
0x2d8f   :  { %v2902_v16 = vpop.permute.xlu1 %2901 }
0x2d90   :  { %v2904_v32 = vadd.f32 %v2902_v16, %v2898_v11  ;;  %v3337_v11 = vld [vmem:[%s7456_s6 + $0xe0] sm:$0xff]  ;;  %v6566_v16 = vpop.permute.xlu0 %3703 }
0x2d91   :  { %vm3794_vm10 = vcmp.eq.s32.totalorder %v6289_v48, %v6566_v16 }
0x2d92   :  { %5016 = vtanh.f32 %v2904_v32  ;;  %3739 = vperm.xlu1 %4580, %v3323_v1   ;;  %v2918_v1 = vld [vmem:[#allocation3 + $0x48] sm:$0xff]  ;;  %v2919_v32 = vld [vmem:[#allocation3 + $0x50] sm:$0xff] }
0x2d96   :  { %3745 = vperm.xlu1 %4580, %v3325_v62   ;;  %v2920_v62 = vld [vmem:[#allocation3 + $0x58] sm:$0xff] }
0x2d9a   :  { %3748 = vperm.xlu1 %4580, %v3326_v26   ;;  %v6570_v26 = vpop.permute.xlu0 %3709 }
0x2d9b   :  { %vm3796_vm12 = vcmp.eq.s32.totalorder %v6289_v48, %v6570_v26 }
0x2d9e   :  { %3751 = vperm.xlu1 %4580, %v3327_v50   ;;  %v6573_v50 = vpop.permute.xlu0 %3715 }
0x2d9f   :  { %v5017_v24 = vpop.eup %5016  ;;  %vm3798_vm14 = vcmp.eq.s32.totalorder %v6289_v48, %v6573_v50 }
0x2da0   :  { %v2906_v46 = vmul.f32 %v5017_v24, %v5015_v6 }
0x2da2   :  { %2907 = vst.msk [vmem:[#allocation3 + $0xf8] sm:$0xff] %vm642_vm0, %v2906_v46  ;;  %3754 = vperm.xlu1 %4580, %v3328_v42   ;;  %v6577_v24 = vpop.permute.xlu0 %3721 }
0x2da3   :  { %2908 = vst.msk [vmem:[#allocation3] sm:$0xff] %vm644_vm1, %v2906_v46  ;;  %vm3800_vm0 = vcmp.eq.s32.totalorder %v6289_v48, %v6577_v24 }
0x2da6   :  { %3757 = vperm.xlu1 %4580, %v3329_v51   ;;  %v6581_v46 = vpop.permute.xlu0 %3727 }
0x2da7   :  { %7509 = vst [vmem:[#allocation16_spill] sm:$0xff] %v6581_v46 }
0x2da9   :  { %v2940_v29 = vld [vmem:[#allocation3 + $0xf8] sm:$0xff] }
0x2daa   :  { %v2909_v14 = vld [vmem:[#allocation3] sm:$0xff]  ;;  %4551 = vmatmul.mubr.msk.f32.gmra.mxu1 %vm573_vm2, %v2940_v29  ;;  %3760 = vperm.xlu1 %4580, %v3330_v54  }
0x2dab   :  { %4505 = vmatprep.mubr.msk.f32.mxu0 %vm573_vm2, %v2909_v14  ;;  %v6585_v14 = vpop.permute.xlu0 %3742 }
0x2dac   :  { %4506 = vmatmul.mubr.msk.f32.vlgmr.msra.gmra.mxu0 %vm573_vm2, %v2910_v47  ;;  %7510 = vst [vmem:[#allocation17_spill] sm:$0xff] %v6585_v14 }
0x2dad   :  { %4508 = vmatprep.mubr.msk.f32.mxu0 %vm573_vm2, %v2911_v60 }
0x2dae   :  { %3766 = vperm.xlu1 %4580, %v3332_v63  }
0x2daf   :  { %v3764_v47 = vpop.permute.xlu0 %3763 }
0x2db0   :  { %4509 = vmatmul.mubr.msk.f32.gmra.mxu0 %vm573_vm2, %v2912_v53  ;;  %vm3814_vm4 = vcmp.eq.s32.totalorder %v6289_v48, %v3764_v47 }
0x2db1   :  { %4511 = vmatprep.mubr.msk.f32.mxu0 %vm573_vm2, %v2913_v19 }
0x2db2   :  { %3772 = vperm.xlu1 %4580, %v3334_v21  }
0x2db4   :  { %4512 = vmatmul.mubr.msk.f32.gmra.mxu0 %vm573_vm2, %v2914_v61 }
0x2db5   :  { %4514 = vmatprep.mubr.msk.f32.mxu0 %vm573_vm2, %v2915_v8 }
0x2db6   :  { %3778 = vperm.xlu1 %4580, %v3336_v23  }
0x2db8   :  { %4515 = vmatmul.mubr.msk.f32.gmra.mxu0 %vm573_vm2, %v2916_v58 }
0x2db9   :  { %4517 = vmatprep.mubr.msk.f32.mxu0 %vm573_vm2, %v2917_v33 }
0x2dba   :  { %3781 = vperm.xlu1 %4580, %v3337_v11  }
0x2dbc   :  { %4518 = vmatmul.mubr.msk.f32.gmra.mxu0 %vm573_vm2, %v2918_v1 }
0x2dbd   :  { %4520 = vmatprep.mubr.msk.f32.mxu0 %vm573_vm2, %v2919_v32 }
0x2dc0   :  { %4521 = vmatmul.mubr.msk.f32.gmra.mxu0 %vm573_vm2, %v2920_v62 }
0x2dca   :  { %v6575_v6 = vpop.xlane.xlu1 %3400 }
0x2dce   :  { %v6579_v42 = vpop.xlane.xlu1 %3404 }
0x2dd2   :  { %v3409_v51 = vpop.xlane.xlu1 %3408 }
0x2dd3   :  { %v6621_v47 = vsub.f32 %v6416_v59, %v3409_v51 }
0x2dd6   :  { %v6583_v54 = vpop.xlane.xlu1 %3412 }
0x2dda   :  { %v6587_v29 = vpop.xlane.xlu1 %3416 }
0x2dde   :  { %v3421_v60 = vpop.xlane.xlu1 %3420 }
0x2ddf   :  { %v6591_v63 = vsub.f32 %v6434_v13, %v3421_v60 }
0x2de1   :  { %v6594_v53 = vsel %vm3814_vm4, %v6591_v63, 0.0 }
0x2de2   :  { %7511 = vst [vmem:[#allocation18_spill] sm:$0xff] %v6594_v53  ;;  %v6596_v19 = vpop.xlane.xlu1 %3424 }
0x2de6   :  { %v6598_v21 = vpop.xlane.xlu1 %3428 }
0x2dea   :  { %v6600_v61 = vpop.xlane.xlu1 %3432 }
0x2dee   :  { %v6602_v8 = vpop.permute.xlu1 %3697 }
0x2def   :  { %vm3792_vm8 = vcmp.eq.s32.totalorder %v6289_v48, %v6602_v8 }
0x2df2   :  { %v6604_v23 = vpop.permute.xlu1 %3706 }
0x2df3   :  { %vm3795_vm9 = vcmp.eq.s32.totalorder %v6289_v48, %v6604_v23 }
0x2df6   :  { %v6606_v58 = vpop.permute.xlu1 %3712 }
0x2df7   :  { %vm3797_vm11 = vcmp.eq.s32.totalorder %v6289_v48, %v6606_v58 }
0x2dfa   :  { %v6608_v33 = vpop.permute.xlu1 %3718 }
0x2dfb   :  { %vm3799_vm13 = vcmp.eq.s32.totalorder %v6289_v48, %v6608_v33 }
0x2dfe   :  { %v6610_v11 = vpop.permute.xlu1 %3724 }
0x2dff   :  { %vm3801_vm15 = vcmp.eq.s32.totalorder %v6289_v48, %v6610_v11 }
0x2e02   :  { %v6612_v13 = vpop.permute.xlu1 %3730 }
0x2e03   :  { %vm3803_vm1 = vcmp.eq.s32.totalorder %v6289_v48, %v6612_v13  ;;  %v7526_v13 = vld [vmem:[#allocation7_spill] sm:$0xff] }
0x2e06   :  { %v6614_v1 = vpop.permute.xlu1 %3733 }
0x2e07   :  { %vm3804_vm6 = vcmp.eq.s32.totalorder %v6289_v48, %v6614_v1  ;;  %v6783_v1 = vsub.f32 %v6295_v44, %v6479_v9 }
0x2e0a   :  { %v6616_v32 = vpop.permute.xlu1 %3736 }
0x2e0b   :  { %7512 = vst [vmem:[#allocation19_spill] sm:$0xff] %v6616_v32 }
0x2e0e   :  { %v6618_v62 = vpop.permute.xlu1 %3739 }
0x2e0f   :  { %7513 = vst [vmem:[#allocation20_spill] sm:$0xff] %v6618_v62 }
0x2e12   :  { %v3746_v60 = vpop.permute.xlu1 %3745 }
0x2e13   :  { %vm3808_vm5 = vcmp.eq.s32.totalorder %v6289_v48, %v3746_v60 }
0x2e14   :  { %v6625_v53 = vsel %vm3808_vm5, %v6621_v47, 0.0 }
0x2e15   :  { %7514 = vst [vmem:[#allocation21_spill] sm:$0xff] %v6625_v53 }
0x2e6a   :  { %v4552_v25 = vpop.f32.mrf.mxu1 }
0x2e6b   :  { %v3274_v12 = vadd.f32 %v4552_v25, %v6177_v45 }
0x2e6c   :  { %v4507_v55 = vpop.f32.mrf.mxu0  ;;  %v3268_v39 = vpop.f32.mrf.mxu1 }
0x2e6d   :  { %v3124_v14 = vadd.f32 %v4507_v55, %v6177_v45  ;;  %3308 = vst [vmem:[%s7457_s7 + $0xf8] sm:$0xff] %v3274_v12  ;;  %v3269_v59 = vadd.f32 %v6177_v45, %v3268_v39  ;;  %v6635_v60 = vsel %vm3343_vm3, %v3274_v12, -1e+30 }
0x2e6e   :  { %v3118_v51 = vpop.f32.mrf.mxu0  ;;  %7515 = vst [vmem:[#allocation22_spill] sm:$0xff] %v6635_v60  ;;  %3438 = vmax.xlane.f32.xlu0 %v6635_v60 }
0x2e6f   :  { %3278 = vst [vmem:[%s7457_s7 + $0x8] sm:$0xff] %v3124_v14  ;;  %v3119_v25 = vadd.f32 %v6177_v45, %v3118_v51  ;;  %v6644_v55 = vsel %vm3343_vm3, %v3124_v14, -1e+30  ;;  %3307 = vst [vmem:[%s7457_s7 + $0xf0] sm:$0xff] %v3269_v59  ;;  %v6665_v62 = vsel %vm3343_vm3, %v3269_v59, -1e+30 }
0x2e70   :  { %3378 = vmax.xlane.f32.xlu1 %v6644_v55  ;;  %v4510_v39 = vpop.f32.mrf.mxu0  ;;  %7516 = vst [vmem:[#allocation23_spill] sm:$0xff] %v6665_v62 }
0x2e71   :  { %3277 = vst [vmem:[%s7457_s7] sm:$0xff] %v3119_v25  ;;  %v3134_v12 = vadd.f32 %v4510_v39, %v6177_v45  ;;  %v6656_v51 = vsel %vm3343_vm3, %v3119_v25, -1e+30 }
0x2e72   :  { %v3128_v53 = vpop.f32.mrf.mxu0  ;;  %3376 = vmax.xlane.f32.xlu0 %v6656_v51 }
0x2e73   :  { %3280 = vst [vmem:[%s7457_s7 + $0x18] sm:$0xff] %v3134_v12  ;;  %v3129_v14 = vadd.f32 %v6177_v45, %v3128_v53  ;;  %v6674_v36 = vsel %vm3343_vm3, %v3134_v12, -1e+30 }
0x2e74   :  { %3436 = vmax.xlane.f32.xlu1 %v6665_v62  ;;  %v4513_v39 = vpop.f32.mrf.mxu0 }
0x2e75   :  { %3279 = vst [vmem:[%s7457_s7 + $0x10] sm:$0xff] %v3129_v14  ;;  %v3144_v25 = vadd.f32 %v4513_v39, %v6177_v45  ;;  %v6692_v46 = vsel %vm3343_vm3, %v3129_v14, -1e+30 }
0x2e76   :  { %v3138_v32 = vpop.f32.mrf.mxu0  ;;  %3382 = vmax.xlane.f32.xlu0 %v6674_v36 }
0x2e77   :  { %3282 = vst [vmem:[%s7457_s7 + $0x28] sm:$0xff] %v3144_v25  ;;  %v3139_v53 = vadd.f32 %v6177_v45, %v3138_v32  ;;  %v6710_v35 = vsel %vm3343_vm3, %v3144_v25, -1e+30 }
0x2e78   :  { %v4516_v59 = vpop.f32.mrf.mxu0 }
0x2e79   :  { %3281 = vst [vmem:[%s7457_s7 + $0x20] sm:$0xff] %v3139_v53  ;;  %v3154_v39 = vadd.f32 %v4516_v59, %v6177_v45  ;;  %v6687_v5 = vsel %vm3343_vm3, %v3139_v53, -1e+30 }
0x2e7a   :  { %v3148_v12 = vpop.f32.mrf.mxu0  ;;  %3384 = vmax.xlane.f32.xlu1 %v6687_v5  ;;  %3380 = vmax.xlane.f32.xlu0 %v6692_v46 }
0x2e7b   :  { %3284 = vst [vmem:[%s7457_s7 + $0x38] sm:$0xff] %v3154_v39  ;;  %v3149_v32 = vadd.f32 %v6177_v45, %v3148_v12  ;;  %v6728_v62 = vsel %vm3343_vm3, %v3154_v39, -1e+30 }
0x2e7c   :  { %v4519_v59 = vpop.f32.mrf.mxu0 }
0x2e7d   :  { %3283 = vst [vmem:[%s7457_s7 + $0x30] sm:$0xff] %v3149_v32  ;;  %v3164_v53 = vadd.f32 %v4519_v59, %v6177_v45  ;;  %v6705_v56 = vsel %vm3343_vm3, %v3149_v32, -1e+30 }
0x2e7e   :  { %v3158_v14 = vpop.f32.mrf.mxu0  ;;  %3388 = vmax.xlane.f32.xlu1 %v6705_v56  ;;  %3386 = vmax.xlane.f32.xlu0 %v6710_v35 }
0x2e7f   :  { %3286 = vst [vmem:[%s7457_s7 + $0x48] sm:$0xff] %v3164_v53  ;;  %v3159_v12 = vadd.f32 %v6177_v45, %v3158_v14 }
0x2e80   :  { %v4522_v59 = vpop.f32.mrf.mxu0 }
0x2e81   :  { %3285 = vst [vmem:[%s7457_s7 + $0x40] sm:$0xff] %v3159_v12  ;;  %v3174_v32 = vadd.f32 %v4522_v59, %v6177_v45  ;;  %v6723_v60 = vsel %vm3343_vm3, %v3159_v12, -1e+30  ;;  %v6740_v12 = vsel %vm3343_vm3, %v3164_v53, -1e+30  ;;  %v6757_v53 = vld [vmem:[%s7456_s6 + $0xe8] sm:$0xff] }
0x2e82   :  { %v3168_v25 = vpop.f32.mrf.mxu0  ;;  %3392 = vmax.xlane.f32.xlu1 %v6723_v60  ;;  %3390 = vmax.xlane.f32.xlu0 %v6728_v62  ;;  %7518 = vst [vmem:[#allocation25_spill] sm:$0xff] %v6757_v53 }
0x2e83   :  { %3288 = vst [vmem:[%s7457_s7 + $0x58] sm:$0xff] %v3174_v32  ;;  %v3169_v14 = vadd.f32 %v6177_v45, %v3168_v25  ;;  %v6745_v39 = vsel %vm3343_vm3, %v3174_v32, -1e+30  ;;  %v6751_v45 = vld [vmem:[%s7456_s6 + $0xf0] sm:$0xff]  ;;  %v3452_v32 = vsub.f32 %v6404_v34, %v6575_v6 }
0x2e84   :  { %7517 = vst [vmem:[#allocation24_spill] sm:$0xff] %v6751_v45 }
0x2e85   :  { %3287 = vst [vmem:[%s7457_s7 + $0x50] sm:$0xff] %v3169_v14  ;;  %v6762_v59 = vsel %vm3343_vm3, %v3169_v14, -1e+30  ;;  %v3836_v25 = vsel %vm3804_vm6, %v3452_v32, 0.0  ;;  %v3496_v34 = vmul.f32 1.442695, %v3452_v32 }
0x2e86   :  { %3394 = vmax.xlane.f32.xlu0 %v6740_v12  ;;  %7519 = vst [vmem:[#allocation26_spill] sm:$0xff] %v6762_v59  ;;  %vm4080_vm6 = vcmask 7168  }
0x2e87   :  { %5018 = vpow2.f32 %v3496_v34  ;;  %v6804_v34 = vsub.f32 %v6305_v18, %v6501_v30  ;;  %v6820_v18 = vsub.f32 %v6310_v41, %v6510_v37 }
0x2e8a   :  { %3398 = vmax.xlane.f32.xlu0 %v6745_v39 }
0x2e93   :  { %3787 = vperm.xlu1 %4580, %v6751_v45   ;;  %v6769_v45 = vpop.permute.xlu1 %3748 }
0x2e94   :  { %7520 = vst [vmem:[#allocation27_spill] sm:$0xff] %v6769_v45  ;;  %v6790_v45 = vsub.f32 %v6410_v40, %v6579_v42  ;;  %v3504_v40 = vmul.f32 1.442695, %v6621_v47  ;;  %v5019_v42 = vpop.eup %5018 }
0x2e96   :  { %v3500_v44 = vmul.f32 1.442695, %v6790_v45 }
0x2e97   :  { %v6777_v14 = vpop.permute.xlu1 %3751 }
0x2ea0   :  { %3784 = vperm.xlu0 %4581, %v6757_v53   ;;  %v6774_v53 = vld [vmem:[%s7456_s6 + $0xf8] sm:$0xff] }
0x2ea1   :  { %7521 = vst [vmem:[#allocation28_spill] sm:$0xff] %v6774_v53 }
0x2eb7   :  { %3396 = vmax.xlane.f32.xlu1 %v6762_v59  ;;  %v6779_v59 = vpop.permute.xlu1 %3754 }
0x2ebb   :  { %v6785_v6 = vpop.permute.xlu1 %3757 }
0x2ebf   :  { %3880 = vadd.xlane.f32.xlu0 %v3836_v25  ;;  %v3498_v25 = vmul.f32 1.442695, %v6783_v1  ;;  %v6792_v7 = vpop.permute.xlu1 %3760 }
0x2ec0   :  { %7522 = vst [vmem:[#allocation29_spill] sm:$0xff] %v6792_v7 }
0x2ec1   :  { %5020 = vpow2.f32 %v3498_v25 }
0x2ec2   :  { %5022 = vpow2.f32 %v3500_v44  ;;  %v3548_v44 = vsel %vm3343_vm3, %v5019_v42, 0.0  ;;  %v6830_v42 = vsub.f32 %v6428_v28, %v6587_v29 }
0x2ec3   :  { %v6800_v32 = vpop.permute.xlu1 %3766 }
0x2ec4   :  { %7523 = vst [vmem:[#allocation30_spill] sm:$0xff] %v6800_v32  ;;  %v6816_v32 = vpop.permute.xlu0 %3769 }
0x2ec7   :  { %v6807_v25 = vpop.permute.xlu1 %3772 }
0x2ec8   :  { %3790 = vperm.xlu1 %4580, %v6774_v53   ;;  %v6796_v53 = vsub.f32 %v6300_v17, %v6492_v52  ;;  %7524 = vst [vmem:[#allocation31_spill] sm:$0xff] %v6807_v25  ;;  %v3506_v17 = vmul.f32 1.442695, %v6804_v34  ;;  %v6812_v52 = vsub.f32 %v6422_v2, %v6583_v54 }
0x2eca   :  { %v3502_v9 = vmul.f32 1.442695, %v6796_v53  ;;  %v3508_v30 = vmul.f32 1.442695, %v6812_v52 }
0x2ecb   :  { %v6823_v47 = vpop.permute.xlu1 %3778 }
0x2ecc   :  { %5024 = vpow2.f32 %v3502_v9  ;;  %7525 = vst [vmem:[#allocation32_spill] sm:$0xff] %v6823_v47 }
0x2ecd   :  { %5026 = vpow2.f32 %v3504_v40  ;;  %v3510_v40 = vmul.f32 1.442695, %v6820_v18 }
0x2ece   :  { %v5021_v9 = vpop.eup %5020  ;;  %5028 = vpow2.f32 %v3506_v17  ;;  %v6834_v17 = vpop.permute.xlu0 %3775 }
0x2ecf   :  { %v3549_v2 = vsel %vm3343_vm3, %v5021_v9, 0.0  ;;  %v5023_v54 = vpop.eup %5022  ;;  %5030 = vpow2.f32 %v3508_v30  ;;  %v3512_v9 = vmul.f32 1.442695, %v6830_v42 }
0x2ed0   :  { %v3550_v41 = vsel %vm3343_vm3, %v5023_v54, 0.0  ;;  %5032 = vpow2.f32 %v3510_v40 }
0x2ed1   :  { %5034 = vpow2.f32 %v3512_v9 }
0x2ed9   :  { %v5025_v37 = vpop.eup %5024 }
0x2eda   :  { %v5027_v30 = vpop.eup %5026 }
0x2edb   :  { %v3552_v54 = vsel %vm3343_vm3, %v5027_v30, 0.0  ;;  %v5029_v40 = vpop.eup %5028 }
0x2eec   :  { %3592 = vadd.xlane.f32.xlu1 %v3548_v44  ;;  %v6836_v44 = vpop.permute.xlu1 %3781 }
0x2ef0   :  { %3594 = vadd.xlane.f32.xlu1 %v3549_v2  ;;  %v3551_v2 = vsel %vm3343_vm3, %v5025_v37, 0.0 }
0x2ef4   :  { %3596 = vadd.xlane.f32.xlu1 %v3550_v41 }
0x2ef7   :  { %v6841_v47 = vpop.xlane.xlu0 %3438 }
0x2ef8   :  { %3598 = vadd.xlane.f32.xlu1 %v3551_v2  ;;  %v5031_v2 = vpop.eup %5030 }
0x2ef9   :  { %v3379_v28 = vpop.xlane.xlu1 %3378 }
0x2efa   :  { %v3441_v29 = vsub.f32 %v6644_v55, %v3379_v28  ;;  %v3553_v55 = vsel %vm3343_vm3, %v5029_v40, 0.0 }
0x2efb   :  { %v3377_v25 = vpop.xlane.xlu0 %3376 }
0x2efc   :  { %v3474_v41 = vmul.f32 1.442695, %v3441_v29  ;;  %3600 = vadd.xlane.f32.xlu1 %v3552_v54  ;;  %v3825_v7 = vsel %vm3793_vm7, %v3441_v29, 0.0  ;;  %v3440_v37 = vsub.f32 %v6656_v51, %v3377_v25  ;;  %v5033_v51 = vpop.eup %5032 }
0x2efd   :  { %3858 = vadd.xlane.f32.xlu0 %v3825_v7  ;;  %v6853_v30 = vpop.xlane.xlu1 %3436  ;;  %v3554_v7 = vsel %vm3343_vm3, %v5031_v2, 0.0  ;;  %v3555_v23 = vsel %vm3343_vm3, %v5033_v51, 0.0 }
0x2efe   :  { %5036 = vpow2.f32 %v3474_v41  ;;  %v3824_v9 = vsel %vm3792_vm8, %v3440_v37, 0.0 }
0x2eff   :  { %v3383_v4 = vpop.xlane.xlu0 %3382 }
0x2f00   :  { %3602 = vadd.xlane.f32.xlu1 %v3553_v55  ;;  %v3443_v28 = vsub.f32 %v6674_v36, %v3383_v4  ;;  %v5035_v55 = vpop.eup %5034 }
0x2f01   :  { %3856 = vadd.xlane.f32.xlu0 %v3824_v9 }
0x2f02   :  { %v3827_v8 = vsel %vm3795_vm9, %v3443_v28, 0.0 }
0x2f03   :  { %v3385_v25 = vpop.xlane.xlu1 %3384  ;;  %v3381_v29 = vpop.xlane.xlu0 %3380 }
0x2f04   :  { %3604 = vadd.xlane.f32.xlu1 %v3554_v7  ;;  %v3442_v54 = vsub.f32 %v6692_v46, %v3381_v29  ;;  %v3444_v36 = vsub.f32 %v6687_v5, %v3385_v25  ;;  %v3556_v5 = vsel %vm3343_vm3, %v5035_v55, 0.0 }
0x2f05   :  { %3862 = vadd.xlane.f32.xlu0 %v3827_v8  ;;  %v3472_v8 = vmul.f32 1.442695, %v3440_v37 }
0x2f06   :  { %v3476_v40 = vmul.f32 1.442695, %v3442_v54  ;;  %v3826_v41 = vsel %vm3794_vm10, %v3442_v54, 0.0  ;;  %v3480_v46 = vmul.f32 1.442695, %v3444_v36  ;;  %v3828_v54 = vsel %vm3796_vm12, %v3444_v36, 0.0 }
0x2f07   :  { %v3387_v9 = vpop.xlane.xlu0 %3386 }
0x2f08   :  { %3606 = vadd.xlane.f32.xlu1 %v3555_v23  ;;  %5038 = vpow2.f32 %v3476_v40  ;;  %v3445_v2 = vsub.f32 %v6710_v35, %v3387_v9  ;;  %v6874_v35 = vsub.f32 %v6315_v57, %v6515_v27  ;;  %v3389_v40 = vpop.xlane.xlu1 %3388  ;;  %v3478_v57 = vmul.f32 1.442695, %v3443_v28 }
0x2f09   :  { %3860 = vadd.xlane.f32.xlu0 %v3826_v41  ;;  %v6884_v27 = vsub.f32 %v6705_v56, %v3389_v40 }
0x2f0a   :  { %v3482_v4 = vmul.f32 1.442695, %v3445_v2  ;;  %v3829_v16 = vsel %vm3797_vm11, %v3445_v2, 0.0  ;;  %v3516_v2 = vmul.f32 1.442695, %v6591_v63  ;;  %vm3816_vm11 = vcmp.eq.s32.totalorder %v6289_v48, %v6816_v32 }
0x2f0b   :  { %v5037_v7 = vpop.eup %5036  ;;  %v3391_v51 = vpop.xlane.xlu0 %3390  ;;  %v3830_v56 = vsel %vm3798_vm14, %v6884_v27, 0.0 }
0x2f0c   :  { %3608 = vadd.xlane.f32.xlu1 %v3556_v5  ;;  %5040 = vpow2.f32 %v3482_v4  ;;  %v3447_v25 = vsub.f32 %v6728_v62, %v3391_v51  ;;  %v3537_v29 = vsel %vm3343_vm3, %v5037_v7, 0.0  ;;  %v3514_v62 = vmul.f32 1.442695, %v6874_v35  ;;  %v3393_v5 = vpop.xlane.xlu1 %3392 }
0x2f0d   :  { %3866 = vadd.xlane.f32.xlu0 %v3829_v16  ;;  %5042 = vpow2.f32 %v3480_v46  ;;  %v3448_v11 = vsub.f32 %v6723_v60, %v3393_v5 }
0x2f0e   :  { %v3486_v58 = vmul.f32 1.442695, %v3447_v25  ;;  %5044 = vpow2.f32 %v3472_v8  ;;  %v3831_v23 = vsel %vm3799_vm13, %v3447_v25, 0.0  ;;  %v6917_v8 = vsub.f32 %v6325_v15, %v6530_v20 }
0x2f0f   :  { %v3395_v37 = vpop.xlane.xlu0 %3394  ;;  %v3832_v60 = vsel %vm3800_vm0, %v3448_v11, 0.0  ;;  %v6927_v15 = vsub.f32 %v6446_v43, %v6598_v21 }
0x2f10   :  { %3570 = vadd.xlane.f32.xlu1 %v3537_v29  ;;  %5046 = vpow2.f32 %v3486_v58  ;;  %v6892_v33 = vsub.f32 %v6740_v12, %v3395_v37  ;;  %v3522_v58 = vmul.f32 1.442695, %v6917_v8  ;;  %v6935_v37 = vsub.f32 %v6330_v22, %v6538_v0 }
0x2f11   :  { %3864 = vadd.xlane.f32.xlu0 %v3828_v54  ;;  %5048 = vpow2.f32 %v3514_v62  ;;  %v3524_v54 = vmul.f32 1.442695, %v6927_v15  ;;  %v6944_v62 = vsub.f32 %v6452_v10, %v6600_v61 }
0x2f12   :  { %5050 = vpow2.f32 %v3478_v57  ;;  %v3833_v46 = vsel %vm3801_vm15, %v6892_v33, 0.0  ;;  %v3526_v57 = vmul.f32 1.442695, %v6935_v37 }
0x2f13   :  { %v3399_v26 = vpop.xlane.xlu0 %3398 }
0x2f14   :  { %v3451_v41 = vsub.f32 %v6745_v39, %v3399_v26  ;;  %v6897_v39 = vsub.f32 %v6320_v49, %v6523_v38  ;;  %v6908_v49 = vsub.f32 %v6440_v31, %v6596_v19  ;;  %v6951_v26 = vsub.f32 %v7526_v13, %v6547_v3 }
0x2f15   :  { %3870 = vadd.xlane.f32.xlu0 %v3831_v23  ;;  %v5039_v55 = vpop.eup %5038  ;;  %v3528_v23 = vmul.f32 1.442695, %v6944_v62  ;;  %v3490_v3 = vmul.f32 1.442695, %v6892_v33 }
0x2f16   :  { %v3494_v36 = vmul.f32 1.442695, %v3451_v41  ;;  %v3538_v9 = vsel %vm3343_vm3, %v5039_v55, 0.0  ;;  %v3518_v16 = vmul.f32 1.442695, %v6897_v39  ;;  %v3835_v40 = vsel %vm3803_vm1, %v3451_v41, 0.0 }
0x2f17   :  { %3572 = vadd.xlane.f32.xlu1 %v3538_v9  ;;  %v3520_v31 = vmul.f32 1.442695, %v6908_v49  ;;  %v3484_v41 = vmul.f32 1.442695, %v6884_v27  ;;  %v3530_v55 = vmul.f32 1.442695, %v6951_v26 }
0x2f18   :  { %5052 = vpow2.f32 %v3494_v36  ;;  %v7527_v36 = vld [vmem:[#allocation23_spill] sm:$0xff] }
0x2f19   :  { %3868 = vadd.xlane.f32.xlu0 %v3830_v56  ;;  %v5041_v28 = vpop.eup %5040  ;;  %5054 = vpow2.f32 %v3516_v2  ;;  %v6960_v9 = vsub.f32 %v7527_v36, %v6853_v30  ;;  %v7528_v2 = vld [vmem:[#allocation22_spill] sm:$0xff] }
0x2f1a   :  { %v3541_v50 = vsel %vm3343_vm3, %v5041_v28, 0.0  ;;  %v5043_v12 = vpop.eup %5042  ;;  %5056 = vpow2.f32 %v3518_v16 }
0x2f1b   :  { %3578 = vadd.xlane.f32.xlu1 %v3541_v50  ;;  %v5045_v4 = vpop.eup %5044  ;;  %v3540_v38 = vsel %vm3343_vm3, %v5043_v12, 0.0  ;;  %5058 = vpow2.f32 %v3520_v31  ;;  %v3532_v27 = vmul.f32 1.442695, %v6960_v9  ;;  %v6968_v50 = vsub.f32 %v7528_v2, %v6841_v47  ;;  %v7529_v47 = vld [vmem:[#allocation8_spill] sm:$0xff] }
0x2f1c   :  { %v3536_v7 = vsel %vm3343_vm3, %v5045_v4, 0.0  ;;  %5060 = vpow2.f32 %v3522_v58  ;;  %v3488_v12 = vmul.f32 1.442695, %v3448_v11  ;;  %v6972_v4 = vpop.permute.xlu1 %3787  ;;  %vm3953_vm2 = vcmp.ne.s32.totalorder %v7529_v47, 0  ;;  %v7531_v11 = vld [vmem:[#allocation26_spill] sm:$0xff]  ;;  %v7532_v31 = vld [vmem:[#allocation16_spill] sm:$0xff] }
0x2f1d   :  { %3874 = vadd.xlane.f32.xlu0 %v3833_v46  ;;  %v5047_v63 = vpop.eup %5046  ;;  %5062 = vpow2.f32 %v3524_v54  ;;  %v3534_v33 = vmul.f32 1.442695, %v6968_v50  ;;  %vm3802_vm5 = vcmp.eq.s32.totalorder %v6289_v48, %v7532_v31 }
0x2f1e   :  { %v3543_v19 = vsel %vm3343_vm3, %v5047_v63, 0.0  ;;  %v5049_v51 = vpop.eup %5048  ;;  %5064 = vpow2.f32 %v3526_v57  ;;  %v7530_v63 = vld [vmem:[#allocation9_spill] sm:$0xff] }
0x2f1f   :  { %3576 = vadd.xlane.f32.xlu1 %v3540_v38  ;;  %v5051_v25 = vpop.eup %5050  ;;  %v3557_v20 = vsel %vm3343_vm3, %v5049_v51, 0.0  ;;  %5066 = vpow2.f32 %v3528_v23  ;;  %vm3952_vm4 = vcmp.ne.s32.totalorder %v7530_v63, 0 }
0x2f20   :  { %v3539_v29 = vsel %vm3343_vm3, %v5051_v25, 0.0  ;;  %5068 = vpow2.f32 %v3484_v41 }
0x2f21   :  { %3568 = vadd.xlane.f32.xlu0 %v3536_v7  ;;  %5070 = vpow2.f32 %v3530_v55 }
0x2f22   :  { %5072 = vpow2.f32 %v3490_v3 }
0x2f23   :  { %3582 = vadd.xlane.f32.xlu1 %v3543_v19  ;;  %5074 = vpow2.f32 %v3532_v27  ;;  %v5165_v27 = vld [vmem:[%s7456_s6 + $0x20] sm:$0xff] }
0x2f24   :  { %5076 = vpow2.f32 %v3488_v12  ;;  %vm3956_vm9 = vcmp.ne.s32.totalorder %v5165_v27, 0 }
0x2f25   :  { %3872 = vadd.xlane.f32.xlu0 %v3832_v60  ;;  %v5053_v24 = vpop.eup %5052  ;;  %5078 = vpow2.f32 %v3534_v33 }
0x2f26   :  { %v3547_v43 = vsel %vm3343_vm3, %v5053_v24, 0.0  ;;  %v5055_v21 = vpop.eup %5054 }
0x2f27   :  { %3610 = vadd.xlane.f32.xlu1 %v3557_v20  ;;  %v3558_v22 = vsel %vm3343_vm3, %v5055_v21, 0.0  ;;  %v5057_v0 = vpop.eup %5056  ;;  %v5197_v20 = vmov 0.0  }
0x2f28   :  { %v3559_v10 = vsel %vm3343_vm3, %v5057_v0, 0.0  ;;  %v5059_v61 = vpop.eup %5058  ;;  %v6985_v24 = vsel %vm3953_vm2, 1.0, %v5197_v20  ;;  %v7024_v33 = vsel %vm3956_vm9, 1.0, %v5197_v20  ;;  %vm3820_vm2 = vcmp.eq.s32.totalorder %v6289_v48, %v6836_v44 }
0x2f29   :  { %3574 = vadd.xlane.f32.xlu0 %v3539_v29  ;;  %v5061_v56 = vpop.eup %5060  ;;  %v3560_v28 = vsel %vm3343_vm3, %v5059_v61, 0.0  ;;  %v6988_v29 = vsel %vm3952_vm4, 1.0, %v5197_v20  ;;  %v4154_v54 = vsel %vm4080_vm6, %v6985_v24, 0.0  ;;  %vm3822_vm4 = vcmp.eq.s32.totalorder %v6289_v48, %v6972_v4  ;;  %v7541_v4 = vld [vmem:[#allocation21_spill] sm:$0xff] }
0x2f2a   :  { %v3561_v30 = vsel %vm3343_vm3, %v5061_v56, 0.0  ;;  %v5063_v46 = vpop.eup %5062  ;;  %v4153_v21 = vsel %vm4080_vm6, %v6988_v29, 0.0  ;;  %vm3810_vm9 = vcmp.eq.s32.totalorder %v6289_v48, %v6777_v14 }
0x2f2b   :  { %3590 = vadd.xlane.f32.xlu1 %v3547_v43  ;;  %v3562_v5 = vsel %vm3343_vm3, %v5063_v46, 0.0  ;;  %v5065_v16 = vpop.eup %5064  ;;  %v5164_v43 = vld [vmem:[%s7456_s6 + $0x10] sm:$0xff]  ;;  %v4155_v23 = vadd.f32 %v4154_v54, %v4153_v21 }
0x2f2c   :  { %v5067_v19 = vpop.eup %5066  ;;  %v3563_v25 = vsel %vm3343_vm3, %v5065_v16, 0.0  ;;  %vm3954_vm7 = vcmp.ne.s32.totalorder %v5164_v43, 0  ;;  %v4160_v16 = vsel %vm4080_vm6, %v7024_v33, 0.0  ;;  %v7536_v43 = vld [vmem:[#allocation20_spill] sm:$0xff] }
0x2f2d   :  { %3878 = vadd.xlane.f32.xlu0 %v3835_v40  ;;  %v5069_v58 = vpop.eup %5068  ;;  %v7002_v13 = vsel %vm3954_vm7, 1.0, %v5197_v20  ;;  %vm3806_vm14 = vcmp.eq.s32.totalorder %v6289_v48, %v7536_v43  ;;  %v5172_v43 = vld [vmem:[%s7456_s6 + $0x80] sm:$0xff] }
0x2f2e   :  { %v5071_v40 = vpop.eup %5070  ;;  %v3542_v57 = vsel %vm3343_vm3, %v5069_v58, 0.0  ;;  %v4156_v41 = vsel %vm4080_vm6, %v7002_v13, 0.0 }
0x2f2f   :  { %3612 = vadd.xlane.f32.xlu1 %v3558_v22  ;;  %v3564_v22 = vsel %vm3343_vm3, %v5067_v19, 0.0  ;;  %v5073_v0 = vpop.eup %5072  ;;  %v3565_v36 = vsel %vm3343_vm3, %v5071_v40, 0.0  ;;  %v7535_v19 = vld [vmem:[#allocation19_spill] sm:$0xff]  ;;  %v7537_v40 = vld [vmem:[#allocation12_spill] sm:$0xff] }
0x2f30   :  { %v5075_v61 = vpop.eup %5074  ;;  %v3545_v55 = vsel %vm3343_vm3, %v5073_v0, 0.0  ;;  %vm3805_vm12 = vcmp.eq.s32.totalorder %v6289_v48, %v7535_v19  ;;  %vm3959_vm15 = vcmp.ne.s32.totalorder %v7537_v40, 0 }
0x2f31   :  { %v5077_v56 = vpop.eup %5076  ;;  %v3837_v58 = vsel %vm3805_vm12, %v6783_v1, 0.0  ;;  %v5167_v1 = vld [vmem:[%s7456_s6 + $0x40] sm:$0xff] }
0x2f32   :  { %v3544_v12 = vsel %vm3343_vm3, %v5077_v56, 0.0  ;;  %v5079_v46 = vpop.eup %5078  ;;  %vm3960_vm0 = vcmp.ne.s32.totalorder %v5167_v1, 0  ;;  %v7540_v56 = vld [vmem:[#allocation27_spill] sm:$0xff] }
0x2f33   :  { %3614 = vadd.xlane.f32.xlu1 %v3559_v10  ;;  %v7533_v10 = vld [vmem:[#allocation10_spill] sm:$0xff] }
0x2f34   :  { %vm3955_vm8 = vcmp.ne.s32.totalorder %v7533_v10, 0 }
0x2f35   :  { %v7012_v3 = vsel %vm3955_vm8, 1.0, %v5197_v20  ;;  %vm3809_vm8 = vcmp.eq.s32.totalorder %v6289_v48, %v7540_v56 }
0x2f36   :  { %v4158_v2 = vsel %vm4080_vm6, %v7012_v3, 0.0 }
0x2f37   :  { %3616 = vadd.xlane.f32.xlu1 %v3560_v28  ;;  %v4157_v28 = vadd.f32 %v4156_v41, %v4155_v23  ;;  %v7072_v41 = vsel %vm3960_vm0, 1.0, %v5197_v20 }
0x2f38   :  { %v4168_v44 = vsel %vm4080_vm6, %v7072_v41, 0.0 }
0x2f3b   :  { %3618 = vadd.xlane.f32.xlu1 %v3561_v30  ;;  %v3566_v30 = vsel %vm3343_vm3, %v5075_v61, 0.0  ;;  %v7539_v61 = vld [vmem:[#allocation13_spill] sm:$0xff] }
0x2f3f   :  { %3620 = vadd.xlane.f32.xlu1 %v3562_v5  ;;  %v4159_v5 = vadd.f32 %v4158_v2, %v4157_v28  ;;  %v3841_v2 = vsel %vm3809_vm8, %v6804_v34, 0.0 }
0x2f40   :  { %v3397_v38 = vpop.xlane.xlu1 %3396 }
0x2f41   :  { %v3450_v7 = vsub.f32 %v7531_v11, %v3397_v38  ;;  %v7534_v38 = vld [vmem:[#allocation11_spill] sm:$0xff]  ;;  %v3567_v11 = vsel %vm3343_vm3, %v5079_v46, 0.0  ;;  %v4161_v31 = vadd.f32 %v4160_v16, %v4159_v5  ;;  %v3842_v46 = vsel %vm3810_vm9, %v6812_v52, 0.0 }
0x2f42   :  { %vm3957_vm10 = vcmp.ne.s32.totalorder %v7534_v38, 0  ;;  %v7543_v16 = vld [vmem:[#allocation15_spill] sm:$0xff] }
0x2f43   :  { %v3492_v51 = vmul.f32 1.442695, %v3450_v7  ;;  %v3834_v60 = vsel %vm3802_vm5, %v3450_v7, 0.0  ;;  %3622 = vadd.xlane.f32.xlu1 %v3563_v25  ;;  %v7034_v7 = vsel %vm3957_vm10, 1.0, %v5197_v20  ;;  %v3848_v25 = vsel %vm3816_vm11, %v6908_v49, 0.0 }
0x2f44   :  { %3876 = vadd.xlane.f32.xlu0 %v3834_v60  ;;  %v4162_v60 = vsel %vm4080_vm6, %v7034_v7, 0.0  ;;  %vm3961_vm5 = vcmp.ne.s32.totalorder %v7539_v61, 0  ;;  %vm3811_vm11 = vcmp.eq.s32.totalorder %v6289_v48, %v6779_v59  ;;  %vm3964_vm12 = vcmp.ne.s32.totalorder %v7543_v16, 0 }
0x2f45   :  { %5080 = vpow2.f32 %v3492_v51  ;;  %v5166_v51 = vld [vmem:[%s7456_s6 + $0x30] sm:$0xff]  ;;  %v4163_v32 = vadd.f32 %v4162_v60, %v4161_v31  ;;  %v3843_v38 = vsel %vm3811_vm11, %v6820_v18, 0.0  ;;  %v5171_v60 = vld [vmem:[%s7456_s6 + $0x78] sm:$0xff] }
0x2f46   :  { %vm3958_vm13 = vcmp.ne.s32.totalorder %v5166_v51, 0  ;;  %v5170_v18 = vld [vmem:[%s7456_s6 + $0x70] sm:$0xff]  ;;  %vm3967_vm0 = vcmp.ne.s32.totalorder %v5171_v60, 0  ;;  %v7548_v60 = vld [vmem:[#allocation32_spill] sm:$0xff] }
0x2f47   :  { %3624 = vadd.xlane.f32.xlu1 %v3564_v22  ;;  %v7048_v54 = vsel %vm3958_vm13, 1.0, %v5197_v20  ;;  %v7065_v22 = vsel %vm3959_vm15, 1.0, %v5197_v20  ;;  %vm3812_vm13 = vcmp.eq.s32.totalorder %v6289_v48, %v6785_v6  ;;  %v7544_v6 = vld [vmem:[#allocation29_spill] sm:$0xff] }
0x2f48   :  { %3580 = vadd.xlane.f32.xlu0 %v3542_v57  ;;  %v4164_v21 = vsel %vm4080_vm6, %v7048_v54, 0.0  ;;  %v3838_v57 = vsel %vm3806_vm14, %v6790_v45, 0.0  ;;  %v4166_v23 = vsel %vm4080_vm6, %v7065_v22, 0.0  ;;  %vm3966_vm14 = vcmp.ne.s32.totalorder %v5170_v18, 0 }
0x2f49   :  { %v4165_v0 = vadd.f32 %v4164_v21, %v4163_v32  ;;  %v3844_v31 = vsel %vm3812_vm13, %v6830_v42, 0.0  ;;  %vm3813_vm15 = vcmp.eq.s32.totalorder %v6289_v48, %v7544_v6  ;;  %v7139_v42 = vsel %vm3966_vm14, 1.0, %v5197_v20 }
0x2f4a   :  { %v3845_v21 = vsel %vm3813_vm15, %v6874_v35, 0.0  ;;  %v4180_v40 = vsel %vm4080_vm6, %v7139_v42, 0.0 }
0x2f4b   :  { %3626 = vadd.xlane.f32.xlu1 %v3565_v36  ;;  %v4167_v10 = vadd.f32 %v4166_v23, %v4165_v0 }
0x2f4c   :  { %3586 = vadd.xlane.f32.xlu0 %v3545_v55  ;;  %v5168_v55 = vld [vmem:[%s7456_s6 + $0x50] sm:$0xff] }
0x2f4d   :  { %vm3962_vm7 = vcmp.ne.s32.totalorder %v5168_v55, 0  ;;  %v4169_v36 = vadd.f32 %v4168_v44, %v4167_v10  ;;  %v7545_v10 = vld [vmem:[#allocation30_spill] sm:$0xff] }
0x2f4e   :  { %v7094_v27 = vsel %vm3962_vm7, 1.0, %v5197_v20  ;;  %v7546_v44 = vld [vmem:[#allocation18_spill] sm:$0xff] }
0x2f4f   :  { %3628 = vadd.xlane.f32.xlu1 %v3566_v30  ;;  %v7542_v30 = vld [vmem:[#allocation14_spill] sm:$0xff] }
0x2f50   :  { %3584 = vadd.xlane.f32.xlu0 %v3544_v12  ;;  %vm3963_vm10 = vcmp.ne.s32.totalorder %v7542_v30, 0 }
0x2f51   :  { %v7106_v5 = vsel %vm3963_vm10, 1.0, %v5197_v20 }
0x2f52   :  { %v5081_v47 = vpop.eup %5080  ;;  %v4174_v14 = vsel %vm4080_vm6, %v7106_v5, 0.0 }
0x2f53   :  { %v3546_v63 = vsel %vm3343_vm3, %v5081_v47, 0.0  ;;  %3630 = vadd.xlane.f32.xlu1 %v3567_v11  ;;  %vm3818_vm3 = vcmp.eq.s32.totalorder %v6289_v48, %v6834_v17  ;;  %v7538_v17 = vld [vmem:[#allocation17_spill] sm:$0xff]  ;;  %v7113_v47 = vsel %vm3964_vm12, 1.0, %v5197_v20  ;;  %v7122_v11 = vpop.permute.xlu1 %3790  ;;  %vm3819_vm12 = vcmp.eq.s32.totalorder %v6289_v48, %v7548_v60 }
0x2f54   :  { %3588 = vadd.xlane.f32.xlu0 %v3546_v63  ;;  %v3850_v49 = vsel %vm3818_vm3, %v6927_v15, 0.0  ;;  %vm3807_vm1 = vcmp.eq.s32.totalorder %v6289_v48, %v7538_v17  ;;  %v3852_v15 = vsel %vm3820_vm2, %v6944_v62, 0.0  ;;  %v7086_v62 = vsel %vm3961_vm5, 1.0, %v5197_v20  ;;  %v5169_v63 = vld [vmem:[%s7456_s6 + $0x68] sm:$0xff] }
0x2f55   :  { %v3839_v45 = vsel %vm3807_vm1, %v6796_v53, 0.0  ;;  %v3854_v53 = vsel %vm3822_vm4, %v6960_v9, 0.0  ;;  %v4170_v28 = vsel %vm4080_vm6, %v7086_v62, 0.0  ;;  %v4172_v9 = vsel %vm4080_vm6, %v7094_v27, 0.0 }
0x2f56   :  { %v4171_v12 = vadd.f32 %v4170_v28, %v4169_v36  ;;  %v4176_v52 = vsel %vm4080_vm6, %v7113_v47, 0.0  ;;  %vm3965_vm3 = vcmp.ne.s32.totalorder %v5169_v63, 0  ;;  %vm3968_vm1 = vcmp.ne.s32.totalorder %v5172_v43, 0  ;;  %v5179_v43 = vld [vmem:[%s7456_s6 + $0xc0] sm:$0xff] }
0x2f57   :  { %3904 = vadd.xlane.f32.xlu1 %v3848_v25  ;;  %v7131_v19 = vsel %vm3965_vm3, 1.0, %v5197_v20  ;;  %v7158_v35 = vsel %vm3968_vm1, 1.0, %v5197_v20  ;;  %vm3815_vm5 = vcmp.eq.s32.totalorder %v6289_v48, %v7545_v10  ;;  %vm3976_vm13 = vcmp.ne.s32.totalorder %v5179_v43, 0  ;;  %v7553_v43 = vld [vmem:[#allocation25_spill] sm:$0xff] }
0x2f58   :  { %3882 = vadd.xlane.f32.xlu0 %v3837_v58  ;;  %v4173_v34 = vadd.f32 %v4172_v9, %v4171_v12  ;;  %v4178_v58 = vsel %vm4080_vm6, %v7131_v19, 0.0  ;;  %v5176_v12 = vld [vmem:[%s7456_s6 + $0xa0] sm:$0xff]  ;;  %v3847_v9 = vsel %vm3815_vm5, %v6897_v39, 0.0  ;;  %v7240_v10 = vsel %vm3976_vm13, 1.0, %v5197_v20 }
0x2f59   :  { %vm3972_vm8 = vcmp.ne.s32.totalorder %v5176_v12, 0  ;;  %vm3823_vm1 = vcmp.eq.s32.totalorder %v6289_v48, %v7122_v11  ;;  %vm3981_vm5 = vcmp.ne.s32.totalorder %v7553_v43, 0 }
0x2f5a   :  { %v4175_v59 = vadd.f32 %v4174_v14, %v4173_v34  ;;  %v5177_v14 = vld [vmem:[%s7456_s6 + $0xa8] sm:$0xff]  ;;  %v7202_v63 = vsel %vm3972_vm8, 1.0, %v5197_v20 }
0x2f5b   :  { %3908 = vadd.xlane.f32.xlu1 %v3850_v49  ;;  %v7148_v49 = vsel %vm3967_vm0, 1.0, %v5197_v20  ;;  %vm3973_vm10 = vcmp.ne.s32.totalorder %v5177_v14, 0 }
0x2f5c   :  { %3884 = vadd.xlane.f32.xlu0 %v3838_v57  ;;  %v4177_v51 = vadd.f32 %v4176_v52, %v4175_v59  ;;  %v5173_v57 = vld [vmem:[%s7456_s6 + $0x88] sm:$0xff]  ;;  %v4182_v0 = vsel %vm4080_vm6, %v7148_v49, 0.0 }
0x2f5d   :  { %vm3969_vm2 = vcmp.ne.s32.totalorder %v5173_v57, 0 }
0x2f5e   :  { %v4179_v32 = vadd.f32 %v4178_v58, %v4177_v51  ;;  %v7169_v55 = vsel %vm3969_vm2, 1.0, %v5197_v20  ;;  %v4192_v51 = vsel %vm4080_vm6, %v7202_v63, 0.0 }
0x2f5f   :  { %3912 = vadd.xlane.f32.xlu1 %v3852_v15  ;;  %v4184_v15 = vsel %vm4080_vm6, %v7158_v35, 0.0  ;;  %v4186_v56 = vsel %vm4080_vm6, %v7169_v55, 0.0 }
0x2f60   :  { %3886 = vadd.xlane.f32.xlu0 %v3839_v45  ;;  %v4181_v1 = vadd.f32 %v4180_v40, %v4179_v32  ;;  %v5174_v45 = vld [vmem:[%s7456_s6 + $0x90] sm:$0xff]  ;;  %v7215_v32 = vsel %vm3973_vm10, 1.0, %v5197_v20 }
0x2f61   :  { %vm3970_vm4 = vcmp.ne.s32.totalorder %v5174_v45, 0  ;;  %v4194_v40 = vsel %vm4080_vm6, %v7215_v32, 0.0  ;;  %v3851_v45 = vsel %vm3819_vm12, %v6935_v37, 0.0  ;;  %v5182_v37 = vld [vmem:[%s7456_s6 + $0xc8] sm:$0xff] }
0x2f62   :  { %v4183_v23 = vadd.f32 %v4182_v0, %v4181_v1  ;;  %vm3977_vm0 = vcmp.ne.s32.totalorder %v5182_v37, 0 }
0x2f63   :  { %3916 = vadd.xlane.f32.xlu1 %v3854_v53  ;;  %v5175_v53 = vld [vmem:[%s7456_s6 + $0x98] sm:$0xff] }
0x2f64   :  { %3888 = vadd.xlane.f32.xlu0 %v7541_v4  ;;  %v4185_v61 = vadd.f32 %v4184_v15, %v4183_v23  ;;  %vm3971_vm7 = vcmp.ne.s32.totalorder %v5175_v53, 0  ;;  %v3785_v4 = vpop.permute.xlu0 %3784  ;;  %v5181_v53 = vld [vmem:[%s7456_s6 + $0xd0] sm:$0xff] }
0x2f65   :  { %v7190_v16 = vsel %vm3971_vm7, 1.0, %v5197_v20  ;;  %vm3821_vm14 = vcmp.eq.s32.totalorder %v6289_v48, %v3785_v4  ;;  %vm3978_vm15 = vcmp.ne.s32.totalorder %v5181_v53, 0  ;;  %v4200_v4 = vsel %vm4080_vm6, %v7240_v10, 0.0 }
0x2f66   :  { %v4187_v28 = vadd.f32 %v4186_v56, %v4185_v61  ;;  %v4190_v39 = vsel %vm4080_vm6, %v7190_v16, 0.0  ;;  %v7301_v53 = vsel %vm3981_vm5, 1.0, %v5197_v20 }
0x2f67   :  { %7556 = vst [vmem:[#allocation26_spill] sm:$0xff] %v7301_v53 }
0x2f68   :  { %3890 = vadd.xlane.f32.xlu0 %v3841_v2  ;;  %v7179_v2 = vsel %vm3970_vm4, 1.0, %v5197_v20  ;;  %v7199_v59 = vpop.xlane.xlu0 %3880 }
0x2f69   :  { %v4188_v30 = vsel %vm4080_vm6, %v7179_v2, 0.0 }
0x2f6a   :  { %v4189_v34 = vadd.f32 %v4188_v30, %v4187_v28  ;;  %v3853_v30 = vsel %vm3821_vm14, %v6951_v26, 0.0  ;;  %v5184_v26 = vld [vmem:[%s7456_s6 + $0xe0] sm:$0xff] }
0x2f6b   :  { %vm3980_vm4 = vcmp.ne.s32.totalorder %v5184_v26, 0 }
0x2f6c   :  { %3892 = vadd.xlane.f32.xlu0 %v3842_v46  ;;  %v7547_v46 = vld [vmem:[#allocation31_spill] sm:$0xff]  ;;  %v4191_v52 = vadd.f32 %v4190_v39, %v4189_v34  ;;  %v7266_v34 = vsel %vm3977_vm0, 1.0, %v5197_v20  ;;  %v5183_v39 = vld [vmem:[%s7456_s6 + $0xd8] sm:$0xff] }
0x2f6d   :  { %vm3817_vm9 = vcmp.eq.s32.totalorder %v6289_v48, %v7547_v46  ;;  %v7263_v46 = vsel %vm3978_vm15, 1.0, %v5197_v20  ;;  %7550 = vst [vmem:[#allocation23_spill] sm:$0xff] %v7266_v34  ;;  %vm3979_vm2 = vcmp.ne.s32.totalorder %v5183_v39, 0  ;;  %v4202_v11 = vsel %vm4080_vm6, %v7266_v34, 0.0  ;;  %v7557_v39 = vld [vmem:[#allocation28_spill] sm:$0xff] }
0x2f6e   :  { %v3849_v6 = vsel %vm3817_vm9, %v6917_v8, 0.0  ;;  %v4193_v58 = vadd.f32 %v4192_v51, %v4191_v52  ;;  %v5180_v8 = vld [vmem:[%s7456_s6 + $0xb8] sm:$0xff]  ;;  %7549 = vst [vmem:[#allocation7_spill] sm:$0xff] %v7263_v46  ;;  %v4204_v48 = vsel %vm4080_vm6, %v7263_v46, 0.0  ;;  %v7284_v51 = vsel %vm3980_vm4, 1.0, %v5197_v20 }
0x2f6f   :  { %vm3975_vm3 = vcmp.ne.s32.totalorder %v5180_v8, 0  ;;  %7551 = vst [vmem:[#allocation22_spill] sm:$0xff] %v7284_v51  ;;  %v7287_v60 = vsel %vm3979_vm2, 1.0, %v5197_v20  ;;  %vm3983_vm8 = vcmp.ne.s32.totalorder %v7557_v39, 0 }
0x2f70   :  { %3894 = vadd.xlane.f32.xlu0 %v3843_v38  ;;  %v4195_v0 = vadd.f32 %v4194_v40, %v4193_v58  ;;  %v7243_v61 = vsel %vm3975_vm3, 1.0, %v5197_v20  ;;  %7552 = vst [vmem:[#allocation8_spill] sm:$0xff] %v7287_v60  ;;  %v4208_v40 = vsel %vm4080_vm6, %v7284_v51, 0.0  ;;  %v7313_v26 = vsel %vm3983_vm8, 1.0, %v5197_v20 }
0x2f71   :  { %v4198_v28 = vsel %vm4080_vm6, %v7243_v61, 0.0  ;;  %7558 = vst [vmem:[#allocation16_spill] sm:$0xff] %v7313_v26 }
0x2f74   :  { %3896 = vadd.xlane.f32.xlu0 %v3844_v31  ;;  %v5178_v31 = vld [vmem:[%s7456_s6 + $0xb0] sm:$0xff] }
0x2f75   :  { %v3593_v25 = vpop.xlane.xlu1 %3592  ;;  %vm3974_vm11 = vcmp.ne.s32.totalorder %v5178_v31, 0 }
0x2f76   :  { %5082 = vlog2.f32 %v3593_v25  ;;  %v7233_v23 = vsel %vm3974_vm11, 1.0, %v5197_v20 }
0x2f77   :  { %v4196_v15 = vsel %vm4080_vm6, %v7233_v23, 0.0 }
0x2f78   :  { %3898 = vadd.xlane.f32.xlu0 %v3845_v21 }
0x2f79   :  { %v7153_v17 = vpop.xlane.xlu1 %3594 }
0x2f7c   :  { %3900 = vadd.xlane.f32.xlu0 %v7546_v44  ;;  %v4197_v44 = vadd.f32 %v4196_v15, %v4195_v0  ;;  %v7554_v0 = vld [vmem:[#allocation24_spill] sm:$0xff] }
0x2f7d   :  { %v7174_v36 = vpop.xlane.xlu1 %3596  ;;  %vm3982_vm7 = vcmp.ne.s32.totalorder %v7554_v0, 0 }
0x2f80   :  { %3902 = vadd.xlane.f32.xlu0 %v3847_v9  ;;  %v4199_v9 = vadd.f32 %v4198_v28, %v4197_v44  ;;  %v7298_v44 = vsel %vm3982_vm7, 1.0, %v5197_v20  ;;  %v4210_v28 = vsel %vm4080_vm6, %v7301_v53, 0.0 }
0x2f81   :  { %v7195_v38 = vpop.xlane.xlu1 %3598  ;;  %7555 = vst [vmem:[#allocation9_spill] sm:$0xff] %v7298_v44 }
0x2f82   :  { %v4201_v14 = vadd.f32 %v4200_v4, %v4199_v9  ;;  %v4212_v4 = vsel %vm4080_vm6, %v7298_v44, 0.0 }
0x2f83   :  { %v5083_v18 = vpop.eup %5082 }
0x2f84   :  { %v7212_v25 = vmul.f32 0.6931472, %v5083_v18  ;;  %3906 = vadd.xlane.f32.xlu0 %v3849_v6  ;;  %v4203_v31 = vadd.f32 %v4202_v11, %v4201_v14  ;;  %v3855_v6 = vsel %vm3823_vm1, %v6968_v50, 0.0  ;;  %v4206_v50 = vsel %vm4080_vm6, %v7287_v60, 0.0 }
0x2f85   :  { %v7223_v21 = vpop.xlane.xlu1 %3600  ;;  %v4214_v11 = vsel %vm4080_vm6, %v7313_v26, 0.0 }
0x2f86   :  { %v7229_v57 = vpop.xlane.xlu0 %3858  ;;  %v4205_v58 = vadd.f32 %v4204_v48, %v4203_v31 }
0x2f88   :  { %3910 = vadd.xlane.f32.xlu0 %v3851_v45  ;;  %v4207_v15 = vadd.f32 %v4206_v50, %v4205_v58 }
0x2f89   :  { %v7251_v56 = vpop.xlane.xlu1 %3602 }
0x2f8a   :  { %v7257_v12 = vpop.xlane.xlu0 %3856  ;;  %v4209_v37 = vadd.f32 %v4208_v40, %v4207_v15 }
0x2f8c   :  { %3914 = vadd.xlane.f32.xlu0 %v3853_v30  ;;  %v4211_v30 = vadd.f32 %v4210_v28, %v4209_v37 }
0x2f8d   :  { %v7274_v52 = vpop.xlane.xlu1 %3604 }
0x2f8e   :  { %v7280_v18 = vpop.xlane.xlu0 %3862  ;;  %v4213_v48 = vadd.f32 %v4212_v4, %v4211_v30 }
0x2f90   :  { %3918 = vadd.xlane.f32.xlu0 %v3855_v6  ;;  %v4215_v6 = vadd.f32 %v4214_v11, %v4213_v48 }
0x2f91   :  { %v7290_v8 = vpop.xlane.xlu1 %3606 }
0x2f92   :  { %v3861_v45 = vpop.xlane.xlu0 %3860 }
0x2f94   :  { %4216 = vadd.xlane.f32.xlu0 %v4215_v6 }
0x2f95   :  { %v7309_v14 = vpop.xlane.xlu1 %3608 }
0x2f96   :  { %v7307_v9 = vpop.xlane.xlu0 %3866 }
0x2f99   :  { %v3571_v58 = vpop.xlane.xlu1 %3570 }
0x2f9a   :  { %v7317_v31 = vpop.xlane.xlu0 %3864  ;;  %5084 = vlog2.f32 %v3571_v58 }
0x2f9e   :  { %v7319_v43 = vpop.xlane.xlu0 %3870 }
0x2fa0   :  { %v3573_v40 = vpop.xlane.xlu1 %3572 }
0x2fa1   :  { %5086 = vlog2.f32 %v3573_v40 }
0x2fa2   :  { %v7321_v0 = vpop.xlane.xlu0 %3868 }
0x2fa4   :  { %v3579_v50 = vpop.xlane.xlu1 %3578 }
0x2fa6   :  { %v7323_v15 = vpop.xlane.xlu0 %3874 }
0x2fa7   :  { %v5085_v28 = vpop.eup %5084 }
0x2fa8   :  { %v3577_v37 = vpop.xlane.xlu1 %3576  ;;  %v3635_v48 = vmul.f32 0.6931472, %v5085_v28 }
0x2faa   :  { %v3569_v20 = vpop.xlane.xlu0 %3568  ;;  %v3921_v6 = vsub.f32 %v3635_v48, %v7229_v57 }
0x2fab   :  { %5088 = vlog2.f32 %v3569_v20 }
0x2fac   :  { %v3583_v30 = vpop.xlane.xlu1 %3582  ;;  %v4049_v40 = vmul.f32 %v6985_v24, %v3921_v6 }
0x2fae   :  { %v7325_v4 = vpop.xlane.xlu0 %3872  ;;  %v5087_v11 = vpop.eup %5086  ;;  %v4082_v34 = vsel %vm4080_vm6, %v4049_v40, 0.0 }
0x2faf   :  { %v3637_v26 = vmul.f32 0.6931472, %v5087_v11 }
0x2fb0   :  { %v7328_v1 = vpop.xlane.xlu1 %3610 }
0x2fb1   :  { %v3922_v20 = vsub.f32 %v3637_v26, %v3861_v45 }
0x2fb2   :  { %v3575_v39 = vpop.xlane.xlu0 %3574 }
0x2fb3   :  { %5090 = vlog2.f32 %v3575_v39  ;;  %v4050_v57 = vmul.f32 %v7002_v13, %v3922_v20 }
0x2fb4   :  { %v3591_v51 = vpop.xlane.xlu1 %3590  ;;  %5092 = vlog2.f32 %v3577_v37 }
0x2fb5   :  { %v4084_v24 = vsel %vm4080_vm6, %v4050_v57, 0.0  ;;  %5094 = vlog2.f32 %v3579_v50 }
0x2fb6   :  { %5096 = vlog2.f32 %v3583_v30 }
0x2fb8   :  { %v5089_v58 = vpop.eup %5088 }
0x2fb9   :  { %v3633_v53 = vmul.f32 0.6931472, %v5089_v58  ;;  %v7337_v58 = vpop.xlane.xlu1 %3612 }
0x2fbb   :  { %v3920_v44 = vsub.f32 %v3633_v53, %v7257_v12  ;;  %v7342_v53 = vpop.xlane.xlu0 %3878 }
0x2fbd   :  { %v4048_v60 = vmul.f32 %v6988_v29, %v3920_v44 }
0x2fbf   :  { %v4081_v28 = vsel %vm4080_vm6, %v4048_v60, 0.0  ;;  %v7344_v60 = vpop.xlane.xlu1 %3614 }
0x2fc0   :  { %v5091_v39 = vpop.eup %5090  ;;  %v4083_v46 = vadd.f32 %v4082_v34, %v4081_v28 }
0x2fc1   :  { %v3639_v48 = vmul.f32 0.6931472, %v5091_v39  ;;  %v5093_v26 = vpop.eup %5092 }
0x2fc2   :  { %v4085_v45 = vadd.f32 %v4084_v24, %v4083_v46  ;;  %v3641_v46 = vmul.f32 0.6931472, %v5093_v26  ;;  %v5095_v37 = vpop.eup %5094 }
0x2fc3   :  { %v3923_v11 = vsub.f32 %v3639_v48, %v7280_v18  ;;  %v7348_v34 = vpop.xlane.xlu1 %3616  ;;  %v3643_v20 = vmul.f32 0.6931472, %v5095_v37  ;;  %v5097_v39 = vpop.eup %5096 }
0x2fc4   :  { %v3924_v28 = vsub.f32 %v3641_v46, %v7317_v31 }
0x2fc5   :  { %v4051_v12 = vmul.f32 %v7012_v3, %v3923_v11  ;;  %v3925_v30 = vsub.f32 %v3643_v20, %v7307_v9 }
0x2fc6   :  { %v4052_v48 = vmul.f32 %v7024_v33, %v3924_v28 }
0x2fc7   :  { %v4086_v29 = vsel %vm4080_vm6, %v4051_v12, 0.0  ;;  %v7350_v6 = vpop.xlane.xlu1 %3618 }
0x2fc8   :  { %v4087_v44 = vadd.f32 %v4086_v29, %v4085_v45  ;;  %v4053_v45 = vmul.f32 %v7034_v7, %v3925_v30 }
0x2fcb   :  { %v7353_v50 = vpop.xlane.xlu1 %3620 }
0x2fcd   :  { %v7346_v13 = vpop.xlane.xlu0 %3876 }
0x2fcf   :  { %v7359_v24 = vpop.xlane.xlu1 %3622 }
0x2fd1   :  { %v3581_v18 = vpop.xlane.xlu0 %3580 }
0x2fd2   :  { %5098 = vlog2.f32 %v3581_v18 }
0x2fd3   :  { %v7372_v7 = vpop.xlane.xlu1 %3624 }
0x2fd5   :  { %v3587_v3 = vpop.xlane.xlu0 %3586 }
0x2fd6   :  { %5100 = vlog2.f32 %v3587_v3 }
0x2fd7   :  { %5102 = vlog2.f32 %v3591_v51  ;;  %v3647_v51 = vmul.f32 0.6931472, %v5097_v39 }
0x2fd9   :  { %v3585_v40 = vpop.xlane.xlu0 %3584  ;;  %v3927_v33 = vsub.f32 %v3647_v51, %v7319_v43 }
0x2fda   :  { %5104 = vlog2.f32 %v3585_v40 }
0x2fdb   :  { %5106 = vlog2.f32 %v7153_v17  ;;  %v4088_v17 = vsel %vm4080_vm6, %v4052_v48, 0.0  ;;  %v4055_v40 = vmul.f32 %v7065_v22, %v3927_v33 }
0x2fdc   :  { %v4089_v18 = vadd.f32 %v4088_v17, %v4087_v44 }
0x2fdd   :  { %v3589_v57 = vpop.xlane.xlu0 %3588  ;;  %v4094_v30 = vsel %vm4080_vm6, %v4055_v40, 0.0 }
0x2fde   :  { %5108 = vlog2.f32 %v3589_v57 }
0x2fdf   :  { %v5099_v11 = vpop.eup %5098  ;;  %5110 = vlog2.f32 %v7174_v36 }
0x2fe0   :  { %v3645_v12 = vmul.f32 0.6931472, %v5099_v11  ;;  %5112 = vlog2.f32 %v7195_v38  ;;  %v4090_v38 = vsel %vm4080_vm6, %v4053_v45, 0.0 }
0x2fe1   :  { %v7361_v31 = vpop.xlane.xlu0 %3882  ;;  %5114 = vlog2.f32 %v7223_v21  ;;  %v4091_v43 = vadd.f32 %v4090_v38, %v4089_v18 }
0x2fe2   :  { %v3926_v9 = vsub.f32 %v3645_v12, %v7321_v0  ;;  %5116 = vlog2.f32 %v7251_v56 }
0x2fe3   :  { %v5101_v29 = vpop.eup %5100  ;;  %5118 = vlog2.f32 %v7274_v52  ;;  %v7383_v52 = vpop.xlane.xlu1 %3626 }
0x2fe4   :  { %v4054_v36 = vmul.f32 %v7048_v54, %v3926_v9  ;;  %v3651_v26 = vmul.f32 0.6931472, %v5101_v29  ;;  %v5103_v46 = vpop.eup %5102  ;;  %5120 = vlog2.f32 %v7290_v8 }
0x2fe5   :  { %v3885_v3 = vpop.xlane.xlu0 %3884  ;;  %v3655_v21 = vmul.f32 0.6931472, %v5103_v46  ;;  %5122 = vlog2.f32 %v7309_v14 }
0x2fe6   :  { %v4092_v37 = vsel %vm4080_vm6, %v4054_v36, 0.0  ;;  %v3929_v54 = vsub.f32 %v3651_v26, %v7323_v15  ;;  %5124 = vlog2.f32 %v7328_v1  ;;  %v7559_v26 = vsub.f32 %v7212_v25, %v7199_v59 }
0x2fe7   :  { %v5105_v0 = vpop.eup %5104  ;;  %v4093_v28 = vadd.f32 %v4092_v37, %v4091_v43  ;;  %v3931_v48 = vsub.f32 %v3655_v21, %v7342_v53  ;;  %v3629_v38 = vpop.xlane.xlu1 %3628  ;;  %5126 = vlog2.f32 %v7337_v58 }
0x2fe8   :  { %v3649_v44 = vmul.f32 0.6931472, %v5105_v0  ;;  %v5107_v39 = vpop.eup %5106  ;;  %v4057_v15 = vmul.f32 %v7086_v62, %v3929_v54  ;;  %5128 = vlog2.f32 %v7348_v34 }
0x2fe9   :  { %v3887_v20 = vpop.xlane.xlu0 %3886  ;;  %v4095_v45 = vadd.f32 %v4094_v30, %v4093_v28  ;;  %v3659_v17 = vmul.f32 0.6931472, %v5107_v39  ;;  %v4059_v53 = vmul.f32 %v7106_v5, %v3931_v48  ;;  %5130 = vlog2.f32 %v7344_v60 }
0x2fea   :  { %v3928_v56 = vsub.f32 %v3649_v44, %v7325_v4  ;;  %v4098_v33 = vsel %vm4080_vm6, %v4057_v15, 0.0  ;;  %5132 = vlog2.f32 %v7353_v50 }
0x2feb   :  { %v5109_v57 = vpop.eup %5108  ;;  %5134 = vlog2.f32 %v7350_v6 }
0x2fec   :  { %v5111_v22 = vpop.eup %5110  ;;  %v4056_v11 = vmul.f32 %v7072_v41, %v3928_v56  ;;  %v3653_v51 = vmul.f32 0.6931472, %v5109_v57  ;;  %v3933_v41 = vsub.f32 %v3659_v17, %v7361_v31  ;;  %v3631_v57 = vpop.xlane.xlu1 %3630  ;;  %5136 = vlog2.f32 %v7372_v7 }
0x2fed   :  { %v3889_v12 = vpop.xlane.xlu0 %3888  ;;  %v5113_v14 = vpop.eup %5112  ;;  %v3661_v29 = vmul.f32 0.6931472, %v5111_v22  ;;  %5138 = vlog2.f32 %v7359_v24 }
0x2fee   :  { %v4096_v8 = vsel %vm4080_vm6, %v4056_v11, 0.0  ;;  %v3930_v4 = vsub.f32 %v3653_v51, %v7346_v13  ;;  %v5115_v36 = vpop.eup %5114  ;;  %v4060_v13 = vmul.f32 %v7113_v47, %v7559_v26  ;;  %v3663_v0 = vmul.f32 0.6931472, %v5113_v14 }
0x2fef   :  { %v4097_v9 = vadd.f32 %v4096_v8, %v4095_v45  ;;  %v3934_v37 = vsub.f32 %v3661_v29, %v3885_v3  ;;  %v5117_v5 = vpop.eup %5116  ;;  %v4061_v31 = vmul.f32 %v7131_v19, %v3933_v41  ;;  %v3665_v21 = vmul.f32 0.6931472, %v5115_v36 }
0x2ff0   :  { %v4058_v62 = vmul.f32 %v7094_v27, %v3930_v4  ;;  %v4102_v27 = vsel %vm4080_vm6, %v4059_v53, 0.0  ;;  %v3935_v43 = vsub.f32 %v3663_v0, %v3887_v20  ;;  %v5119_v59 = vpop.eup %5118  ;;  %v4104_v25 = vsel %vm4080_vm6, %v4060_v13, 0.0  ;;  %v3905_v14 = vpop.xlane.xlu1 %3904 }
0x2ff1   :  { %v3891_v18 = vpop.xlane.xlu0 %3890  ;;  %v4099_v46 = vadd.f32 %v4098_v33, %v4097_v9  ;;  %v4062_v3 = vmul.f32 %v7139_v42, %v3934_v37  ;;  %v3936_v44 = vsub.f32 %v3665_v21, %v3889_v12  ;;  %v3667_v58 = vmul.f32 0.6931472, %v5117_v5  ;;  %v5121_v28 = vpop.eup %5120 }
0x2ff2   :  { %v4100_v1 = vsel %vm4080_vm6, %v4058_v62, 0.0  ;;  %v5123_v56 = vpop.eup %5122  ;;  %v4106_v19 = vsel %vm4080_vm6, %v4061_v31, 0.0  ;;  %v4063_v20 = vmul.f32 %v7148_v49, %v3935_v43  ;;  %v3669_v22 = vmul.f32 0.6931472, %v5119_v59 }
0x2ff3   :  { %v4101_v40 = vadd.f32 %v4100_v1, %v4099_v46  ;;  %v3937_v30 = vsub.f32 %v3667_v58, %v3891_v18  ;;  %v4108_v60 = vsel %vm4080_vm6, %v4062_v3, 0.0  ;;  %v4064_v42 = vmul.f32 %v7158_v35, %v3936_v44  ;;  %v5125_v12 = vpop.eup %5124 }
0x2ff4   :  { %v3671_v11 = vmul.f32 0.6931472, %v5121_v28  ;;  %v4110_v45 = vsel %vm4080_vm6, %v4063_v20, 0.0  ;;  %v3673_v4 = vmul.f32 0.6931472, %v5123_v56  ;;  %v5127_v33 = vpop.eup %5126  ;;  %5140 = vlog2.f32 %v3629_v38  ;;  %v3909_v1 = vpop.xlane.xlu1 %3908 }
0x2ff5   :  { %v3893_v54 = vpop.xlane.xlu0 %3892  ;;  %v4103_v47 = vadd.f32 %v4102_v27, %v4101_v40  ;;  %v4065_v49 = vmul.f32 %v7169_v55, %v3937_v30  ;;  %v4112_v35 = vsel %vm4080_vm6, %v4064_v42, 0.0  ;;  %v3675_v53 = vmul.f32 0.6931472, %v5125_v12  ;;  %v5129_v36 = vpop.eup %5128  ;;  %v7560_v12 = vld [vmem:[#allocation7_spill] sm:$0xff] }
0x2ff6   :  { %v3938_v15 = vsub.f32 %v3669_v22, %v3893_v54  ;;  %5142 = vlog2.f32 %v7383_v52  ;;  %v3677_v46 = vmul.f32 0.6931472, %v5127_v33  ;;  %v3681_v5 = vmul.f32 0.6931472, %v5129_v36 }
0x2ff7   :  { %v4105_v39 = vadd.f32 %v4104_v25, %v4103_v47  ;;  %v4114_v62 = vsel %vm4080_vm6, %v4065_v49, 0.0  ;;  %5144 = vlog2.f32 %v3631_v57 }
0x2ff8   :  { %v4066_v9 = vmul.f32 %v7179_v2, %v3938_v15  ;;  %v5131_v2 = vpop.eup %5130  ;;  %v3944_v43 = vsub.f32 %v3681_v5, %v3905_v14  ;;  %v3913_v28 = vpop.xlane.xlu1 %3912 }
0x2ff9   :  { %v3895_v34 = vpop.xlane.xlu0 %3894  ;;  %v4107_v48 = vadd.f32 %v4106_v19, %v4105_v39  ;;  %v5133_v27 = vpop.eup %5132  ;;  %v3679_v52 = vmul.f32 0.6931472, %v5131_v2 }
0x2ffa   :  { %v3939_v8 = vsub.f32 %v3671_v11, %v3895_v34  ;;  %v4116_v24 = vsel %vm4080_vm6, %v4066_v9, 0.0  ;;  %v5135_v54 = vpop.eup %5134  ;;  %v3685_v25 = vmul.f32 0.6931472, %v5133_v27  ;;  %v4072_v56 = vmul.f32 %v7240_v10, %v3944_v43  ;;  %v7561_v10 = vld [vmem:[#allocation23_spill] sm:$0xff]  ;;  %v7566_v43 = vld [vmem:[#allocation16_spill] sm:$0xff] }
0x2ffb   :  { %v4109_v51 = vadd.f32 %v4108_v60, %v4107_v48  ;;  %v5137_v58 = vpop.eup %5136  ;;  %v3683_v20 = vmul.f32 0.6931472, %v5135_v54 }
0x2ffc   :  { %v4067_v55 = vmul.f32 %v7190_v16, %v3939_v8  ;;  %v5139_v39 = vpop.eup %5138  ;;  %v3946_v19 = vsub.f32 %v3685_v25, %v3909_v1  ;;  %v3689_v22 = vmul.f32 0.6931472, %v5137_v58 }
0x2ffd   :  { %v3897_v17 = vpop.xlane.xlu0 %3896  ;;  %v4111_v50 = vadd.f32 %v4110_v45, %v4109_v51  ;;  %v3687_v15 = vmul.f32 0.6931472, %v5139_v39  ;;  %v4128_v51 = vsel %vm4080_vm6, %v4072_v56, 0.0 }
0x2ffe   :  { %v3940_v6 = vsub.f32 %v3673_v4, %v3897_v17  ;;  %v4118_v37 = vsel %vm4080_vm6, %v4067_v55, 0.0  ;;  %v4074_v45 = vmul.f32 %v7560_v12, %v3946_v19  ;;  %v3948_v49 = vsub.f32 %v3689_v22, %v3913_v28  ;;  %v3917_v4 = vpop.xlane.xlu1 %3916  ;;  %v7563_v55 = vld [vmem:[#allocation8_spill] sm:$0xff] }
0x2fff   :  { %v4113_v29 = vadd.f32 %v4112_v35, %v4111_v50 }
0x3000   :  { %v4068_v26 = vmul.f32 %v7202_v63, %v3940_v6 }
0x3001   :  { %v3899_v41 = vpop.xlane.xlu0 %3898  ;;  %v4115_v18 = vadd.f32 %v4114_v62, %v4113_v29  ;;  %v5141_v60 = vpop.eup %5140  ;;  %v4132_v29 = vsel %vm4080_vm6, %v4074_v45, 0.0 }
0x3002   :  { %v3941_v7 = vsub.f32 %v3675_v53, %v3899_v41  ;;  %v4120_v31 = vsel %vm4080_vm6, %v4068_v26, 0.0  ;;  %v3693_v50 = vmul.f32 0.6931472, %v5141_v60  ;;  %v7562_v53 = vld [vmem:[#allocation22_spill] sm:$0xff] }
0x3003   :  { %v4117_v13 = vadd.f32 %v4116_v24, %v4115_v18  ;;  %v5143_v11 = vpop.eup %5142  ;;  %v4076_v33 = vmul.f32 %v7562_v53, %v3948_v49 }
0x3004   :  { %v4069_v0 = vmul.f32 %v7215_v32, %v3941_v7  ;;  %v3691_v6 = vmul.f32 0.6931472, %v5143_v11  ;;  %v3950_v62 = vsub.f32 %v3693_v50, %v3917_v4  ;;  %v5145_v18 = vpop.eup %5144 }
0x3005   :  { %v3901_v16 = vpop.xlane.xlu0 %3900  ;;  %v4119_v38 = vadd.f32 %v4118_v37, %v4117_v13  ;;  %v4136_v13 = vsel %vm4080_vm6, %v4076_v33, 0.0  ;;  %v7565_v37 = vld [vmem:[#allocation26_spill] sm:$0xff] }
0x3006   :  { %v3942_v40 = vsub.f32 %v3677_v46, %v3901_v16  ;;  %v4122_v59 = vsel %vm4080_vm6, %v4069_v0, 0.0  ;;  %v7564_v46 = vld [vmem:[#allocation9_spill] sm:$0xff]  ;;  %v3695_v16 = vmul.f32 0.6931472, %v5145_v18 }
0x3007   :  { %v4121_v21 = vadd.f32 %v4120_v31, %v4119_v38  ;;  %v4078_v1 = vmul.f32 %v7564_v46, %v3950_v62 }
0x3008   :  { %v4070_v63 = vmul.f32 %v7233_v23, %v3942_v40 }
0x3009   :  { %v3903_v47 = vpop.xlane.xlu0 %3902  ;;  %v4123_v3 = vadd.f32 %v4122_v59, %v4121_v21 }
0x300a   :  { %v4124_v32 = vsel %vm4080_vm6, %v4070_v63, 0.0  ;;  %v3943_v44 = vsub.f32 %v3679_v52, %v3903_v47  ;;  %v4140_v52 = vsel %vm4080_vm6, %v4078_v1, 0.0 }
0x300b   :  { %v4125_v30 = vadd.f32 %v4124_v32, %v4123_v3 }
0x300c   :  { %v4071_v57 = vmul.f32 %v7243_v61, %v3943_v44 }
0x300d   :  { %v3907_v23 = vpop.xlane.xlu0 %3906 }
0x300e   :  { %v4126_v34 = vsel %vm4080_vm6, %v4071_v57, 0.0  ;;  %v3945_v48 = vsub.f32 %v3683_v20, %v3907_v23 }
0x300f   :  { %v4127_v42 = vadd.f32 %v4126_v34, %v4125_v30 }
0x3010   :  { %v4073_v8 = vmul.f32 %v7561_v10, %v3945_v48 }
0x3011   :  { %v4129_v61 = vadd.f32 %v4128_v51, %v4127_v42  ;;  %v3911_v17 = vpop.xlane.xlu0 %3910 }
0x3012   :  { %v4130_v14 = vsel %vm4080_vm6, %v4073_v8, 0.0  ;;  %v3947_v35 = vsub.f32 %v3687_v15, %v3911_v17 }
0x3013   :  { %v4131_v9 = vadd.f32 %v4130_v14, %v4129_v61 }
0x3014   :  { %v4075_v41 = vmul.f32 %v7563_v55, %v3947_v35 }
0x3015   :  { %v4133_v7 = vadd.f32 %v4132_v29, %v4131_v9  ;;  %v3915_v36 = vpop.xlane.xlu0 %3914 }
0x3016   :  { %v4134_v24 = vsel %vm4080_vm6, %v4075_v41, 0.0  ;;  %v3949_v26 = vsub.f32 %v3691_v6, %v3915_v36 }
0x3017   :  { %v4135_v2 = vadd.f32 %v4134_v24, %v4133_v7 }
0x3018   :  { %v4077_v0 = vmul.f32 %v7565_v37, %v3949_v26 }
0x3019   :  { %v4137_v5 = vadd.f32 %v4136_v13, %v4135_v2  ;;  %v3919_v38 = vpop.xlane.xlu0 %3918 }
0x301a   :  { %v4138_v40 = vsel %vm4080_vm6, %v4077_v0, 0.0  ;;  %v3951_v27 = vsub.f32 %v3695_v16, %v3919_v38 }
0x301b   :  { %v4139_v31 = vadd.f32 %v4138_v40, %v4137_v5 }
0x301c   :  { %v4079_v21 = vmul.f32 %v7566_v43, %v3951_v27 }
0x301d   :  { %v4141_v63 = vadd.f32 %v4140_v52, %v4139_v31  ;;  %v4217_v47 = vpop.xlane.xlu0 %4216 }
0x301e   :  { %v4142_v54 = vsel %vm4080_vm6, %v4079_v21, 0.0  ;;  %v4218_v25 = vrot.slane %v4217_v47, 4 }
0x301f   :  { %v4143_v59 = vadd.f32 %v4142_v54, %v4141_v63 }
0x3020   :  { %v4219_v3 = vadd.f32 %v4218_v25, %v4217_v47 }
0x3021   :  { %4144 = vadd.xlane.f32.xlu1 %v4143_v59 }
0x3022   :  { %v4220_v32 = vrot.slane %v4219_v3, 2 }
0x3024   :  { %v4221_v39 = vadd.f32 %v4220_v32, %v4219_v3 }
0x3026   :  { %v4222_v57 = vrot.slane %v4221_v39, 1 }
0x3028   :  { %v4223_v23 = vadd.f32 %v4222_v57, %v4221_v39 }
0x30aa   :  { %v4145_v44 = vpop.xlane.xlu1 %4144 }
0x30ab   :  { %v4146_v58 = vrot.slane %v4145_v44, 4 }
0x30ad   :  { %v4147_v28 = vadd.f32 %v4146_v58, %v4145_v44 }
0x30af   :  { %v4148_v56 = vrot.slane %v4147_v28, 2 }
0x30b1   :  { %v4149_v19 = vadd.f32 %v4148_v56, %v4147_v28 }
0x30b3   :  { %v4150_v20 = vrot.slane %v4149_v19, 1 }
0x30b5   :  { %v4151_v30 = vadd.f32 %v4150_v20, %v4149_v19 }
0x30b7   :  { %4569 = vpush %v4151_v30 }
0x30b8   :  { %4571 = vpush %v4223_v23 }
0x30e8   :  { %s4570_s6 = spop %4569 }
0x30e9   :  { %s4572_s2 = spop %4571 }
0x30ea   :  { %s4225_s20 = smax.f32 %s5198_s5, %s4572_s2 }
0x30eb   :  { %v4226_v22 = vstv %s4225_s20 }
0x30ec   :  { %5146 = vrcp.f32 %v4226_v22 }
0x30f9   :  { %v5147_v34 = vpop.eup %5146 }
0x30fa   :  { %4573 = vpush %v5147_v34 }
0x312b   :  { %s4574_s21 = spop %4573 }
0x312c   :  { %s4229_s22 = smul.f32 %s4574_s21, %s4570_s6 }
0x312e   :  { %4231 = sst [smem:[#allocation4]] %s4229_s22 }
0x312f   :  { %4241 = dma.smem_to_hbm %s5199_s23, 16, %s7458_s8, [#allocation5]  }
0x3130   :  { %5193 = dma.done.wait [#allocation5], 16  }
0x3131   :  { %5194 = vsyncadd [#allocation5], 4294967280 }
0x3132   :  { %4247 = sfence }
0x3133   :  { %4248 = vsyncpa [#allocation5], 1 }

</bundles_post_ra>
